<compile_context>
chip_gen: v6e
topology: v6e:2x2x1
jax: 0.10.0
libtpu: 0.0.40
codegen_flags: <defaults>
</compile_context>

<pallas_src>
import numpy as np
import jax
import jax.numpy as jnp
from jax import lax
from jax.experimental import pallas as pl
from jax.experimental.pallas import tpu as pltpu


# ---------------------------------------------------------------------------
# Network geometry (the PyTorch module's fc layers are sized for 64x64 input).
# ---------------------------------------------------------------------------
H_IN = W_IN = 64
C_IN = 4
S2D = 4                         # conv1 stride -> space-to-depth block factor
GB = H_IN // S2D                # 16 s2d blocks per side
C_S2D = S2D * S2D * C_IN        # 64 channels after space-to-depth
O1 = (H_IN - 8) // 4 + 1        # 15   conv1 output side
O2 = (O1 - 4) // 2 + 1          # 6    conv2 output side
O3 = (O2 - 3) // 1 + 1          # 4    conv3 output side
FC_SIZE = 64 * O3 * O3          # 1024


# ---------------------------------------------------------------------------
# The fused kernel: one image per grid step, everything stays on-chip.
# ---------------------------------------------------------------------------
def _net_kernel(xs_ref,
                g1_ref, w1_ref, b1_ref,
                g2_ref, w2_ref, b2_ref,
                g3_ref, w3_ref, b3_ref,
                wf1_ref, bf1_ref, wf2_ref, bf2_ref,
                o_ref, flat_ref):
    x = xs_ref[0]                                              # [256, 64] bf16

    # conv1 (8x8, stride 4) on the space-to-depth input -> 2x2 block taps.
    acc = jnp.zeros((O1 * O1, 32), jnp.float32)
    for t in range(4):
        rows = jnp.dot(g1_ref[t], x, preferred_element_type=jnp.float32)
        acc = acc + jnp.dot(rows.astype(jnp.bfloat16), w1_ref[t],
                            preferred_element_type=jnp.float32)
    c1 = jnp.maximum(acc + b1_ref[...], 0.0).astype(jnp.bfloat16)   # [225, 32]

    # conv2 (4x4, stride 2): 16 taps.
    acc = jnp.zeros((O2 * O2, 64), jnp.float32)
    for t in range(16):
        rows = jnp.dot(g2_ref[t], c1, preferred_element_type=jnp.float32)
        acc = acc + jnp.dot(rows.astype(jnp.bfloat16), w2_ref[t],
                            preferred_element_type=jnp.float32)
    c2 = jnp.maximum(acc + b2_ref[...], 0.0).astype(jnp.bfloat16)   # [36, 64]

    # conv3 (3x3, stride 1): 9 taps.
    acc = jnp.zeros((O3 * O3, 64), jnp.float32)
    for t in range(9):
        rows = jnp.dot(g3_ref[t], c2, preferred_element_type=jnp.float32)
        acc = acc + jnp.dot(rows.astype(jnp.bfloat16), w3_ref[t],
                            preferred_element_type=jnp.float32)
    c3 = jnp.maximum(acc + b3_ref[...], 0.0)                         # [16, 64] f32

    # Flatten (spatial, channel) -> [1, 1024] via static stores into VMEM
    # scratch (avoids a sublane->lane reshape); fc1 rows were pre-permuted to
    # match this order.
    for p in range(O3 * O3):
        flat_ref[:, 64 * p:64 * (p + 1)] = c3[p:p + 1, :]
    flat = flat_ref[...].astype(jnp.bfloat16)                        # [1, 1024]

    # Fused fc1 + relu + fc2; the hidden [1,512] never leaves the chip.
    h = jnp.dot(flat, wf1_ref[...], preferred_element_type=jnp.float32)
    h = jnp.maximum(h + bf1_ref[...], 0.0).astype(jnp.bfloat16)
    q = jnp.dot(h, wf2_ref[...], preferred_element_type=jnp.float32) + bf2_ref[...]
    o_ref[0, :, :] = q


# ---------------------------------------------------------------------------
# Wrapper: input relayout + single pallas_call.
# ---------------------------------------------------------------------------
def _s2d_input(state_t):
    """[B,4,64,64] f32 NCHW -> stride-4 space-to-depth, flattened [B,256,64] bf16."""
    x = jnp.transpose(state_t.astype(jnp.bfloat16), (0, 2, 3, 1))   # NHWC
    B = x.shape[0]
    x = x.reshape(B, GB, S2D, GB, S2D, C_IN)
    x = jnp.transpose(x, (0, 1, 3, 2, 4, 5))                        # [B,16,16,4,4,4]
    return x.reshape(B, GB * GB, C_S2D)


def _const_spec(arr):
    nd = arr.ndim
    return pl.BlockSpec(arr.shape, lambda i, _nd=nd: (0,) * _nd)


def network_forward(kparams, state_t):
    B = state_t.shape[0]
    n_actions = kparams["wf2"].shape[1]
    xs = _s2d_input(state_t)                                        # [B,256,64] bf16

    const_names = ("g1", "w1", "b1", "g2", "w2", "b2",
                   "g3", "w3", "b3", "wf1", "bf1", "wf2", "bf2")
    consts = [kparams[k] for k in const_names]

    in_specs = [pl.BlockSpec((1, GB * GB, C_S2D), lambda i: (i, 0, 0))]
    in_specs += [_const_spec(c) for c in consts]

    # Use both v7x TensorCores only when there is enough batch to pay for it.
    semantics = ("parallel",) if B >= 4 else ("arbitrary",)

    out = pl.pallas_call(
        _net_kernel,
        out_shape=jax.ShapeDtypeStruct((B, 1, n_actions), jnp.float32),
        grid_spec=pltpu.PrefetchScalarGridSpec(
            num_scalar_prefetch=0,
            grid=(B,),
            in_specs=in_specs,
            out_specs=pl.BlockSpec((1, 1, n_actions), lambda i: (i, 0, 0)),
            scratch_shapes=[pltpu.VMEM((1, FC_SIZE), jnp.float32)],
        ),
        compiler_params=pltpu.CompilerParams(
            dimension_semantics=semantics,
            vmem_limit_bytes=32 << 20,      # safe on v5e/v6e/v7x; footprint ~3 MiB
        ),
    )(xs, *consts)
    return out.reshape(B, n_actions)


# ---------------------------------------------------------------------------
# Parameters: PyTorch-layout init, then a one-time conversion to kernel layout.
# ---------------------------------------------------------------------------
def init_params_torch_layout(key, n_actions):
    def _u(k, shape, fan_in):
        bound = 1.0 / np.sqrt(fan_in)
        return jax.random.uniform(k, shape, jnp.float32, -bound, bound)

    ks = jax.random.split(key, 10)
    return {
        "conv1_w": _u(ks[0], (32, 4, 8, 8), 4 * 8 * 8),
        "conv1_b": _u(ks[1], (32,), 4 * 8 * 8),
        "conv2_w": _u(ks[2], (64, 32, 4, 4), 32 * 4 * 4),
        "conv2_b": _u(ks[3], (64,), 32 * 4 * 4),
        "conv3_w": _u(ks[4], (64, 64, 3, 3), 64 * 3 * 3),
        "conv3_b": _u(ks[5], (64,), 64 * 3 * 3),
        "fc1_w": _u(ks[6], (512, FC_SIZE), FC_SIZE),
        "fc1_b": _u(ks[7], (512,), FC_SIZE),
        "fc2_w": _u(ks[8], (n_actions, 512), 512),
        "fc2_b": _u(ks[9], (n_actions,), 512),
    }


def _conv_gather_mats(oh_n, ow_n, kh, kw, stride, in_h, in_w):
    """0/1 row-gather matrices: g[tap, out_pos, in_pos] selecting the im2col row."""
    g = np.zeros((kh * kw, oh_n * ow_n, in_h * in_w), np.float32)
    for i in range(kh):
        for j in range(kw):
            for oh in range(oh_n):
                for ow in range(ow_n):
                    g[i * kw + j, oh * ow_n + ow,
                      in_w * (stride * oh + i) + (stride * ow + j)] = 1.0
    return g


def prepare_params(tp, n_actions):
    bf = jnp.bfloat16
    # conv1 weights regrouped to match the stride-4 space-to-depth input:
    # tap = (block_i, block_j) in 2x2, K-dim order = (ri, rj, c).
    w1 = jnp.transpose(tp["conv1_w"], (2, 3, 1, 0))                 # [8,8,4,32]
    w1 = w1.reshape(2, S2D, 2, S2D, C_IN, 32)
    w1 = jnp.transpose(w1, (0, 2, 1, 3, 4, 5)).reshape(4, C_S2D, 32)
    w2 = jnp.transpose(tp["conv2_w"], (2, 3, 1, 0)).reshape(16, 32, 64)
    w3 = jnp.transpose(tp["conv3_w"], (2, 3, 1, 0)).reshape(9, 64, 64)
    # fc1 rows permuted from PyTorch's NCHW flatten (c*16 + p) to our (p*64 + c).
    wf1 = tp["fc1_w"].reshape(512, 64, O3 * O3)
    wf1 = jnp.transpose(wf1, (2, 1, 0)).reshape(FC_SIZE, 512)
    return {
        "g1": jnp.asarray(_conv_gather_mats(O1, O1, 2, 2, 1, GB, GB), bf),
        "w1": w1.astype(bf),
        "b1": tp["conv1_b"].reshape(1, 32).astype(jnp.float32),
        "g2": jnp.asarray(_conv_gather_mats(O2, O2, 4, 4, 2, O1, O1), bf),
        "w2": w2.astype(bf),
        "b2": tp["conv2_b"].reshape(1, 64).astype(jnp.float32),
        "g3": jnp.asarray(_conv_gather_mats(O3, O3, 3, 3, 1, O2, O2), bf),
        "w3": w3.astype(bf),
        "b3": tp["conv3_b"].reshape(1, 64).astype(jnp.float32),
        "wf1": wf1.astype(bf),
        "bf1": tp["fc1_b"].reshape(1, 512).astype(jnp.float32),
        "wf2": jnp.transpose(tp["fc2_w"]).astype(bf),
        "bf2": tp["fc2_b"].reshape(1, n_actions).astype(jnp.float32),
    }


# ---------------------------------------------------------------------------
# Plain-JAX f32 reference (mirrors the PyTorch module) for a tolerance check.
# ---------------------------------------------------------------------------
def reference_forward(tp, state_t):
    def conv(x, w, b, s):
        y = lax.conv_general_dilated(
            x, w, window_strides=(s, s), padding="VALID",
            dimension_numbers=("NCHW", "OIHW", "NCHW"))
        return jax.nn.relu(y + b.reshape(1, -1, 1, 1))

    x = conv(state_t, tp["conv1_w"], tp["conv1_b"], 4)
    x = conv(x, tp["conv2_w"], tp["conv2_b"], 2)
    x = conv(x, tp["conv3_w"], tp["conv3_b"], 1)
    x = x.reshape(x.shape[0], -1)
    x = jax.nn.relu(x @ tp["fc1_w"].T + tp["fc1_b"])
    return x @ tp["fc2_w"].T + tp["fc2_b"]


if __name__ == "__main__":
    n_actions = 6
    batch = 2

    key = jax.random.PRNGKey(0)
    pkey, xkey = jax.random.split(key)
    torch_params = init_params_torch_layout(pkey, n_actions)
    kparams = prepare_params(torch_params, n_actions)
    state_t = jax.random.uniform(xkey, (batch, 4, H_IN, W_IN), jnp.float32)

    fwd = jax.jit(network_forward)
    q = fwd(kparams, state_t)
    jax.block_until_ready(q)

    assert q.shape == (batch, n_actions), q.shape
    assert bool(jnp.all(jnp.isfinite(q)))

    # bf16 kernel vs f32 reference: loose tolerance (expected deviation ~1e-2).
    q_ref = reference_forward(torch_params, state_t)
    max_err = float(jnp.max(jnp.abs(q.astype(jnp.float32) - q_ref)))
    assert max_err < 0.15, f"max |q - q_ref| = {max_err}"

    print("KERNEL_OK")
</pallas_src>

<mosaic_0001>
module attributes {stable_mosaic.version = 11 : i64} {
  func.func @_net_kernel(%arg0: i32, %arg1: memref<1x256x64xbf16, #tpu.memory_space<vmem>>, %arg2: memref<4x225x256xbf16, #tpu.memory_space<vmem>>, %arg3: memref<4x64x32xbf16, #tpu.memory_space<vmem>>, %arg4: memref<1x32xf32, #tpu.memory_space<vmem>>, %arg5: memref<16x36x225xbf16, #tpu.memory_space<vmem>>, %arg6: memref<16x32x64xbf16, #tpu.memory_space<vmem>>, %arg7: memref<1x64xf32, #tpu.memory_space<vmem>>, %arg8: memref<9x16x36xbf16, #tpu.memory_space<vmem>>, %arg9: memref<9x64x64xbf16, #tpu.memory_space<vmem>>, %arg10: memref<1x64xf32, #tpu.memory_space<vmem>>, %arg11: memref<1024x512xbf16, #tpu.memory_space<vmem>>, %arg12: memref<1x512xf32, #tpu.memory_space<vmem>>, %arg13: memref<512x6xbf16, #tpu.memory_space<vmem>>, %arg14: memref<1x6xf32, #tpu.memory_space<vmem>>, %arg15: memref<1x1x6xf32, #tpu.memory_space<vmem>>, %arg16: memref<1x1024xf32, #tpu.memory_space<vmem>>) attributes {dimension_semantics = [#tpu.dimension_semantics<arbitrary>], iteration_bounds = array<i64: 2>, scalar_prefetch = 0 : i64, scratch_operands = 1 : i64, tpu.core_type = #tpu.core_type<tc>, window_params = [{transform_indices = @transform_0, window_bounds = array<i64: 1, 256, 64>}, {pipeline_mode = #tpu.pipeline_mode<synchronous>, transform_indices = @transform_1, window_bounds = array<i64: 4, 225, 256>}, {pipeline_mode = #tpu.pipeline_mode<synchronous>, transform_indices = @transform_2, window_bounds = array<i64: 4, 64, 32>}, {pipeline_mode = #tpu.pipeline_mode<synchronous>, transform_indices = @transform_3, window_bounds = array<i64: 1, 32>}, {pipeline_mode = #tpu.pipeline_mode<synchronous>, transform_indices = @transform_4, window_bounds = array<i64: 16, 36, 225>}, {pipeline_mode = #tpu.pipeline_mode<synchronous>, transform_indices = @transform_5, window_bounds = array<i64: 16, 32, 64>}, {pipeline_mode = #tpu.pipeline_mode<synchronous>, transform_indices = @transform_6, window_bounds = array<i64: 1, 64>}, {pipeline_mode = #tpu.pipeline_mode<synchronous>, transform_indices = @transform_7, window_bounds = array<i64: 9, 16, 36>}, {pipeline_mode = #tpu.pipeline_mode<synchronous>, transform_indices = @transform_8, window_bounds = array<i64: 9, 64, 64>}, {pipeline_mode = #tpu.pipeline_mode<synchronous>, transform_indices = @transform_9, window_bounds = array<i64: 1, 64>}, {pipeline_mode = #tpu.pipeline_mode<synchronous>, transform_indices = @transform_10, window_bounds = array<i64: 1024, 512>}, {pipeline_mode = #tpu.pipeline_mode<synchronous>, transform_indices = @transform_11, window_bounds = array<i64: 1, 512>}, {pipeline_mode = #tpu.pipeline_mode<synchronous>, transform_indices = @transform_12, window_bounds = array<i64: 512, 6>}, {pipeline_mode = #tpu.pipeline_mode<synchronous>, transform_indices = @transform_13, window_bounds = array<i64: 1, 6>}, {transform_indices = @transform_14, window_bounds = array<i64: 1, 1, 6>}]} {
    %c0 = arith.constant 0 : index
    %c0_0 = arith.constant 0 : index
    %c0_1 = arith.constant 0 : index
    %0 = vector.load %arg1[%c0, %c0_0, %c0_1] : memref<1x256x64xbf16, #tpu.memory_space<vmem>>, vector<1x256x64xbf16>
    %1 = vector.shape_cast %0 : vector<1x256x64xbf16> to vector<256x64xbf16>
    %cst = arith.constant 0.000000e+00 : f32
    %2 = vector.broadcast %cst : f32 to vector<225x32xf32>
    %c0_2 = arith.constant 0 : index
    %c0_3 = arith.constant 0 : index
    %c0_4 = arith.constant 0 : index
    %3 = vector.load %arg2[%c0_2, %c0_3, %c0_4] : memref<4x225x256xbf16, #tpu.memory_space<vmem>>, vector<1x225x256xbf16>
    %4 = vector.shape_cast %3 : vector<1x225x256xbf16> to vector<225x256xbf16>
    %cst_5 = arith.constant dense<0.000000e+00> : vector<225x64xf32>
    %5 = tpu.matmul %4, %1, %cst_5 {dimension_numbers = #tpu.dot_dimension_numbers<[1], [0], [0], [1], [0, 0, 1, 1], [], []>} : vector<225x256xbf16>, vector<256x64xbf16>, vector<225x64xf32> -> vector<225x64xf32>
    %6 = arith.truncf %5 : vector<225x64xf32> to vector<225x64xbf16>
    %c0_6 = arith.constant 0 : index
    %c0_7 = arith.constant 0 : index
    %c0_8 = arith.constant 0 : index
    %7 = vector.load %arg3[%c0_6, %c0_7, %c0_8] : memref<4x64x32xbf16, #tpu.memory_space<vmem>>, vector<1x64x32xbf16>
    %8 = vector.shape_cast %7 : vector<1x64x32xbf16> to vector<64x32xbf16>
    %cst_9 = arith.constant dense<0.000000e+00> : vector<225x32xf32>
    %9 = tpu.matmul %6, %8, %cst_9 {dimension_numbers = #tpu.dot_dimension_numbers<[1], [0], [0], [1], [0, 0, 1, 1], [], []>} : vector<225x64xbf16>, vector<64x32xbf16>, vector<225x32xf32> -> vector<225x32xf32>
    %10 = arith.addf %2, %9 : vector<225x32xf32>
    %c1 = arith.constant 1 : index
    %c0_10 = arith.constant 0 : index
    %c0_11 = arith.constant 0 : index
    %11 = vector.load %arg2[%c1, %c0_10, %c0_11] : memref<4x225x256xbf16, #tpu.memory_space<vmem>>, vector<1x225x256xbf16>
    %12 = vector.shape_cast %11 : vector<1x225x256xbf16> to vector<225x256xbf16>
    %cst_12 = arith.constant dense<0.000000e+00> : vector<225x64xf32>
    %13 = tpu.matmul %12, %1, %cst_12 {dimension_numbers = #tpu.dot_dimension_numbers<[1], [0], [0], [1], [0, 0, 1, 1], [], []>} : vector<225x256xbf16>, vector<256x64xbf16>, vector<225x64xf32> -> vector<225x64xf32>
    %14 = arith.truncf %13 : vector<225x64xf32> to vector<225x64xbf16>
    %c1_13 = arith.constant 1 : index
    %c0_14 = arith.constant 0 : index
    %c0_15 = arith.constant 0 : index
    %15 = vector.load %arg3[%c1_13, %c0_14, %c0_15] : memref<4x64x32xbf16, #tpu.memory_space<vmem>>, vector<1x64x32xbf16>
    %16 = vector.shape_cast %15 : vector<1x64x32xbf16> to vector<64x32xbf16>
    %cst_16 = arith.constant dense<0.000000e+00> : vector<225x32xf32>
    %17 = tpu.matmul %14, %16, %cst_16 {dimension_numbers = #tpu.dot_dimension_numbers<[1], [0], [0], [1], [0, 0, 1, 1], [], []>} : vector<225x64xbf16>, vector<64x32xbf16>, vector<225x32xf32> -> vector<225x32xf32>
    %18 = arith.addf %10, %17 : vector<225x32xf32>
    %c2 = arith.constant 2 : index
    %c0_17 = arith.constant 0 : index
    %c0_18 = arith.constant 0 : index
    %19 = vector.load %arg2[%c2, %c0_17, %c0_18] : memref<4x225x256xbf16, #tpu.memory_space<vmem>>, vector<1x225x256xbf16>
    %20 = vector.shape_cast %19 : vector<1x225x256xbf16> to vector<225x256xbf16>
    %cst_19 = arith.constant dense<0.000000e+00> : vector<225x64xf32>
    %21 = tpu.matmul %20, %1, %cst_19 {dimension_numbers = #tpu.dot_dimension_numbers<[1], [0], [0], [1], [0, 0, 1, 1], [], []>} : vector<225x256xbf16>, vector<256x64xbf16>, vector<225x64xf32> -> vector<225x64xf32>
    %22 = arith.truncf %21 : vector<225x64xf32> to vector<225x64xbf16>
    %c2_20 = arith.constant 2 : index
    %c0_21 = arith.constant 0 : index
    %c0_22 = arith.constant 0 : index
    %23 = vector.load %arg3[%c2_20, %c0_21, %c0_22] : memref<4x64x32xbf16, #tpu.memory_space<vmem>>, vector<1x64x32xbf16>
    %24 = vector.shape_cast %23 : vector<1x64x32xbf16> to vector<64x32xbf16>
    %cst_23 = arith.constant dense<0.000000e+00> : vector<225x32xf32>
    %25 = tpu.matmul %22, %24, %cst_23 {dimension_numbers = #tpu.dot_dimension_numbers<[1], [0], [0], [1], [0, 0, 1, 1], [], []>} : vector<225x64xbf16>, vector<64x32xbf16>, vector<225x32xf32> -> vector<225x32xf32>
    %26 = arith.addf %18, %25 : vector<225x32xf32>
    %c3 = arith.constant 3 : index
    %c0_24 = arith.constant 0 : index
    %c0_25 = arith.constant 0 : index
    %27 = vector.load %arg2[%c3, %c0_24, %c0_25] : memref<4x225x256xbf16, #tpu.memory_space<vmem>>, vector<1x225x256xbf16>
    %28 = vector.shape_cast %27 : vector<1x225x256xbf16> to vector<225x256xbf16>
    %cst_26 = arith.constant dense<0.000000e+00> : vector<225x64xf32>
    %29 = tpu.matmul %28, %1, %cst_26 {dimension_numbers = #tpu.dot_dimension_numbers<[1], [0], [0], [1], [0, 0, 1, 1], [], []>} : vector<225x256xbf16>, vector<256x64xbf16>, vector<225x64xf32> -> vector<225x64xf32>
    %30 = arith.truncf %29 : vector<225x64xf32> to vector<225x64xbf16>
    %c3_27 = arith.constant 3 : index
    %c0_28 = arith.constant 0 : index
    %c0_29 = arith.constant 0 : index
    %31 = vector.load %arg3[%c3_27, %c0_28, %c0_29] : memref<4x64x32xbf16, #tpu.memory_space<vmem>>, vector<1x64x32xbf16>
    %32 = vector.shape_cast %31 : vector<1x64x32xbf16> to vector<64x32xbf16>
    %cst_30 = arith.constant dense<0.000000e+00> : vector<225x32xf32>
    %33 = tpu.matmul %30, %32, %cst_30 {dimension_numbers = #tpu.dot_dimension_numbers<[1], [0], [0], [1], [0, 0, 1, 1], [], []>} : vector<225x64xbf16>, vector<64x32xbf16>, vector<225x32xf32> -> vector<225x32xf32>
    %34 = arith.addf %26, %33 : vector<225x32xf32>
    %c0_31 = arith.constant 0 : index
    %c0_32 = arith.constant 0 : index
    %35 = vector.load %arg4[%c0_31, %c0_32] : memref<1x32xf32, #tpu.memory_space<vmem>>, vector<1x32xf32>
    %36 = vector.broadcast %35 : vector<1x32xf32> to vector<225x32xf32>
    %37 = arith.addf %34, %36 : vector<225x32xf32>
    %cst_33 = arith.constant 0.000000e+00 : f32
    %38 = vector.broadcast %cst_33 : f32 to vector<225x32xf32>
    %39 = arith.maximumf %37, %38 : vector<225x32xf32>
    %40 = arith.truncf %39 : vector<225x32xf32> to vector<225x32xbf16>
    %cst_34 = arith.constant 0.000000e+00 : f32
    %41 = vector.broadcast %cst_34 : f32 to vector<36x64xf32>
    %c0_35 = arith.constant 0 : index
    %c0_36 = arith.constant 0 : index
    %c0_37 = arith.constant 0 : index
    %42 = vector.load %arg5[%c0_35, %c0_36, %c0_37] : memref<16x36x225xbf16, #tpu.memory_space<vmem>>, vector<1x36x225xbf16>
    %43 = vector.shape_cast %42 : vector<1x36x225xbf16> to vector<36x225xbf16>
    %cst_38 = arith.constant dense<0.000000e+00> : vector<36x32xf32>
    %44 = tpu.matmul %43, %40, %cst_38 {dimension_numbers = #tpu.dot_dimension_numbers<[1], [0], [0], [1], [0, 0, 1, 1], [], []>} : vector<36x225xbf16>, vector<225x32xbf16>, vector<36x32xf32> -> vector<36x32xf32>
    %45 = arith.truncf %44 : vector<36x32xf32> to vector<36x32xbf16>
    %c0_39 = arith.constant 0 : index
    %c0_40 = arith.constant 0 : index
    %c0_41 = arith.constant 0 : index
    %46 = vector.load %arg6[%c0_39, %c0_40, %c0_41] : memref<16x32x64xbf16, #tpu.memory_space<vmem>>, vector<1x32x64xbf16>
    %47 = vector.shape_cast %46 : vector<1x32x64xbf16> to vector<32x64xbf16>
    %cst_42 = arith.constant dense<0.000000e+00> : vector<36x64xf32>
    %48 = tpu.matmul %45, %47, %cst_42 {dimension_numbers = #tpu.dot_dimension_numbers<[1], [0], [0], [1], [0, 0, 1, 1], [], []>} : vector<36x32xbf16>, vector<32x64xbf16>, vector<36x64xf32> -> vector<36x64xf32>
    %49 = arith.addf %41, %48 : vector<36x64xf32>
    %c1_43 = arith.constant 1 : index
    %c0_44 = arith.constant 0 : index
    %c0_45 = arith.constant 0 : index
    %50 = vector.load %arg5[%c1_43, %c0_44, %c0_45] : memref<16x36x225xbf16, #tpu.memory_space<vmem>>, vector<1x36x225xbf16>
    %51 = vector.shape_cast %50 : vector<1x36x225xbf16> to vector<36x225xbf16>
    %cst_46 = arith.constant dense<0.000000e+00> : vector<36x32xf32>
    %52 = tpu.matmul %51, %40, %cst_46 {dimension_numbers = #tpu.dot_dimension_numbers<[1], [0], [0], [1], [0, 0, 1, 1], [], []>} : vector<36x225xbf16>, vector<225x32xbf16>, vector<36x32xf32> -> vector<36x32xf32>
    %53 = arith.truncf %52 : vector<36x32xf32> to vector<36x32xbf16>
    %c1_47 = arith.constant 1 : index
    %c0_48 = arith.constant 0 : index
    %c0_49 = arith.constant 0 : index
    %54 = vector.load %arg6[%c1_47, %c0_48, %c0_49] : memref<16x32x64xbf16, #tpu.memory_space<vmem>>, vector<1x32x64xbf16>
    %55 = vector.shape_cast %54 : vector<1x32x64xbf16> to vector<32x64xbf16>
    %cst_50 = arith.constant dense<0.000000e+00> : vector<36x64xf32>
    %56 = tpu.matmul %53, %55, %cst_50 {dimension_numbers = #tpu.dot_dimension_numbers<[1], [0], [0], [1], [0, 0, 1, 1], [], []>} : vector<36x32xbf16>, vector<32x64xbf16>, vector<36x64xf32> -> vector<36x64xf32>
    %57 = arith.addf %49, %56 : vector<36x64xf32>
    %c2_51 = arith.constant 2 : index
    %c0_52 = arith.constant 0 : index
    %c0_53 = arith.constant 0 : index
    %58 = vector.load %arg5[%c2_51, %c0_52, %c0_53] : memref<16x36x225xbf16, #tpu.memory_space<vmem>>, vector<1x36x225xbf16>
    %59 = vector.shape_cast %58 : vector<1x36x225xbf16> to vector<36x225xbf16>
    %cst_54 = arith.constant dense<0.000000e+00> : vector<36x32xf32>
    %60 = tpu.matmul %59, %40, %cst_54 {dimension_numbers = #tpu.dot_dimension_numbers<[1], [0], [0], [1], [0, 0, 1, 1], [], []>} : vector<36x225xbf16>, vector<225x32xbf16>, vector<36x32xf32> -> vector<36x32xf32>
    %61 = arith.truncf %60 : vector<36x32xf32> to vector<36x32xbf16>
    %c2_55 = arith.constant 2 : index
    %c0_56 = arith.constant 0 : index
    %c0_57 = arith.constant 0 : index
    %62 = vector.load %arg6[%c2_55, %c0_56, %c0_57] : memref<16x32x64xbf16, #tpu.memory_space<vmem>>, vector<1x32x64xbf16>
    %63 = vector.shape_cast %62 : vector<1x32x64xbf16> to vector<32x64xbf16>
    %cst_58 = arith.constant dense<0.000000e+00> : vector<36x64xf32>
    %64 = tpu.matmul %61, %63, %cst_58 {dimension_numbers = #tpu.dot_dimension_numbers<[1], [0], [0], [1], [0, 0, 1, 1], [], []>} : vector<36x32xbf16>, vector<32x64xbf16>, vector<36x64xf32> -> vector<36x64xf32>
    %65 = arith.addf %57, %64 : vector<36x64xf32>
    %c3_59 = arith.constant 3 : index
    %c0_60 = arith.constant 0 : index
    %c0_61 = arith.constant 0 : index
    %66 = vector.load %arg5[%c3_59, %c0_60, %c0_61] : memref<16x36x225xbf16, #tpu.memory_space<vmem>>, vector<1x36x225xbf16>
    %67 = vector.shape_cast %66 : vector<1x36x225xbf16> to vector<36x225xbf16>
    %cst_62 = arith.constant dense<0.000000e+00> : vector<36x32xf32>
    %68 = tpu.matmul %67, %40, %cst_62 {dimension_numbers = #tpu.dot_dimension_numbers<[1], [0], [0], [1], [0, 0, 1, 1], [], []>} : vector<36x225xbf16>, vector<225x32xbf16>, vector<36x32xf32> -> vector<36x32xf32>
    %69 = arith.truncf %68 : vector<36x32xf32> to vector<36x32xbf16>
    %c3_63 = arith.constant 3 : index
    %c0_64 = arith.constant 0 : index
    %c0_65 = arith.constant 0 : index
    %70 = vector.load %arg6[%c3_63, %c0_64, %c0_65] : memref<16x32x64xbf16, #tpu.memory_space<vmem>>, vector<1x32x64xbf16>
    %71 = vector.shape_cast %70 : vector<1x32x64xbf16> to vector<32x64xbf16>
    %cst_66 = arith.constant dense<0.000000e+00> : vector<36x64xf32>
    %72 = tpu.matmul %69, %71, %cst_66 {dimension_numbers = #tpu.dot_dimension_numbers<[1], [0], [0], [1], [0, 0, 1, 1], [], []>} : vector<36x32xbf16>, vector<32x64xbf16>, vector<36x64xf32> -> vector<36x64xf32>
    %73 = arith.addf %65, %72 : vector<36x64xf32>
    %c4 = arith.constant 4 : index
    %c0_67 = arith.constant 0 : index
    %c0_68 = arith.constant 0 : index
    %74 = vector.load %arg5[%c4, %c0_67, %c0_68] : memref<16x36x225xbf16, #tpu.memory_space<vmem>>, vector<1x36x225xbf16>
    %75 = vector.shape_cast %74 : vector<1x36x225xbf16> to vector<36x225xbf16>
    %cst_69 = arith.constant dense<0.000000e+00> : vector<36x32xf32>
    %76 = tpu.matmul %75, %40, %cst_69 {dimension_numbers = #tpu.dot_dimension_numbers<[1], [0], [0], [1], [0, 0, 1, 1], [], []>} : vector<36x225xbf16>, vector<225x32xbf16>, vector<36x32xf32> -> vector<36x32xf32>
    %77 = arith.truncf %76 : vector<36x32xf32> to vector<36x32xbf16>
    %c4_70 = arith.constant 4 : index
    %c0_71 = arith.constant 0 : index
    %c0_72 = arith.constant 0 : index
    %78 = vector.load %arg6[%c4_70, %c0_71, %c0_72] : memref<16x32x64xbf16, #tpu.memory_space<vmem>>, vector<1x32x64xbf16>
    %79 = vector.shape_cast %78 : vector<1x32x64xbf16> to vector<32x64xbf16>
    %cst_73 = arith.constant dense<0.000000e+00> : vector<36x64xf32>
    %80 = tpu.matmul %77, %79, %cst_73 {dimension_numbers = #tpu.dot_dimension_numbers<[1], [0], [0], [1], [0, 0, 1, 1], [], []>} : vector<36x32xbf16>, vector<32x64xbf16>, vector<36x64xf32> -> vector<36x64xf32>
    %81 = arith.addf %73, %80 : vector<36x64xf32>
    %c5 = arith.constant 5 : index
    %c0_74 = arith.constant 0 : index
    %c0_75 = arith.constant 0 : index
    %82 = vector.load %arg5[%c5, %c0_74, %c0_75] : memref<16x36x225xbf16, #tpu.memory_space<vmem>>, vector<1x36x225xbf16>
    %83 = vector.shape_cast %82 : vector<1x36x225xbf16> to vector<36x225xbf16>
    %cst_76 = arith.constant dense<0.000000e+00> : vector<36x32xf32>
    %84 = tpu.matmul %83, %40, %cst_76 {dimension_numbers = #tpu.dot_dimension_numbers<[1], [0], [0], [1], [0, 0, 1, 1], [], []>} : vector<36x225xbf16>, vector<225x32xbf16>, vector<36x32xf32> -> vector<36x32xf32>
    %85 = arith.truncf %84 : vector<36x32xf32> to vector<36x32xbf16>
    %c5_77 = arith.constant 5 : index
    %c0_78 = arith.constant 0 : index
    %c0_79 = arith.constant 0 : index
    %86 = vector.load %arg6[%c5_77, %c0_78, %c0_79] : memref<16x32x64xbf16, #tpu.memory_space<vmem>>, vector<1x32x64xbf16>
    %87 = vector.shape_cast %86 : vector<1x32x64xbf16> to vector<32x64xbf16>
    %cst_80 = arith.constant dense<0.000000e+00> : vector<36x64xf32>
    %88 = tpu.matmul %85, %87, %cst_80 {dimension_numbers = #tpu.dot_dimension_numbers<[1], [0], [0], [1], [0, 0, 1, 1], [], []>} : vector<36x32xbf16>, vector<32x64xbf16>, vector<36x64xf32> -> vector<36x64xf32>
    %89 = arith.addf %81, %88 : vector<36x64xf32>
    %c6 = arith.constant 6 : index
    %c0_81 = arith.constant 0 : index
    %c0_82 = arith.constant 0 : index
    %90 = vector.load %arg5[%c6, %c0_81, %c0_82] : memref<16x36x225xbf16, #tpu.memory_space<vmem>>, vector<1x36x225xbf16>
    %91 = vector.shape_cast %90 : vector<1x36x225xbf16> to vector<36x225xbf16>
    %cst_83 = arith.constant dense<0.000000e+00> : vector<36x32xf32>
    %92 = tpu.matmul %91, %40, %cst_83 {dimension_numbers = #tpu.dot_dimension_numbers<[1], [0], [0], [1], [0, 0, 1, 1], [], []>} : vector<36x225xbf16>, vector<225x32xbf16>, vector<36x32xf32> -> vector<36x32xf32>
    %93 = arith.truncf %92 : vector<36x32xf32> to vector<36x32xbf16>
    %c6_84 = arith.constant 6 : index
    %c0_85 = arith.constant 0 : index
    %c0_86 = arith.constant 0 : index
    %94 = vector.load %arg6[%c6_84, %c0_85, %c0_86] : memref<16x32x64xbf16, #tpu.memory_space<vmem>>, vector<1x32x64xbf16>
    %95 = vector.shape_cast %94 : vector<1x32x64xbf16> to vector<32x64xbf16>
    %cst_87 = arith.constant dense<0.000000e+00> : vector<36x64xf32>
    %96 = tpu.matmul %93, %95, %cst_87 {dimension_numbers = #tpu.dot_dimension_numbers<[1], [0], [0], [1], [0, 0, 1, 1], [], []>} : vector<36x32xbf16>, vector<32x64xbf16>, vector<36x64xf32> -> vector<36x64xf32>
    %97 = arith.addf %89, %96 : vector<36x64xf32>
    %c7 = arith.constant 7 : index
    %c0_88 = arith.constant 0 : index
    %c0_89 = arith.constant 0 : index
    %98 = vector.load %arg5[%c7, %c0_88, %c0_89] : memref<16x36x225xbf16, #tpu.memory_space<vmem>>, vector<1x36x225xbf16>
    %99 = vector.shape_cast %98 : vector<1x36x225xbf16> to vector<36x225xbf16>
    %cst_90 = arith.constant dense<0.000000e+00> : vector<36x32xf32>
    %100 = tpu.matmul %99, %40, %cst_90 {dimension_numbers = #tpu.dot_dimension_numbers<[1], [0], [0], [1], [0, 0, 1, 1], [], []>} : vector<36x225xbf16>, vector<225x32xbf16>, vector<36x32xf32> -> vector<36x32xf32>
    %101 = arith.truncf %100 : vector<36x32xf32> to vector<36x32xbf16>
    %c7_91 = arith.constant 7 : index
    %c0_92 = arith.constant 0 : index
    %c0_93 = arith.constant 0 : index
    %102 = vector.load %arg6[%c7_91, %c0_92, %c0_93] : memref<16x32x64xbf16, #tpu.memory_space<vmem>>, vector<1x32x64xbf16>
    %103 = vector.shape_cast %102 : vector<1x32x64xbf16> to vector<32x64xbf16>
    %cst_94 = arith.constant dense<0.000000e+00> : vector<36x64xf32>
    %104 = tpu.matmul %101, %103, %cst_94 {dimension_numbers = #tpu.dot_dimension_numbers<[1], [0], [0], [1], [0, 0, 1, 1], [], []>} : vector<36x32xbf16>, vector<32x64xbf16>, vector<36x64xf32> -> vector<36x64xf32>
    %105 = arith.addf %97, %104 : vector<36x64xf32>
    %c8 = arith.constant 8 : index
    %c0_95 = arith.constant 0 : index
    %c0_96 = arith.constant 0 : index
    %106 = vector.load %arg5[%c8, %c0_95, %c0_96] : memref<16x36x225xbf16, #tpu.memory_space<vmem>>, vector<1x36x225xbf16>
    %107 = vector.shape_cast %106 : vector<1x36x225xbf16> to vector<36x225xbf16>
    %cst_97 = arith.constant dense<0.000000e+00> : vector<36x32xf32>
    %108 = tpu.matmul %107, %40, %cst_97 {dimension_numbers = #tpu.dot_dimension_numbers<[1], [0], [0], [1], [0, 0, 1, 1], [], []>} : vector<36x225xbf16>, vector<225x32xbf16>, vector<36x32xf32> -> vector<36x32xf32>
    %109 = arith.truncf %108 : vector<36x32xf32> to vector<36x32xbf16>
    %c8_98 = arith.constant 8 : index
    %c0_99 = arith.constant 0 : index
    %c0_100 = arith.constant 0 : index
    %110 = vector.load %arg6[%c8_98, %c0_99, %c0_100] : memref<16x32x64xbf16, #tpu.memory_space<vmem>>, vector<1x32x64xbf16>
    %111 = vector.shape_cast %110 : vector<1x32x64xbf16> to vector<32x64xbf16>
    %cst_101 = arith.constant dense<0.000000e+00> : vector<36x64xf32>
    %112 = tpu.matmul %109, %111, %cst_101 {dimension_numbers = #tpu.dot_dimension_numbers<[1], [0], [0], [1], [0, 0, 1, 1], [], []>} : vector<36x32xbf16>, vector<32x64xbf16>, vector<36x64xf32> -> vector<36x64xf32>
    %113 = arith.addf %105, %112 : vector<36x64xf32>
    %c9 = arith.constant 9 : index
    %c0_102 = arith.constant 0 : index
    %c0_103 = arith.constant 0 : index
    %114 = vector.load %arg5[%c9, %c0_102, %c0_103] : memref<16x36x225xbf16, #tpu.memory_space<vmem>>, vector<1x36x225xbf16>
    %115 = vector.shape_cast %114 : vector<1x36x225xbf16> to vector<36x225xbf16>
    %cst_104 = arith.constant dense<0.000000e+00> : vector<36x32xf32>
    %116 = tpu.matmul %115, %40, %cst_104 {dimension_numbers = #tpu.dot_dimension_numbers<[1], [0], [0], [1], [0, 0, 1, 1], [], []>} : vector<36x225xbf16>, vector<225x32xbf16>, vector<36x32xf32> -> vector<36x32xf32>
    %117 = arith.truncf %116 : vector<36x32xf32> to vector<36x32xbf16>
    %c9_105 = arith.constant 9 : index
    %c0_106 = arith.constant 0 : index
    %c0_107 = arith.constant 0 : index
    %118 = vector.load %arg6[%c9_105, %c0_106, %c0_107] : memref<16x32x64xbf16, #tpu.memory_space<vmem>>, vector<1x32x64xbf16>
    %119 = vector.shape_cast %118 : vector<1x32x64xbf16> to vector<32x64xbf16>
    %cst_108 = arith.constant dense<0.000000e+00> : vector<36x64xf32>
    %120 = tpu.matmul %117, %119, %cst_108 {dimension_numbers = #tpu.dot_dimension_numbers<[1], [0], [0], [1], [0, 0, 1, 1], [], []>} : vector<36x32xbf16>, vector<32x64xbf16>, vector<36x64xf32> -> vector<36x64xf32>
    %121 = arith.addf %113, %120 : vector<36x64xf32>
    %c10 = arith.constant 10 : index
    %c0_109 = arith.constant 0 : index
    %c0_110 = arith.constant 0 : index
    %122 = vector.load %arg5[%c10, %c0_109, %c0_110] : memref<16x36x225xbf16, #tpu.memory_space<vmem>>, vector<1x36x225xbf16>
    %123 = vector.shape_cast %122 : vector<1x36x225xbf16> to vector<36x225xbf16>
    %cst_111 = arith.constant dense<0.000000e+00> : vector<36x32xf32>
    %124 = tpu.matmul %123, %40, %cst_111 {dimension_numbers = #tpu.dot_dimension_numbers<[1], [0], [0], [1], [0, 0, 1, 1], [], []>} : vector<36x225xbf16>, vector<225x32xbf16>, vector<36x32xf32> -> vector<36x32xf32>
    %125 = arith.truncf %124 : vector<36x32xf32> to vector<36x32xbf16>
    %c10_112 = arith.constant 10 : index
    %c0_113 = arith.constant 0 : index
    %c0_114 = arith.constant 0 : index
    %126 = vector.load %arg6[%c10_112, %c0_113, %c0_114] : memref<16x32x64xbf16, #tpu.memory_space<vmem>>, vector<1x32x64xbf16>
    %127 = vector.shape_cast %126 : vector<1x32x64xbf16> to vector<32x64xbf16>
    %cst_115 = arith.constant dense<0.000000e+00> : vector<36x64xf32>
    %128 = tpu.matmul %125, %127, %cst_115 {dimension_numbers = #tpu.dot_dimension_numbers<[1], [0], [0], [1], [0, 0, 1, 1], [], []>} : vector<36x32xbf16>, vector<32x64xbf16>, vector<36x64xf32> -> vector<36x64xf32>
    %129 = arith.addf %121, %128 : vector<36x64xf32>
    %c11 = arith.constant 11 : index
    %c0_116 = arith.constant 0 : index
    %c0_117 = arith.constant 0 : index
    %130 = vector.load %arg5[%c11, %c0_116, %c0_117] : memref<16x36x225xbf16, #tpu.memory_space<vmem>>, vector<1x36x225xbf16>
    %131 = vector.shape_cast %130 : vector<1x36x225xbf16> to vector<36x225xbf16>
    %cst_118 = arith.constant dense<0.000000e+00> : vector<36x32xf32>
    %132 = tpu.matmul %131, %40, %cst_118 {dimension_numbers = #tpu.dot_dimension_numbers<[1], [0], [0], [1], [0, 0, 1, 1], [], []>} : vector<36x225xbf16>, vector<225x32xbf16>, vector<36x32xf32> -> vector<36x32xf32>
    %133 = arith.truncf %132 : vector<36x32xf32> to vector<36x32xbf16>
    %c11_119 = arith.constant 11 : index
    %c0_120 = arith.constant 0 : index
    %c0_121 = arith.constant 0 : index
    %134 = vector.load %arg6[%c11_119, %c0_120, %c0_121] : memref<16x32x64xbf16, #tpu.memory_space<vmem>>, vector<1x32x64xbf16>
    %135 = vector.shape_cast %134 : vector<1x32x64xbf16> to vector<32x64xbf16>
    %cst_122 = arith.constant dense<0.000000e+00> : vector<36x64xf32>
    %136 = tpu.matmul %133, %135, %cst_122 {dimension_numbers = #tpu.dot_dimension_numbers<[1], [0], [0], [1], [0, 0, 1, 1], [], []>} : vector<36x32xbf16>, vector<32x64xbf16>, vector<36x64xf32> -> vector<36x64xf32>
    %137 = arith.addf %129, %136 : vector<36x64xf32>
    %c12 = arith.constant 12 : index
    %c0_123 = arith.constant 0 : index
    %c0_124 = arith.constant 0 : index
    %138 = vector.load %arg5[%c12, %c0_123, %c0_124] : memref<16x36x225xbf16, #tpu.memory_space<vmem>>, vector<1x36x225xbf16>
    %139 = vector.shape_cast %138 : vector<1x36x225xbf16> to vector<36x225xbf16>
    %cst_125 = arith.constant dense<0.000000e+00> : vector<36x32xf32>
    %140 = tpu.matmul %139, %40, %cst_125 {dimension_numbers = #tpu.dot_dimension_numbers<[1], [0], [0], [1], [0, 0, 1, 1], [], []>} : vector<36x225xbf16>, vector<225x32xbf16>, vector<36x32xf32> -> vector<36x32xf32>
    %141 = arith.truncf %140 : vector<36x32xf32> to vector<36x32xbf16>
    %c12_126 = arith.constant 12 : index
    %c0_127 = arith.constant 0 : index
    %c0_128 = arith.constant 0 : index
    %142 = vector.load %arg6[%c12_126, %c0_127, %c0_128] : memref<16x32x64xbf16, #tpu.memory_space<vmem>>, vector<1x32x64xbf16>
    %143 = vector.shape_cast %142 : vector<1x32x64xbf16> to vector<32x64xbf16>
    %cst_129 = arith.constant dense<0.000000e+00> : vector<36x64xf32>
    %144 = tpu.matmul %141, %143, %cst_129 {dimension_numbers = #tpu.dot_dimension_numbers<[1], [0], [0], [1], [0, 0, 1, 1], [], []>} : vector<36x32xbf16>, vector<32x64xbf16>, vector<36x64xf32> -> vector<36x64xf32>
    %145 = arith.addf %137, %144 : vector<36x64xf32>
    %c13 = arith.constant 13 : index
    %c0_130 = arith.constant 0 : index
    %c0_131 = arith.constant 0 : index
    %146 = vector.load %arg5[%c13, %c0_130, %c0_131] : memref<16x36x225xbf16, #tpu.memory_space<vmem>>, vector<1x36x225xbf16>
    %147 = vector.shape_cast %146 : vector<1x36x225xbf16> to vector<36x225xbf16>
    %cst_132 = arith.constant dense<0.000000e+00> : vector<36x32xf32>
    %148 = tpu.matmul %147, %40, %cst_132 {dimension_numbers = #tpu.dot_dimension_numbers<[1], [0], [0], [1], [0, 0, 1, 1], [], []>} : vector<36x225xbf16>, vector<225x32xbf16>, vector<36x32xf32> -> vector<36x32xf32>
    %149 = arith.truncf %148 : vector<36x32xf32> to vector<36x32xbf16>
    %c13_133 = arith.constant 13 : index
    %c0_134 = arith.constant 0 : index
    %c0_135 = arith.constant 0 : index
    %150 = vector.load %arg6[%c13_133, %c0_134, %c0_135] : memref<16x32x64xbf16, #tpu.memory_space<vmem>>, vector<1x32x64xbf16>
    %151 = vector.shape_cast %150 : vector<1x32x64xbf16> to vector<32x64xbf16>
    %cst_136 = arith.constant dense<0.000000e+00> : vector<36x64xf32>
    %152 = tpu.matmul %149, %151, %cst_136 {dimension_numbers = #tpu.dot_dimension_numbers<[1], [0], [0], [1], [0, 0, 1, 1], [], []>} : vector<36x32xbf16>, vector<32x64xbf16>, vector<36x64xf32> -> vector<36x64xf32>
    %153 = arith.addf %145, %152 : vector<36x64xf32>
    %c14 = arith.constant 14 : index
    %c0_137 = arith.constant 0 : index
    %c0_138 = arith.constant 0 : index
    %154 = vector.load %arg5[%c14, %c0_137, %c0_138] : memref<16x36x225xbf16, #tpu.memory_space<vmem>>, vector<1x36x225xbf16>
    %155 = vector.shape_cast %154 : vector<1x36x225xbf16> to vector<36x225xbf16>
    %cst_139 = arith.constant dense<0.000000e+00> : vector<36x32xf32>
    %156 = tpu.matmul %155, %40, %cst_139 {dimension_numbers = #tpu.dot_dimension_numbers<[1], [0], [0], [1], [0, 0, 1, 1], [], []>} : vector<36x225xbf16>, vector<225x32xbf16>, vector<36x32xf32> -> vector<36x32xf32>
    %157 = arith.truncf %156 : vector<36x32xf32> to vector<36x32xbf16>
    %c14_140 = arith.constant 14 : index
    %c0_141 = arith.constant 0 : index
    %c0_142 = arith.constant 0 : index
    %158 = vector.load %arg6[%c14_140, %c0_141, %c0_142] : memref<16x32x64xbf16, #tpu.memory_space<vmem>>, vector<1x32x64xbf16>
    %159 = vector.shape_cast %158 : vector<1x32x64xbf16> to vector<32x64xbf16>
    %cst_143 = arith.constant dense<0.000000e+00> : vector<36x64xf32>
    %160 = tpu.matmul %157, %159, %cst_143 {dimension_numbers = #tpu.dot_dimension_numbers<[1], [0], [0], [1], [0, 0, 1, 1], [], []>} : vector<36x32xbf16>, vector<32x64xbf16>, vector<36x64xf32> -> vector<36x64xf32>
    %161 = arith.addf %153, %160 : vector<36x64xf32>
    %c15 = arith.constant 15 : index
    %c0_144 = arith.constant 0 : index
    %c0_145 = arith.constant 0 : index
    %162 = vector.load %arg5[%c15, %c0_144, %c0_145] : memref<16x36x225xbf16, #tpu.memory_space<vmem>>, vector<1x36x225xbf16>
    %163 = vector.shape_cast %162 : vector<1x36x225xbf16> to vector<36x225xbf16>
    %cst_146 = arith.constant dense<0.000000e+00> : vector<36x32xf32>
    %164 = tpu.matmul %163, %40, %cst_146 {dimension_numbers = #tpu.dot_dimension_numbers<[1], [0], [0], [1], [0, 0, 1, 1], [], []>} : vector<36x225xbf16>, vector<225x32xbf16>, vector<36x32xf32> -> vector<36x32xf32>
    %165 = arith.truncf %164 : vector<36x32xf32> to vector<36x32xbf16>
    %c15_147 = arith.constant 15 : index
    %c0_148 = arith.constant 0 : index
    %c0_149 = arith.constant 0 : index
    %166 = vector.load %arg6[%c15_147, %c0_148, %c0_149] : memref<16x32x64xbf16, #tpu.memory_space<vmem>>, vector<1x32x64xbf16>
    %167 = vector.shape_cast %166 : vector<1x32x64xbf16> to vector<32x64xbf16>
    %cst_150 = arith.constant dense<0.000000e+00> : vector<36x64xf32>
    %168 = tpu.matmul %165, %167, %cst_150 {dimension_numbers = #tpu.dot_dimension_numbers<[1], [0], [0], [1], [0, 0, 1, 1], [], []>} : vector<36x32xbf16>, vector<32x64xbf16>, vector<36x64xf32> -> vector<36x64xf32>
    %169 = arith.addf %161, %168 : vector<36x64xf32>
    %c0_151 = arith.constant 0 : index
    %c0_152 = arith.constant 0 : index
    %170 = vector.load %arg7[%c0_151, %c0_152] : memref<1x64xf32, #tpu.memory_space<vmem>>, vector<1x64xf32>
    %171 = vector.broadcast %170 : vector<1x64xf32> to vector<36x64xf32>
    %172 = arith.addf %169, %171 : vector<36x64xf32>
    %cst_153 = arith.constant 0.000000e+00 : f32
    %173 = vector.broadcast %cst_153 : f32 to vector<36x64xf32>
    %174 = arith.maximumf %172, %173 : vector<36x64xf32>
    %175 = arith.truncf %174 : vector<36x64xf32> to vector<36x64xbf16>
    %cst_154 = arith.constant 0.000000e+00 : f32
    %176 = vector.broadcast %cst_154 : f32 to vector<16x64xf32>
    %c0_155 = arith.constant 0 : index
    %c0_156 = arith.constant 0 : index
    %c0_157 = arith.constant 0 : index
    %177 = vector.load %arg8[%c0_155, %c0_156, %c0_157] : memref<9x16x36xbf16, #tpu.memory_space<vmem>>, vector<1x16x36xbf16>
    %178 = vector.shape_cast %177 : vector<1x16x36xbf16> to vector<16x36xbf16>
    %cst_158 = arith.constant dense<0.000000e+00> : vector<16x64xf32>
    %179 = tpu.matmul %178, %175, %cst_158 {dimension_numbers = #tpu.dot_dimension_numbers<[1], [0], [0], [1], [0, 0, 1, 1], [], []>} : vector<16x36xbf16>, vector<36x64xbf16>, vector<16x64xf32> -> vector<16x64xf32>
    %180 = arith.truncf %179 : vector<16x64xf32> to vector<16x64xbf16>
    %c0_159 = arith.constant 0 : index
    %c0_160 = arith.constant 0 : index
    %c0_161 = arith.constant 0 : index
    %181 = vector.load %arg9[%c0_159, %c0_160, %c0_161] : memref<9x64x64xbf16, #tpu.memory_space<vmem>>, vector<1x64x64xbf16>
    %182 = vector.shape_cast %181 : vector<1x64x64xbf16> to vector<64x64xbf16>
    %cst_162 = arith.constant dense<0.000000e+00> : vector<16x64xf32>
    %183 = tpu.matmul %180, %182, %cst_162 {dimension_numbers = #tpu.dot_dimension_numbers<[1], [0], [0], [1], [0, 0, 1, 1], [], []>} : vector<16x64xbf16>, vector<64x64xbf16>, vector<16x64xf32> -> vector<16x64xf32>
    %184 = arith.addf %176, %183 : vector<16x64xf32>
    %c1_163 = arith.constant 1 : index
    %c0_164 = arith.constant 0 : index
    %c0_165 = arith.constant 0 : index
    %185 = vector.load %arg8[%c1_163, %c0_164, %c0_165] : memref<9x16x36xbf16, #tpu.memory_space<vmem>>, vector<1x16x36xbf16>
    %186 = vector.shape_cast %185 : vector<1x16x36xbf16> to vector<16x36xbf16>
    %cst_166 = arith.constant dense<0.000000e+00> : vector<16x64xf32>
    %187 = tpu.matmul %186, %175, %cst_166 {dimension_numbers = #tpu.dot_dimension_numbers<[1], [0], [0], [1], [0, 0, 1, 1], [], []>} : vector<16x36xbf16>, vector<36x64xbf16>, vector<16x64xf32> -> vector<16x64xf32>
    %188 = arith.truncf %187 : vector<16x64xf32> to vector<16x64xbf16>
    %c1_167 = arith.constant 1 : index
    %c0_168 = arith.constant 0 : index
    %c0_169 = arith.constant 0 : index
    %189 = vector.load %arg9[%c1_167, %c0_168, %c0_169] : memref<9x64x64xbf16, #tpu.memory_space<vmem>>, vector<1x64x64xbf16>
    %190 = vector.shape_cast %189 : vector<1x64x64xbf16> to vector<64x64xbf16>
    %cst_170 = arith.constant dense<0.000000e+00> : vector<16x64xf32>
    %191 = tpu.matmul %188, %190, %cst_170 {dimension_numbers = #tpu.dot_dimension_numbers<[1], [0], [0], [1], [0, 0, 1, 1], [], []>} : vector<16x64xbf16>, vector<64x64xbf16>, vector<16x64xf32> -> vector<16x64xf32>
    %192 = arith.addf %184, %191 : vector<16x64xf32>
    %c2_171 = arith.constant 2 : index
    %c0_172 = arith.constant 0 : index
    %c0_173 = arith.constant 0 : index
    %193 = vector.load %arg8[%c2_171, %c0_172, %c0_173] : memref<9x16x36xbf16, #tpu.memory_space<vmem>>, vector<1x16x36xbf16>
    %194 = vector.shape_cast %193 : vector<1x16x36xbf16> to vector<16x36xbf16>
    %cst_174 = arith.constant dense<0.000000e+00> : vector<16x64xf32>
    %195 = tpu.matmul %194, %175, %cst_174 {dimension_numbers = #tpu.dot_dimension_numbers<[1], [0], [0], [1], [0, 0, 1, 1], [], []>} : vector<16x36xbf16>, vector<36x64xbf16>, vector<16x64xf32> -> vector<16x64xf32>
    %196 = arith.truncf %195 : vector<16x64xf32> to vector<16x64xbf16>
    %c2_175 = arith.constant 2 : index
    %c0_176 = arith.constant 0 : index
    %c0_177 = arith.constant 0 : index
    %197 = vector.load %arg9[%c2_175, %c0_176, %c0_177] : memref<9x64x64xbf16, #tpu.memory_space<vmem>>, vector<1x64x64xbf16>
    %198 = vector.shape_cast %197 : vector<1x64x64xbf16> to vector<64x64xbf16>
    %cst_178 = arith.constant dense<0.000000e+00> : vector<16x64xf32>
    %199 = tpu.matmul %196, %198, %cst_178 {dimension_numbers = #tpu.dot_dimension_numbers<[1], [0], [0], [1], [0, 0, 1, 1], [], []>} : vector<16x64xbf16>, vector<64x64xbf16>, vector<16x64xf32> -> vector<16x64xf32>
    %200 = arith.addf %192, %199 : vector<16x64xf32>
    %c3_179 = arith.constant 3 : index
    %c0_180 = arith.constant 0 : index
    %c0_181 = arith.constant 0 : index
    %201 = vector.load %arg8[%c3_179, %c0_180, %c0_181] : memref<9x16x36xbf16, #tpu.memory_space<vmem>>, vector<1x16x36xbf16>
    %202 = vector.shape_cast %201 : vector<1x16x36xbf16> to vector<16x36xbf16>
    %cst_182 = arith.constant dense<0.000000e+00> : vector<16x64xf32>
    %203 = tpu.matmul %202, %175, %cst_182 {dimension_numbers = #tpu.dot_dimension_numbers<[1], [0], [0], [1], [0, 0, 1, 1], [], []>} : vector<16x36xbf16>, vector<36x64xbf16>, vector<16x64xf32> -> vector<16x64xf32>
    %204 = arith.truncf %203 : vector<16x64xf32> to vector<16x64xbf16>
    %c3_183 = arith.constant 3 : index
    %c0_184 = arith.constant 0 : index
    %c0_185 = arith.constant 0 : index
    %205 = vector.load %arg9[%c3_183, %c0_184, %c0_185] : memref<9x64x64xbf16, #tpu.memory_space<vmem>>, vector<1x64x64xbf16>
    %206 = vector.shape_cast %205 : vector<1x64x64xbf16> to vector<64x64xbf16>
    %cst_186 = arith.constant dense<0.000000e+00> : vector<16x64xf32>
    %207 = tpu.matmul %204, %206, %cst_186 {dimension_numbers = #tpu.dot_dimension_numbers<[1], [0], [0], [1], [0, 0, 1, 1], [], []>} : vector<16x64xbf16>, vector<64x64xbf16>, vector<16x64xf32> -> vector<16x64xf32>
    %208 = arith.addf %200, %207 : vector<16x64xf32>
    %c4_187 = arith.constant 4 : index
    %c0_188 = arith.constant 0 : index
    %c0_189 = arith.constant 0 : index
    %209 = vector.load %arg8[%c4_187, %c0_188, %c0_189] : memref<9x16x36xbf16, #tpu.memory_space<vmem>>, vector<1x16x36xbf16>
    %210 = vector.shape_cast %209 : vector<1x16x36xbf16> to vector<16x36xbf16>
    %cst_190 = arith.constant dense<0.000000e+00> : vector<16x64xf32>
    %211 = tpu.matmul %210, %175, %cst_190 {dimension_numbers = #tpu.dot_dimension_numbers<[1], [0], [0], [1], [0, 0, 1, 1], [], []>} : vector<16x36xbf16>, vector<36x64xbf16>, vector<16x64xf32> -> vector<16x64xf32>
    %212 = arith.truncf %211 : vector<16x64xf32> to vector<16x64xbf16>
    %c4_191 = arith.constant 4 : index
    %c0_192 = arith.constant 0 : index
    %c0_193 = arith.constant 0 : index
    %213 = vector.load %arg9[%c4_191, %c0_192, %c0_193] : memref<9x64x64xbf16, #tpu.memory_space<vmem>>, vector<1x64x64xbf16>
    %214 = vector.shape_cast %213 : vector<1x64x64xbf16> to vector<64x64xbf16>
    %cst_194 = arith.constant dense<0.000000e+00> : vector<16x64xf32>
    %215 = tpu.matmul %212, %214, %cst_194 {dimension_numbers = #tpu.dot_dimension_numbers<[1], [0], [0], [1], [0, 0, 1, 1], [], []>} : vector<16x64xbf16>, vector<64x64xbf16>, vector<16x64xf32> -> vector<16x64xf32>
    %216 = arith.addf %208, %215 : vector<16x64xf32>
    %c5_195 = arith.constant 5 : index
    %c0_196 = arith.constant 0 : index
    %c0_197 = arith.constant 0 : index
    %217 = vector.load %arg8[%c5_195, %c0_196, %c0_197] : memref<9x16x36xbf16, #tpu.memory_space<vmem>>, vector<1x16x36xbf16>
    %218 = vector.shape_cast %217 : vector<1x16x36xbf16> to vector<16x36xbf16>
    %cst_198 = arith.constant dense<0.000000e+00> : vector<16x64xf32>
    %219 = tpu.matmul %218, %175, %cst_198 {dimension_numbers = #tpu.dot_dimension_numbers<[1], [0], [0], [1], [0, 0, 1, 1], [], []>} : vector<16x36xbf16>, vector<36x64xbf16>, vector<16x64xf32> -> vector<16x64xf32>
    %220 = arith.truncf %219 : vector<16x64xf32> to vector<16x64xbf16>
    %c5_199 = arith.constant 5 : index
    %c0_200 = arith.constant 0 : index
    %c0_201 = arith.constant 0 : index
    %221 = vector.load %arg9[%c5_199, %c0_200, %c0_201] : memref<9x64x64xbf16, #tpu.memory_space<vmem>>, vector<1x64x64xbf16>
    %222 = vector.shape_cast %221 : vector<1x64x64xbf16> to vector<64x64xbf16>
    %cst_202 = arith.constant dense<0.000000e+00> : vector<16x64xf32>
    %223 = tpu.matmul %220, %222, %cst_202 {dimension_numbers = #tpu.dot_dimension_numbers<[1], [0], [0], [1], [0, 0, 1, 1], [], []>} : vector<16x64xbf16>, vector<64x64xbf16>, vector<16x64xf32> -> vector<16x64xf32>
    %224 = arith.addf %216, %223 : vector<16x64xf32>
    %c6_203 = arith.constant 6 : index
    %c0_204 = arith.constant 0 : index
    %c0_205 = arith.constant 0 : index
    %225 = vector.load %arg8[%c6_203, %c0_204, %c0_205] : memref<9x16x36xbf16, #tpu.memory_space<vmem>>, vector<1x16x36xbf16>
    %226 = vector.shape_cast %225 : vector<1x16x36xbf16> to vector<16x36xbf16>
    %cst_206 = arith.constant dense<0.000000e+00> : vector<16x64xf32>
    %227 = tpu.matmul %226, %175, %cst_206 {dimension_numbers = #tpu.dot_dimension_numbers<[1], [0], [0], [1], [0, 0, 1, 1], [], []>} : vector<16x36xbf16>, vector<36x64xbf16>, vector<16x64xf32> -> vector<16x64xf32>
    %228 = arith.truncf %227 : vector<16x64xf32> to vector<16x64xbf16>
    %c6_207 = arith.constant 6 : index
    %c0_208 = arith.constant 0 : index
    %c0_209 = arith.constant 0 : index
    %229 = vector.load %arg9[%c6_207, %c0_208, %c0_209] : memref<9x64x64xbf16, #tpu.memory_space<vmem>>, vector<1x64x64xbf16>
    %230 = vector.shape_cast %229 : vector<1x64x64xbf16> to vector<64x64xbf16>
    %cst_210 = arith.constant dense<0.000000e+00> : vector<16x64xf32>
    %231 = tpu.matmul %228, %230, %cst_210 {dimension_numbers = #tpu.dot_dimension_numbers<[1], [0], [0], [1], [0, 0, 1, 1], [], []>} : vector<16x64xbf16>, vector<64x64xbf16>, vector<16x64xf32> -> vector<16x64xf32>
    %232 = arith.addf %224, %231 : vector<16x64xf32>
    %c7_211 = arith.constant 7 : index
    %c0_212 = arith.constant 0 : index
    %c0_213 = arith.constant 0 : index
    %233 = vector.load %arg8[%c7_211, %c0_212, %c0_213] : memref<9x16x36xbf16, #tpu.memory_space<vmem>>, vector<1x16x36xbf16>
    %234 = vector.shape_cast %233 : vector<1x16x36xbf16> to vector<16x36xbf16>
    %cst_214 = arith.constant dense<0.000000e+00> : vector<16x64xf32>
    %235 = tpu.matmul %234, %175, %cst_214 {dimension_numbers = #tpu.dot_dimension_numbers<[1], [0], [0], [1], [0, 0, 1, 1], [], []>} : vector<16x36xbf16>, vector<36x64xbf16>, vector<16x64xf32> -> vector<16x64xf32>
    %236 = arith.truncf %235 : vector<16x64xf32> to vector<16x64xbf16>
    %c7_215 = arith.constant 7 : index
    %c0_216 = arith.constant 0 : index
    %c0_217 = arith.constant 0 : index
    %237 = vector.load %arg9[%c7_215, %c0_216, %c0_217] : memref<9x64x64xbf16, #tpu.memory_space<vmem>>, vector<1x64x64xbf16>
    %238 = vector.shape_cast %237 : vector<1x64x64xbf16> to vector<64x64xbf16>
    %cst_218 = arith.constant dense<0.000000e+00> : vector<16x64xf32>
    %239 = tpu.matmul %236, %238, %cst_218 {dimension_numbers = #tpu.dot_dimension_numbers<[1], [0], [0], [1], [0, 0, 1, 1], [], []>} : vector<16x64xbf16>, vector<64x64xbf16>, vector<16x64xf32> -> vector<16x64xf32>
    %240 = arith.addf %232, %239 : vector<16x64xf32>
    %c8_219 = arith.constant 8 : index
    %c0_220 = arith.constant 0 : index
    %c0_221 = arith.constant 0 : index
    %241 = vector.load %arg8[%c8_219, %c0_220, %c0_221] : memref<9x16x36xbf16, #tpu.memory_space<vmem>>, vector<1x16x36xbf16>
    %242 = vector.shape_cast %241 : vector<1x16x36xbf16> to vector<16x36xbf16>
    %cst_222 = arith.constant dense<0.000000e+00> : vector<16x64xf32>
    %243 = tpu.matmul %242, %175, %cst_222 {dimension_numbers = #tpu.dot_dimension_numbers<[1], [0], [0], [1], [0, 0, 1, 1], [], []>} : vector<16x36xbf16>, vector<36x64xbf16>, vector<16x64xf32> -> vector<16x64xf32>
    %244 = arith.truncf %243 : vector<16x64xf32> to vector<16x64xbf16>
    %c8_223 = arith.constant 8 : index
    %c0_224 = arith.constant 0 : index
    %c0_225 = arith.constant 0 : index
    %245 = vector.load %arg9[%c8_223, %c0_224, %c0_225] : memref<9x64x64xbf16, #tpu.memory_space<vmem>>, vector<1x64x64xbf16>
    %246 = vector.shape_cast %245 : vector<1x64x64xbf16> to vector<64x64xbf16>
    %cst_226 = arith.constant dense<0.000000e+00> : vector<16x64xf32>
    %247 = tpu.matmul %244, %246, %cst_226 {dimension_numbers = #tpu.dot_dimension_numbers<[1], [0], [0], [1], [0, 0, 1, 1], [], []>} : vector<16x64xbf16>, vector<64x64xbf16>, vector<16x64xf32> -> vector<16x64xf32>
    %248 = arith.addf %240, %247 : vector<16x64xf32>
    %c0_227 = arith.constant 0 : index
    %c0_228 = arith.constant 0 : index
    %249 = vector.load %arg10[%c0_227, %c0_228] : memref<1x64xf32, #tpu.memory_space<vmem>>, vector<1x64xf32>
    %250 = vector.broadcast %249 : vector<1x64xf32> to vector<16x64xf32>
    %251 = arith.addf %248, %250 : vector<16x64xf32>
    %cst_229 = arith.constant 0.000000e+00 : f32
    %252 = vector.broadcast %cst_229 : f32 to vector<16x64xf32>
    %253 = arith.maximumf %251, %252 : vector<16x64xf32>
    %254 = vector.extract_strided_slice %253 {offsets = [0, 0], sizes = [1, 64], strides = [1, 1]} : vector<16x64xf32> to vector<1x64xf32>
    %c0_230 = arith.constant 0 : index
    %c0_231 = arith.constant 0 : index
    %255 = vector.load %arg16[%c0_230, %c0_231] : memref<1x1024xf32, #tpu.memory_space<vmem>>, vector<1x64xf32>
    tpu.vector_store %arg16[%c0_230, %c0_231], %254 {strides = array<i32>} : memref<1x1024xf32, #tpu.memory_space<vmem>>, vector<1x64xf32>,
    %256 = vector.extract_strided_slice %253 {offsets = [1, 0], sizes = [1, 64], strides = [1, 1]} : vector<16x64xf32> to vector<1x64xf32>
    %c0_232 = arith.constant 0 : index
    %c64 = arith.constant 64 : index
    %257 = vector.load %arg16[%c0_232, %c64] : memref<1x1024xf32, #tpu.memory_space<vmem>>, vector<1x64xf32>
    tpu.vector_store %arg16[%c0_232, %c64], %256 {strides = array<i32>} : memref<1x1024xf32, #tpu.memory_space<vmem>>, vector<1x64xf32>,
    %258 = vector.extract_strided_slice %253 {offsets = [2, 0], sizes = [1, 64], strides = [1, 1]} : vector<16x64xf32> to vector<1x64xf32>
    %c0_233 = arith.constant 0 : index
    %c128 = arith.constant 128 : index
    %259 = vector.load %arg16[%c0_233, %c128] : memref<1x1024xf32, #tpu.memory_space<vmem>>, vector<1x64xf32>
    tpu.vector_store %arg16[%c0_233, %c128], %258 {strides = array<i32>} : memref<1x1024xf32, #tpu.memory_space<vmem>>, vector<1x64xf32>,
    %260 = vector.extract_strided_slice %253 {offsets = [3, 0], sizes = [1, 64], strides = [1, 1]} : vector<16x64xf32> to vector<1x64xf32>
    %c0_234 = arith.constant 0 : index
    %c192 = arith.constant 192 : index
    %261 = vector.load %arg16[%c0_234, %c192] : memref<1x1024xf32, #tpu.memory_space<vmem>>, vector<1x64xf32>
    tpu.vector_store %arg16[%c0_234, %c192], %260 {strides = array<i32>} : memref<1x1024xf32, #tpu.memory_space<vmem>>, vector<1x64xf32>,
    %262 = vector.extract_strided_slice %253 {offsets = [4, 0], sizes = [1, 64], strides = [1, 1]} : vector<16x64xf32> to vector<1x64xf32>
    %c0_235 = arith.constant 0 : index
    %c256 = arith.constant 256 : index
    %263 = vector.load %arg16[%c0_235, %c256] : memref<1x1024xf32, #tpu.memory_space<vmem>>, vector<1x64xf32>
    tpu.vector_store %arg16[%c0_235, %c256], %262 {strides = array<i32>} : memref<1x1024xf32, #tpu.memory_space<vmem>>, vector<1x64xf32>,
    %264 = vector.extract_strided_slice %253 {offsets = [5, 0], sizes = [1, 64], strides = [1, 1]} : vector<16x64xf32> to vector<1x64xf32>
    %c0_236 = arith.constant 0 : index
    %c320 = arith.constant 320 : index
    %265 = vector.load %arg16[%c0_236, %c320] : memref<1x1024xf32, #tpu.memory_space<vmem>>, vector<1x64xf32>
    tpu.vector_store %arg16[%c0_236, %c320], %264 {strides = array<i32>} : memref<1x1024xf32, #tpu.memory_space<vmem>>, vector<1x64xf32>,
    %266 = vector.extract_strided_slice %253 {offsets = [6, 0], sizes = [1, 64], strides = [1, 1]} : vector<16x64xf32> to vector<1x64xf32>
    %c0_237 = arith.constant 0 : index
    %c384 = arith.constant 384 : index
    %267 = vector.load %arg16[%c0_237, %c384] : memref<1x1024xf32, #tpu.memory_space<vmem>>, vector<1x64xf32>
    tpu.vector_store %arg16[%c0_237, %c384], %266 {strides = array<i32>} : memref<1x1024xf32, #tpu.memory_space<vmem>>, vector<1x64xf32>,
    %268 = vector.extract_strided_slice %253 {offsets = [7, 0], sizes = [1, 64], strides = [1, 1]} : vector<16x64xf32> to vector<1x64xf32>
    %c0_238 = arith.constant 0 : index
    %c448 = arith.constant 448 : index
    %269 = vector.load %arg16[%c0_238, %c448] : memref<1x1024xf32, #tpu.memory_space<vmem>>, vector<1x64xf32>
    tpu.vector_store %arg16[%c0_238, %c448], %268 {strides = array<i32>} : memref<1x1024xf32, #tpu.memory_space<vmem>>, vector<1x64xf32>,
    %270 = vector.extract_strided_slice %253 {offsets = [8, 0], sizes = [1, 64], strides = [1, 1]} : vector<16x64xf32> to vector<1x64xf32>
    %c0_239 = arith.constant 0 : index
    %c512 = arith.constant 512 : index
    %271 = vector.load %arg16[%c0_239, %c512] : memref<1x1024xf32, #tpu.memory_space<vmem>>, vector<1x64xf32>
    tpu.vector_store %arg16[%c0_239, %c512], %270 {strides = array<i32>} : memref<1x1024xf32, #tpu.memory_space<vmem>>, vector<1x64xf32>,
    %272 = vector.extract_strided_slice %253 {offsets = [9, 0], sizes = [1, 64], strides = [1, 1]} : vector<16x64xf32> to vector<1x64xf32>
    %c0_240 = arith.constant 0 : index
    %c576 = arith.constant 576 : index
    %273 = vector.load %arg16[%c0_240, %c576] : memref<1x1024xf32, #tpu.memory_space<vmem>>, vector<1x64xf32>
    tpu.vector_store %arg16[%c0_240, %c576], %272 {strides = array<i32>} : memref<1x1024xf32, #tpu.memory_space<vmem>>, vector<1x64xf32>,
    %274 = vector.extract_strided_slice %253 {offsets = [10, 0], sizes = [1, 64], strides = [1, 1]} : vector<16x64xf32> to vector<1x64xf32>
    %c0_241 = arith.constant 0 : index
    %c640 = arith.constant 640 : index
    %275 = vector.load %arg16[%c0_241, %c640] : memref<1x1024xf32, #tpu.memory_space<vmem>>, vector<1x64xf32>
    tpu.vector_store %arg16[%c0_241, %c640], %274 {strides = array<i32>} : memref<1x1024xf32, #tpu.memory_space<vmem>>, vector<1x64xf32>,
    %276 = vector.extract_strided_slice %253 {offsets = [11, 0], sizes = [1, 64], strides = [1, 1]} : vector<16x64xf32> to vector<1x64xf32>
    %c0_242 = arith.constant 0 : index
    %c704 = arith.constant 704 : index
    %277 = vector.load %arg16[%c0_242, %c704] : memref<1x1024xf32, #tpu.memory_space<vmem>>, vector<1x64xf32>
    tpu.vector_store %arg16[%c0_242, %c704], %276 {strides = array<i32>} : memref<1x1024xf32, #tpu.memory_space<vmem>>, vector<1x64xf32>,
    %278 = vector.extract_strided_slice %253 {offsets = [12, 0], sizes = [1, 64], strides = [1, 1]} : vector<16x64xf32> to vector<1x64xf32>
    %c0_243 = arith.constant 0 : index
    %c768 = arith.constant 768 : index
    %279 = vector.load %arg16[%c0_243, %c768] : memref<1x1024xf32, #tpu.memory_space<vmem>>, vector<1x64xf32>
    tpu.vector_store %arg16[%c0_243, %c768], %278 {strides = array<i32>} : memref<1x1024xf32, #tpu.memory_space<vmem>>, vector<1x64xf32>,
    %280 = vector.extract_strided_slice %253 {offsets = [13, 0], sizes = [1, 64], strides = [1, 1]} : vector<16x64xf32> to vector<1x64xf32>
    %c0_244 = arith.constant 0 : index
    %c832 = arith.constant 832 : index
    %281 = vector.load %arg16[%c0_244, %c832] : memref<1x1024xf32, #tpu.memory_space<vmem>>, vector<1x64xf32>
    tpu.vector_store %arg16[%c0_244, %c832], %280 {strides = array<i32>} : memref<1x1024xf32, #tpu.memory_space<vmem>>, vector<1x64xf32>,
    %282 = vector.extract_strided_slice %253 {offsets = [14, 0], sizes = [1, 64], strides = [1, 1]} : vector<16x64xf32> to vector<1x64xf32>
    %c0_245 = arith.constant 0 : index
    %c896 = arith.constant 896 : index
    %283 = vector.load %arg16[%c0_245, %c896] : memref<1x1024xf32, #tpu.memory_space<vmem>>, vector<1x64xf32>
    tpu.vector_store %arg16[%c0_245, %c896], %282 {strides = array<i32>} : memref<1x1024xf32, #tpu.memory_space<vmem>>, vector<1x64xf32>,
    %284 = vector.extract_strided_slice %253 {offsets = [15, 0], sizes = [1, 64], strides = [1, 1]} : vector<16x64xf32> to vector<1x64xf32>
    %c0_246 = arith.constant 0 : index
    %c960 = arith.constant 960 : index
    %285 = vector.load %arg16[%c0_246, %c960] : memref<1x1024xf32, #tpu.memory_space<vmem>>, vector<1x64xf32>
    tpu.vector_store %arg16[%c0_246, %c960], %284 {strides = array<i32>} : memref<1x1024xf32, #tpu.memory_space<vmem>>, vector<1x64xf32>,
    %c0_247 = arith.constant 0 : index
    %c0_248 = arith.constant 0 : index
    %286 = vector.load %arg16[%c0_247, %c0_248] : memref<1x1024xf32, #tpu.memory_space<vmem>>, vector<1x1024xf32>
    %287 = arith.truncf %286 : vector<1x1024xf32> to vector<1x1024xbf16>
    %c0_249 = arith.constant 0 : index
    %c0_250 = arith.constant 0 : index
    %288 = vector.load %arg11[%c0_249, %c0_250] : memref<1024x512xbf16, #tpu.memory_space<vmem>>, vector<1024x512xbf16>
    %cst_251 = arith.constant dense<0.000000e+00> : vector<1x512xf32>
    %289 = tpu.matmul %287, %288, %cst_251 {dimension_numbers = #tpu.dot_dimension_numbers<[1], [0], [0], [1], [0, 0, 1, 1], [], []>} : vector<1x1024xbf16>, vector<1024x512xbf16>, vector<1x512xf32> -> vector<1x512xf32>
    %c0_252 = arith.constant 0 : index
    %c0_253 = arith.constant 0 : index
    %290 = vector.load %arg12[%c0_252, %c0_253] : memref<1x512xf32, #tpu.memory_space<vmem>>, vector<1x512xf32>
    %291 = arith.addf %289, %290 : vector<1x512xf32>
    %cst_254 = arith.constant 0.000000e+00 : f32
    %292 = vector.broadcast %cst_254 : f32 to vector<1x512xf32>
    %293 = arith.maximumf %291, %292 : vector<1x512xf32>
    %294 = arith.truncf %293 : vector<1x512xf32> to vector<1x512xbf16>
    %c0_255 = arith.constant 0 : index
    %c0_256 = arith.constant 0 : index
    %295 = vector.load %arg13[%c0_255, %c0_256] : memref<512x6xbf16, #tpu.memory_space<vmem>>, vector<512x6xbf16>
    %cst_257 = arith.constant dense<0.000000e+00> : vector<1x6xf32>
    %296 = tpu.matmul %294, %295, %cst_257 {dimension_numbers = #tpu.dot_dimension_numbers<[1], [0], [0], [1], [0, 0, 1, 1], [], []>} : vector<1x512xbf16>, vector<512x6xbf16>, vector<1x6xf32> -> vector<1x6xf32>
    %c0_258 = arith.constant 0 : index
    %c0_259 = arith.constant 0 : index
    %297 = vector.load %arg14[%c0_258, %c0_259] : memref<1x6xf32, #tpu.memory_space<vmem>>, vector<1x6xf32>
    %298 = arith.addf %296, %297 : vector<1x6xf32>
    %c0_260 = arith.constant 0 : index
    %c0_261 = arith.constant 0 : index
    %c0_262 = arith.constant 0 : index
    %299 = vector.load %arg15[%c0_260, %c0_261, %c0_262] : memref<1x1x6xf32, #tpu.memory_space<vmem>>, vector<1x1x6xf32>
    %300 = vector.shape_cast %299 : vector<1x1x6xf32> to vector<1x6xf32>
    %301 = vector.shape_cast %298 : vector<1x6xf32> to vector<1x1x6xf32>
    tpu.vector_store %arg15[%c0_260, %c0_261, %c0_262], %301 {strides = array<i32>} : memref<1x1x6xf32, #tpu.memory_space<vmem>>, vector<1x1x6xf32>,
    return
  }
  func.func @transform_0(%arg0: i32) -> (i32, i32, i32) {
    %c0_i32 = arith.constant 0 : i32
    %c0_i32_0 = arith.constant 0 : i32
    %c0_i32_1 = arith.constant 0 : i32
    return %arg0, %c0_i32, %c0_i32_0 : i32, i32, i32
  }
  func.func @transform_1(%arg0: i32) -> (i32, i32, i32) {
    %c0_i32 = arith.constant 0 : i32
    %c0_i32_0 = arith.constant 0 : i32
    %c0_i32_1 = arith.constant 0 : i32
    %c0_i32_2 = arith.constant 0 : i32
    return %c0_i32, %c0_i32_0, %c0_i32_1 : i32, i32, i32
  }
  func.func @transform_2(%arg0: i32) -> (i32, i32, i32) {
    %c0_i32 = arith.constant 0 : i32
    %c0_i32_0 = arith.constant 0 : i32
    %c0_i32_1 = arith.constant 0 : i32
    %c0_i32_2 = arith.constant 0 : i32
    return %c0_i32, %c0_i32_0, %c0_i32_1 : i32, i32, i32
  }
  func.func @transform_3(%arg0: i32) -> (i32, i32) {
    %c0_i32 = arith.constant 0 : i32
    %c0_i32_0 = arith.constant 0 : i32
    %c0_i32_1 = arith.constant 0 : i32
    return %c0_i32, %c0_i32_0 : i32, i32
  }
  func.func @transform_4(%arg0: i32) -> (i32, i32, i32) {
    %c0_i32 = arith.constant 0 : i32
    %c0_i32_0 = arith.constant 0 : i32
    %c0_i32_1 = arith.constant 0 : i32
    %c0_i32_2 = arith.constant 0 : i32
    return %c0_i32, %c0_i32_0, %c0_i32_1 : i32, i32, i32
  }
  func.func @transform_5(%arg0: i32) -> (i32, i32, i32) {
    %c0_i32 = arith.constant 0 : i32
    %c0_i32_0 = arith.constant 0 : i32
    %c0_i32_1 = arith.constant 0 : i32
    %c0_i32_2 = arith.constant 0 : i32
    return %c0_i32, %c0_i32_0, %c0_i32_1 : i32, i32, i32
  }
  func.func @transform_6(%arg0: i32) -> (i32, i32) {
    %c0_i32 = arith.constant 0 : i32
    %c0_i32_0 = arith.constant 0 : i32
    %c0_i32_1 = arith.constant 0 : i32
    return %c0_i32, %c0_i32_0 : i32, i32
  }
  func.func @transform_7(%arg0: i32) -> (i32, i32, i32) {
    %c0_i32 = arith.constant 0 : i32
    %c0_i32_0 = arith.constant 0 : i32
    %c0_i32_1 = arith.constant 0 : i32
    %c0_i32_2 = arith.constant 0 : i32
    return %c0_i32, %c0_i32_0, %c0_i32_1 : i32, i32, i32
  }
  func.func @transform_8(%arg0: i32) -> (i32, i32, i32) {
    %c0_i32 = arith.constant 0 : i32
    %c0_i32_0 = arith.constant 0 : i32
    %c0_i32_1 = arith.constant 0 : i32
    %c0_i32_2 = arith.constant 0 : i32
    return %c0_i32, %c0_i32_0, %c0_i32_1 : i32, i32, i32
  }
  func.func @transform_9(%arg0: i32) -> (i32, i32) {
    %c0_i32 = arith.constant 0 : i32
    %c0_i32_0 = arith.constant 0 : i32
    %c0_i32_1 = arith.constant 0 : i32
    return %c0_i32, %c0_i32_0 : i32, i32
  }
  func.func @transform_10(%arg0: i32) -> (i32, i32) {
    %c0_i32 = arith.constant 0 : i32
    %c0_i32_0 = arith.constant 0 : i32
    %c0_i32_1 = arith.constant 0 : i32
    return %c0_i32, %c0_i32_0 : i32, i32
  }
  func.func @transform_11(%arg0: i32) -> (i32, i32) {
    %c0_i32 = arith.constant 0 : i32
    %c0_i32_0 = arith.constant 0 : i32
    %c0_i32_1 = arith.constant 0 : i32
    return %c0_i32, %c0_i32_0 : i32, i32
  }
  func.func @transform_12(%arg0: i32) -> (i32, i32) {
    %c0_i32 = arith.constant 0 : i32
    %c0_i32_0 = arith.constant 0 : i32
    %c0_i32_1 = arith.constant 0 : i32
    return %c0_i32, %c0_i32_0 : i32, i32
  }
  func.func @transform_13(%arg0: i32) -> (i32, i32) {
    %c0_i32 = arith.constant 0 : i32
    %c0_i32_0 = arith.constant 0 : i32
    %c0_i32_1 = arith.constant 0 : i32
    return %c0_i32, %c0_i32_0 : i32, i32
  }
  func.func @transform_14(%arg0: i32) -> (i32, i32, i32) {
    %c0_i32 = arith.constant 0 : i32
    %c0_i32_0 = arith.constant 0 : i32
    %c0_i32_1 = arith.constant 0 : i32
    return %arg0, %c0_i32, %c0_i32_0 : i32, i32, i32
  }
}

</mosaic_0001>

<bundles_post_ra>
// kernel: network_forward.1
= control target key start
LH: loop header
LB: loop body
LE: loop exit
PB: predicated region body
PF: predicated region fallthrough
CT: control target
= control target key end

     0   :  { %s16860_s0 = inlined_call_operand.vmem [shape: bf16[2,256,64], index: 0, kind: input, shape index: {}]   ;;  %s16861_s1 = inlined_call_operand.vmem [shape: bf16[4,225,256], index: 1, kind: input, shape index: {}]   ;;  %s16862_s2 = inlined_call_operand.vmem [shape: bf16[4,64,32], index: 2, kind: input, shape index: {}]   ;;  %s16863_s3 = inlined_call_operand.vmem [shape: f32[1,32], index: 3, kind: input, shape index: {}]   ;;  %s16864_s4 = inlined_call_operand.vmem [shape: bf16[16,36,225], index: 4, kind: input, shape index: {}]   ;;  %s16865_s5 = inlined_call_operand.vmem [shape: bf16[16,32,64], index: 5, kind: input, shape index: {}]   ;;  %s16866_s6 = inlined_call_operand.vmem [shape: f32[1,64], index: 6, kind: input, shape index: {}]   ;;  %s16867_s7 = inlined_call_operand.vmem [shape: bf16[9,16,36], index: 7, kind: input, shape index: {}]   ;;  %s16868_s8 = inlined_call_operand.vmem [shape: bf16[9,64,64], index: 8, kind: input, shape index: {}]   ;;  %s16869_s9 = inlined_call_operand.vmem [shape: f32[1,64], index: 9, kind: input, shape index: {}]   ;;  %s16870_s10 = inlined_call_operand.vmem [shape: bf16[1024,512], index: 10, kind: input, shape index: {}]   ;;  %s16871_s11 = inlined_call_operand.vmem [shape: f32[1,512], index: 11, kind: input, shape index: {}]   ;;  %s16872_s12 = inlined_call_operand.vmem [shape: bf16[512,6], index: 12, kind: input, shape index: {}]   ;;  %s16873_s13 = inlined_call_operand.vmem [shape: f32[1,6], index: 13, kind: input, shape index: {}]   ;;  %s16874_s14 = inlined_call_operand.hbm [shape: f32[2,1,6], index: 14, kind: output, shape index: {}]  }
   0x1   :  { %16878 = sst [smem:[#allocation9_spill]] %s16860_s0 }
   0x2   :  { %19 = vsyncpa [#allocation4], 0 }
   0x3   :  { %21 = vsyncpa [#allocation4 + $0x1], 0  ;;  %s13294_s29 = smov 0   ;;  %s13296_s30 = smov 0  }
   0x4   :  { %s13298_s15 = smov 0   ;;  %s13300_s16 = smov 0  }
   0x5 LB: > { %16879 = sst [smem:[#allocation6_spill]] %s13207_s15  ;;  %s13315_s17 = sadd.s32 4294967295, %s13211_s16   ;;  %s13211_s16 = sphi %s13300_s16, %s16889_s16   ;;  %s13207_s15 = sphi %s13298_s15, %s16891_s15   ;;  %s13203_s30 = sphi %s13296_s30, %s16893_s30   ;;  %s13199_s29 = sphi %s13294_s29, %s16892_s29  }
   0x6   : > { %s9705_s18 = sadd.s32 4294967294, %s13211_s16   ;;  %s13319_s19 = sadd.s32 1, %s13211_s16  }
   0x7   : > { %16880 = sst [smem:[#allocation7_spill]] %s13319_s19  ;;  %s333_s20 = sadd.s32 1, %s13207_s15 }
   0x8   : > { %s330_s21 = ssub.s32 %s13211_s16, %s13319_s19  ;;  %p343_p0 = scmp.ne.s32.totalorder %s13207_s15, %s13203_s30 }
   0x9   : > { %p331_p1 = scmp.eq.s32.totalorder %s330_s21, 0  ;;  %p344_p2 = scmp.eq.s32.totalorder %s13315_s17, 1 }
   0xa   : > { %p349_p3 = scmp.ne.s32.totalorder %s13203_s30, %s13199_s29  ;;  %p350_p4 = scmp.eq.s32.totalorder %s9705_s18, 1 }
   0xb   : > { %s13330_s22 = scalar_select %p331_p1, %s13207_s15, %s333_s20  }
   0xc   : > { %p13332_p5 = por %p344_p2, %p343_p0  ;;  %p13336_p6 = por %p350_p4, %p349_p3 }
   0xd   : > { %16881 = sst [smem:[#allocation8_spill]] %s13330_s22  ;;  %p9708_p7 = scmp.ge.s32.totalorder %s13211_s16, 1 }
   0xe   : > { %p415_p8 = scmp.lt.s32.totalorder %s13211_s16, 3 }
  0x10   : > { %p416_p9 = pnand %p9708_p7, %p415_p8 }
  0x11   : > { %p460_p10 = scmp.lt.s32.totalorder (!%p416_p9), %s13315_s17, 1  ;;  %s16884_s0 = sld [smem:[#allocation9_spill]] (!%p416_p9) }
  0x12   : > { %419 = sbr.rel (%p416_p9) target bundleno = 6921 (0x1b09), region = 76  ;;  %s13217_s18 = smov (!%p416_p9), 64  }
  0x13   : > { %s458_s19 = sand.u32 (!%p416_p9), 1, %s13203_s30   ;;  %s10827_s25 = sshll.u32 (!%p416_p9), %s13315_s17, 4 }
  0x14   : > { %s459_s26 = scalar_lea.vmem (!%p416_p9), [#allocation3], %s458_s19  ;;  %s9638_s21 = scalar_lea.sflag (!%p416_p9), [#allocation4], %s458_s19 }
  0x17   : > { %v12324_v0 = vld [vmem:[%s16861_s1 + $0x4] ss:$8 sps:$4 sm:$0xff]   ;;  %s461_s27 = scalar_select %p460_p10, %s13315_s17, 1  ;;  %v12322_v18 = vld [vmem:[%s16861_s1] ss:$8 sps:$4 sm:$0xff]   ;;  %v13213_v22 = vmov 0.0  }
  0x18   : > { %v12327_v1 = vld [vmem:[%s16861_s1 + $0xec] ss:$8 sps:$4 sm:$0xff]   ;;  %802 = vmatprep.mubr.bf16.mxu0 %v12324_v0  ;;  %v12325_v19 = vld [vmem:[%s16861_s1 + $0xe8] ss:$8 sps:$4 sm:$0xff]   ;;  %v12330_v21 = vld [vmem:[%s16861_s1 + $0xfc] ss:$8 sps:$4 sm:$0xff]  }
  0x19   : > { %s10830_s20 = sshll.u32 %s461_s27, 7  ;;  %1154 = vmatprep.mubr.bf16.mxu1 %v12327_v1  ;;  %v12328_v20 = vld [vmem:[%s16861_s1 + $0x14] ss:$8 sps:$4 sm:$0xff]   ;;  %v12332_v23 = vld [vmem:[%s16861_s1 + $0x10] ss:$8 sps:$4 sm:$0xff]   ;;  %v12412_v38 = vld [vmem:[%s16862_s2 + $0x28] sm:$0xff]  }
  0x1a   : > { %s13353_s15 = scalar_lea.vmem %s16884_s0, %s10830_s20  ;;  %v12333_v24 = vld [vmem:[%s16861_s1 + $0xf8] ss:$8 sps:$4 sm:$0xff]   ;;  %v12334_v25 = vld [vmem:[%s16861_s1 + $0x24] ss:$8 sps:$4 sm:$0xff]   ;;  %v12339_v28 = vld [vmem:[%s16861_s1 + $0x108] ss:$8 sps:$4 sm:$0xff]   ;;  %s16825_s20 = scalar_lea.hbm %s16874_s14, %s10827_s25 }
  0x1b   : > { %v13356_v2 = vld [vmem:[%s13353_s15 + $0x78] sm:$0xff]   ;;  %v12308_v4 = vld [vmem:[%s13353_s15 + $0x70] sm:$0xff]   ;;  %v12310_v6 = vld [vmem:[%s13353_s15 + $0x68] sm:$0xff]   ;;  %vm13214_vm0 = vmmov 0   ;;  %vm1322_vm1 = vcmask 523264   ;;  %vm3056_vm2 = vcmask 793600  }
  0x1c   : > { %v12307_v3 = vld [vmem:[%s13353_s15 + $0x38] sm:$0xff]   ;;  %10831 = vmatprep.subr.bf16.mxu0 %v13356_v2  ;;  %10937 = vmatprep.subr.bf16.mxu1 %v13356_v2  ;;  %v12309_v5 = vld [vmem:[%s13353_s15 + $0x30] sm:$0xff]   ;;  %v12311_v7 = vld [vmem:[%s13353_s15 + $0x28] sm:$0xff]   ;;  %vm3066_vm3 = vcmask 1040384   ;;  %vm3250_vm4 = vcmask 261120   ;;  %vm6014_vm5 = vcmask 1041408  }
  0x1d   : > { %10832 = vmatpush3.bf16.msra.mxu0 %v12307_v3  ;;  %10938 = vmatpush3.bf16.msra.mxu1 %v12307_v3  ;;  %v12312_v8 = vld [vmem:[%s13353_s15 + $0x60] sm:$0xff]   ;;  %v12314_v10 = vld [vmem:[%s13353_s15 + $0x58] sm:$0xff]   ;;  %v12316_v12 = vld [vmem:[%s13353_s15 + $0x50] sm:$0xff]   ;;  %vm6010_vm6 = vcmask 293888   ;;  %vm9635_vm11 = vcmask 40960   ;;  %s13218_s17 = smov [#allocation3]  }
  0x1e   : > { %10833 = vmatprep.subr.bf16.mxu0 %v12308_v4  ;;  %10939 = vmatprep.subr.bf16.mxu1 %v12308_v4  ;;  %v12313_v9 = vld [vmem:[%s13353_s15 + $0x20] sm:$0xff]   ;;  %v12315_v11 = vld [vmem:[%s13353_s15 + $0x18] sm:$0xff]   ;;  %v12317_v13 = vld [vmem:[%s13353_s15 + $0x10] sm:$0xff]  }
  0x1f   : > { %v12318_v14 = vld [vmem:[%s13353_s15 + $0x48] sm:$0xff]   ;;  %v12320_v16 = vld [vmem:[%s13353_s15 + $0x40] sm:$0xff]   ;;  %v12340_v29 = vld [vmem:[%s16861_s1 + $0x34] ss:$8 sps:$4 sm:$0xff]  }
  0x20   : > { %v12319_v15 = vld [vmem:[%s13353_s15 + $0x8] sm:$0xff]   ;;  %v12321_v17 = vld [vmem:[%s13353_s15] sm:$0xff]   ;;  %v12410_v31 = vld [vmem:[%s16862_s2 + $0x38] sm:$0xff]  }
  0x21   : > { %10834 = vmatpush3.bf16.msra.mxu0 %v12309_v5  ;;  %10940 = vmatpush3.bf16.msra.mxu1 %v12309_v5  ;;  %v12336_v26 = vld [vmem:[%s16861_s1 + $0x10c] ss:$8 sps:$4 sm:$0xff]   ;;  %v12338_v27 = vld [vmem:[%s16861_s1 + $0x20] ss:$8 sps:$4 sm:$0xff]   ;;  %v12342_v30 = vld [vmem:[%s16861_s1 + $0x11c] ss:$8 sps:$4 sm:$0xff]  }
  0x22   : > { %10835 = vmatprep.subr.bf16.mxu0 %v12310_v6  ;;  %10941 = vmatprep.subr.bf16.mxu1 %v12310_v6  ;;  %v12411_v32 = vld [vmem:[%s16862_s2 + $0x30] sm:$0xff]   ;;  %v12413_v33 = vld [vmem:[%s16862_s2 + $0x18] sm:$0xff]   ;;  %v12346_v36 = vld [vmem:[%s16861_s1 + $0x44] ss:$8 sps:$4 sm:$0xff]  }
  0x23   : > { %v12344_v34 = vld [vmem:[%s16861_s1 + $0x30] ss:$8 sps:$4 sm:$0xff]   ;;  %v12348_v37 = vld [vmem:[%s16861_s1 + $0x12c] ss:$8 sps:$4 sm:$0xff]   ;;  %v12350_v39 = vld [vmem:[%s16861_s1 + $0x40] ss:$8 sps:$4 sm:$0xff]  }
  0x24   : > { %v12345_v35 = vld [vmem:[%s16861_s1 + $0x118] ss:$8 sps:$4 sm:$0xff]   ;;  %v12351_v40 = vld [vmem:[%s16861_s1 + $0x128] ss:$8 sps:$4 sm:$0xff]   ;;  %v12352_v41 = vld [vmem:[%s16861_s1 + $0x54] ss:$8 sps:$4 sm:$0xff]  }
  0x25   : > { %10836 = vmatpush3.bf16.msra.mxu0 %v12311_v7  ;;  %10942 = vmatpush3.bf16.msra.mxu1 %v12311_v7  ;;  %v12354_v42 = vld [vmem:[%s16861_s1 + $0x13c] ss:$8 sps:$4 sm:$0xff]   ;;  %v12356_v43 = vld [vmem:[%s16861_s1 + $0x50] ss:$8 sps:$4 sm:$0xff]   ;;  %v12360_v46 = vld [vmem:[%s16861_s1 + $0x14c] ss:$8 sps:$4 sm:$0xff]  }
  0x26   : > { %10837 = vmatprep.subr.bf16.mxu0 %v12312_v8  ;;  %10943 = vmatprep.subr.bf16.mxu1 %v12312_v8  ;;  %v12357_v44 = vld [vmem:[%s16861_s1 + $0x138] ss:$8 sps:$4 sm:$0xff]   ;;  %v12358_v45 = vld [vmem:[%s16861_s1 + $0x64] ss:$8 sps:$4 sm:$0xff]   ;;  %v12363_v48 = vld [vmem:[%s16861_s1 + $0x148] ss:$8 sps:$4 sm:$0xff]  }
  0x27   : > { %v12362_v47 = vld [vmem:[%s16861_s1 + $0x60] ss:$8 sps:$4 sm:$0xff]   ;;  %v12364_v49 = vld [vmem:[%s16861_s1 + $0x74] ss:$8 sps:$4 sm:$0xff]   ;;  %v12368_v51 = vld [vmem:[%s16861_s1 + $0x70] ss:$8 sps:$4 sm:$0xff]  }
  0x28   : > { %v12366_v50 = vld [vmem:[%s16861_s1 + $0x15c] ss:$8 sps:$4 sm:$0xff]   ;;  %v12369_v52 = vld [vmem:[%s16861_s1 + $0x158] ss:$8 sps:$4 sm:$0xff]   ;;  %v12372_v54 = vld [vmem:[%s16861_s1 + $0x16c] ss:$8 sps:$4 sm:$0xff]  }
  0x29   : > { %10838 = vmatpush3.bf16.msra.mxu0 %v12313_v9  ;;  %10944 = vmatpush3.bf16.msra.mxu1 %v12313_v9  ;;  %v12370_v53 = vld [vmem:[%s16861_s1 + $0x84] ss:$8 sps:$4 sm:$0xff]   ;;  %v12374_v55 = vld [vmem:[%s16861_s1 + $0x80] ss:$8 sps:$4 sm:$0xff]   ;;  %v12376_v57 = vld [vmem:[%s16861_s1 + $0x94] ss:$8 sps:$4 sm:$0xff]  }
  0x2a   : > { %10839 = vmatprep.subr.bf16.mxu0 %v12314_v10  ;;  %10945 = vmatprep.subr.bf16.mxu1 %v12314_v10  ;;  %v12375_v56 = vld [vmem:[%s16861_s1 + $0x168] ss:$8 sps:$4 sm:$0xff]   ;;  %v12378_v58 = vld [vmem:[%s16861_s1 + $0x17c] ss:$8 sps:$4 sm:$0xff]   ;;  %v12381_v61 = vld [vmem:[%s16861_s1 + $0x178] ss:$8 sps:$4 sm:$0xff]  }
  0x2b   : > { %v12414_v59 = vld [vmem:[%s16862_s2 + $0x10] sm:$0xff]   ;;  %v12415_v62 = vld [vmem:[%s16862_s2 + $0x8] sm:$0xff]   ;;  %v12416_v1 = vld [vmem:[%s16862_s2 + $0x20] sm:$0xff]  }
  0x2c   : > { %v12380_v60 = vld [vmem:[%s16861_s1 + $0x90] ss:$8 sps:$4 sm:$0xff]   ;;  %v12382_v63 = vld [vmem:[%s16861_s1 + $0xa4] ss:$8 sps:$4 sm:$0xff]   ;;  %v12386_v4 = vld [vmem:[%s16861_s1 + $0xa0] ss:$8 sps:$4 sm:$0xff]  }
  0x2d   : > { %10840 = vmatpush3.bf16.msra.mxu0 %v12315_v11  ;;  %10946 = vmatpush3.bf16.msra.mxu1 %v12315_v11  ;;  %v12384_v0 = vld [vmem:[%s16861_s1 + $0x18c] ss:$8 sps:$4 sm:$0xff]   ;;  %v12417_v3 = vld [vmem:[%s16862_s2] sm:$0xff]   ;;  %v12387_v5 = vld [vmem:[%s16861_s1 + $0x188] ss:$8 sps:$4 sm:$0xff]  }
  0x2e   : > { %10841 = vmatprep.subr.bf16.mxu0 %v12316_v12  ;;  %10947 = vmatprep.subr.bf16.mxu1 %v12316_v12  ;;  %v12388_v6 = vld [vmem:[%s16861_s1 + $0xb4] ss:$8 sps:$4 sm:$0xff]   ;;  %v12392_v8 = vld [vmem:[%s16861_s1 + $0xb0] ss:$8 sps:$4 sm:$0xff]   ;;  %v12394_v10 = vld [vmem:[%s16861_s1 + $0xc4] ss:$8 sps:$4 sm:$0xff]  }
  0x2f   : > { %v12390_v7 = vld [vmem:[%s16861_s1 + $0x19c] ss:$8 sps:$4 sm:$0xff]   ;;  %v12393_v9 = vld [vmem:[%s16861_s1 + $0x198] ss:$8 sps:$4 sm:$0xff]   ;;  %v12399_v12 = vld [vmem:[%s16861_s1 + $0x1a8] ss:$8 sps:$4 sm:$0xff]  }
  0x30   : > { %v12398_v11 = vld [vmem:[%s16861_s1 + $0xc0] ss:$8 sps:$4 sm:$0xff]  }
  0x31   : > { %10842 = vmatpush3.bf16.msra.mxu0 %v12317_v13  ;;  %10948 = vmatpush3.bf16.msra.mxu1 %v12317_v13  ;;  %v12400_v13 = vld [vmem:[%s16861_s1 + $0xd4] ss:$8 sps:$4 sm:$0xff]  }
  0x32   : > { %10843 = vmatprep.subr.bf16.mxu0 %v12318_v14  ;;  %10949 = vmatprep.subr.bf16.mxu1 %v12318_v14  ;;  %v12402_v14 = vld [vmem:[%s16861_s1 + $0x1bc] ss:$8 sps:$4 sm:$0xff]  }
  0x35   : > { %10844 = vmatpush3.bf16.msra.mxu0 %v12319_v15  ;;  %10950 = vmatpush3.bf16.msra.mxu1 %v12319_v15  ;;  %v9785_v15 = vld [vmem:[%s16861_s1 + $0x1c8] sm:$0x11] }
  0x36   : > { %10845 = vmatprep.subr.bf16.mxu0 %v12320_v16  ;;  %10951 = vmatprep.subr.bf16.mxu1 %v12320_v16  ;;  %v526_v16 = vld [vmem:[%s16861_s1 + $0xe0] sm:$0x11] }
  0x39   : > { %10846 = vmatpush3.bf16.msra.mxu0 %v12321_v17  ;;  %10952 = vmatpush3.bf16.msra.mxu1 %v12321_v17  ;;  %v12404_v17 = vld [vmem:[%s16861_s1 + $0xd0] ss:$8 sps:$4 sm:$0xff]  }
  0x3a   : > { %11536 = vmatprep.subr.bf16.mxu0 %v13213_v22  ;;  %11604 = vmatprep.subr.bf16.mxu1 %v13213_v22 }
  0x3c   : > { %803 = vmatmul.mubr.bf16.vlgmr.msra.gmra.mxu0 %v12322_v18  ;;  %1155 = vmatmul.mubr.bf16.vlgmr.msra.gmra.mxu1 %v12325_v19  ;;  %v12405_v18 = vld [vmem:[%s16861_s1 + $0x1b8] ss:$8 sps:$4 sm:$0xff]   ;;  %v9815_v19 = vcombine.high %v9785_v15, %v9785_v15 }
  0x3d   : > { %810 = vmatprep.mubr.bf16.mxu0 %v12328_v20  ;;  %1162 = vmatprep.mubr.bf16.mxu1 %v12330_v21  ;;  %v9740_v20 = vcombine.high %v526_v16, %v526_v16  ;;  %v9814_v21 = vcombine.low %v9785_v15, %v9785_v15 }
  0x3e   : > { %11537 = vmatpush3.bf16.msra.mxu0 %v12410_v31  ;;  %11605 = vmatpush3.bf16.msra.mxu1 %v12413_v33 }
  0x3f   : > { %11538 = vmatprep.subr.bf16.mxu0 %v13213_v22  ;;  %11606 = vmatprep.subr.bf16.mxu1 %v13213_v22 }
  0x42   : > { %11539 = vmatpush3.bf16.msra.mxu0 %v12411_v32  ;;  %11607 = vmatpush3.bf16.msra.mxu1 %v12414_v59  ;;  %v13600_v59 = vld [vmem:[%s13353_s15 + $0x68] sm:$0xff]  }
  0x43   : > { %11540 = vmatprep.subr.bf16.mxu0 %v13213_v22  ;;  %11608 = vmatprep.subr.bf16.mxu1 %v13213_v22 }
  0x44   : > { %811 = vmatmul.mubr.bf16.gmra.mxu0 %v12332_v23  ;;  %1163 = vmatmul.mubr.bf16.gmra.mxu1 %v12333_v24  ;;  %v9739_v23 = vcombine.low %v526_v16, %v526_v16 }
  0x45   : > { %818 = vmatprep.mubr.bf16.mxu0 %v12334_v25  ;;  %1170 = vmatprep.mubr.bf16.mxu1 %v12336_v26 }
  0x46   : > { %11541 = vmatpush3.bf16.msra.mxu0 %v12412_v38  ;;  %11609 = vmatpush3.bf16.msra.mxu1 %v12415_v62 }
  0x47   : > { %11542 = vmatprep.subr.bf16.mxu0 %v13213_v22  ;;  %11610 = vmatprep.subr.bf16.mxu1 %v13213_v22 }
  0x4a   : > { %11543 = vmatpush3.bf16.msra.mxu0 %v12416_v1  ;;  %11611 = vmatpush3.bf16.msra.mxu1 %v12417_v3  ;;  %v13614_v3 = vld [vmem:[%s13353_s15 + $0x60] sm:$0xff]  }
  0x4b   : > { %11081 = vmatprep.subr.bf16.mxu0 %v13356_v2  ;;  %11672 = vmatprep.subr.bf16.mxu1 %v13213_v22  ;;  %v12396_v2 = vld [vmem:[%s16861_s1 + $0x1ac] ss:$8 sps:$4 sm:$0xff]  }
  0x4c   : > { %819 = vmatmul.mubr.bf16.gmra.mxu0 %v12338_v27  ;;  %1171 = vmatmul.mubr.bf16.gmra.mxu1 %v12339_v28 }
  0x4d   : > { %826 = vmatprep.mubr.bf16.mxu0 %v12340_v29  ;;  %1178 = vmatprep.mubr.bf16.mxu1 %v12342_v30 }
  0x54   : > { %827 = vmatmul.mubr.bf16.gmra.mxu0 %v12344_v34  ;;  %1179 = vmatmul.mubr.bf16.gmra.mxu1 %v12345_v35 }
  0x55   : > { %834 = vmatprep.mubr.bf16.mxu0 %v12346_v36  ;;  %1186 = vmatprep.mubr.bf16.mxu1 %v12348_v37 }
  0x5c   : > { %835 = vmatmul.mubr.bf16.gmra.mxu0 %v12350_v39  ;;  %1187 = vmatmul.mubr.bf16.gmra.mxu1 %v12351_v40 }
  0x5d   : > { %842 = vmatprep.mubr.bf16.mxu0 %v12352_v41  ;;  %1194 = vmatprep.mubr.bf16.mxu1 %v12354_v42 }
  0x64   : > { %843 = vmatmul.mubr.bf16.gmra.mxu0 %v12356_v43  ;;  %1195 = vmatmul.mubr.bf16.gmra.mxu1 %v12357_v44 }
  0x65   : > { %850 = vmatprep.mubr.bf16.mxu0 %v12358_v45  ;;  %1202 = vmatprep.mubr.bf16.mxu1 %v12360_v46  ;;  %v13588_v45 = vld [vmem:[%s13353_s15 + $0x38] sm:$0xff]  }
  0x6c   : > { %851 = vmatmul.mubr.bf16.gmra.mxu0 %v12362_v47  ;;  %1203 = vmatmul.mubr.bf16.gmra.mxu1 %v12363_v48  ;;  %v13592_v48 = vld [vmem:[%s13353_s15 + $0x70] sm:$0xff]  }
  0x6d   : > { %858 = vmatprep.mubr.bf16.mxu0 %v12364_v49  ;;  %1210 = vmatprep.mubr.bf16.mxu1 %v12366_v50 }
  0x74   : > { %859 = vmatmul.mubr.bf16.gmra.mxu0 %v12368_v51  ;;  %1211 = vmatmul.mubr.bf16.gmra.mxu1 %v12369_v52 }
  0x75   : > { %866 = vmatprep.mubr.bf16.mxu0 %v12370_v53  ;;  %1218 = vmatprep.mubr.bf16.mxu1 %v12372_v54 }
  0x7c   : > { %867 = vmatmul.mubr.bf16.gmra.mxu0 %v12374_v55  ;;  %1219 = vmatmul.mubr.bf16.gmra.mxu1 %v12375_v56  ;;  %v13596_v56 = vld [vmem:[%s13353_s15 + $0x30] sm:$0xff]  }
  0x7d   : > { %874 = vmatprep.mubr.bf16.mxu0 %v12376_v57  ;;  %1226 = vmatprep.mubr.bf16.mxu1 %v12378_v58 }
  0x84   : > { %875 = vmatmul.mubr.bf16.gmra.mxu0 %v12380_v60  ;;  %1227 = vmatmul.mubr.bf16.gmra.mxu1 %v12381_v61 }
  0x85   : > { %882 = vmatprep.mubr.bf16.mxu0 %v12382_v63  ;;  %1234 = vmatprep.mubr.bf16.mxu1 %v12384_v0  ;;  %v13610_v63 = vld [vmem:[%s13353_s15 + $0x28] sm:$0xff]  }
  0x8c   : > { %883 = vmatmul.mubr.bf16.gmra.mxu0 %v12386_v4  ;;  %1235 = vmatmul.mubr.bf16.gmra.mxu1 %v12387_v5 }
  0x8d   : > { %890 = vmatprep.mubr.bf16.mxu0 %v12388_v6  ;;  %1242 = vmatprep.mubr.bf16.mxu1 %v12390_v7 }
  0x94   : > { %891 = vmatmul.mubr.bf16.gmra.mxu0 %v12392_v8  ;;  %1243 = vmatmul.mubr.bf16.gmra.mxu1 %v12393_v9 }
  0x95   : > { %898 = vmatprep.mubr.bf16.mxu0 %v12394_v10  ;;  %1250 = vmatprep.mubr.bf16.mxu1 %v12396_v2  ;;  %v13618_v2 = vld [vmem:[%s13353_s15 + $0x20] sm:$0xff]  }
  0x9c   : > { %899 = vmatmul.mubr.bf16.gmra.mxu0 %v12398_v11  ;;  %1251 = vmatmul.mubr.bf16.gmra.mxu1 %v12399_v12 }
  0x9d   : > { %906 = vmatprep.mubr.bf16.mxu0 %v12400_v13  ;;  %1258 = vmatprep.mubr.bf16.mxu1 %v12402_v14  ;;  %v13622_v13 = vld [vmem:[%s13353_s15 + $0x58] sm:$0xff]  }
  0xa4   : > { %907 = vmatmul.mubr.bf16.gmra.mxu0 %v12404_v17  ;;  %1259 = vmatmul.mubr.bf16.gmra.mxu1 %v12405_v18  ;;  %v13632_v17 = vld [vmem:[%s13353_s15 + $0x18] sm:$0xff]  }
  0xa5   : > { %1266 = vmatprep.mubr.bf16.mxu1 %v9815_v19  ;;  %914 = vmatprep.mubr.bf16.mxu0 %v9740_v20  ;;  %v13636_v20 = vld [vmem:[%s13353_s15 + $0x50] sm:$0xff]  }
  0xac   : > { %1267 = vmatmul.mubr.bf16.gmra.mxu1 %v9814_v21  ;;  %915 = vmatmul.mubr.bf16.gmra.mxu0 %v9739_v23 }
  0xad   : > { %11544 = vmatprep.mubr.msk.bf16.mxu0 %vm13214_vm0, %v13213_v22  ;;  %11612 = vmatprep.mubr.msk.bf16.mxu1 %vm13214_vm0, %v13213_v22 }
  0xfc   : > { %v10847_v24 = vpop.f32.mrf.mxu0  ;;  %v10953_v25 = vpop.f32.mrf.mxu1 }
  0xfe   : > { %v10848_v26 = vpop.f32.mrf.mxu0  ;;  %v10954_v27 = vpop.f32.mrf.mxu1 }
  0xff   : > { %v10849_v30 = vadd.f32 %v10848_v26, %v10847_v24  ;;  %v10955_v33 = vadd.f32 %v10954_v27, %v10953_v25 }
 0x100   : > { %v10850_v28 = vpop.f32.mrf.mxu0  ;;  %v10956_v29 = vpop.f32.mrf.mxu1 }
 0x102   : > { %v10851_v31 = vpop.f32.mrf.mxu0  ;;  %v10957_v32 = vpop.f32.mrf.mxu1 }
 0x103   : > { %v10852_v34 = vadd.f32 %v10851_v31, %v10850_v28  ;;  %v10958_v35 = vadd.f32 %v10957_v32, %v10956_v29  ;;  %v13640_v29 = vld [vmem:[%s13353_s15 + $0x10] sm:$0xff]   ;;  %v13644_v32 = vld [vmem:[%s13353_s15 + $0x48] sm:$0xff]  }
 0x104   : > { %v10853_v36 = vpop.f32.mrf.mxu0  ;;  %v10959_v37 = vpop.f32.mrf.mxu1 }
 0x105   : > { %v922_v38 = vpack.c.bf16 %v10852_v34, %v10849_v30  ;;  %v1274_v39 = vpack.c.bf16 %v10958_v35, %v10955_v33 }
 0x106   : > { %v10854_v40 = vpop.f32.mrf.mxu0  ;;  %v10960_v41 = vpop.f32.mrf.mxu1 }
 0x107   : > { %11545 = vmatmul.mubr.msk.bf16.vlgmr.msra.gmra.mxu0 %vm1322_vm1, %v1274_v39  ;;  %11613 = vmatmul.mubr.msk.bf16.vlgmr.msra.gmra.mxu1 %vm1322_vm1, %v922_v38  ;;  %v10855_v44 = vadd.f32 %v10854_v40, %v10853_v36  ;;  %v10961_v49 = vadd.f32 %v10960_v41, %v10959_v37  ;;  %v13654_v36 = vld [vmem:[%s13353_s15 + $0x8] sm:$0xff]   ;;  %v13658_v39 = vld [vmem:[%s13353_s15 + $0x40] sm:$0xff]  }
 0x108   : > { %v10856_v42 = vpop.f32.mrf.mxu0  ;;  %v10962_v43 = vpop.f32.mrf.mxu1  ;;  %11548 = vmatprep.mubr.msk.bf16.mxu0 %vm13214_vm0, %v13213_v22  ;;  %11616 = vmatprep.mubr.msk.bf16.mxu1 %vm13214_vm0, %v13213_v22 }
 0x109   : > { %11082 = vmatpush3.bf16.msra.mxu0 %v13588_v45 }
 0x10a   : > { %v10857_v46 = vpop.f32.mrf.mxu0  ;;  %v10963_v47 = vpop.f32.mrf.mxu1  ;;  %11083 = vmatprep.subr.bf16.mxu0 %v13592_v48 }
 0x10b   : > { %v10858_v50 = vadd.f32 %v10857_v46, %v10856_v42  ;;  %v10964_v51 = vadd.f32 %v10963_v47, %v10962_v43 }
 0x10c   : > { %v10859_v52 = vpop.f32.mrf.mxu0  ;;  %v10965_v53 = vpop.f32.mrf.mxu1 }
 0x10d   : > { %v923_v54 = vpack.c.bf16 %v10858_v50, %v10855_v44  ;;  %v1275_v55 = vpack.c.bf16 %v10964_v51, %v10961_v49  ;;  %11084 = vmatpush3.bf16.msra.mxu0 %v13596_v56  ;;  %v13662_v49 = vld [vmem:[%s13353_s15] sm:$0xff]  }
 0x10e   : > { %v10860_v57 = vpop.f32.mrf.mxu0  ;;  %v10966_v58 = vpop.f32.mrf.mxu1  ;;  %11085 = vmatprep.subr.bf16.mxu0 %v13600_v59 }
 0x10f   : > { %11549 = vmatmul.mubr.msk.bf16.gmra.mxu0 %vm1322_vm1, %v1275_v55  ;;  %11617 = vmatmul.mubr.msk.bf16.gmra.mxu1 %vm1322_vm1, %v923_v54  ;;  %v10861_v62 = vadd.f32 %v10860_v57, %v10859_v52  ;;  %v10967_v4 = vadd.f32 %v10966_v58, %v10965_v53  ;;  %v13150_v52 = vld [vmem:[%s13353_s15 + $0x78] sm:$0xff]   ;;  %s13155_s15 = sshll.u32 %s13218_s17, 4  ;;  %s13156_s15 = int_to_ptr.vmem [resolvable:$false] %s13155_s15 }
 0x110   : > { %v10862_v60 = vpop.f32.mrf.mxu0  ;;  %v10968_v61 = vpop.f32.mrf.mxu1  ;;  %11552 = vmatprep.mubr.msk.bf16.mxu0 %vm13214_vm0, %v13213_v22  ;;  %11620 = vmatprep.mubr.msk.bf16.mxu1 %vm13214_vm0, %v13213_v22  ;;  %s13157_s22 = scalar_lea.vmem %s13156_s15, 32 }
 0x111   : > { %11086 = vmatpush3.bf16.msra.mxu0 %v13610_v63 }
 0x112   : > { %v10863_v0 = vpop.f32.mrf.mxu0  ;;  %v10969_v1 = vpop.f32.mrf.mxu1  ;;  %11087 = vmatprep.subr.bf16.mxu0 %v13614_v3 }
 0x113   : > { %v10864_v5 = vadd.f32 %v10863_v0, %v10862_v60  ;;  %v10970_v6 = vadd.f32 %v10969_v1, %v10968_v61 }
 0x114   : > { %v10865_v7 = vpop.f32.mrf.mxu0  ;;  %v10971_v8 = vpop.f32.mrf.mxu1 }
 0x115   : > { %v924_v9 = vpack.c.bf16 %v10864_v5, %v10861_v62  ;;  %v1276_v10 = vpack.c.bf16 %v10970_v6, %v10967_v4  ;;  %11088 = vmatpush3.bf16.msra.mxu0 %v13618_v2 }
 0x116   : > { %v10866_v11 = vpop.f32.mrf.mxu0  ;;  %v10972_v12 = vpop.f32.mrf.mxu1  ;;  %11089 = vmatprep.subr.bf16.mxu0 %v13622_v13 }
 0x117   : > { %11553 = vmatmul.mubr.msk.bf16.gmra.mxu0 %vm1322_vm1, %v1276_v10  ;;  %11621 = vmatmul.mubr.msk.bf16.gmra.mxu1 %vm1322_vm1, %v924_v9  ;;  %v10867_v16 = vadd.f32 %v10866_v11, %v10865_v7  ;;  %v10973_v21 = vadd.f32 %v10972_v12, %v10971_v8 }
 0x118   : > { %v10868_v14 = vpop.f32.mrf.mxu0  ;;  %v10974_v15 = vpop.f32.mrf.mxu1  ;;  %11556 = vmatprep.mubr.msk.bf16.mxu0 %vm13214_vm0, %v13213_v22  ;;  %11624 = vmatprep.mubr.msk.bf16.mxu1 %vm13214_vm0, %v13213_v22 }
 0x119   : > { %11090 = vmatpush3.bf16.msra.mxu0 %v13632_v17 }
 0x11a   : > { %v10869_v18 = vpop.f32.mrf.mxu0  ;;  %v10975_v19 = vpop.f32.mrf.mxu1  ;;  %11091 = vmatprep.subr.bf16.mxu0 %v13636_v20 }
 0x11b   : > { %v10870_v23 = vadd.f32 %v10869_v18, %v10868_v14  ;;  %v10976_v24 = vadd.f32 %v10975_v19, %v10974_v15 }
 0x11c   : > { %v10871_v25 = vpop.f32.mrf.mxu0  ;;  %v10977_v26 = vpop.f32.mrf.mxu1 }
 0x11d   : > { %v925_v27 = vpack.c.bf16 %v10870_v23, %v10867_v16  ;;  %v1277_v28 = vpack.c.bf16 %v10976_v24, %v10973_v21  ;;  %11092 = vmatpush3.bf16.msra.mxu0 %v13640_v29 }
 0x11e   : > { %v10872_v30 = vpop.f32.mrf.mxu0  ;;  %v10978_v31 = vpop.f32.mrf.mxu1  ;;  %11093 = vmatprep.subr.bf16.mxu0 %v13644_v32 }
 0x11f   : > { %11557 = vmatmul.mubr.msk.bf16.gmra.mxu0 %vm1322_vm1, %v1277_v28  ;;  %11625 = vmatmul.mubr.msk.bf16.gmra.mxu1 %vm1322_vm1, %v925_v27  ;;  %v10873_v35 = vadd.f32 %v10872_v30, %v10871_v25  ;;  %v10979_v40 = vadd.f32 %v10978_v31, %v10977_v26 }
 0x120   : > { %v10874_v33 = vpop.f32.mrf.mxu0  ;;  %v10980_v34 = vpop.f32.mrf.mxu1  ;;  %11560 = vmatprep.mubr.msk.bf16.mxu0 %vm13214_vm0, %v13213_v22  ;;  %11628 = vmatprep.mubr.msk.bf16.mxu1 %vm13214_vm0, %v13213_v22 }
 0x121   : > { %11094 = vmatpush3.bf16.msra.mxu0 %v13654_v36 }
 0x122   : > { %v10875_v37 = vpop.f32.mrf.mxu0  ;;  %v10981_v38 = vpop.f32.mrf.mxu1  ;;  %11095 = vmatprep.subr.bf16.mxu0 %v13658_v39 }
 0x123   : > { %v10876_v41 = vadd.f32 %v10875_v37, %v10874_v33  ;;  %v10982_v42 = vadd.f32 %v10981_v38, %v10980_v34 }
 0x124   : > { %v10877_v43 = vpop.f32.mrf.mxu0  ;;  %v10983_v44 = vpop.f32.mrf.mxu1 }
 0x125   : > { %v926_v46 = vpack.c.bf16 %v10876_v41, %v10873_v35  ;;  %v1278_v47 = vpack.c.bf16 %v10982_v42, %v10979_v40  ;;  %11096 = vmatpush3.bf16.msra.mxu0 %v13662_v49 }
 0x126   : > { %v10878_v50 = vpop.f32.mrf.mxu0  ;;  %v10984_v51 = vpop.f32.mrf.mxu1  ;;  %11206 = vmatprep.subr.bf16.mxu0 %v13150_v52 }
 0x127   : > { %11561 = vmatmul.mubr.msk.bf16.gmra.mxu0 %vm1322_vm1, %v1278_v47  ;;  %11629 = vmatmul.mubr.msk.bf16.gmra.mxu1 %vm1322_vm1, %v926_v46  ;;  %v10879_v55 = vadd.f32 %v10878_v50, %v10877_v43  ;;  %v10985_v60 = vadd.f32 %v10984_v51, %v10983_v44 }
 0x128   : > { %v10880_v53 = vpop.f32.mrf.mxu0  ;;  %v10986_v54 = vpop.f32.mrf.mxu1  ;;  %11564 = vmatprep.mubr.msk.bf16.mxu0 %vm13214_vm0, %v13213_v22  ;;  %11632 = vmatprep.mubr.msk.bf16.mxu1 %vm13214_vm0, %v13213_v22 }
 0x12a   : > { %v10881_v57 = vpop.f32.mrf.mxu0  ;;  %v10987_v58 = vpop.f32.mrf.mxu1 }
 0x12b   : > { %v10882_v61 = vadd.f32 %v10881_v57, %v10880_v53  ;;  %v10988_v62 = vadd.f32 %v10987_v58, %v10986_v54 }
 0x12c   : > { %v10883_v0 = vpop.f32.mrf.mxu0  ;;  %v10989_v1 = vpop.f32.mrf.mxu1 }
 0x12d   : > { %v927_v4 = vpack.c.bf16 %v10882_v61, %v10879_v55  ;;  %v1279_v5 = vpack.c.bf16 %v10988_v62, %v10985_v60 }
 0x12e   : > { %v10884_v6 = vpop.f32.mrf.mxu0  ;;  %v10990_v7 = vpop.f32.mrf.mxu1 }
 0x12f   : > { %11565 = vmatmul.mubr.msk.bf16.gmra.mxu0 %vm1322_vm1, %v1279_v5  ;;  %11633 = vmatmul.mubr.msk.bf16.gmra.mxu1 %vm1322_vm1, %v927_v4  ;;  %v10885_v10 = vadd.f32 %v10884_v6, %v10883_v0  ;;  %v10991_v14 = vadd.f32 %v10990_v7, %v10989_v1 }
 0x130   : > { %v10886_v8 = vpop.f32.mrf.mxu0  ;;  %v10992_v9 = vpop.f32.mrf.mxu1  ;;  %11568 = vmatprep.mubr.msk.bf16.mxu0 %vm13214_vm0, %v13213_v22  ;;  %11636 = vmatprep.mubr.msk.bf16.mxu1 %vm13214_vm0, %v13213_v22 }
 0x132   : > { %v10887_v11 = vpop.f32.mrf.mxu0  ;;  %v10993_v12 = vpop.f32.mrf.mxu1 }
 0x133   : > { %v10888_v15 = vadd.f32 %v10887_v11, %v10886_v8  ;;  %v10994_v16 = vadd.f32 %v10993_v12, %v10992_v9 }
 0x134   : > { %v10889_v18 = vpop.f32.mrf.mxu0  ;;  %v10995_v19 = vpop.f32.mrf.mxu1 }
 0x135   : > { %v928_v21 = vpack.c.bf16 %v10888_v15, %v10885_v10  ;;  %v1280_v23 = vpack.c.bf16 %v10994_v16, %v10991_v14 }
 0x136   : > { %v10890_v24 = vpop.f32.mrf.mxu0  ;;  %v10996_v25 = vpop.f32.mrf.mxu1 }
 0x137   : > { %11569 = vmatmul.mubr.msk.bf16.gmra.mxu0 %vm1322_vm1, %v1280_v23  ;;  %11637 = vmatmul.mubr.msk.bf16.gmra.mxu1 %vm1322_vm1, %v928_v21  ;;  %v10891_v28 = vadd.f32 %v10890_v24, %v10889_v18  ;;  %v10997_v33 = vadd.f32 %v10996_v25, %v10995_v19 }
 0x138   : > { %v10892_v26 = vpop.f32.mrf.mxu0  ;;  %v10998_v27 = vpop.f32.mrf.mxu1  ;;  %11572 = vmatprep.mubr.msk.bf16.mxu0 %vm13214_vm0, %v13213_v22  ;;  %11640 = vmatprep.mubr.msk.bf16.mxu1 %vm13214_vm0, %v13213_v22 }
 0x13a   : > { %v10893_v30 = vpop.f32.mrf.mxu0  ;;  %v10999_v31 = vpop.f32.mrf.mxu1 }
 0x13b   : > { %v10894_v34 = vadd.f32 %v10893_v30, %v10892_v26  ;;  %v11000_v35 = vadd.f32 %v10999_v31, %v10998_v27 }
 0x13c   : > { %v10895_v37 = vpop.f32.mrf.mxu0  ;;  %v11001_v38 = vpop.f32.mrf.mxu1 }
 0x13d   : > { %v929_v40 = vpack.c.bf16 %v10894_v34, %v10891_v28  ;;  %v1281_v41 = vpack.c.bf16 %v11000_v35, %v10997_v33 }
 0x13e   : > { %v10896_v42 = vpop.f32.mrf.mxu0  ;;  %v11002_v43 = vpop.f32.mrf.mxu1 }
 0x13f   : > { %11573 = vmatmul.mubr.msk.bf16.gmra.mxu0 %vm1322_vm1, %v1281_v41  ;;  %11641 = vmatmul.mubr.msk.bf16.gmra.mxu1 %vm1322_vm1, %v929_v40  ;;  %v10897_v47 = vadd.f32 %v10896_v42, %v10895_v37  ;;  %v11003_v52 = vadd.f32 %v11002_v43, %v11001_v38 }
 0x140   : > { %v10898_v44 = vpop.f32.mrf.mxu0  ;;  %v11004_v46 = vpop.f32.mrf.mxu1  ;;  %11576 = vmatprep.mubr.msk.bf16.mxu0 %vm13214_vm0, %v13213_v22  ;;  %11644 = vmatprep.mubr.msk.bf16.mxu1 %vm13214_vm0, %v13213_v22 }
 0x142   : > { %v10899_v50 = vpop.f32.mrf.mxu0  ;;  %v11005_v51 = vpop.f32.mrf.mxu1 }
 0x143   : > { %v10900_v53 = vadd.f32 %v10899_v50, %v10898_v44  ;;  %v11006_v54 = vadd.f32 %v11005_v51, %v11004_v46 }
 0x144   : > { %v10901_v55 = vpop.f32.mrf.mxu0  ;;  %v11007_v57 = vpop.f32.mrf.mxu1 }
 0x145   : > { %v930_v58 = vpack.c.bf16 %v10900_v53, %v10897_v47  ;;  %v1282_v60 = vpack.c.bf16 %v11006_v54, %v11003_v52 }
 0x146   : > { %v10902_v61 = vpop.f32.mrf.mxu0  ;;  %v11008_v62 = vpop.f32.mrf.mxu1 }
 0x147   : > { %11577 = vmatmul.mubr.msk.bf16.gmra.mxu0 %vm1322_vm1, %v1282_v60  ;;  %11645 = vmatmul.mubr.msk.bf16.gmra.mxu1 %vm1322_vm1, %v930_v58  ;;  %v10903_v4 = vadd.f32 %v10902_v61, %v10901_v55  ;;  %v11009_v7 = vadd.f32 %v11008_v62, %v11007_v57 }
 0x148   : > { %v10904_v0 = vpop.f32.mrf.mxu0  ;;  %v11010_v1 = vpop.f32.mrf.mxu1  ;;  %11580 = vmatprep.mubr.msk.bf16.mxu0 %vm13214_vm0, %v13213_v22  ;;  %11648 = vmatprep.mubr.msk.bf16.mxu1 %vm13214_vm0, %v13213_v22 }
 0x14a   : > { %v10905_v5 = vpop.f32.mrf.mxu0  ;;  %v11011_v6 = vpop.f32.mrf.mxu1 }
 0x14b   : > { %v10906_v8 = vadd.f32 %v10905_v5, %v10904_v0  ;;  %v11012_v9 = vadd.f32 %v11011_v6, %v11010_v1 }
 0x14c   : > { %v10907_v10 = vpop.f32.mrf.mxu0  ;;  %v11013_v11 = vpop.f32.mrf.mxu1 }
 0x14d   : > { %v931_v12 = vpack.c.bf16 %v10906_v8, %v10903_v4  ;;  %v1283_v14 = vpack.c.bf16 %v11012_v9, %v11009_v7 }
 0x14e   : > { %v10908_v15 = vpop.f32.mrf.mxu0  ;;  %v11014_v16 = vpop.f32.mrf.mxu1 }
 0x14f   : > { %11581 = vmatmul.mubr.msk.bf16.gmra.mxu0 %vm1322_vm1, %v1283_v14  ;;  %11649 = vmatmul.mubr.msk.bf16.gmra.mxu1 %vm1322_vm1, %v931_v12  ;;  %v10909_v21 = vadd.f32 %v10908_v15, %v10907_v10  ;;  %v11015_v25 = vadd.f32 %v11014_v16, %v11013_v11 }
 0x150   : > { %v10910_v18 = vpop.f32.mrf.mxu0  ;;  %v11016_v19 = vpop.f32.mrf.mxu1  ;;  %11584 = vmatprep.mubr.msk.bf16.mxu0 %vm13214_vm0, %v13213_v22  ;;  %11652 = vmatprep.mubr.msk.bf16.mxu1 %vm13214_vm0, %v13213_v22 }
 0x152   : > { %v10911_v23 = vpop.f32.mrf.mxu0  ;;  %v11017_v24 = vpop.f32.mrf.mxu1 }
 0x153   : > { %v10912_v26 = vadd.f32 %v10911_v23, %v10910_v18  ;;  %v11018_v27 = vadd.f32 %v11017_v24, %v11016_v19 }
 0x154   : > { %v10913_v28 = vpop.f32.mrf.mxu0  ;;  %v11019_v30 = vpop.f32.mrf.mxu1 }
 0x155   : > { %v932_v31 = vpack.c.bf16 %v10912_v26, %v10909_v21  ;;  %v1284_v33 = vpack.c.bf16 %v11018_v27, %v11015_v25 }
 0x156   : > { %v10914_v34 = vpop.f32.mrf.mxu0  ;;  %v11020_v35 = vpop.f32.mrf.mxu1 }
 0x157   : > { %11585 = vmatmul.mubr.msk.bf16.gmra.mxu0 %vm1322_vm1, %v1284_v33  ;;  %11653 = vmatmul.mubr.msk.bf16.gmra.mxu1 %vm1322_vm1, %v932_v31  ;;  %v10915_v40 = vadd.f32 %v10914_v34, %v10913_v28  ;;  %v11021_v43 = vadd.f32 %v11020_v35, %v11019_v30 }
 0x158   : > { %v10916_v37 = vpop.f32.mrf.mxu0  ;;  %v11022_v38 = vpop.f32.mrf.mxu1  ;;  %11588 = vmatprep.mubr.msk.bf16.mxu0 %vm13214_vm0, %v13213_v22  ;;  %11656 = vmatprep.mubr.msk.bf16.mxu1 %vm13214_vm0, %v13213_v22 }
 0x15a   : > { %v10917_v41 = vpop.f32.mrf.mxu0  ;;  %v11023_v42 = vpop.f32.mrf.mxu1 }
 0x15b   : > { %v10918_v44 = vadd.f32 %v10917_v41, %v10916_v37  ;;  %v11024_v46 = vadd.f32 %v11023_v42, %v11022_v38  ;;  %v12420_v38 = vld [vmem:[%s16861_s1 + $0x1d4] ss:$8 sps:$4 sm:$0xff]   ;;  %v12418_v42 = vld [vmem:[%s16861_s1 + $0x1d0] ss:$8 sps:$4 sm:$0xff]  }
 0x15c   : > { %v10919_v47 = vpop.f32.mrf.mxu0  ;;  %v11025_v50 = vpop.f32.mrf.mxu1  ;;  %v12465_v41 = vld [vmem:[%s16862_s2 + $0x58] sm:$0xff]  }
 0x15d   : > { %v933_v51 = vpack.c.bf16 %v10918_v44, %v10915_v40  ;;  %v1285_v52 = vpack.c.bf16 %v11024_v46, %v11021_v43  ;;  %11673 = vmatpush3.bf16.msra.mxu1 %v12465_v41  ;;  %v12423_v43 = vld [vmem:[%s16861_s1 + $0x1e4] ss:$8 sps:$4 sm:$0xff]   ;;  %v12421_v44 = vld [vmem:[%s16861_s1 + $0x1e0] ss:$8 sps:$4 sm:$0xff]   ;;  %v12426_v46 = vld [vmem:[%s16861_s1 + $0x1f4] ss:$8 sps:$4 sm:$0xff]  }
 0x15e   : > { %v10920_v53 = vpop.f32.mrf.mxu0  ;;  %v11026_v54 = vpop.f32.mrf.mxu1  ;;  %11674 = vmatprep.subr.bf16.mxu1 %v13213_v22 }
 0x15f   : > { %11589 = vmatmul.mubr.msk.bf16.gmra.mxu0 %vm1322_vm1, %v1285_v52  ;;  %11657 = vmatmul.mubr.msk.bf16.gmra.mxu1 %vm1322_vm1, %v933_v51  ;;  %v10921_v58 = vadd.f32 %v10920_v53, %v10919_v47  ;;  %v11027_v62 = vadd.f32 %v11026_v54, %v11025_v50  ;;  %v12447_v47 = vld [vmem:[%s16861_s1 + $0x264] ss:$8 sps:$4 sm:$0xff]   ;;  %v12445_v50 = vld [vmem:[%s16861_s1 + $0x260] ss:$8 sps:$4 sm:$0xff]   ;;  %v12450_v51 = vld [vmem:[%s16861_s1 + $0x274] ss:$8 sps:$4 sm:$0xff]  }
 0x160   : > { %v10922_v55 = vpop.f32.mrf.mxu0  ;;  %v11028_v57 = vpop.f32.mrf.mxu1  ;;  %11592 = vmatprep.mubr.msk.bf16.mxu0 %vm13214_vm0, %v13213_v22  ;;  %11660 = vmatprep.mubr.msk.bf16.mxu1 %vm13214_vm0, %v13213_v22  ;;  %v12498_v52 = vld [vmem:[%s16862_s2 + $0x40] sm:$0xff]  }
 0x162   : > { %v10923_v60 = vpop.f32.mrf.mxu0  ;;  %v11029_v61 = vpop.f32.mrf.mxu1 }
 0x163   : > { %v10924_v0 = vadd.f32 %v10923_v60, %v10922_v55  ;;  %v11030_v1 = vadd.f32 %v11029_v61, %v11028_v57 }
 0x164   : > { %v10925_v4 = vpop.f32.mrf.mxu0  ;;  %v11031_v5 = vpop.f32.mrf.mxu1 }
 0x165   : > { %v934_v6 = vpack.c.bf16 %v10924_v0, %v10921_v58  ;;  %v1286_v7 = vpack.c.bf16 %v11030_v1, %v11027_v62  ;;  %v12448_v62 = vld [vmem:[%s16861_s1 + $0x270] ss:$8 sps:$4 sm:$0xff]   ;;  %v12453_v1 = vld [vmem:[%s16861_s1 + $0x284] ss:$8 sps:$4 sm:$0xff]  }
 0x166   : > { %v10926_v8 = vpop.f32.mrf.mxu0  ;;  %v11032_v9 = vpop.f32.mrf.mxu1 }
 0x167   : > { %11593 = vmatmul.mubr.msk.bf16.gmra.mxu0 %vm1322_vm1, %v1286_v7  ;;  %11661 = vmatmul.mubr.msk.bf16.gmra.mxu1 %vm1322_vm1, %v934_v6  ;;  %v10927_v12 = vadd.f32 %v10926_v8, %v10925_v4  ;;  %v11033_v16 = vadd.f32 %v11032_v9, %v11031_v5 }
 0x168   : > { %v10928_v10 = vpop.f32.mrf.mxu0  ;;  %v11034_v11 = vpop.f32.mrf.mxu1  ;;  %11596 = vmatprep.mubr.msk.bf16.mxu0 %vm13214_vm0, %v13213_v22  ;;  %11664 = vmatprep.mubr.msk.bf16.mxu1 %vm13214_vm0, %v13213_v22 }
 0x16a   : > { %v10929_v14 = vpop.f32.mrf.mxu0  ;;  %v11035_v15 = vpop.f32.mrf.mxu1 }
 0x16b   : > { %v10930_v18 = vadd.f32 %v10929_v14, %v10928_v10  ;;  %v11036_v19 = vadd.f32 %v11035_v15, %v11034_v11  ;;  %v12451_v14 = vld [vmem:[%s16861_s1 + $0x280] ss:$8 sps:$4 sm:$0xff]  }
 0x16c   : > { %v11037_v21 = vpop.f32.mrf.mxu1  ;;  %v10931_v23 = vpop.f32.mrf.mxu0 }
 0x16d   : > { %v935_v24 = vpack.c.bf16 %v10930_v18, %v10927_v12  ;;  %v1287_v25 = vpack.c.bf16 %v11036_v19, %v11033_v16  ;;  %v12456_v16 = vld [vmem:[%s16861_s1 + $0x294] ss:$8 sps:$4 sm:$0xff]  }
 0x16e   : > { %v11038_v26 = vpop.f32.mrf.mxu1  ;;  %v10932_v27 = vpop.f32.mrf.mxu0 }
 0x16f   : > { %11597 = vmatmul.mubr.msk.bf16.gmra.mxu0 %vm1322_vm1, %v1287_v25  ;;  %11665 = vmatmul.mubr.msk.bf16.gmra.mxu1 %vm1322_vm1, %v935_v24  ;;  %v10933_v28 = vadd.f32 %v10932_v27, %v10931_v23  ;;  %v11039_v33 = vadd.f32 %v11038_v26, %v11037_v21 }
 0x170   : > { %v11040_v30 = vpop.f32.mrf.mxu1  ;;  %11600 = vmatprep.mubr.msk.bf16.mxu0 %vm13214_vm0, %v13213_v22  ;;  %11668 = vmatprep.mubr.msk.bf16.mxu1 %vm13214_vm0, %v13213_v22  ;;  %v10934_v31 = vpop.f32.mrf.mxu0 }
 0x171   : > { %v936_v37 = vpack.c.bf16 %v10933_v28, %v10933_v28  ;;  %v1288_v40 = vpack.c.bf16 %v11039_v33, %v11039_v33  ;;  %v12454_v30 = vld [vmem:[%s16861_s1 + $0x290] ss:$8 sps:$4 sm:$0xff]   ;;  %v12459_v33 = vld [vmem:[%s16861_s1 + $0x2a4] ss:$8 sps:$4 sm:$0xff]  }
 0x172   : > { %v11041_v34 = vpop.f32.mrf.mxu1  ;;  %v10935_v35 = vpop.f32.mrf.mxu0 }
 0x177   : > { %11601 = vmatmul.mubr.msk.bf16.gmra.mxu0 %vm1322_vm1, %v1288_v40  ;;  %11669 = vmatmul.mubr.msk.bf16.gmra.mxu1 %vm1322_vm1, %v936_v37 }
 0x178   : > { %1950 = vmatprep.mubr.bf16.mxu0 %v12420_v38  ;;  %11680 = vmatprep.mubr.msk.bf16.mxu1 %vm13214_vm0, %v13213_v22 }
 0x17f   : > { %1951 = vmatmul.mubr.bf16.vlgmr.msra.gmra.mxu0 %v12418_v42 }
 0x180   : > { %1958 = vmatprep.mubr.bf16.mxu0 %v12423_v43  ;;  %11207 = vmatpush3.bf16.msra.mxu0 %v13588_v45  ;;  %v12424_v45 = vld [vmem:[%s16861_s1 + $0x1f0] ss:$8 sps:$4 sm:$0xff]  }
 0x181   : > { %11208 = vmatprep.subr.bf16.mxu0 %v13592_v48  ;;  %v12429_v48 = vld [vmem:[%s16861_s1 + $0x204] ss:$8 sps:$4 sm:$0xff]   ;;  %v9890_v43 = vld [vmem:[%s16861_s1 + $0x2b0] sm:$0x11] }
 0x184   : > { %11209 = vmatpush3.bf16.msra.mxu0 %v13596_v56  ;;  %v12427_v56 = vld [vmem:[%s16861_s1 + $0x200] ss:$8 sps:$4 sm:$0xff]  }
 0x185   : > { %11210 = vmatprep.subr.bf16.mxu0 %v13600_v59  ;;  %v12432_v59 = vld [vmem:[%s16861_s1 + $0x214] ss:$8 sps:$4 sm:$0xff]  }
 0x187   : > { %1959 = vmatmul.mubr.bf16.gmra.mxu0 %v12421_v44 }
 0x188   : > { %1966 = vmatprep.mubr.bf16.mxu0 %v12426_v46  ;;  %11211 = vmatpush3.bf16.msra.mxu0 %v13610_v63  ;;  %v12478_v63 = vld [vmem:[%s16862_s2 + $0x50] sm:$0xff]  }
 0x189   : > { %11212 = vmatprep.subr.bf16.mxu0 %v13614_v3  ;;  %11675 = vmatpush3.bf16.msra.mxu1 %v12478_v63  ;;  %v12430_v3 = vld [vmem:[%s16861_s1 + $0x210] ss:$8 sps:$4 sm:$0xff]  }
 0x18a   : > { %11676 = vmatprep.subr.bf16.mxu1 %v13213_v22 }
 0x18c   : > { %11213 = vmatpush3.bf16.msra.mxu0 %v13618_v2  ;;  %v12435_v2 = vld [vmem:[%s16861_s1 + $0x224] ss:$8 sps:$4 sm:$0xff]  }
 0x18d   : > { %11214 = vmatprep.subr.bf16.mxu0 %v13622_v13  ;;  %v12433_v13 = vld [vmem:[%s16861_s1 + $0x220] ss:$8 sps:$4 sm:$0xff]  }
 0x18f   : > { %1967 = vmatmul.mubr.bf16.gmra.mxu0 %v12424_v45  ;;  %v12457_v45 = vld [vmem:[%s16861_s1 + $0x2a0] ss:$8 sps:$4 sm:$0xff]  }
 0x190   : > { %1974 = vmatprep.mubr.bf16.mxu0 %v12429_v48  ;;  %11215 = vmatpush3.bf16.msra.mxu0 %v13632_v17  ;;  %v12438_v17 = vld [vmem:[%s16861_s1 + $0x234] ss:$8 sps:$4 sm:$0xff]  }
 0x191   : > { %11216 = vmatprep.subr.bf16.mxu0 %v13636_v20  ;;  %v12436_v20 = vld [vmem:[%s16861_s1 + $0x230] ss:$8 sps:$4 sm:$0xff]  }
 0x194   : > { %11217 = vmatpush3.bf16.msra.mxu0 %v13640_v29  ;;  %v12441_v29 = vld [vmem:[%s16861_s1 + $0x244] ss:$8 sps:$4 sm:$0xff]  }
 0x195   : > { %11218 = vmatprep.subr.bf16.mxu0 %v13644_v32  ;;  %v12439_v32 = vld [vmem:[%s16861_s1 + $0x240] ss:$8 sps:$4 sm:$0xff]  }
 0x197   : > { %1975 = vmatmul.mubr.bf16.gmra.mxu0 %v12427_v56  ;;  %v9920_v56 = vcombine.high %v9890_v43, %v9890_v43 }
 0x198   : > { %1982 = vmatprep.mubr.bf16.mxu0 %v12432_v59  ;;  %11219 = vmatpush3.bf16.msra.mxu0 %v13654_v36  ;;  %v12444_v36 = vld [vmem:[%s16861_s1 + $0x254] ss:$8 sps:$4 sm:$0xff]  }
 0x199   : > { %11220 = vmatprep.subr.bf16.mxu0 %v13658_v39  ;;  %v12488_v39 = vld [vmem:[%s16862_s2 + $0x48] sm:$0xff]  }
 0x19a   : > { %11677 = vmatpush3.bf16.msra.mxu1 %v12488_v39 }
 0x19b   : > { %11678 = vmatprep.subr.bf16.mxu1 %v13213_v22 }
 0x19c   : > { %11221 = vmatpush3.bf16.msra.mxu0 %v13662_v49  ;;  %v12442_v49 = vld [vmem:[%s16861_s1 + $0x250] ss:$8 sps:$4 sm:$0xff]  }
 0x19e   : > { %11679 = vmatpush3.bf16.msra.mxu1 %v12498_v52 }
 0x19f   : > { %1983 = vmatmul.mubr.bf16.gmra.mxu0 %v12430_v3  ;;  %11740 = vmatprep.subr.bf16.mxu1 %v13213_v22 }
 0x1a0   : > { %1990 = vmatprep.mubr.bf16.mxu0 %v12435_v2 }
 0x1a7   : > { %1991 = vmatmul.mubr.bf16.gmra.mxu0 %v12433_v13 }
 0x1a8   : > { %1998 = vmatprep.mubr.bf16.mxu0 %v12438_v17 }
 0x1af   : > { %1999 = vmatmul.mubr.bf16.gmra.mxu0 %v12436_v20 }
 0x1b0   : > { %2006 = vmatprep.mubr.bf16.mxu0 %v12441_v29 }
 0x1b7   : > { %2007 = vmatmul.mubr.bf16.gmra.mxu0 %v12439_v32 }
 0x1b8   : > { %2014 = vmatprep.mubr.bf16.mxu0 %v12444_v36  ;;  %v9919_v36 = vcombine.low %v9890_v43, %v9890_v43 }
 0x1bf   : > { %2015 = vmatmul.mubr.bf16.gmra.mxu0 %v12442_v49  ;;  %v12464_v49 = vld [vmem:[%s16861_s1 + $0x2bc] ss:$8 sps:$4 sm:$0xff]  }
 0x1c0   : > { %2022 = vmatprep.mubr.bf16.mxu0 %v12447_v47 }
 0x1c7   : > { %v1402_v53 = vpop.f32.mrf.mxu0  ;;  %v1623_v54 = vpop.f32.mrf.mxu1  ;;  %2023 = vmatmul.mubr.bf16.gmra.mxu0 %v12445_v50 }
 0x1c8   : > { %v13823_v55 = vadd.f32 %v1623_v54, %v1402_v53  ;;  %2030 = vmatprep.mubr.bf16.mxu0 %v12450_v51 }
 0x1c9   : > { %v11546_v57 = vpop.f32.mrf.mxu0  ;;  %v11614_v58 = vpop.f32.mrf.mxu1 }
 0x1cb   : > { %v1405_v60 = vpop.f32.mrf.mxu0  ;;  %v1626_v61 = vpop.f32.mrf.mxu1 }
 0x1cc   : > { %v13829_v0 = vadd.f32 %v1626_v61, %v1405_v60  ;;  %v12462_v61 = vld [vmem:[%s16861_s1 + $0x2b8] ss:$8 sps:$4 sm:$0xff]  }
 0x1cd   : > { %v11547_v4 = vpop.f32.mrf.mxu0  ;;  %v11615_v5 = vpop.f32.mrf.mxu1 }
 0x1cf   : > { %v1410_v6 = vpop.f32.mrf.mxu0  ;;  %v1631_v7 = vpop.f32.mrf.mxu1  ;;  %2031 = vmatmul.mubr.bf16.gmra.mxu0 %v12448_v62 }
 0x1d0   : > { %v13834_v8 = vadd.f32 %v1631_v7, %v1410_v6  ;;  %2038 = vmatprep.mubr.bf16.mxu0 %v12453_v1  ;;  %v12468_v1 = vld [vmem:[%s16861_s1 + $0x2cc] ss:$8 sps:$4 sm:$0xff]  }
 0x1d1   : > { %v11550_v9 = vpop.f32.mrf.mxu0  ;;  %v11618_v10 = vpop.f32.mrf.mxu1 }
 0x1d3   : > { %v1413_v11 = vpop.f32.mrf.mxu0  ;;  %v1634_v12 = vpop.f32.mrf.mxu1 }
 0x1d4   : > { %v13839_v15 = vadd.f32 %v1634_v12, %v1413_v11 }
 0x1d5   : > { %v11551_v18 = vpop.f32.mrf.mxu0  ;;  %v11619_v19 = vpop.f32.mrf.mxu1 }
 0x1d6   : > { %v12471_v19 = vld [vmem:[%s16861_s1 + $0x2dc] ss:$8 sps:$4 sm:$0xff]  }
 0x1d7   : > { %v1418_v21 = vpop.f32.mrf.mxu0  ;;  %v1639_v23 = vpop.f32.mrf.mxu1  ;;  %2039 = vmatmul.mubr.bf16.gmra.mxu0 %v12451_v14 }
 0x1d8   : > { %v13844_v24 = vadd.f32 %v1639_v23, %v1418_v21  ;;  %2046 = vmatprep.mubr.bf16.mxu0 %v12456_v16  ;;  %v12466_v16 = vld [vmem:[%s16861_s1 + $0x2c8] ss:$8 sps:$4 sm:$0xff]  }
 0x1d9   : > { %v11554_v25 = vpop.f32.mrf.mxu0  ;;  %v11622_v26 = vpop.f32.mrf.mxu1 }
 0x1db   : > { %v1421_v27 = vpop.f32.mrf.mxu0  ;;  %v1642_v28 = vpop.f32.mrf.mxu1 }
 0x1dc   : > { %v13849_v31 = vadd.f32 %v1642_v28, %v1421_v27 }
 0x1dd   : > { %v11555_v34 = vpop.f32.mrf.mxu0  ;;  %v11623_v35 = vpop.f32.mrf.mxu1 }
 0x1de   : > { %v12469_v35 = vld [vmem:[%s16861_s1 + $0x2d8] ss:$8 sps:$4 sm:$0xff]  }
 0x1df   : > { %v1426_v37 = vpop.f32.mrf.mxu0  ;;  %v1647_v38 = vpop.f32.mrf.mxu1  ;;  %2047 = vmatmul.mubr.bf16.gmra.mxu0 %v12454_v30 }
 0x1e0   : > { %v13854_v40 = vadd.f32 %v1647_v38, %v1426_v37  ;;  %2054 = vmatprep.mubr.bf16.mxu0 %v12459_v33  ;;  %v12474_v38 = vld [vmem:[%s16861_s1 + $0x2ec] ss:$8 sps:$4 sm:$0xff]  }
 0x1e1   : > { %v11558_v41 = vpop.f32.mrf.mxu0  ;;  %v11626_v42 = vpop.f32.mrf.mxu1 }
 0x1e3   : > { %v1429_v44 = vpop.f32.mrf.mxu0  ;;  %v1650_v46 = vpop.f32.mrf.mxu1 }
 0x1e4   : > { %v13862_v48 = vadd.f32 %v1650_v46, %v1429_v44 }
 0x1e5   : > { %v11559_v59 = vpop.f32.mrf.mxu0  ;;  %v11627_v63 = vpop.f32.mrf.mxu1 }
 0x1e7   : > { %v1434_v3 = vpop.f32.mrf.mxu0  ;;  %v1655_v2 = vpop.f32.mrf.mxu1  ;;  %2055 = vmatmul.mubr.bf16.gmra.mxu0 %v12457_v45 }
 0x1e8   : > { %v13864_v13 = vadd.f32 %v1655_v2, %v1434_v3  ;;  %2062 = vmatprep.mubr.bf16.mxu0 %v9920_v56  ;;  %v12472_v3 = vld [vmem:[%s16861_s1 + $0x2e8] ss:$8 sps:$4 sm:$0xff]  }
 0x1e9   : > { %v11562_v17 = vpop.f32.mrf.mxu0  ;;  %v11630_v20 = vpop.f32.mrf.mxu1 }
 0x1ea   : > { %v12477_v17 = vld [vmem:[%s16861_s1 + $0x2fc] ss:$8 sps:$4 sm:$0xff]  }
 0x1eb   : > { %v1437_v29 = vpop.f32.mrf.mxu0  ;;  %v1658_v32 = vpop.f32.mrf.mxu1 }
 0x1ec   : > { %v13866_v39 = vadd.f32 %v1658_v32, %v1437_v29 }
 0x1ed   : > { %v11563_v47 = vpop.f32.mrf.mxu0  ;;  %v11631_v50 = vpop.f32.mrf.mxu1 }
 0x1ef   : > { %v1442_v51 = vpop.f32.mrf.mxu0  ;;  %v1663_v52 = vpop.f32.mrf.mxu1  ;;  %2063 = vmatmul.mubr.bf16.gmra.mxu0 %v9919_v36 }
 0x1f0   : > { %v13871_v53 = vadd.f32 %v1663_v52, %v1442_v51  ;;  %2553 = vmatprep.mubr.bf16.mxu0 %v12464_v49 }
 0x1f1   : > { %v11566_v54 = vpop.f32.mrf.mxu0  ;;  %v11634_v57 = vpop.f32.mrf.mxu1 }
 0x1f2   : > { %v12475_v54 = vld [vmem:[%s16861_s1 + $0x2f8] ss:$8 sps:$4 sm:$0xff]  }
 0x1f3   : > { %v1445_v58 = vpop.f32.mrf.mxu0  ;;  %v1666_v60 = vpop.f32.mrf.mxu1 }
 0x1f4   : > { %v13876_v62 = vadd.f32 %v1666_v60, %v1445_v58  ;;  %v12481_v58 = vld [vmem:[%s16861_s1 + $0x30c] ss:$8 sps:$4 sm:$0xff]  }
 0x1f5   : > { %v11567_v4 = vpop.f32.mrf.mxu0  ;;  %v11635_v5 = vpop.f32.mrf.mxu1 }
 0x1f7   : > { %v1450_v6 = vpop.f32.mrf.mxu0  ;;  %v1671_v7 = vpop.f32.mrf.mxu1  ;;  %2554 = vmatmul.mubr.bf16.vlgmr.msra.gmra.mxu0 %v12462_v61 }
 0x1f8   : > { %v13881_v9 = vadd.f32 %v1671_v7, %v1450_v6  ;;  %2561 = vmatprep.mubr.bf16.mxu0 %v12468_v1 }
 0x1f9   : > { %v11570_v10 = vpop.f32.mrf.mxu0  ;;  %v11638_v11 = vpop.f32.mrf.mxu1 }
 0x1fb   : > { %v1453_v12 = vpop.f32.mrf.mxu0  ;;  %v1674_v14 = vpop.f32.mrf.mxu1 }
 0x1fc   : > { %v13886_v18 = vadd.f32 %v1674_v14, %v1453_v12  ;;  %v12479_v12 = vld [vmem:[%s16861_s1 + $0x308] ss:$8 sps:$4 sm:$0xff]  }
 0x1fd   : > { %v11571_v21 = vpop.f32.mrf.mxu0  ;;  %v11639_v23 = vpop.f32.mrf.mxu1 }
 0x1ff   : > { %v1458_v25 = vpop.f32.mrf.mxu0  ;;  %v1679_v26 = vpop.f32.mrf.mxu1  ;;  %2562 = vmatmul.mubr.bf16.gmra.mxu0 %v12466_v16  ;;  %v12484_v16 = vld [vmem:[%s16861_s1 + $0x31c] ss:$8 sps:$4 sm:$0xff]  }
 0x200   : > { %v13891_v27 = vadd.f32 %v1679_v26, %v1458_v25  ;;  %2569 = vmatprep.mubr.bf16.mxu0 %v12471_v19 }
 0x201   : > { %v11574_v28 = vpop.f32.mrf.mxu0  ;;  %v11642_v30 = vpop.f32.mrf.mxu1 }
 0x203   : > { %v1461_v33 = vpop.f32.mrf.mxu0  ;;  %v1682_v34 = vpop.f32.mrf.mxu1 }
 0x204   : > { %v13896_v37 = vadd.f32 %v1682_v34, %v1461_v33 }
 0x205   : > { %v11575_v41 = vpop.f32.mrf.mxu0  ;;  %v11643_v42 = vpop.f32.mrf.mxu1 }
 0x206   : > { %v12487_v41 = vld [vmem:[%s16861_s1 + $0x32c] ss:$8 sps:$4 sm:$0xff]  }
 0x207   : > { %v1466_v43 = vpop.f32.mrf.mxu0  ;;  %v1687_v44 = vpop.f32.mrf.mxu1  ;;  %2570 = vmatmul.mubr.bf16.gmra.mxu0 %v12469_v35  ;;  %v12482_v35 = vld [vmem:[%s16861_s1 + $0x318] ss:$8 sps:$4 sm:$0xff]  }
 0x208   : > { %v13901_v46 = vadd.f32 %v1687_v44, %v1466_v43  ;;  %2577 = vmatprep.mubr.bf16.mxu0 %v12474_v38 }
 0x209   : > { %v11578_v45 = vpop.f32.mrf.mxu0  ;;  %v11646_v56 = vpop.f32.mrf.mxu1 }
 0x20b   : > { %v1469_v59 = vpop.f32.mrf.mxu0  ;;  %v1690_v63 = vpop.f32.mrf.mxu1 }
 0x20c   : > { %v13906_v2 = vadd.f32 %v1690_v63, %v1469_v59 }
 0x20d   : > { %v11579_v20 = vpop.f32.mrf.mxu0  ;;  %v11647_v29 = vpop.f32.mrf.mxu1 }
 0x20e   : > { %v12485_v20 = vld [vmem:[%s16861_s1 + $0x328] ss:$8 sps:$4 sm:$0xff]  }
 0x20f   : > { %v1474_v32 = vpop.f32.mrf.mxu0  ;;  %v1695_v36 = vpop.f32.mrf.mxu1  ;;  %2578 = vmatmul.mubr.bf16.gmra.mxu0 %v12472_v3 }
 0x210   : > { %v13911_v49 = vadd.f32 %v1695_v36, %v1474_v32  ;;  %2585 = vmatprep.mubr.bf16.mxu0 %v12477_v17  ;;  %v12491_v32 = vld [vmem:[%s16861_s1 + $0x33c] ss:$8 sps:$4 sm:$0xff]  }
 0x211   : > { %v11582_v47 = vpop.f32.mrf.mxu0  ;;  %v11650_v50 = vpop.f32.mrf.mxu1 }
 0x213   : > { %v1477_v51 = vpop.f32.mrf.mxu0  ;;  %v1698_v52 = vpop.f32.mrf.mxu1 }
 0x214   : > { %v13916_v57 = vadd.f32 %v1698_v52, %v1477_v51 }
 0x215   : > { %v11583_v60 = vpop.f32.mrf.mxu0  ;;  %v11651_v61 = vpop.f32.mrf.mxu1 }
 0x217   : > { %v1482_v1 = vpop.f32.mrf.mxu0  ;;  %v1703_v4 = vpop.f32.mrf.mxu1  ;;  %2586 = vmatmul.mubr.bf16.gmra.mxu0 %v12475_v54 }
 0x218   : > { %v13921_v5 = vadd.f32 %v1703_v4, %v1482_v1  ;;  %2593 = vmatprep.mubr.bf16.mxu0 %v12481_v58  ;;  %v12489_v1 = vld [vmem:[%s16861_s1 + $0x338] ss:$8 sps:$4 sm:$0xff]  }
 0x219   : > { %v11586_v6 = vpop.f32.mrf.mxu0  ;;  %v11654_v7 = vpop.f32.mrf.mxu1 }
 0x21a   : > { %v12494_v6 = vld [vmem:[%s16861_s1 + $0x34c] ss:$8 sps:$4 sm:$0xff]  }
 0x21b   : > { %v1485_v10 = vpop.f32.mrf.mxu0  ;;  %v1706_v11 = vpop.f32.mrf.mxu1 }
 0x21c   : > { %v13926_v14 = vadd.f32 %v1706_v11, %v1485_v10 }
 0x21d   : > { %v11587_v19 = vpop.f32.mrf.mxu0  ;;  %v11655_v21 = vpop.f32.mrf.mxu1 }
 0x21f   : > { %v1490_v23 = vpop.f32.mrf.mxu0  ;;  %v1711_v25 = vpop.f32.mrf.mxu1  ;;  %2594 = vmatmul.mubr.bf16.gmra.mxu0 %v12479_v12 }
 0x220   : > { %v13931_v26 = vadd.f32 %v1711_v25, %v1490_v23  ;;  %2601 = vmatprep.mubr.bf16.mxu0 %v12484_v16  ;;  %v12492_v25 = vld [vmem:[%s16861_s1 + $0x348] ss:$8 sps:$4 sm:$0xff]  }
 0x221   : > { %v11590_v28 = vpop.f32.mrf.mxu0  ;;  %v11658_v30 = vpop.f32.mrf.mxu1 }
 0x222   : > { %v12497_v30 = vld [vmem:[%s16861_s1 + $0x35c] ss:$8 sps:$4 sm:$0xff]  }
 0x223   : > { %v1493_v33 = vpop.f32.mrf.mxu0  ;;  %v1714_v34 = vpop.f32.mrf.mxu1 }
 0x224   : > { %v13936_v38 = vadd.f32 %v1714_v34, %v1493_v33 }
 0x225   : > { %v11591_v42 = vpop.f32.mrf.mxu0  ;;  %v11659_v43 = vpop.f32.mrf.mxu1 }
 0x226   : > { %v12495_v43 = vld [vmem:[%s16861_s1 + $0x358] ss:$8 sps:$4 sm:$0xff]  }
 0x227   : > { %v1498_v44 = vpop.f32.mrf.mxu0  ;;  %v1719_v45 = vpop.f32.mrf.mxu1  ;;  %2602 = vmatmul.mubr.bf16.gmra.mxu0 %v12482_v35 }
 0x228   : > { %v13941_v56 = vadd.f32 %v1719_v45, %v1498_v44  ;;  %2609 = vmatprep.mubr.bf16.mxu0 %v12487_v41  ;;  %v12501_v44 = vld [vmem:[%s16861_s1 + $0x36c] ss:$8 sps:$4 sm:$0xff]  }
 0x229   : > { %v11594_v59 = vpop.f32.mrf.mxu0  ;;  %v11662_v63 = vpop.f32.mrf.mxu1 }
 0x22b   : > { %v1501_v3 = vpop.f32.mrf.mxu0  ;;  %v1722_v17 = vpop.f32.mrf.mxu1 }
 0x22c   : > { %v13946_v29 = vadd.f32 %v1722_v17, %v1501_v3  ;;  %v12510_v17 = vld [vmem:[%s16862_s2 + $0x78] sm:$0xff]  }
 0x22d   : > { %v11595_v36 = vpop.f32.mrf.mxu0  ;;  %v11663_v47 = vpop.f32.mrf.mxu1 }
 0x22e   : > { %v12499_v47 = vld [vmem:[%s16861_s1 + $0x368] ss:$8 sps:$4 sm:$0xff]  }
 0x22f   : > { %v1506_v50 = vpop.f32.mrf.mxu0  ;;  %v1727_v51 = vpop.f32.mrf.mxu1  ;;  %2610 = vmatmul.mubr.bf16.gmra.mxu0 %v12485_v20 }
 0x230   : > { %v13951_v52 = vadd.f32 %v1727_v51, %v1506_v50  ;;  %2617 = vmatprep.mubr.bf16.mxu0 %v12491_v32  ;;  %v12511_v50 = vld [vmem:[%s16862_s2 + $0x70] sm:$0xff]   ;;  %v12504_v51 = vld [vmem:[%s16861_s1 + $0x37c] ss:$8 sps:$4 sm:$0xff]  }
 0x231   : > { %v11598_v54 = vpop.f32.mrf.mxu0  ;;  %v11666_v58 = vpop.f32.mrf.mxu1 }
 0x233   : > { %v1509_v60 = vpop.f32.mrf.mxu0  ;;  %v1730_v61 = vpop.f32.mrf.mxu1 }
 0x234   : > { %v13956_v4 = vadd.f32 %v1730_v61, %v1509_v60 }
 0x235   : > { %v11599_v7 = vpop.f32.mrf.mxu0  ;;  %v11667_v10 = vpop.f32.mrf.mxu1 }
 0x237   : > { %v1514_v11 = vpop.f32.mrf.mxu0  ;;  %v1735_v12 = vpop.f32.mrf.mxu1  ;;  %2618 = vmatmul.mubr.bf16.gmra.mxu0 %v12489_v1  ;;  %v12512_v1 = vld [vmem:[%s16862_s2 + $0x68] sm:$0xff]  }
 0x238   : > { %v13961_v16 = vadd.f32 %v1735_v12, %v1514_v11  ;;  %2625 = vmatprep.mubr.bf16.mxu0 %v12494_v6  ;;  %v12502_v11 = vld [vmem:[%s16861_s1 + $0x378] ss:$8 sps:$4 sm:$0xff]  }
 0x239   : > { %v11602_v19 = vpop.f32.mrf.mxu0  ;;  %v11670_v21 = vpop.f32.mrf.mxu1  ;;  %v12513_v12 = vld [vmem:[%s16862_s2 + $0x60] sm:$0xff]  }
 0x23a   : > { %v12507_v19 = vld [vmem:[%s16861_s1 + $0x38c] ss:$8 sps:$4 sm:$0xff]  }
 0x23b   : > { %v1517_v23 = vpop.f32.mrf.mxu0  ;;  %v1738_v28 = vpop.f32.mrf.mxu1 }
 0x23d   : > { %v11603_v33 = vpop.f32.mrf.mxu0  ;;  %v11671_v34 = vpop.f32.mrf.mxu1 }
 0x23e   : > { %v9976_v34 = vld [vmem:[%s16861_s1 + $0x398] sm:$0x11] }
 0x23f   : > { %v11097_v35 = vpop.f32.mrf.mxu0  ;;  %2626 = vmatmul.mubr.bf16.gmra.mxu0 %v12492_v25 }
 0x240   : > { %2633 = vmatprep.mubr.bf16.mxu0 %v12497_v30 }
 0x241   : > { %v11098_v41 = vpop.f32.mrf.mxu0 }
 0x242   : > { %v11099_v59 = vadd.f32 %v11098_v41, %v11097_v35  ;;  %v12505_v41 = vld [vmem:[%s16861_s1 + $0x388] ss:$8 sps:$4 sm:$0xff]  }
 0x243   : > { %v11100_v42 = vpop.f32.mrf.mxu0 }
 0x245   : > { %v11101_v45 = vpop.f32.mrf.mxu0 }
 0x246   : > { %v11102_v63 = vadd.f32 %v11101_v45, %v11100_v42  ;;  %v10006_v42 = vcombine.high %v9976_v34, %v9976_v34 }
 0x247   : > { %v11103_v3 = vpop.f32.mrf.mxu0  ;;  %2634 = vmatmul.mubr.bf16.gmra.mxu0 %v12495_v43 }
 0x248   : > { %v2070_v20 = vpack.c.bf16 %v11102_v63, %v11099_v59  ;;  %2641 = vmatprep.mubr.bf16.mxu0 %v12501_v44 }
 0x249   : > { %v11104_v32 = vpop.f32.mrf.mxu0 }
 0x24a   : > { %11681 = vmatmul.mubr.msk.bf16.vlgmr.msra.gmra.mxu1 %vm1322_vm1, %v2070_v20  ;;  %v11105_v58 = vadd.f32 %v11104_v32, %v11103_v3  ;;  %v10005_v20 = vcombine.low %v9976_v34, %v9976_v34 }
 0x24b   : > { %v11106_v36 = vpop.f32.mrf.mxu0  ;;  %11684 = vmatprep.mubr.msk.bf16.mxu1 %vm13214_vm0, %v13213_v22  ;;  %11741 = vmatpush3.bf16.msra.mxu1 %v12510_v17 }
 0x24c   : > { %11742 = vmatprep.subr.bf16.mxu1 %v13213_v22 }
 0x24d   : > { %v11107_v54 = vpop.f32.mrf.mxu0 }
 0x24e   : > { %v11108_v60 = vadd.f32 %v11107_v54, %v11106_v36 }
 0x24f   : > { %v11109_v61 = vpop.f32.mrf.mxu0  ;;  %2642 = vmatmul.mubr.bf16.gmra.mxu0 %v12499_v47  ;;  %11743 = vmatpush3.bf16.msra.mxu1 %v12511_v50 }
 0x250   : > { %v2071_v6 = vpack.c.bf16 %v11108_v60, %v11105_v58  ;;  %2649 = vmatprep.mubr.bf16.mxu0 %v12504_v51  ;;  %11744 = vmatprep.subr.bf16.mxu1 %v13213_v22 }
 0x251   : > { %v11110_v7 = vpop.f32.mrf.mxu0 }
 0x252   : > { %11685 = vmatmul.mubr.msk.bf16.gmra.mxu1 %vm1322_vm1, %v2071_v6  ;;  %v11111_v23 = vadd.f32 %v11110_v7, %v11109_v61 }
 0x253   : > { %v11112_v10 = vpop.f32.mrf.mxu0  ;;  %11688 = vmatprep.mubr.msk.bf16.mxu1 %vm13214_vm0, %v13213_v22  ;;  %11745 = vmatpush3.bf16.msra.mxu1 %v12512_v1 }
 0x254   : > { %11746 = vmatprep.subr.bf16.mxu1 %v13213_v22 }
 0x255   : > { %v11113_v21 = vpop.f32.mrf.mxu0 }
 0x256   : > { %v11114_v25 = vadd.f32 %v11113_v21, %v11112_v10 }
 0x257   : > { %v11115_v28 = vpop.f32.mrf.mxu0  ;;  %2650 = vmatmul.mubr.bf16.gmra.mxu0 %v12502_v11  ;;  %11747 = vmatpush3.bf16.msra.mxu1 %v12513_v12 }
 0x258   : > { %v2072_v30 = vpack.c.bf16 %v11114_v25, %v11111_v23  ;;  %2657 = vmatprep.mubr.bf16.mxu0 %v12507_v19 }
 0x259   : > { %v11116_v33 = vpop.f32.mrf.mxu0 }
 0x25a   : > { %11689 = vmatmul.mubr.msk.bf16.gmra.mxu1 %vm1322_vm1, %v2072_v30  ;;  %v11117_v44 = vadd.f32 %v11116_v33, %v11115_v28 }
 0x25b   : > { %v11118_v35 = vpop.f32.mrf.mxu0  ;;  %11692 = vmatprep.mubr.msk.bf16.mxu1 %vm13214_vm0, %v13213_v22 }
 0x25d   : > { %v11119_v43 = vpop.f32.mrf.mxu0 }
 0x25e   : > { %v11120_v45 = vadd.f32 %v11119_v43, %v11118_v35 }
 0x25f   : > { %v11121_v59 = vpop.f32.mrf.mxu0  ;;  %2658 = vmatmul.mubr.bf16.gmra.mxu0 %v12505_v41 }
 0x260   : > { %v2073_v63 = vpack.c.bf16 %v11120_v45, %v11117_v44  ;;  %2665 = vmatprep.mubr.bf16.mxu0 %v10006_v42 }
 0x261   : > { %v11122_v3 = vpop.f32.mrf.mxu0 }
 0x262   : > { %11693 = vmatmul.mubr.msk.bf16.gmra.mxu1 %vm1322_vm1, %v2073_v63  ;;  %v11123_v36 = vadd.f32 %v11122_v3, %v11121_v59 }
 0x263   : > { %v11124_v17 = vpop.f32.mrf.mxu0  ;;  %11696 = vmatprep.mubr.msk.bf16.mxu1 %vm13214_vm0, %v13213_v22 }
 0x265   : > { %v11125_v32 = vpop.f32.mrf.mxu0 }
 0x266   : > { %v11126_v47 = vadd.f32 %v11125_v32, %v11124_v17 }
 0x267   : > { %v11127_v50 = vpop.f32.mrf.mxu0  ;;  %2666 = vmatmul.mubr.bf16.gmra.mxu0 %v10005_v20 }
 0x268   : > { %v2074_v51 = vpack.c.bf16 %v11126_v47, %v11123_v36 }
 0x269   : > { %v11128_v54 = vpop.f32.mrf.mxu0 }
 0x26a   : > { %11697 = vmatmul.mubr.msk.bf16.gmra.mxu1 %vm1322_vm1, %v2074_v51  ;;  %v11129_v61 = vadd.f32 %v11128_v54, %v11127_v50 }
 0x26b   : > { %v11130_v58 = vpop.f32.mrf.mxu0  ;;  %11700 = vmatprep.mubr.msk.bf16.mxu1 %vm13214_vm0, %v13213_v22 }
 0x26d   : > { %v11131_v60 = vpop.f32.mrf.mxu0 }
 0x26e   : > { %v11132_v1 = vadd.f32 %v11131_v60, %v11130_v58 }
 0x26f   : > { %v11133_v6 = vpop.f32.mrf.mxu0 }
 0x270   : > { %v2075_v7 = vpack.c.bf16 %v11132_v1, %v11129_v61 }
 0x271   : > { %v11134_v10 = vpop.f32.mrf.mxu0 }
 0x272   : > { %11701 = vmatmul.mubr.msk.bf16.gmra.mxu1 %vm1322_vm1, %v2075_v7  ;;  %v11135_v19 = vadd.f32 %v11134_v10, %v11133_v6 }
 0x273   : > { %v11136_v11 = vpop.f32.mrf.mxu0  ;;  %11704 = vmatprep.mubr.msk.bf16.mxu1 %vm13214_vm0, %v13213_v22 }
 0x275   : > { %v11137_v12 = vpop.f32.mrf.mxu0 }
 0x276   : > { %v11138_v21 = vadd.f32 %v11137_v12, %v11136_v11 }
 0x277   : > { %v11139_v23 = vpop.f32.mrf.mxu0 }
 0x278   : > { %v2076_v25 = vpack.c.bf16 %v11138_v21, %v11135_v19 }
 0x279   : > { %v11140_v28 = vpop.f32.mrf.mxu0 }
 0x27a   : > { %11705 = vmatmul.mubr.msk.bf16.gmra.mxu1 %vm1322_vm1, %v2076_v25  ;;  %v11141_v34 = vadd.f32 %v11140_v28, %v11139_v23 }
 0x27b   : > { %v11142_v30 = vpop.f32.mrf.mxu0  ;;  %11708 = vmatprep.mubr.msk.bf16.mxu1 %vm13214_vm0, %v13213_v22 }
 0x27d   : > { %v11143_v33 = vpop.f32.mrf.mxu0 }
 0x27e   : > { %v11144_v35 = vadd.f32 %v11143_v33, %v11142_v30 }
 0x27f   : > { %v11145_v41 = vpop.f32.mrf.mxu0 }
 0x280   : > { %v2077_v42 = vpack.c.bf16 %v11144_v35, %v11141_v34 }
 0x281   : > { %v11146_v43 = vpop.f32.mrf.mxu0 }
 0x282   : > { %11709 = vmatmul.mubr.msk.bf16.gmra.mxu1 %vm1322_vm1, %v2077_v42  ;;  %v11147_v59 = vadd.f32 %v11146_v43, %v11145_v41 }
 0x283   : > { %v11148_v44 = vpop.f32.mrf.mxu0  ;;  %11712 = vmatprep.mubr.msk.bf16.mxu1 %vm13214_vm0, %v13213_v22 }
 0x285   : > { %v11149_v45 = vpop.f32.mrf.mxu0 }
 0x286   : > { %v11150_v63 = vadd.f32 %v11149_v45, %v11148_v44 }
 0x287   : > { %v11151_v3 = vpop.f32.mrf.mxu0 }
 0x288   : > { %v2078_v17 = vpack.c.bf16 %v11150_v63, %v11147_v59 }
 0x289   : > { %v11152_v20 = vpop.f32.mrf.mxu0 }
 0x28a   : > { %11713 = vmatmul.mubr.msk.bf16.gmra.mxu1 %vm1322_vm1, %v2078_v17  ;;  %v11153_v47 = vadd.f32 %v11152_v20, %v11151_v3 }
 0x28b   : > { %v11154_v32 = vpop.f32.mrf.mxu0  ;;  %11716 = vmatprep.mubr.msk.bf16.mxu1 %vm13214_vm0, %v13213_v22 }
 0x28d   : > { %v11155_v36 = vpop.f32.mrf.mxu0 }
 0x28e   : > { %v11156_v50 = vadd.f32 %v11155_v36, %v11154_v32 }
 0x28f   : > { %v11157_v51 = vpop.f32.mrf.mxu0 }
 0x290   : > { %v2079_v54 = vpack.c.bf16 %v11156_v50, %v11153_v47 }
 0x291   : > { %v11158_v58 = vpop.f32.mrf.mxu0 }
 0x292   : > { %11717 = vmatmul.mubr.msk.bf16.gmra.mxu1 %vm1322_vm1, %v2079_v54  ;;  %v11159_v1 = vadd.f32 %v11158_v58, %v11157_v51 }
 0x293   : > { %v11160_v60 = vpop.f32.mrf.mxu0  ;;  %11720 = vmatprep.mubr.msk.bf16.mxu1 %vm13214_vm0, %v13213_v22 }
 0x295   : > { %v11161_v61 = vpop.f32.mrf.mxu0 }
 0x296   : > { %v11162_v6 = vadd.f32 %v11161_v61, %v11160_v60 }
 0x297   : > { %v11163_v7 = vpop.f32.mrf.mxu0 }
 0x298   : > { %v2080_v10 = vpack.c.bf16 %v11162_v6, %v11159_v1 }
 0x299   : > { %v11164_v11 = vpop.f32.mrf.mxu0 }
 0x29a   : > { %11721 = vmatmul.mubr.msk.bf16.gmra.mxu1 %vm1322_vm1, %v2080_v10  ;;  %v11165_v21 = vadd.f32 %v11164_v11, %v11163_v7 }
 0x29b   : > { %v11166_v12 = vpop.f32.mrf.mxu0  ;;  %11724 = vmatprep.mubr.msk.bf16.mxu1 %vm13214_vm0, %v13213_v22 }
 0x29d   : > { %v11167_v19 = vpop.f32.mrf.mxu0 }
 0x29e   : > { %v11168_v23 = vadd.f32 %v11167_v19, %v11166_v12 }
 0x29f   : > { %v11169_v25 = vpop.f32.mrf.mxu0 }
 0x2a0   : > { %v2081_v28 = vpack.c.bf16 %v11168_v23, %v11165_v21 }
 0x2a1   : > { %v11170_v30 = vpop.f32.mrf.mxu0 }
 0x2a2   : > { %11725 = vmatmul.mubr.msk.bf16.gmra.mxu1 %vm1322_vm1, %v2081_v28  ;;  %v11171_v35 = vadd.f32 %v11170_v30, %v11169_v25 }
 0x2a3   : > { %v11172_v33 = vpop.f32.mrf.mxu0  ;;  %11728 = vmatprep.mubr.msk.bf16.mxu1 %vm13214_vm0, %v13213_v22 }
 0x2a5   : > { %v11173_v34 = vpop.f32.mrf.mxu0 }
 0x2a6   : > { %v11174_v41 = vadd.f32 %v11173_v34, %v11172_v33 }
 0x2a7   : > { %v11175_v42 = vpop.f32.mrf.mxu0 }
 0x2a8   : > { %v2082_v43 = vpack.c.bf16 %v11174_v41, %v11171_v35 }
 0x2a9   : > { %v11176_v44 = vpop.f32.mrf.mxu0 }
 0x2aa   : > { %11729 = vmatmul.mubr.msk.bf16.gmra.mxu1 %vm1322_vm1, %v2082_v43  ;;  %v11177_v63 = vadd.f32 %v11176_v44, %v11175_v42 }
 0x2ab   : > { %v11178_v45 = vpop.f32.mrf.mxu0  ;;  %11732 = vmatprep.mubr.msk.bf16.mxu1 %vm13214_vm0, %v13213_v22 }
 0x2ad   : > { %v11179_v59 = vpop.f32.mrf.mxu0 }
 0x2ae   : > { %v11180_v3 = vadd.f32 %v11179_v59, %v11178_v45 }
 0x2af   : > { %v11181_v17 = vpop.f32.mrf.mxu0 }
 0x2b0   : > { %v2083_v20 = vpack.c.bf16 %v11180_v3, %v11177_v63 }
 0x2b1   : > { %v11182_v32 = vpop.f32.mrf.mxu0 }
 0x2b2   : > { %11733 = vmatmul.mubr.msk.bf16.gmra.mxu1 %vm1322_vm1, %v2083_v20  ;;  %v11183_v47 = vadd.f32 %v11182_v32, %v11181_v17 }
 0x2b3   : > { %v11184_v36 = vpop.f32.mrf.mxu0  ;;  %11736 = vmatprep.mubr.msk.bf16.mxu1 %vm13214_vm0, %v13213_v22 }
 0x2b4   : > { %v2084_v54 = vpack.c.bf16 %v11183_v47, %v11183_v47 }
 0x2b5   : > { %v11185_v50 = vpop.f32.mrf.mxu0 }
 0x2b7   : > { %v11222_v51 = vpop.f32.mrf.mxu0 }
 0x2b9   : > { %v11223_v58 = vpop.f32.mrf.mxu0 }
 0x2ba   : > { %11737 = vmatmul.mubr.msk.bf16.gmra.mxu1 %vm1322_vm1, %v2084_v54  ;;  %v11224_v1 = vadd.f32 %v11223_v58, %v11222_v51 }
 0x2bb   : > { %v11225_v60 = vpop.f32.mrf.mxu0  ;;  %11748 = vmatprep.mubr.msk.bf16.mxu1 %vm13214_vm0, %v13213_v22 }
 0x2bd   : > { %v11226_v61 = vpop.f32.mrf.mxu0 }
 0x2be   : > { %v11227_v6 = vadd.f32 %v11226_v61, %v11225_v60 }
 0x2bf   : > { %v11228_v7 = vpop.f32.mrf.mxu0 }
 0x2c0   : > { %v2673_v10 = vpack.c.bf16 %v11227_v6, %v11224_v1 }
 0x2c1   : > { %v11229_v11 = vpop.f32.mrf.mxu0 }
 0x2c2   : > { %11749 = vmatmul.mubr.msk.bf16.vlgmr.msra.gmra.mxu1 %vm1322_vm1, %v2673_v10  ;;  %v11230_v21 = vadd.f32 %v11229_v11, %v11228_v7 }
 0x2c3   : > { %v11231_v12 = vpop.f32.mrf.mxu0  ;;  %11752 = vmatprep.mubr.msk.bf16.mxu1 %vm13214_vm0, %v13213_v22 }
 0x2c5   : > { %v11232_v19 = vpop.f32.mrf.mxu0 }
 0x2c6   : > { %v11233_v23 = vadd.f32 %v11232_v19, %v11231_v12 }
 0x2c7   : > { %v11234_v25 = vpop.f32.mrf.mxu0 }
 0x2c8   : > { %v2674_v28 = vpack.c.bf16 %v11233_v23, %v11230_v21 }
 0x2c9   : > { %v11235_v30 = vpop.f32.mrf.mxu0 }
 0x2ca   : > { %11753 = vmatmul.mubr.msk.bf16.gmra.mxu1 %vm1322_vm1, %v2674_v28  ;;  %v11236_v35 = vadd.f32 %v11235_v30, %v11234_v25 }
 0x2cb   : > { %v11237_v33 = vpop.f32.mrf.mxu0  ;;  %11756 = vmatprep.mubr.msk.bf16.mxu1 %vm13214_vm0, %v13213_v22 }
 0x2cd   : > { %v11238_v34 = vpop.f32.mrf.mxu0 }
 0x2ce   : > { %v11239_v41 = vadd.f32 %v11238_v34, %v11237_v33 }
 0x2cf   : > { %v11240_v42 = vpop.f32.mrf.mxu0 }
 0x2d0   : > { %v2675_v43 = vpack.c.bf16 %v11239_v41, %v11236_v35 }
 0x2d1   : > { %v11241_v44 = vpop.f32.mrf.mxu0 }
 0x2d2   : > { %11757 = vmatmul.mubr.msk.bf16.gmra.mxu1 %vm1322_vm1, %v2675_v43  ;;  %v11242_v63 = vadd.f32 %v11241_v44, %v11240_v42 }
 0x2d3   : > { %v11243_v45 = vpop.f32.mrf.mxu0  ;;  %11760 = vmatprep.mubr.msk.bf16.mxu1 %vm13214_vm0, %v13213_v22 }
 0x2d5   : > { %v11244_v59 = vpop.f32.mrf.mxu0 }
 0x2d6   : > { %v11245_v3 = vadd.f32 %v11244_v59, %v11243_v45 }
 0x2d7   : > { %v11246_v17 = vpop.f32.mrf.mxu0 }
 0x2d8   : > { %v2676_v20 = vpack.c.bf16 %v11245_v3, %v11242_v63 }
 0x2d9   : > { %v11247_v32 = vpop.f32.mrf.mxu0 }
 0x2da   : > { %11761 = vmatmul.mubr.msk.bf16.gmra.mxu1 %vm1322_vm1, %v2676_v20  ;;  %v11248_v50 = vadd.f32 %v11247_v32, %v11246_v17 }
 0x2db   : > { %v11249_v36 = vpop.f32.mrf.mxu0  ;;  %11764 = vmatprep.mubr.msk.bf16.mxu1 %vm13214_vm0, %v13213_v22 }
 0x2dd   : > { %v11250_v47 = vpop.f32.mrf.mxu0 }
 0x2de   : > { %v11251_v51 = vadd.f32 %v11250_v47, %v11249_v36 }
 0x2df   : > { %v11252_v54 = vpop.f32.mrf.mxu0 }
 0x2e0   : > { %v2677_v58 = vpack.c.bf16 %v11251_v51, %v11248_v50 }
 0x2e1   : > { %v11253_v60 = vpop.f32.mrf.mxu0 }
 0x2e2   : > { %11765 = vmatmul.mubr.msk.bf16.gmra.mxu1 %vm1322_vm1, %v2677_v58  ;;  %v11254_v6 = vadd.f32 %v11253_v60, %v11252_v54 }
 0x2e3   : > { %v11255_v61 = vpop.f32.mrf.mxu0  ;;  %11768 = vmatprep.mubr.msk.bf16.mxu1 %vm13214_vm0, %v13213_v22 }
 0x2e5   : > { %v11256_v1 = vpop.f32.mrf.mxu0 }
 0x2e6   : > { %v11257_v7 = vadd.f32 %v11256_v1, %v11255_v61 }
 0x2e7   : > { %v11258_v10 = vpop.f32.mrf.mxu0 }
 0x2e8   : > { %v2678_v11 = vpack.c.bf16 %v11257_v7, %v11254_v6 }
 0x2e9   : > { %v11259_v12 = vpop.f32.mrf.mxu0 }
 0x2ea   : > { %11769 = vmatmul.mubr.msk.bf16.gmra.mxu1 %vm1322_vm1, %v2678_v11  ;;  %v11260_v23 = vadd.f32 %v11259_v12, %v11258_v10 }
 0x2eb   : > { %v11261_v19 = vpop.f32.mrf.mxu0  ;;  %11772 = vmatprep.mubr.msk.bf16.mxu1 %vm13214_vm0, %v13213_v22 }
 0x2ed   : > { %v11262_v21 = vpop.f32.mrf.mxu0 }
 0x2ee   : > { %v11263_v25 = vadd.f32 %v11262_v21, %v11261_v19 }
 0x2ef   : > { %v11264_v28 = vpop.f32.mrf.mxu0 }
 0x2f0   : > { %v2679_v30 = vpack.c.bf16 %v11263_v25, %v11260_v23 }
 0x2f1   : > { %v11265_v33 = vpop.f32.mrf.mxu0 }
 0x2f2   : > { %11773 = vmatmul.mubr.msk.bf16.gmra.mxu1 %vm1322_vm1, %v2679_v30  ;;  %v11266_v41 = vadd.f32 %v11265_v33, %v11264_v28 }
 0x2f3   : > { %v11267_v34 = vpop.f32.mrf.mxu0  ;;  %11776 = vmatprep.mubr.msk.bf16.mxu1 %vm13214_vm0, %v13213_v22 }
 0x2f5   : > { %v11268_v35 = vpop.f32.mrf.mxu0 }
 0x2f6   : > { %v11269_v42 = vadd.f32 %v11268_v35, %v11267_v34 }
 0x2f7   : > { %v11270_v43 = vpop.f32.mrf.mxu0 }
 0x2f8   : > { %v2680_v44 = vpack.c.bf16 %v11269_v42, %v11266_v41 }
 0x2f9   : > { %v11271_v45 = vpop.f32.mrf.mxu0 }
 0x2fa   : > { %11777 = vmatmul.mubr.msk.bf16.gmra.mxu1 %vm1322_vm1, %v2680_v44  ;;  %v11272_v3 = vadd.f32 %v11271_v45, %v11270_v43 }
 0x2fb   : > { %v11273_v59 = vpop.f32.mrf.mxu0  ;;  %11780 = vmatprep.mubr.msk.bf16.mxu1 %vm13214_vm0, %v13213_v22 }
 0x2fd   : > { %v11274_v63 = vpop.f32.mrf.mxu0 }
 0x2fe   : > { %v11275_v17 = vadd.f32 %v11274_v63, %v11273_v59 }
 0x2ff   : > { %v11276_v20 = vpop.f32.mrf.mxu0 }
 0x300   : > { %v2681_v32 = vpack.c.bf16 %v11275_v17, %v11272_v3 }
 0x301   : > { %v11277_v36 = vpop.f32.mrf.mxu0 }
 0x302   : > { %11781 = vmatmul.mubr.msk.bf16.gmra.mxu1 %vm1322_vm1, %v2681_v32  ;;  %v11278_v51 = vadd.f32 %v11277_v36, %v11276_v20 }
 0x303   : > { %v11279_v47 = vpop.f32.mrf.mxu0  ;;  %11784 = vmatprep.mubr.msk.bf16.mxu1 %vm13214_vm0, %v13213_v22 }
 0x305   : > { %v11280_v50 = vpop.f32.mrf.mxu0 }
 0x306   : > { %v11281_v54 = vadd.f32 %v11280_v50, %v11279_v47 }
 0x307   : > { %v11282_v58 = vpop.f32.mrf.mxu0 }
 0x308   : > { %v2682_v60 = vpack.c.bf16 %v11281_v54, %v11278_v51 }
 0x309   : > { %v11283_v61 = vpop.f32.mrf.mxu0 }
 0x30a   : > { %v2197_v1 = vpop.f32.mrf.mxu1  ;;  %11785 = vmatmul.mubr.msk.bf16.gmra.mxu1 %vm1322_vm1, %v2682_v60  ;;  %v11284_v12 = vadd.f32 %v11283_v61, %v11282_v58 }
 0x30b   : > { %v14082_v6 = vadd.f32 %v2197_v1, %v13823_v55  ;;  %v11285_v7 = vpop.f32.mrf.mxu0  ;;  %11788 = vmatprep.mubr.msk.bf16.mxu1 %vm13214_vm0, %v13213_v22 }
 0x30c   : > { %v11682_v10 = vpop.f32.mrf.mxu1 }
 0x30d   : > { %v11286_v11 = vpop.f32.mrf.mxu0 }
 0x30e   : > { %v11287_v19 = vadd.f32 %v11286_v11, %v11285_v7  ;;  %v2200_v21 = vpop.f32.mrf.mxu1 }
 0x30f   : > { %v14087_v23 = vadd.f32 %v2200_v21, %v13829_v0  ;;  %v11288_v25 = vpop.f32.mrf.mxu0 }
 0x310   : > { %v2683_v28 = vpack.c.bf16 %v11287_v19, %v11284_v12  ;;  %v11683_v30 = vpop.f32.mrf.mxu1 }
 0x311   : > { %v11289_v33 = vpop.f32.mrf.mxu0 }
 0x312   : > { %v2205_v34 = vpop.f32.mrf.mxu1  ;;  %11789 = vmatmul.mubr.msk.bf16.gmra.mxu1 %vm1322_vm1, %v2683_v28  ;;  %v11290_v43 = vadd.f32 %v11289_v33, %v11288_v25 }
 0x313   : > { %v14091_v55 = vadd.f32 %v2205_v34, %v13834_v8  ;;  %v11291_v35 = vpop.f32.mrf.mxu0  ;;  %11792 = vmatprep.mubr.msk.bf16.mxu1 %vm13214_vm0, %v13213_v22 }
 0x314   : > { %v11686_v41 = vpop.f32.mrf.mxu1 }
 0x315   : > { %v11292_v42 = vpop.f32.mrf.mxu0 }
 0x316   : > { %v11293_v44 = vadd.f32 %v11292_v42, %v11291_v35  ;;  %v2208_v0 = vpop.f32.mrf.mxu1 }
 0x317   : > { %v14096_v45 = vadd.f32 %v2208_v0, %v13839_v15  ;;  %v11294_v59 = vpop.f32.mrf.mxu0 }
 0x318   : > { %v2684_v63 = vpack.c.bf16 %v11293_v44, %v11290_v43  ;;  %v11687_v3 = vpop.f32.mrf.mxu1 }
 0x319   : > { %v11295_v17 = vpop.f32.mrf.mxu0 }
 0x31a   : > { %v2213_v20 = vpop.f32.mrf.mxu1  ;;  %11793 = vmatmul.mubr.msk.bf16.gmra.mxu1 %vm1322_vm1, %v2684_v63  ;;  %v11296_v50 = vadd.f32 %v11295_v17, %v11294_v59 }
 0x31b   : > { %v14100_v8 = vadd.f32 %v2213_v20, %v13844_v24  ;;  %v11297_v32 = vpop.f32.mrf.mxu0  ;;  %11796 = vmatprep.mubr.msk.bf16.mxu1 %vm13214_vm0, %v13213_v22 }
 0x31c   : > { %v11690_v36 = vpop.f32.mrf.mxu1 }
 0x31d   : > { %v11298_v47 = vpop.f32.mrf.mxu0 }
 0x31e   : > { %v11299_v51 = vadd.f32 %v11298_v47, %v11297_v32  ;;  %v2216_v15 = vpop.f32.mrf.mxu1 }
 0x31f   : > { %v14105_v54 = vadd.f32 %v2216_v15, %v13849_v31  ;;  %v11300_v58 = vpop.f32.mrf.mxu0 }
 0x320   : > { %v2685_v60 = vpack.c.bf16 %v11299_v51, %v11296_v50  ;;  %v11691_v61 = vpop.f32.mrf.mxu1 }
 0x321   : > { %v11301_v1 = vpop.f32.mrf.mxu0 }
 0x322   : > { %v2221_v7 = vpop.f32.mrf.mxu1  ;;  %11797 = vmatmul.mubr.msk.bf16.gmra.mxu1 %vm1322_vm1, %v2685_v60  ;;  %v11302_v19 = vadd.f32 %v11301_v1, %v11300_v58 }
 0x323   : > { %v14109_v24 = vadd.f32 %v2221_v7, %v13854_v40  ;;  %v11303_v10 = vpop.f32.mrf.mxu0  ;;  %11800 = vmatprep.mubr.msk.bf16.mxu1 %vm13214_vm0, %v13213_v22  ;;  %v13215_v7 = vmov 0  }
 0x324   : > { %v11694_v11 = vpop.f32.mrf.mxu1  ;;  %3072 = vmatprep.subr.bf16.mxu0 %v13215_v7  ;;  %3174 = vmatprep.subr.bf16.mxu1 %v13215_v7 }
 0x325   : > { %v11304_v12 = vpop.f32.mrf.mxu0 }
 0x326   : > { %v11305_v21 = vadd.f32 %v11304_v12, %v11303_v10  ;;  %v2224_v31 = vpop.f32.mrf.mxu1 }
 0x327   : > { %v14114_v25 = vadd.f32 %v2224_v31, %v13862_v48  ;;  %v11306_v28 = vpop.f32.mrf.mxu0 }
 0x328   : > { %v2686_v30 = vpack.c.bf16 %v11305_v21, %v11302_v19  ;;  %v11695_v33 = vpop.f32.mrf.mxu1 }
 0x329   : > { %v11307_v34 = vpop.f32.mrf.mxu0 }
 0x32a   : > { %v2229_v35 = vpop.f32.mrf.mxu1  ;;  %11801 = vmatmul.mubr.msk.bf16.gmra.mxu1 %vm1322_vm1, %v2686_v30  ;;  %v11308_v43 = vadd.f32 %v11307_v34, %v11306_v28 }
 0x32b   : > { %v14118_v40 = vadd.f32 %v2229_v35, %v13864_v13  ;;  %11804 = vmatprep.mubr.msk.bf16.mxu1 %vm13214_vm0, %v13213_v22  ;;  %v11309_v41 = vpop.f32.mrf.mxu0 }
 0x32c   : > { %v11698_v42 = vpop.f32.mrf.mxu1  ;;  %v2687_v59 = vpack.c.bf16 %v11308_v43, %v11308_v43 }
 0x32d   : > { %v11310_v44 = vpop.f32.mrf.mxu0 }
 0x32e   : > { %v2232_v0 = vpop.f32.mrf.mxu1 }
 0x32f   : > { %v14123_v48 = vadd.f32 %v2232_v0, %v13866_v39 }
 0x330   : > { %v11699_v63 = vpop.f32.mrf.mxu1 }
 0x332   : > { %v2237_v3 = vpop.f32.mrf.mxu1  ;;  %11805 = vmatmul.mubr.msk.bf16.gmra.mxu1 %vm1322_vm1, %v2687_v59 }
 0x333   : > { %v14127_v17 = vadd.f32 %v2237_v3, %v13871_v53 }
 0x334   : > { %v11702_v13 = vpop.f32.mrf.mxu1 }
 0x336   : > { %v2240_v20 = vpop.f32.mrf.mxu1 }
 0x337   : > { %v14130_v32 = vadd.f32 %v2240_v20, %v13876_v62 }
 0x338   : > { %v11703_v36 = vpop.f32.mrf.mxu1 }
 0x33a   : > { %v2245_v47 = vpop.f32.mrf.mxu1 }
 0x33b   : > { %v14133_v50 = vadd.f32 %v2245_v47, %v13881_v9 }
 0x33c   : > { %v11706_v39 = vpop.f32.mrf.mxu1 }
 0x33e   : > { %v2248_v51 = vpop.f32.mrf.mxu1 }
 0x33f   : > { %v14136_v15 = vadd.f32 %v2248_v51, %v13886_v18 }
 0x340   : > { %v11707_v58 = vpop.f32.mrf.mxu1 }
 0x342   : > { %v2253_v60 = vpop.f32.mrf.mxu1 }
 0x343   : > { %v14139_v53 = vadd.f32 %v2253_v60, %v13891_v27 }
 0x344   : > { %v11710_v61 = vpop.f32.mrf.mxu1 }
 0x346   : > { %v2256_v1 = vpop.f32.mrf.mxu1 }
 0x347   : > { %v14144_v62 = vadd.f32 %v2256_v1, %v13896_v37 }
 0x348   : > { %v11711_v9 = vpop.f32.mrf.mxu1 }
 0x34a   : > { %v2261_v10 = vpop.f32.mrf.mxu1 }
 0x34b   : > { %v14147_v18 = vadd.f32 %v2261_v10, %v13901_v46 }
 0x34c   : > { %v11714_v11 = vpop.f32.mrf.mxu1 }
 0x34e   : > { %v2264_v12 = vpop.f32.mrf.mxu1 }
 0x34f   : > { %v14150_v27 = vadd.f32 %v2264_v12, %v13906_v2 }
 0x350   : > { %v11715_v19 = vpop.f32.mrf.mxu1 }
 0x352   : > { %v2269_v21 = vpop.f32.mrf.mxu1 }
 0x353   : > { %v14153_v31 = vadd.f32 %v2269_v21, %v13911_v49 }
 0x354   : > { %v11718_v28 = vpop.f32.mrf.mxu1 }
 0x356   : > { %v2272_v30 = vpop.f32.mrf.mxu1 }
 0x357   : > { %v14156_v37 = vadd.f32 %v2272_v30, %v13916_v57 }
 0x358   : > { %v11719_v33 = vpop.f32.mrf.mxu1 }
 0x35a   : > { %v2277_v34 = vpop.f32.mrf.mxu1 }
 0x35b   : > { %v14159_v46 = vadd.f32 %v2277_v34, %v13921_v5 }
 0x35c   : > { %v11722_v35 = vpop.f32.mrf.mxu1 }
 0x35e   : > { %v2280_v41 = vpop.f32.mrf.mxu1 }
 0x35f   : > { %v14162_v2 = vadd.f32 %v2280_v41, %v13926_v14 }
 0x360   : > { %v11723_v42 = vpop.f32.mrf.mxu1 }
 0x362   : > { %v2285_v43 = vpop.f32.mrf.mxu1 }
 0x363   : > { %v14165_v49 = vadd.f32 %v2285_v43, %v13931_v26 }
 0x364   : > { %v11726_v44 = vpop.f32.mrf.mxu1 }
 0x366   : > { %v2288_v0 = vpop.f32.mrf.mxu1 }
 0x367   : > { %v14168_v57 = vadd.f32 %v2288_v0, %v13936_v38 }
 0x368   : > { %v11727_v59 = vpop.f32.mrf.mxu1 }
 0x36a   : > { %v2293_v63 = vpop.f32.mrf.mxu1 }
 0x36b   : > { %v14171_v5 = vadd.f32 %v2293_v63, %v13941_v56 }
 0x36c   : > { %v11730_v3 = vpop.f32.mrf.mxu1 }
 0x36e   : > { %v2296_v13 = vpop.f32.mrf.mxu1 }
 0x36f   : > { %v14174_v14 = vadd.f32 %v2296_v13, %v13946_v29 }
 0x370   : > { %v11731_v20 = vpop.f32.mrf.mxu1 }
 0x372   : > { %v2301_v36 = vpop.f32.mrf.mxu1 }
 0x373   : > { %v14177_v26 = vadd.f32 %v2301_v36, %v13951_v52  ;;  %v14189_v52 = vld [vmem:[%s16863_s3] ss:$0 sm:$0xff] }
 0x374   : > { %v11734_v47 = vpop.f32.mrf.mxu1 }
 0x376   : > { %v2304_v39 = vpop.f32.mrf.mxu1 }
 0x377   : > { %v14180_v38 = vadd.f32 %v2304_v39, %v13956_v4 }
 0x378   : > { %v11735_v51 = vpop.f32.mrf.mxu1 }
 0x37a   : > { %v2309_v58 = vpop.f32.mrf.mxu1 }
 0x37b   : > { %v14183_v56 = vadd.f32 %v2309_v58, %v13961_v16 }
 0x37c   : > { %v11738_v60 = vpop.f32.mrf.mxu1 }
 0x37e   : > { %v2312_v61 = vpop.f32.mrf.mxu1 }
 0x380   : > { %v11739_v1 = vpop.f32.mrf.mxu1 }
 0x382   : > { %v2800_v29 = vpop.f32.mrf.mxu1 }
 0x383   : > { %v2918_v9 = vadd.f32 %v2800_v29, %v14082_v6 }
 0x384   : > { %v11750_v10 = vpop.f32.mrf.mxu1 }
 0x385   : > { %v2954_v4 = vadd.f32 %v14189_v52, %v2918_v9 }
 0x386   : > { %v2803_v11 = vpop.f32.mrf.mxu1 }
 0x387   : > { %v2919_v12 = vadd.f32 %v2803_v11, %v14087_v23  ;;  %v2983_v28 = vmax.f32 %v2954_v4, 0.0 }
 0x388   : > { %v11751_v19 = vpop.f32.mrf.mxu1 }
 0x389   : > { %v2955_v16 = vadd.f32 %v14189_v52, %v2919_v12 }
 0x38a   : > { %v2808_v21 = vpop.f32.mrf.mxu1 }
 0x38b   : > { %v2984_v30 = vmax.f32 %v2955_v16, 0.0  ;;  %v2920_v33 = vadd.f32 %v2808_v21, %v14091_v55  ;;  %v12516_v55 = vld [vmem:[%s16864_s4 + $0x2c] ss:$8 sps:$4 sm:$0xff]  }
 0x38c   : > { %v11754_v6 = vpop.f32.mrf.mxu1  ;;  %10055 = vmatprep.mubr.msk.bf16.mxu1 %vm3056_vm2, %v12516_v55 }
 0x38d   : > { %v14195_v34 = vpack.c.bf16 %v2984_v30, %v2983_v28  ;;  %v2956_v41 = vadd.f32 %v14189_v52, %v2920_v33 }
 0x38e   : > { %v2811_v35 = vpop.f32.mrf.mxu1 }
 0x38f   : > { %v2921_v42 = vadd.f32 %v2811_v35, %v14096_v45  ;;  %v2985_v0 = vmax.f32 %v2956_v41, 0.0  ;;  %v12519_v45 = vld [vmem:[%s16864_s4 + $0x4] ss:$8 sps:$4 sm:$0xff]  }
 0x390   : > { %v11755_v43 = vpop.f32.mrf.mxu1  ;;  %10041 = vmatprep.mubr.msk.bf16.mxu0 %vm3056_vm2, %v12519_v45 }
 0x391   : > { %v2957_v44 = vadd.f32 %v14189_v52, %v2921_v42 }
 0x392   : > { %v2816_v23 = vpop.f32.mrf.mxu1 }
 0x393   : > { %v2986_v59 = vmax.f32 %v2957_v44, 0.0  ;;  %v2922_v63 = vadd.f32 %v2816_v23, %v14100_v8 }
 0x394   : > { %v11758_v3 = vpop.f32.mrf.mxu1 }
 0x395   : > { %v14201_v13 = vpack.c.bf16 %v2986_v59, %v2985_v0  ;;  %v2958_v36 = vadd.f32 %v14189_v52, %v2922_v63 }
 0x396   : > { %v2819_v20 = vpop.f32.mrf.mxu1 }
 0x397   : > { %v2923_v47 = vadd.f32 %v2819_v20, %v14105_v54  ;;  %v2987_v58 = vmax.f32 %v2958_v36, 0.0 }
 0x398   : > { %v11759_v8 = vpop.f32.mrf.mxu1 }
 0x399   : > { %v2959_v39 = vadd.f32 %v14189_v52, %v2923_v47 }
 0x39a   : > { %v2824_v51 = vpop.f32.mrf.mxu1 }
 0x39b   : > { %v2988_v60 = vmax.f32 %v2959_v39, 0.0  ;;  %v2924_v61 = vadd.f32 %v2824_v51, %v14109_v24 }
 0x39c   : > { %v11762_v1 = vpop.f32.mrf.mxu1 }
 0x39d   : > { %v14215_v29 = vpack.c.bf16 %v2988_v60, %v2987_v58  ;;  %v2960_v10 = vadd.f32 %v14189_v52, %v2924_v61 }
 0x39e   : > { %v2827_v9 = vpop.f32.mrf.mxu1 }
 0x39f   : > { %v2925_v54 = vadd.f32 %v2827_v9, %v14114_v25  ;;  %v2989_v19 = vmax.f32 %v2960_v10, 0.0 }
 0x3a0   : > { %v11763_v11 = vpop.f32.mrf.mxu1 }
 0x3a1   : > { %v2961_v4 = vadd.f32 %v14189_v52, %v2925_v54 }
 0x3a2   : > { %v2832_v12 = vpop.f32.mrf.mxu1 }
 0x3a3   : > { %v2990_v16 = vmax.f32 %v2961_v4, 0.0  ;;  %v2926_v21 = vadd.f32 %v2832_v12, %v14118_v40 }
 0x3a4   : > { %v11766_v28 = vpop.f32.mrf.mxu1 }
 0x3a5   : > { %v14221_v30 = vpack.c.bf16 %v2990_v16, %v2989_v19  ;;  %v2962_v33 = vadd.f32 %v14189_v52, %v2926_v21 }
 0x3a6   : > { %v2835_v24 = vpop.f32.mrf.mxu1 }
 0x3a7   : > { %v2927_v6 = vadd.f32 %v2835_v24, %v14123_v48  ;;  %v2991_v42 = vmax.f32 %v2962_v33, 0.0 }
 0x3a8   : > { %v11767_v35 = vpop.f32.mrf.mxu1 }
 0x3a9   : > { %v2963_v41 = vadd.f32 %v14189_v52, %v2927_v6 }
 0x3aa   : > { %v2840_v25 = vpop.f32.mrf.mxu1 }
 0x3ab   : > { %v2992_v43 = vmax.f32 %v2963_v41, 0.0  ;;  %v2928_v44 = vadd.f32 %v2840_v25, %v14127_v17 }
 0x3ac   : > { %v11770_v23 = vpop.f32.mrf.mxu1 }
 0x3ad   : > { %v14227_v0 = vpack.c.bf16 %v2992_v43, %v2991_v42  ;;  %v2964_v59 = vadd.f32 %v14189_v52, %v2928_v44 }
 0x3ae   : > { %v2843_v40 = vpop.f32.mrf.mxu1 }
 0x3af   : > { %v2929_v63 = vadd.f32 %v2843_v40, %v14130_v32  ;;  %v2993_v20 = vmax.f32 %v2964_v59, 0.0 }
 0x3b0   : > { %v11771_v3 = vpop.f32.mrf.mxu1 }
 0x3b1   : > { %v2965_v55 = vadd.f32 %v14189_v52, %v2929_v63 }
 0x3b2   : > { %v2848_v48 = vpop.f32.mrf.mxu1 }
 0x3b3   : > { %v2994_v45 = vmax.f32 %v2965_v55, 0.0  ;;  %v2930_v36 = vadd.f32 %v2848_v48, %v14133_v50 }
 0x3b4   : > { %v11774_v47 = vpop.f32.mrf.mxu1 }
 0x3b5   : > { %v14233_v8 = vpack.c.bf16 %v2994_v45, %v2993_v20  ;;  %v2966_v39 = vadd.f32 %v14189_v52, %v2930_v36 }
 0x3b6   : > { %v2851_v17 = vpop.f32.mrf.mxu1 }
 0x3b7   : > { %v2931_v51 = vadd.f32 %v2851_v17, %v14136_v15  ;;  %v2995_v61 = vmax.f32 %v2966_v39, 0.0 }
 0x3b8   : > { %v11775_v58 = vpop.f32.mrf.mxu1 }
 0x3b9   : > { %v2967_v60 = vadd.f32 %v14189_v52, %v2931_v51 }
 0x3ba   : > { %v2856_v32 = vpop.f32.mrf.mxu1 }
 0x3bb   : > { %v2996_v1 = vmax.f32 %v2967_v60, 0.0  ;;  %v2932_v9 = vadd.f32 %v2856_v32, %v14139_v53 }
 0x3bc   : > { %v11778_v10 = vpop.f32.mrf.mxu1 }
 0x3bd   : > { %v14239_v54 = vpack.c.bf16 %v2996_v1, %v2995_v61  ;;  %v2968_v11 = vadd.f32 %v14189_v52, %v2932_v9 }
 0x3be   : > { %v2859_v50 = vpop.f32.mrf.mxu1 }
 0x3bf   : > { %v2933_v4 = vadd.f32 %v2859_v50, %v14144_v62  ;;  %v2997_v16 = vmax.f32 %v2968_v11, 0.0 }
 0x3c0   : > { %v11779_v12 = vpop.f32.mrf.mxu1 }
 0x3c1   : > { %v2969_v19 = vadd.f32 %v14189_v52, %v2933_v4 }
 0x3c2   : > { %v2864_v15 = vpop.f32.mrf.mxu1 }
 0x3c3   : > { %v2998_v21 = vmax.f32 %v2969_v19, 0.0  ;;  %v2934_v28 = vadd.f32 %v2864_v15, %v14147_v18 }
 0x3c4   : > { %v11782_v24 = vpop.f32.mrf.mxu1 }
 0x3c5   : > { %v14245_v33 = vpack.c.bf16 %v2998_v21, %v2997_v16  ;;  %v2970_v6 = vadd.f32 %v14189_v52, %v2934_v28 }
 0x3c6   : > { %v2867_v53 = vpop.f32.mrf.mxu1 }
 0x3c7   : > { %v2935_v35 = vadd.f32 %v2867_v53, %v14150_v27  ;;  %3073 = vmatpush1.bf16.msra.mxu0 %v14245_v33  ;;  %3175 = vmatpush1.bf16.msra.mxu1 %v14245_v33  ;;  %v2999_v25 = vmax.f32 %v2970_v6, 0.0 }
 0x3c8   : > { %v11783_v62 = vpop.f32.mrf.mxu1  ;;  %3074 = vmatprep.subr.bf16.mxu0 %v13215_v7  ;;  %3176 = vmatprep.subr.bf16.mxu1 %v13215_v7 }
 0x3c9   : > { %v2971_v41 = vadd.f32 %v14189_v52, %v2935_v35 }
 0x3ca   : > { %v2872_v18 = vpop.f32.mrf.mxu1 }
 0x3cb   : > { %v3000_v42 = vmax.f32 %v2971_v41, 0.0  ;;  %v2936_v43 = vadd.f32 %v2872_v18, %v14153_v31  ;;  %3075 = vmatpush1.bf16.msra.mxu0 %v14239_v54  ;;  %3177 = vmatpush1.bf16.msra.mxu1 %v14239_v54 }
 0x3cc   : > { %v11786_v27 = vpop.f32.mrf.mxu1  ;;  %3076 = vmatprep.subr.bf16.mxu0 %v13215_v7  ;;  %3178 = vmatprep.subr.bf16.mxu1 %v13215_v7 }
 0x3cd   : > { %v14259_v44 = vpack.c.bf16 %v3000_v42, %v2999_v25  ;;  %v2972_v40 = vadd.f32 %v14189_v52, %v2936_v43 }
 0x3ce   : > { %v2875_v23 = vpop.f32.mrf.mxu1 }
 0x3cf   : > { %v2937_v59 = vadd.f32 %v2875_v23, %v14156_v37  ;;  %3077 = vmatpush1.bf16.msra.mxu0 %v14233_v8  ;;  %3179 = vmatpush1.bf16.msra.mxu1 %v14233_v8  ;;  %v3001_v55 = vmax.f32 %v2972_v40, 0.0 }
 0x3d0   : > { %v11787_v31 = vpop.f32.mrf.mxu1  ;;  %3078 = vmatprep.subr.bf16.mxu0 %v13215_v7  ;;  %3180 = vmatprep.subr.bf16.mxu1 %v13215_v7 }
 0x3d1   : > { %v2973_v63 = vadd.f32 %v14189_v52, %v2937_v59 }
 0x3d2   : > { %v2880_v3 = vpop.f32.mrf.mxu1 }
 0x3d3   : > { %v3002_v48 = vmax.f32 %v2973_v63, 0.0  ;;  %v2938_v20 = vadd.f32 %v2880_v3, %v14159_v46  ;;  %3079 = vmatpush1.bf16.msra.mxu0 %v14227_v0  ;;  %3181 = vmatpush1.bf16.msra.mxu1 %v14227_v0 }
 0x3d4   : > { %v11790_v37 = vpop.f32.mrf.mxu1  ;;  %3080 = vmatprep.subr.bf16.mxu0 %v13215_v7  ;;  %3182 = vmatprep.subr.bf16.mxu1 %v13215_v7 }
 0x3d5   : > { %v14273_v45 = vpack.c.bf16 %v3002_v48, %v3001_v55  ;;  %v2974_v47 = vadd.f32 %v14189_v52, %v2938_v20  ;;  %v3068_v20 = vsel %vm3066_vm3, 65535, %v13215_v7 }
 0x3d6   : > { %v2883_v36 = vpop.f32.mrf.mxu1 }
 0x3d7   : > { %v2939_v17 = vadd.f32 %v2883_v36, %v14162_v2  ;;  %3081 = vmatpush1.bf16.msra.mxu0 %v14221_v30  ;;  %3183 = vmatpush1.bf16.msra.mxu1 %v14221_v30  ;;  %v3003_v58 = vmax.f32 %v2974_v47, 0.0  ;;  %v12520_v47 = vld [vmem:[%s16864_s4 + $0x3c] ss:$8 sps:$4 sm:$0xff]  }
 0x3d8   : > { %v11791_v46 = vpop.f32.mrf.mxu1  ;;  %3082 = vmatprep.subr.bf16.mxu0 %v13215_v7  ;;  %3184 = vmatprep.subr.bf16.mxu1 %v13215_v7 }
 0x3d9   : > { %v2975_v39 = vadd.f32 %v14189_v52, %v2939_v17  ;;  %v12525_v17 = vld [vmem:[%s16864_s4 + $0x14] ss:$8 sps:$4 sm:$0xff]  }
 0x3da   : > { %v2888_v51 = vpop.f32.mrf.mxu1  ;;  %v12530_v46 = vld [vmem:[%s16865_s5 + $0x18] sm:$0xff]  }
 0x3db   : > { %v3004_v60 = vmax.f32 %v2975_v39, 0.0  ;;  %v2940_v32 = vadd.f32 %v2888_v51, %v14165_v49  ;;  %3083 = vmatpush1.bf16.msra.mxu0 %v14215_v29  ;;  %3185 = vmatpush1.bf16.msra.mxu1 %v14215_v29  ;;  %v10048_v39 = vld [vmem:[%s16864_s4 + $0x48] sm:$0x33]  ;;  %v3031_v51 = vld [vmem:[%s16864_s4 + $0x20] sm:$0x33] }
 0x3dc   : > { %v11794_v2 = vpop.f32.mrf.mxu1  ;;  %3084 = vmatprep.subr.bf16.mxu0 %v13215_v7  ;;  %3186 = vmatprep.subr.bf16.mxu1 %v13215_v7 }
 0x3dd   : > { %v14287_v61 = vpack.c.bf16 %v3004_v60, %v3003_v58  ;;  %v2976_v9 = vadd.f32 %v14189_v52, %v2940_v32  ;;  %v12522_v58 = vld [vmem:[%s16864_s4 + $0x38] ss:$8 sps:$4 sm:$0xff]   ;;  %v10054_v32 = vcombine.high %v10048_v39, %v10048_v39  ;;  %v10040_v2 = vcombine.high %v3031_v51, %v3031_v51 }
 0x3de   : > { %v2891_v1 = vpop.f32.mrf.mxu1  ;;  %v12527_v60 = vld [vmem:[%s16864_s4 + $0x10] ss:$8 sps:$4 sm:$0xff]  }
 0x3df   : > { %v2941_v10 = vadd.f32 %v2891_v1, %v14168_v57  ;;  %3085 = vmatpush1.bf16.msra.mxu0 %v14201_v13  ;;  %3187 = vmatpush1.bf16.msra.mxu1 %v14201_v13  ;;  %v3005_v4 = vmax.f32 %v2976_v9, 0.0  ;;  %v10053_v1 = vcombine.low %v10048_v39, %v10048_v39  ;;  %v10039_v9 = vcombine.low %v3031_v51, %v3031_v51  ;;  %v12542_v51 = vld [vmem:[%s16865_s5 + $0x28] sm:$0xff]  }
 0x3e0   : > { %v11795_v49 = vpop.f32.mrf.mxu1  ;;  %3086 = vmatprep.subr.bf16.mxu0 %v13215_v7  ;;  %3188 = vmatprep.subr.bf16.mxu1 %v13215_v7 }
 0x3e1   : > { %v2977_v50 = vadd.f32 %v14189_v52, %v2941_v10  ;;  %v12532_v10 = vld [vmem:[%s16865_s5 + $0x8] sm:$0xff]   ;;  %v12531_v49 = vld [vmem:[%s16865_s5 + $0x10] sm:$0xff]  }
 0x3e2   : > { %v2896_v11 = vpop.f32.mrf.mxu1 }
 0x3e3   : > { %v3006_v12 = vmax.f32 %v2977_v50, 0.0  ;;  %v2942_v19 = vadd.f32 %v2896_v11, %v14171_v5  ;;  %3087 = vmatpush1.bf16.msra.mxu0 %v14195_v34  ;;  %3189 = vmatpush1.bf16.msra.mxu1 %v14195_v34  ;;  %v12533_v50 = vld [vmem:[%s16865_s5] sm:$0xff]  }
 0x3e4   : > { %v11798_v57 = vpop.f32.mrf.mxu1  ;;  %3090 = vmatprep.subr.bf16.mxu0 %v13215_v7  ;;  %3192 = vmatprep.subr.bf16.mxu1 %v13215_v7 }
 0x3e5   : > { %v14301_v15 = vpack.c.bf16 %v3006_v12, %v3005_v4  ;;  %v2978_v21 = vadd.f32 %v14189_v52, %v2942_v19 }
 0x3e6   : > { %v2899_v16 = vpop.f32.mrf.mxu1 }
 0x3e7   : > { %v2943_v28 = vadd.f32 %v2899_v16, %v14174_v14  ;;  %v3007_v6 = vmax.f32 %v2978_v21, 0.0 }
 0x3e8   : > { %v11799_v24 = vpop.f32.mrf.mxu1 }
 0x3e9   : > { %v2979_v53 = vadd.f32 %v14189_v52, %v2943_v28 }
 0x3ea   : > { %v2904_v5 = vpop.f32.mrf.mxu1 }
 0x3eb   : > { %v3008_v35 = vmax.f32 %v2979_v53, 0.0  ;;  %v2944_v62 = vadd.f32 %v2904_v5, %v14177_v26 }
 0x3ec   : > { %v11802_v41 = vpop.f32.mrf.mxu1 }
 0x3ed   : > { %v14307_v18 = vpack.c.bf16 %v3008_v35, %v3007_v6  ;;  %v2980_v42 = vadd.f32 %v14189_v52, %v2944_v62 }
 0x3ee   : > { %v2907_v25 = vpop.f32.mrf.mxu1 }
 0x3ef   : > { %v2945_v43 = vadd.f32 %v2907_v25, %v14180_v38  ;;  %v3009_v40 = vmax.f32 %v2980_v42, 0.0 }
 0x3f0   : > { %v11803_v27 = vpop.f32.mrf.mxu1 }
 0x3f1   : > { %v2981_v23 = vadd.f32 %v14189_v52, %v2945_v43 }
 0x3f2   : > { %v2912_v14 = vpop.f32.mrf.mxu1 }
 0x3f3   : > { %v3010_v59 = vmax.f32 %v2981_v23, 0.0  ;;  %v2946_v31 = vadd.f32 %v2912_v14, %v14183_v56  ;;  %v12514_v56 = vld [vmem:[%s16864_s4 + $0x28] ss:$8 sps:$4 sm:$0xff]  }
 0x3f4   : > { %v11806_v63 = vpop.f32.mrf.mxu1 }
 0x3f5   : > { %v14313_v3 = vpack.c.bf16 %v3010_v59, %v3009_v40  ;;  %v2982_v26 = vadd.f32 %v14189_v52, %v2946_v31  ;;  %v12517_v52 = vld [vmem:[%s16864_s4] ss:$8 sps:$4 sm:$0xff]  }
 0x3f6   : > { %v2915_v55 = vpop.f32.mrf.mxu1 }
 0x3f7   : > { %v3011_v48 = vmax.f32 %v2982_v26, 0.0  ;;  %v12536_v55 = vld [vmem:[%s16864_s4 + $0x54] ss:$8 sps:$4 sm:$0xff]  }
 0x3f8   : > { %v11807_v37 = vpop.f32.mrf.mxu1 }
 0x3f9   : > { %v3026_v38 = vpack.c.bf16 %v3011_v48, %v3011_v48 }
 0x3fb   : > { %v14317_v36 = vand.u32 %v3068_v20, %v3026_v38 }
 0x3fd   : > { %3091 = vmatpush2.bf16.msra.mxu0 %v14317_v36  ;;  %3193 = vmatpush2.bf16.msra.mxu1 %v14317_v36 }
 0x3fe   : > { %3092 = vmatprep.subr.bf16.mxu0 %v13215_v7  ;;  %3194 = vmatprep.subr.bf16.mxu1 %v13215_v7 }
 0x401   : > { %3093 = vmatpush2.bf16.msra.mxu0 %v14313_v3  ;;  %3195 = vmatpush2.bf16.msra.mxu1 %v14313_v3 }
 0x402   : > { %3094 = vmatprep.subr.bf16.mxu0 %v13215_v7  ;;  %3196 = vmatprep.subr.bf16.mxu1 %v13215_v7 }
 0x405   : > { %3095 = vmatpush2.bf16.msra.mxu0 %v14307_v18  ;;  %3197 = vmatpush2.bf16.msra.mxu1 %v14307_v18 }
 0x406   : > { %3096 = vmatprep.subr.bf16.mxu0 %v13215_v7  ;;  %3198 = vmatprep.subr.bf16.mxu1 %v13215_v7 }
 0x409   : > { %3097 = vmatpush2.bf16.msra.mxu0 %v14301_v15  ;;  %3199 = vmatpush2.bf16.msra.mxu1 %v14301_v15 }
 0x40a   : > { %3098 = vmatprep.subr.bf16.mxu0 %v13215_v7  ;;  %3200 = vmatprep.subr.bf16.mxu1 %v13215_v7 }
 0x40d   : > { %3099 = vmatpush2.bf16.msra.mxu0 %v14287_v61  ;;  %3201 = vmatpush2.bf16.msra.mxu1 %v14287_v61 }
 0x40e   : > { %3100 = vmatprep.subr.bf16.mxu0 %v13215_v7  ;;  %3202 = vmatprep.subr.bf16.mxu1 %v13215_v7 }
 0x411   : > { %3101 = vmatpush2.bf16.msra.mxu0 %v14273_v45  ;;  %3203 = vmatpush2.bf16.msra.mxu1 %v14273_v45 }
 0x412   : > { %3102 = vmatprep.subr.bf16.mxu0 %v13215_v7  ;;  %3204 = vmatprep.subr.bf16.mxu1 %v13215_v7 }
 0x415   : > { %3103 = vmatpush2.bf16.msra.mxu0 %v14259_v44  ;;  %3205 = vmatpush2.bf16.msra.mxu1 %v14259_v44 }
 0x416   : > { %11808 = vmatprep.subr.bf16.mxu0 %v13213_v22  ;;  %11824 = vmatprep.subr.bf16.mxu1 %v13213_v22 }
 0x418   : > { %3207 = vmatmul.mubr.bf16.vlgmr.msra.gmra.mxu1 %v12514_v56  ;;  %3105 = vmatmul.mubr.bf16.vlgmr.msra.gmra.mxu0 %v12517_v52  ;;  %v12534_v56 = vld [vmem:[%s16864_s4 + $0x50] ss:$8 sps:$4 sm:$0xff]   ;;  %v12537_v52 = vld [vmem:[%s16864_s4 + $0x64] ss:$8 sps:$4 sm:$0xff]  }
 0x419   : > { %10056 = vmatprep.mubr.msk.bf16.mxu1 %vm3056_vm2, %v12520_v47  ;;  %10042 = vmatprep.mubr.msk.bf16.mxu0 %vm3056_vm2, %v12525_v17  ;;  %v10076_v47 = vld [vmem:[%s16864_s4 + $0x70] sm:$0x33]  ;;  %v12539_v17 = vld [vmem:[%s16864_s4 + $0x60] ss:$8 sps:$4 sm:$0xff]  }
 0x41a   : > { %11809 = vmatpush3.bf16.msra.mxu0 %v12530_v46  ;;  %11825 = vmatpush3.bf16.msra.mxu1 %v12532_v10  ;;  %v10082_v46 = vcombine.high %v10076_v47, %v10076_v47  ;;  %v10081_v39 = vcombine.low %v10076_v47, %v10076_v47 }
 0x41b   : > { %11810 = vmatprep.subr.bf16.mxu0 %v13213_v22  ;;  %11826 = vmatprep.subr.bf16.mxu1 %v13213_v22 }
 0x41e   : > { %11811 = vmatpush3.bf16.msra.mxu0 %v12531_v49  ;;  %11827 = vmatpush3.bf16.msra.mxu1 %v12533_v50 }
 0x41f   : > { %3432 = vmatprep.subr.bf16.mxu0 %v13215_v7  ;;  %11840 = vmatprep.subr.bf16.mxu1 %v13213_v22 }
 0x420   : > { %3215 = vmatmul.mubr.bf16.gmra.mxu1 %v12522_v58  ;;  %3113 = vmatmul.mubr.bf16.gmra.mxu0 %v12527_v60  ;;  %v12543_v58 = vld [vmem:[%s16865_s5 + $0x20] sm:$0xff]  }
 0x421   : > { %10057 = vmatprep.mubr.msk.bf16.mxu1 %vm3056_vm2, %v10054_v32  ;;  %10043 = vmatprep.mubr.msk.bf16.mxu0 %vm3056_vm2, %v10040_v2 }
 0x428   : > { %3223 = vmatmul.mubr.bf16.gmra.mxu1 %v10053_v1  ;;  %3121 = vmatmul.mubr.bf16.gmra.mxu0 %v10039_v9 }
 0x429   : > { %11812 = vmatprep.mubr.msk.bf16.mxu0 %vm13214_vm0, %v13213_v22  ;;  %11828 = vmatprep.mubr.msk.bf16.mxu1 %vm13214_vm0, %v13213_v22 }
 0x4d8   : > { %v3208_v11 = vpop.f32.mrf.mxu1  ;;  %v3106_v4 = vpop.f32.mrf.mxu0 }
 0x4da   : > { %v3210_v12 = vpop.f32.mrf.mxu1  ;;  %v3108_v19 = vpop.f32.mrf.mxu0 }
 0x4dc   : > { %v3211_v57 = vpop.f32.mrf.mxu1  ;;  %v3109_v16 = vpop.f32.mrf.mxu0 }
 0x4dd   : > { %v3230_v21 = vpack.c.bf16 %v3211_v57, %v3208_v11  ;;  %v3128_v28 = vpack.c.bf16 %v3109_v16, %v3106_v4 }
 0x4de   : > { %v3213_v24 = vpop.f32.mrf.mxu1  ;;  %v3111_v53 = vpop.f32.mrf.mxu0 }
 0x4df   : > { %11813 = vmatmul.mubr.msk.bf16.vlgmr.msra.gmra.mxu0 %vm3250_vm4, %v3230_v21  ;;  %11829 = vmatmul.mubr.msk.bf16.vlgmr.msra.gmra.mxu1 %vm3250_vm4, %v3128_v28 }
 0x4e0   : > { %3433 = vmatpush1.bf16.msra.mxu0 %v14245_v33  ;;  %v3216_v5 = vpop.f32.mrf.mxu1  ;;  %11816 = vmatprep.mubr.msk.bf16.mxu0 %vm13214_vm0, %v13213_v22  ;;  %v3114_v6 = vpop.f32.mrf.mxu0 }
 0x4e1   : > { %3434 = vmatprep.subr.bf16.mxu0 %v13215_v7  ;;  %11832 = vmatprep.mubr.msk.bf16.mxu1 %vm13214_vm0, %v13213_v22 }
 0x4e2   : > { %v3218_v35 = vpop.f32.mrf.mxu1  ;;  %v3116_v62 = vpop.f32.mrf.mxu0  ;;  %11841 = vmatpush3.bf16.msra.mxu1 %v12542_v51  ;;  %v12544_v51 = vld [vmem:[%s16864_s4 + $0x78] ss:$8 sps:$4 sm:$0xff]  }
 0x4e3   : > { %11842 = vmatprep.subr.bf16.mxu1 %v13213_v22 }
 0x4e4   : > { %3435 = vmatpush1.bf16.msra.mxu0 %v14239_v54  ;;  %v3219_v41 = vpop.f32.mrf.mxu1  ;;  %v3117_v25 = vpop.f32.mrf.mxu0 }
 0x4e5   : > { %3436 = vmatprep.subr.bf16.mxu0 %v13215_v7  ;;  %v3231_v42 = vpack.c.bf16 %v3219_v41, %v3216_v5  ;;  %v3129_v43 = vpack.c.bf16 %v3117_v25, %v3114_v6 }
 0x4e6   : > { %v3221_v27 = vpop.f32.mrf.mxu1  ;;  %v3119_v23 = vpop.f32.mrf.mxu0  ;;  %11843 = vmatpush3.bf16.msra.mxu1 %v12543_v58  ;;  %v12547_v58 = vld [vmem:[%s16864_s4 + $0x8c] ss:$8 sps:$4 sm:$0xff]  }
 0x4e7   : > { %11817 = vmatmul.mubr.msk.bf16.gmra.mxu0 %vm3250_vm4, %v3231_v42  ;;  %11833 = vmatmul.mubr.msk.bf16.gmra.mxu1 %vm3250_vm4, %v3129_v43 }
 0x4e8   : > { %3437 = vmatpush1.bf16.msra.mxu0 %v14233_v8  ;;  %v3224_v14 = vpop.f32.mrf.mxu1  ;;  %11820 = vmatprep.mubr.msk.bf16.mxu0 %vm13214_vm0, %v13213_v22  ;;  %v3122_v40 = vpop.f32.mrf.mxu0 }
 0x4e9   : > { %3438 = vmatprep.subr.bf16.mxu0 %v13215_v7  ;;  %11836 = vmatprep.mubr.msk.bf16.mxu1 %vm13214_vm0, %v13213_v22  ;;  %v3232_v63 = vpack.c.bf16 %v3224_v14, %v3224_v14  ;;  %v3130_v26 = vpack.c.bf16 %v3122_v40, %v3122_v40 }
 0x4ea   : > { %v3226_v59 = vpop.f32.mrf.mxu1  ;;  %v3124_v31 = vpop.f32.mrf.mxu0  ;;  %3617 = vmatprep.subr.bf16.mxu1 %v13215_v7 }
 0x4ec   : > { %3439 = vmatpush1.bf16.msra.mxu0 %v14227_v0  ;;  %v3227_v48 = vpop.f32.mrf.mxu1  ;;  %v3125_v20 = vpop.f32.mrf.mxu0 }
 0x4ed   : > { %3440 = vmatprep.subr.bf16.mxu0 %v13215_v7 }
 0x4ee   : > { %v3228_v37 = vpop.f32.mrf.mxu1  ;;  %v3126_v38 = vpop.f32.mrf.mxu0 }
 0x4ef   : > { %11821 = vmatmul.mubr.msk.bf16.gmra.mxu0 %vm3250_vm4, %v3232_v63  ;;  %11837 = vmatmul.mubr.msk.bf16.gmra.mxu1 %vm3250_vm4, %v3130_v26 }
 0x4f0   : > { %3441 = vmatpush1.bf16.msra.mxu0 %v14221_v30  ;;  %10083 = vmatprep.mubr.msk.bf16.mxu0 %vm3056_vm2, %v12536_v55 }
 0x4f1   : > { %3442 = vmatprep.subr.bf16.mxu0 %v13215_v7  ;;  %11844 = vmatprep.mubr.msk.bf16.mxu1 %vm13214_vm0, %v13213_v22 }
 0x4f4   : > { %3443 = vmatpush1.bf16.msra.mxu0 %v14215_v29 }
 0x4f5   : > { %3444 = vmatprep.subr.bf16.mxu0 %v13215_v7 }
 0x4f8   : > { %3445 = vmatpush1.bf16.msra.mxu0 %v14201_v13 }
 0x4f9   : > { %3446 = vmatprep.subr.bf16.mxu0 %v13215_v7 }
 0x4fc   : > { %3447 = vmatpush1.bf16.msra.mxu0 %v14195_v34 }
 0x4fd   : > { %3450 = vmatprep.subr.bf16.mxu0 %v13215_v7 }
 0x500   : > { %3451 = vmatpush2.bf16.msra.mxu0 %v14317_v36 }
 0x501   : > { %3452 = vmatprep.subr.bf16.mxu0 %v13215_v7 }
 0x504   : > { %3453 = vmatpush2.bf16.msra.mxu0 %v14313_v3 }
 0x505   : > { %3454 = vmatprep.subr.bf16.mxu0 %v13215_v7 }
 0x508   : > { %3455 = vmatpush2.bf16.msra.mxu0 %v14307_v18 }
 0x509   : > { %3456 = vmatprep.subr.bf16.mxu0 %v13215_v7 }
 0x50c   : > { %3457 = vmatpush2.bf16.msra.mxu0 %v14301_v15 }
 0x50d   : > { %3458 = vmatprep.subr.bf16.mxu0 %v13215_v7 }
 0x510   : > { %3459 = vmatpush2.bf16.msra.mxu0 %v14287_v61 }
 0x511   : > { %3460 = vmatprep.subr.bf16.mxu0 %v13215_v7 }
 0x514   : > { %3461 = vmatpush2.bf16.msra.mxu0 %v14273_v45 }
 0x515   : > { %3462 = vmatprep.subr.bf16.mxu0 %v13215_v7 }
 0x518   : > { %3463 = vmatpush2.bf16.msra.mxu0 %v14259_v44 }
 0x519   : > { %11856 = vmatprep.subr.bf16.mxu0 %v13213_v22 }
 0x51b   : > { %3465 = vmatmul.mubr.bf16.vlgmr.msra.gmra.mxu0 %v12534_v56 }
 0x51c   : > { %10084 = vmatprep.mubr.msk.bf16.mxu0 %vm3056_vm2, %v12537_v52 }
 0x523   : > { %3473 = vmatmul.mubr.bf16.gmra.mxu0 %v12539_v17  ;;  %v12546_v17 = vld [vmem:[%s16864_s4 + $0x7c] ss:$8 sps:$4 sm:$0xff]  }
 0x524   : > { %10085 = vmatprep.mubr.msk.bf16.mxu0 %vm3056_vm2, %v10082_v46 }
 0x52b   : > { %3481 = vmatmul.mubr.bf16.gmra.mxu0 %v10081_v39 }
 0x52c   : > { %11860 = vmatprep.mubr.msk.bf16.mxu0 %vm13214_vm0, %v13213_v22 }
 0x59f   : > { %v3294_v60 = vpop.f32.mrf.mxu0  ;;  %v3371_v32 = vpop.f32.mrf.mxu1 }
 0x5a0   : > { %v14469_v2 = vadd.f32 %v3371_v32, %v3294_v60  ;;  %v10099_v60 = vld [vmem:[%s16864_s4 + $0x98] sm:$0x33]  ;;  %v12549_v32 = vld [vmem:[%s16864_s4 + $0x88] ss:$8 sps:$4 sm:$0xff]  }
 0x5a1   : > { %v11814_v1 = vpop.f32.mrf.mxu0  ;;  %v11830_v9 = vpop.f32.mrf.mxu1 }
 0x5a2   : > { %v10105_v1 = vcombine.high %v10099_v60, %v10099_v60  ;;  %v10104_v9 = vcombine.low %v10099_v60, %v10099_v60 }
 0x5a3   : > { %v3297_v10 = vpop.f32.mrf.mxu0  ;;  %v3374_v49 = vpop.f32.mrf.mxu1 }
 0x5a4   : > { %v14471_v50 = vadd.f32 %v3374_v49, %v3297_v10  ;;  %v12552_v10 = vld [vmem:[%s16865_s5 + $0x38] sm:$0xff]   ;;  %v12553_v49 = vld [vmem:[%s16865_s5 + $0x30] sm:$0xff]  }
 0x5a5   : > { %v11815_v11 = vpop.f32.mrf.mxu0  ;;  %v11831_v4 = vpop.f32.mrf.mxu1  ;;  %11857 = vmatpush3.bf16.msra.mxu0 %v12552_v10 }
 0x5a6   : > { %11858 = vmatprep.subr.bf16.mxu0 %v13213_v22 }
 0x5a7   : > { %v3302_v12 = vpop.f32.mrf.mxu0  ;;  %v3379_v19 = vpop.f32.mrf.mxu1 }
 0x5a8   : > { %v14473_v57 = vadd.f32 %v3379_v19, %v3302_v12 }
 0x5a9   : > { %v11818_v16 = vpop.f32.mrf.mxu0  ;;  %v11834_v21 = vpop.f32.mrf.mxu1  ;;  %11859 = vmatpush3.bf16.msra.mxu0 %v12553_v49 }
 0x5aa   : > { %3802 = vmatprep.subr.bf16.mxu0 %v13215_v7 }
 0x5ab   : > { %v3305_v28 = vpop.f32.mrf.mxu0  ;;  %v3382_v24 = vpop.f32.mrf.mxu1 }
 0x5ac   : > { %v14475_v53 = vadd.f32 %v3382_v24, %v3305_v28 }
 0x5ad   : > { %v11819_v5 = vpop.f32.mrf.mxu0  ;;  %v11835_v6 = vpop.f32.mrf.mxu1 }
 0x5af   : > { %v3310_v35 = vpop.f32.mrf.mxu0  ;;  %v3387_v62 = vpop.f32.mrf.mxu1 }
 0x5b0   : > { %v14477_v41 = vadd.f32 %v3387_v62, %v3310_v35 }
 0x5b1   : > { %v11822_v25 = vpop.f32.mrf.mxu0  ;;  %v11838_v42 = vpop.f32.mrf.mxu1 }
 0x5b3   : > { %v3313_v43 = vpop.f32.mrf.mxu0  ;;  %v3390_v27 = vpop.f32.mrf.mxu1 }
 0x5b5   : > { %v11823_v23 = vpop.f32.mrf.mxu0  ;;  %v11839_v14 = vpop.f32.mrf.mxu1 }
 0x5db   : > { %v3466_v40 = vpop.f32.mrf.mxu0 }
 0x5dd   : > { %v3468_v59 = vpop.f32.mrf.mxu0 }
 0x5df   : > { %v3469_v31 = vpop.f32.mrf.mxu0 }
 0x5e0   : > { %v3488_v63 = vpack.c.bf16 %v3469_v31, %v3466_v40 }
 0x5e1   : > { %v3471_v26 = vpop.f32.mrf.mxu0 }
 0x5e2   : > { %11845 = vmatmul.mubr.msk.bf16.vlgmr.msra.gmra.mxu1 %vm3250_vm4, %v3488_v63 }
 0x5e3   : > { %3618 = vmatpush1.bf16.msra.mxu1 %v14245_v33  ;;  %v3474_v55 = vpop.f32.mrf.mxu0  ;;  %11848 = vmatprep.mubr.msk.bf16.mxu1 %vm13214_vm0, %v13213_v22 }
 0x5e4   : > { %3619 = vmatprep.subr.bf16.mxu1 %v13215_v7 }
 0x5e5   : > { %v3476_v48 = vpop.f32.mrf.mxu0 }
 0x5e7   : > { %3620 = vmatpush1.bf16.msra.mxu1 %v14239_v54  ;;  %v3477_v20 = vpop.f32.mrf.mxu0 }
 0x5e8   : > { %v3489_v37 = vpack.c.bf16 %v3477_v20, %v3474_v55  ;;  %3621 = vmatprep.subr.bf16.mxu1 %v13215_v7  ;;  %v12556_v20 = vld [vmem:[%s16864_s4 + $0xa4] ss:$8 sps:$4 sm:$0xff]  }
 0x5e9   : > { %v3479_v38 = vpop.f32.mrf.mxu0 }
 0x5ea   : > { %11849 = vmatmul.mubr.msk.bf16.gmra.mxu1 %vm3250_vm4, %v3489_v37 }
 0x5eb   : > { %3622 = vmatpush1.bf16.msra.mxu1 %v14233_v8  ;;  %v3482_v56 = vpop.f32.mrf.mxu0  ;;  %11852 = vmatprep.mubr.msk.bf16.mxu1 %vm13214_vm0, %v13213_v22 }
 0x5ec   : > { %3623 = vmatprep.subr.bf16.mxu1 %v13215_v7  ;;  %v3490_v47 = vpack.c.bf16 %v3482_v56, %v3482_v56  ;;  %v12554_v56 = vld [vmem:[%s16864_s4 + $0xa0] ss:$8 sps:$4 sm:$0xff]  }
 0x5ed   : > { %v3484_v52 = vpop.f32.mrf.mxu0 }
 0x5ee   : > { %v12557_v52 = vld [vmem:[%s16864_s4 + $0xb4] ss:$8 sps:$4 sm:$0xff]  }
 0x5ef   : > { %3624 = vmatpush1.bf16.msra.mxu1 %v14227_v0  ;;  %v3485_v46 = vpop.f32.mrf.mxu0 }
 0x5f0   : > { %3625 = vmatprep.subr.bf16.mxu1 %v13215_v7 }
 0x5f1   : > { %v3486_v39 = vpop.f32.mrf.mxu0 }
 0x5f2   : > { %11853 = vmatmul.mubr.msk.bf16.gmra.mxu1 %vm3250_vm4, %v3490_v47  ;;  %v10122_v47 = vld [vmem:[%s16864_s4 + $0xc0] sm:$0x33] }
 0x5f3   : > { %3626 = vmatpush1.bf16.msra.mxu1 %v14221_v30  ;;  %10106 = vmatprep.mubr.msk.bf16.mxu1 %vm3056_vm2, %v12546_v17  ;;  %v12559_v17 = vld [vmem:[%s16864_s4 + $0xb0] ss:$8 sps:$4 sm:$0xff]   ;;  %v10128_v46 = vcombine.high %v10122_v47, %v10122_v47  ;;  %v10127_v39 = vcombine.low %v10122_v47, %v10122_v47 }
 0x5f4   : > { %3627 = vmatprep.subr.bf16.mxu1 %v13215_v7 }
 0x5f7   : > { %3628 = vmatpush1.bf16.msra.mxu1 %v14215_v29 }
 0x5f8   : > { %3629 = vmatprep.subr.bf16.mxu1 %v13215_v7 }
 0x5fb   : > { %3630 = vmatpush1.bf16.msra.mxu1 %v14201_v13 }
 0x5fc   : > { %3631 = vmatprep.subr.bf16.mxu1 %v13215_v7 }
 0x5ff   : > { %3632 = vmatpush1.bf16.msra.mxu1 %v14195_v34 }
 0x600   : > { %3635 = vmatprep.subr.bf16.mxu1 %v13215_v7 }
 0x603   : > { %3636 = vmatpush2.bf16.msra.mxu1 %v14317_v36 }
 0x604   : > { %3637 = vmatprep.subr.bf16.mxu1 %v13215_v7 }
 0x607   : > { %3638 = vmatpush2.bf16.msra.mxu1 %v14313_v3 }
 0x608   : > { %3639 = vmatprep.subr.bf16.mxu1 %v13215_v7 }
 0x60b   : > { %3640 = vmatpush2.bf16.msra.mxu1 %v14307_v18 }
 0x60c   : > { %3641 = vmatprep.subr.bf16.mxu1 %v13215_v7 }
 0x60f   : > { %3642 = vmatpush2.bf16.msra.mxu1 %v14301_v15 }
 0x610   : > { %3643 = vmatprep.subr.bf16.mxu1 %v13215_v7 }
 0x613   : > { %3644 = vmatpush2.bf16.msra.mxu1 %v14287_v61 }
 0x614   : > { %3645 = vmatprep.subr.bf16.mxu1 %v13215_v7 }
 0x617   : > { %3646 = vmatpush2.bf16.msra.mxu1 %v14273_v45 }
 0x618   : > { %3647 = vmatprep.subr.bf16.mxu1 %v13215_v7 }
 0x61b   : > { %3648 = vmatpush2.bf16.msra.mxu1 %v14259_v44 }
 0x61c   : > { %11872 = vmatprep.subr.bf16.mxu1 %v13213_v22 }
 0x61e   : > { %3650 = vmatmul.mubr.bf16.vlgmr.msra.gmra.mxu1 %v12544_v51  ;;  %v12562_v51 = vld [vmem:[%s16865_s5 + $0x48] sm:$0xff]  }
 0x61f   : > { %10107 = vmatprep.mubr.msk.bf16.mxu1 %vm3056_vm2, %v12547_v58  ;;  %11873 = vmatpush3.bf16.msra.mxu1 %v12562_v51  ;;  %v12563_v58 = vld [vmem:[%s16865_s5 + $0x40] sm:$0xff]  }
 0x620   : > { %11874 = vmatprep.subr.bf16.mxu1 %v13213_v22 }
 0x623   : > { %11875 = vmatpush3.bf16.msra.mxu1 %v12563_v58 }
 0x624   : > { %3987 = vmatprep.subr.bf16.mxu1 %v13215_v7 }
 0x626   : > { %3658 = vmatmul.mubr.bf16.gmra.mxu1 %v12549_v32 }
 0x627   : > { %10108 = vmatprep.mubr.msk.bf16.mxu1 %vm3056_vm2, %v10105_v1 }
 0x62e   : > { %3666 = vmatmul.mubr.bf16.gmra.mxu1 %v10104_v9 }
 0x62f   : > { %11876 = vmatprep.mubr.msk.bf16.mxu1 %vm13214_vm0, %v13213_v22 }
 0x6a2   : > { %v3551_v11 = vpop.f32.mrf.mxu1 }
 0x6a3   : > { %v14545_v4 = vadd.f32 %v3551_v11, %v14469_v2 }
 0x6a4   : > { %v11846_v12 = vpop.f32.mrf.mxu1 }
 0x6a6   : > { %v3554_v19 = vpop.f32.mrf.mxu1 }
 0x6a7   : > { %v14548_v16 = vadd.f32 %v3554_v19, %v14471_v50 }
 0x6a8   : > { %v11847_v21 = vpop.f32.mrf.mxu1 }
 0x6aa   : > { %v3559_v28 = vpop.f32.mrf.mxu1 }
 0x6ab   : > { %v14551_v24 = vadd.f32 %v3559_v28, %v14473_v57 }
 0x6ac   : > { %v11850_v5 = vpop.f32.mrf.mxu1 }
 0x6ae   : > { %v3562_v6 = vpop.f32.mrf.mxu1 }
 0x6af   : > { %v14554_v35 = vadd.f32 %v3562_v6, %v14475_v53 }
 0x6b0   : > { %v11851_v62 = vpop.f32.mrf.mxu1 }
 0x6b2   : > { %v3567_v25 = vpop.f32.mrf.mxu1 }
 0x6b3   : > { %v14557_v2 = vadd.f32 %v3567_v25, %v14477_v41 }
 0x6b4   : > { %v11854_v42 = vpop.f32.mrf.mxu1 }
 0x6b6   : > { %v3570_v43 = vpop.f32.mrf.mxu1 }
 0x6b8   : > { %v11855_v27 = vpop.f32.mrf.mxu1 }
 0x6de   : > { %v3651_v50 = vpop.f32.mrf.mxu1 }
 0x6e0   : > { %v3653_v23 = vpop.f32.mrf.mxu1 }
 0x6e2   : > { %v3654_v14 = vpop.f32.mrf.mxu1 }
 0x6e3   : > { %v3673_v40 = vpack.c.bf16 %v3654_v14, %v3651_v50 }
 0x6e4   : > { %v3656_v59 = vpop.f32.mrf.mxu1 }
 0x6e5   : > { %11861 = vmatmul.mubr.msk.bf16.vlgmr.msra.gmra.mxu0 %vm3250_vm4, %v3673_v40 }
 0x6e6   : > { %3803 = vmatpush1.bf16.msra.mxu0 %v14245_v33  ;;  %v3659_v57 = vpop.f32.mrf.mxu1  ;;  %11864 = vmatprep.mubr.msk.bf16.mxu0 %vm13214_vm0, %v13213_v22 }
 0x6e7   : > { %3804 = vmatprep.subr.bf16.mxu0 %v13215_v7 }
 0x6e8   : > { %v3661_v53 = vpop.f32.mrf.mxu1 }
 0x6ea   : > { %3805 = vmatpush1.bf16.msra.mxu0 %v14239_v54  ;;  %v3662_v41 = vpop.f32.mrf.mxu1 }
 0x6eb   : > { %v3674_v31 = vpack.c.bf16 %v3662_v41, %v3659_v57  ;;  %3806 = vmatprep.subr.bf16.mxu0 %v13215_v7  ;;  %v12566_v41 = vld [vmem:[%s16864_s4 + $0xcc] ss:$8 sps:$4 sm:$0xff]  }
 0x6ec   : > { %v3664_v63 = vpop.f32.mrf.mxu1 }
 0x6ed   : > { %11865 = vmatmul.mubr.msk.bf16.gmra.mxu0 %vm3250_vm4, %v3674_v31 }
 0x6ee   : > { %3807 = vmatpush1.bf16.msra.mxu0 %v14233_v8  ;;  %v3667_v26 = vpop.f32.mrf.mxu1  ;;  %11868 = vmatprep.mubr.msk.bf16.mxu0 %vm13214_vm0, %v13213_v22 }
 0x6ef   : > { %3808 = vmatprep.subr.bf16.mxu0 %v13215_v7  ;;  %v3675_v48 = vpack.c.bf16 %v3667_v26, %v3667_v26  ;;  %v12564_v26 = vld [vmem:[%s16864_s4 + $0xc8] ss:$8 sps:$4 sm:$0xff]  }
 0x6f0   : > { %v3669_v55 = vpop.f32.mrf.mxu1 }
 0x6f1   : > { %v12567_v55 = vld [vmem:[%s16864_s4 + $0xdc] ss:$8 sps:$4 sm:$0xff]  }
 0x6f2   : > { %3809 = vmatpush1.bf16.msra.mxu0 %v14227_v0  ;;  %v3670_v37 = vpop.f32.mrf.mxu1 }
 0x6f3   : > { %3810 = vmatprep.subr.bf16.mxu0 %v13215_v7 }
 0x6f4   : > { %v3671_v38 = vpop.f32.mrf.mxu1 }
 0x6f5   : > { %11869 = vmatmul.mubr.msk.bf16.gmra.mxu0 %vm3250_vm4, %v3675_v48  ;;  %v10145_v48 = vld [vmem:[%s16864_s4 + $0xe8] sm:$0x33] }
 0x6f6   : > { %3811 = vmatpush1.bf16.msra.mxu0 %v14221_v30  ;;  %10129 = vmatprep.mubr.msk.bf16.mxu0 %vm3056_vm2, %v12556_v20  ;;  %v12569_v20 = vld [vmem:[%s16864_s4 + $0xd8] ss:$8 sps:$4 sm:$0xff]   ;;  %v10151_v37 = vcombine.high %v10145_v48, %v10145_v48  ;;  %v10150_v38 = vcombine.low %v10145_v48, %v10145_v48 }
 0x6f7   : > { %3812 = vmatprep.subr.bf16.mxu0 %v13215_v7 }
 0x6fa   : > { %3813 = vmatpush1.bf16.msra.mxu0 %v14215_v29 }
 0x6fb   : > { %3814 = vmatprep.subr.bf16.mxu0 %v13215_v7 }
 0x6fe   : > { %3815 = vmatpush1.bf16.msra.mxu0 %v14201_v13 }
 0x6ff   : > { %3816 = vmatprep.subr.bf16.mxu0 %v13215_v7 }
 0x702   : > { %3817 = vmatpush1.bf16.msra.mxu0 %v14195_v34 }
 0x703   : > { %3820 = vmatprep.subr.bf16.mxu0 %v13215_v7 }
 0x706   : > { %3821 = vmatpush2.bf16.msra.mxu0 %v14317_v36 }
 0x707   : > { %3822 = vmatprep.subr.bf16.mxu0 %v13215_v7 }
 0x70a   : > { %3823 = vmatpush2.bf16.msra.mxu0 %v14313_v3 }
 0x70b   : > { %3824 = vmatprep.subr.bf16.mxu0 %v13215_v7 }
 0x70e   : > { %3825 = vmatpush2.bf16.msra.mxu0 %v14307_v18 }
 0x70f   : > { %3826 = vmatprep.subr.bf16.mxu0 %v13215_v7 }
 0x712   : > { %3827 = vmatpush2.bf16.msra.mxu0 %v14301_v15 }
 0x713   : > { %3828 = vmatprep.subr.bf16.mxu0 %v13215_v7 }
 0x716   : > { %3829 = vmatpush2.bf16.msra.mxu0 %v14287_v61 }
 0x717   : > { %3830 = vmatprep.subr.bf16.mxu0 %v13215_v7 }
 0x71a   : > { %3831 = vmatpush2.bf16.msra.mxu0 %v14273_v45 }
 0x71b   : > { %3832 = vmatprep.subr.bf16.mxu0 %v13215_v7 }
 0x71e   : > { %3833 = vmatpush2.bf16.msra.mxu0 %v14259_v44 }
 0x71f   : > { %11888 = vmatprep.subr.bf16.mxu0 %v13213_v22 }
 0x721   : > { %3835 = vmatmul.mubr.bf16.vlgmr.msra.gmra.mxu0 %v12554_v56  ;;  %v12572_v56 = vld [vmem:[%s16865_s5 + $0x58] sm:$0xff]  }
 0x722   : > { %10130 = vmatprep.mubr.msk.bf16.mxu0 %vm3056_vm2, %v12557_v52  ;;  %11889 = vmatpush3.bf16.msra.mxu0 %v12572_v56  ;;  %v12573_v52 = vld [vmem:[%s16865_s5 + $0x50] sm:$0xff]  }
 0x723   : > { %11890 = vmatprep.subr.bf16.mxu0 %v13213_v22 }
 0x726   : > { %11891 = vmatpush3.bf16.msra.mxu0 %v12573_v52 }
 0x727   : > { %4172 = vmatprep.subr.bf16.mxu0 %v13215_v7 }
 0x729   : > { %3843 = vmatmul.mubr.bf16.gmra.mxu0 %v12559_v17 }
 0x72a   : > { %10131 = vmatprep.mubr.msk.bf16.mxu0 %vm3056_vm2, %v10128_v46 }
 0x731   : > { %3851 = vmatmul.mubr.bf16.gmra.mxu0 %v10127_v39 }
 0x732   : > { %11892 = vmatprep.mubr.msk.bf16.mxu0 %vm13214_vm0, %v13213_v22 }
 0x7a5   : > { %v3736_v60 = vpop.f32.mrf.mxu0 }
 0x7a6   : > { %v14625_v32 = vadd.f32 %v3736_v60, %v14545_v4 }
 0x7a7   : > { %v11862_v1 = vpop.f32.mrf.mxu0 }
 0x7a9   : > { %v3739_v9 = vpop.f32.mrf.mxu0 }
 0x7aa   : > { %v14628_v10 = vadd.f32 %v3739_v9, %v14548_v16 }
 0x7ab   : > { %v11863_v49 = vpop.f32.mrf.mxu0 }
 0x7ad   : > { %v3744_v11 = vpop.f32.mrf.mxu0 }
 0x7ae   : > { %v14631_v12 = vadd.f32 %v3744_v11, %v14551_v24 }
 0x7af   : > { %v11866_v19 = vpop.f32.mrf.mxu0 }
 0x7b1   : > { %v3747_v21 = vpop.f32.mrf.mxu0 }
 0x7b2   : > { %v14634_v28 = vadd.f32 %v3747_v21, %v14554_v35 }
 0x7b3   : > { %v11867_v5 = vpop.f32.mrf.mxu0 }
 0x7b5   : > { %v3752_v6 = vpop.f32.mrf.mxu0 }
 0x7b6   : > { %v14637_v4 = vadd.f32 %v3752_v6, %v14557_v2 }
 0x7b7   : > { %v11870_v62 = vpop.f32.mrf.mxu0 }
 0x7b9   : > { %v3755_v25 = vpop.f32.mrf.mxu0 }
 0x7bb   : > { %v11871_v42 = vpop.f32.mrf.mxu0 }
 0x7e1   : > { %v3836_v16 = vpop.f32.mrf.mxu0 }
 0x7e3   : > { %v3838_v43 = vpop.f32.mrf.mxu0 }
 0x7e5   : > { %v3839_v27 = vpop.f32.mrf.mxu0 }
 0x7e6   : > { %v3858_v50 = vpack.c.bf16 %v3839_v27, %v3836_v16 }
 0x7e7   : > { %v3841_v23 = vpop.f32.mrf.mxu0 }
 0x7e8   : > { %11877 = vmatmul.mubr.msk.bf16.vlgmr.msra.gmra.mxu1 %vm3250_vm4, %v3858_v50 }
 0x7e9   : > { %3988 = vmatpush1.bf16.msra.mxu1 %v14245_v33  ;;  %v3844_v24 = vpop.f32.mrf.mxu0  ;;  %11880 = vmatprep.mubr.msk.bf16.mxu1 %vm13214_vm0, %v13213_v22 }
 0x7ea   : > { %3989 = vmatprep.subr.bf16.mxu1 %v13215_v7 }
 0x7eb   : > { %v3846_v35 = vpop.f32.mrf.mxu0 }
 0x7ed   : > { %3990 = vmatpush1.bf16.msra.mxu1 %v14239_v54  ;;  %v3847_v2 = vpop.f32.mrf.mxu0 }
 0x7ee   : > { %v3859_v14 = vpack.c.bf16 %v3847_v2, %v3844_v24  ;;  %3991 = vmatprep.subr.bf16.mxu1 %v13215_v7  ;;  %v12576_v2 = vld [vmem:[%s16864_s4 + $0xf4] ss:$8 sps:$4 sm:$0xff]  }
 0x7ef   : > { %v3849_v40 = vpop.f32.mrf.mxu0 }
 0x7f0   : > { %11881 = vmatmul.mubr.msk.bf16.gmra.mxu1 %vm3250_vm4, %v3859_v14 }
 0x7f1   : > { %3992 = vmatpush1.bf16.msra.mxu1 %v14233_v8  ;;  %v3852_v59 = vpop.f32.mrf.mxu0  ;;  %11884 = vmatprep.mubr.msk.bf16.mxu1 %vm13214_vm0, %v13213_v22 }
 0x7f2   : > { %3993 = vmatprep.subr.bf16.mxu1 %v13215_v7  ;;  %v3860_v53 = vpack.c.bf16 %v3852_v59, %v3852_v59  ;;  %v12574_v59 = vld [vmem:[%s16864_s4 + $0xf0] ss:$8 sps:$4 sm:$0xff]  }
 0x7f3   : > { %v3854_v57 = vpop.f32.mrf.mxu0 }
 0x7f4   : > { %v12577_v57 = vld [vmem:[%s16864_s4 + $0x104] ss:$8 sps:$4 sm:$0xff]  }
 0x7f5   : > { %3994 = vmatpush1.bf16.msra.mxu1 %v14227_v0  ;;  %v3855_v31 = vpop.f32.mrf.mxu0 }
 0x7f6   : > { %3995 = vmatprep.subr.bf16.mxu1 %v13215_v7 }
 0x7f7   : > { %v3856_v63 = vpop.f32.mrf.mxu0 }
 0x7f8   : > { %11885 = vmatmul.mubr.msk.bf16.gmra.mxu1 %vm3250_vm4, %v3860_v53  ;;  %v10168_v53 = vld [vmem:[%s16864_s4 + $0x110] sm:$0x33] }
 0x7f9   : > { %3996 = vmatpush1.bf16.msra.mxu1 %v14221_v30  ;;  %10152 = vmatprep.mubr.msk.bf16.mxu1 %vm3056_vm2, %v12566_v41  ;;  %v12579_v41 = vld [vmem:[%s16864_s4 + $0x100] ss:$8 sps:$4 sm:$0xff]   ;;  %v10174_v31 = vcombine.high %v10168_v53, %v10168_v53  ;;  %v10173_v63 = vcombine.low %v10168_v53, %v10168_v53 }
 0x7fa   : > { %3997 = vmatprep.subr.bf16.mxu1 %v13215_v7 }
 0x7fd   : > { %3998 = vmatpush1.bf16.msra.mxu1 %v14215_v29 }
 0x7fe   : > { %3999 = vmatprep.subr.bf16.mxu1 %v13215_v7 }
 0x801   : > { %4000 = vmatpush1.bf16.msra.mxu1 %v14201_v13 }
 0x802   : > { %4001 = vmatprep.subr.bf16.mxu1 %v13215_v7 }
 0x805   : > { %4002 = vmatpush1.bf16.msra.mxu1 %v14195_v34 }
 0x806   : > { %4005 = vmatprep.subr.bf16.mxu1 %v13215_v7 }
 0x809   : > { %4006 = vmatpush2.bf16.msra.mxu1 %v14317_v36 }
 0x80a   : > { %4007 = vmatprep.subr.bf16.mxu1 %v13215_v7 }
 0x80d   : > { %4008 = vmatpush2.bf16.msra.mxu1 %v14313_v3 }
 0x80e   : > { %4009 = vmatprep.subr.bf16.mxu1 %v13215_v7 }
 0x811   : > { %4010 = vmatpush2.bf16.msra.mxu1 %v14307_v18 }
 0x812   : > { %4011 = vmatprep.subr.bf16.mxu1 %v13215_v7 }
 0x815   : > { %4012 = vmatpush2.bf16.msra.mxu1 %v14301_v15 }
 0x816   : > { %4013 = vmatprep.subr.bf16.mxu1 %v13215_v7 }
 0x819   : > { %4014 = vmatpush2.bf16.msra.mxu1 %v14287_v61 }
 0x81a   : > { %4015 = vmatprep.subr.bf16.mxu1 %v13215_v7 }
 0x81d   : > { %4016 = vmatpush2.bf16.msra.mxu1 %v14273_v45 }
 0x81e   : > { %4017 = vmatprep.subr.bf16.mxu1 %v13215_v7 }
 0x821   : > { %4018 = vmatpush2.bf16.msra.mxu1 %v14259_v44 }
 0x822   : > { %11904 = vmatprep.subr.bf16.mxu1 %v13213_v22 }
 0x824   : > { %4020 = vmatmul.mubr.bf16.vlgmr.msra.gmra.mxu1 %v12564_v26  ;;  %v12582_v26 = vld [vmem:[%s16865_s5 + $0x68] sm:$0xff]  }
 0x825   : > { %10153 = vmatprep.mubr.msk.bf16.mxu1 %vm3056_vm2, %v12567_v55  ;;  %11905 = vmatpush3.bf16.msra.mxu1 %v12582_v26  ;;  %v12583_v55 = vld [vmem:[%s16865_s5 + $0x60] sm:$0xff]  }
 0x826   : > { %11906 = vmatprep.subr.bf16.mxu1 %v13213_v22 }
 0x829   : > { %11907 = vmatpush3.bf16.msra.mxu1 %v12583_v55 }
 0x82a   : > { %4357 = vmatprep.subr.bf16.mxu1 %v13215_v7 }
 0x82c   : > { %4028 = vmatmul.mubr.bf16.gmra.mxu1 %v12569_v20 }
 0x82d   : > { %10154 = vmatprep.mubr.msk.bf16.mxu1 %vm3056_vm2, %v10151_v37 }
 0x834   : > { %4036 = vmatmul.mubr.bf16.gmra.mxu1 %v10150_v38 }
 0x835   : > { %11908 = vmatprep.mubr.msk.bf16.mxu1 %vm13214_vm0, %v13213_v22 }
 0x8a8   : > { %v3921_v47 = vpop.f32.mrf.mxu1 }
 0x8a9   : > { %v14705_v17 = vadd.f32 %v3921_v47, %v14625_v32 }
 0x8aa   : > { %v11878_v46 = vpop.f32.mrf.mxu1 }
 0x8ac   : > { %v3924_v39 = vpop.f32.mrf.mxu1 }
 0x8ad   : > { %v14708_v51 = vadd.f32 %v3924_v39, %v14628_v10 }
 0x8ae   : > { %v11879_v58 = vpop.f32.mrf.mxu1 }
 0x8b0   : > { %v3929_v60 = vpop.f32.mrf.mxu1 }
 0x8b1   : > { %v14711_v1 = vadd.f32 %v3929_v60, %v14631_v12 }
 0x8b2   : > { %v11882_v9 = vpop.f32.mrf.mxu1 }
 0x8b4   : > { %v3932_v49 = vpop.f32.mrf.mxu1 }
 0x8b5   : > { %v14714_v11 = vadd.f32 %v3932_v49, %v14634_v28 }
 0x8b6   : > { %v11883_v19 = vpop.f32.mrf.mxu1 }
 0x8b8   : > { %v3937_v21 = vpop.f32.mrf.mxu1 }
 0x8b9   : > { %v14717_v32 = vadd.f32 %v3937_v21, %v14637_v4 }
 0x8ba   : > { %v11886_v5 = vpop.f32.mrf.mxu1 }
 0x8bc   : > { %v3940_v6 = vpop.f32.mrf.mxu1 }
 0x8be   : > { %v11887_v62 = vpop.f32.mrf.mxu1 }
 0x8e4   : > { %v4021_v10 = vpop.f32.mrf.mxu1 }
 0x8e6   : > { %v4023_v25 = vpop.f32.mrf.mxu1 }
 0x8e8   : > { %v4024_v42 = vpop.f32.mrf.mxu1 }
 0x8e9   : > { %v4043_v16 = vpack.c.bf16 %v4024_v42, %v4021_v10 }
 0x8ea   : > { %v4026_v43 = vpop.f32.mrf.mxu1 }
 0x8eb   : > { %11893 = vmatmul.mubr.msk.bf16.vlgmr.msra.gmra.mxu0 %vm3250_vm4, %v4043_v16 }
 0x8ec   : > { %4173 = vmatpush1.bf16.msra.mxu0 %v14245_v33  ;;  %v4029_v12 = vpop.f32.mrf.mxu1  ;;  %11896 = vmatprep.mubr.msk.bf16.mxu0 %vm13214_vm0, %v13213_v22 }
 0x8ed   : > { %4174 = vmatprep.subr.bf16.mxu0 %v13215_v7 }
 0x8ee   : > { %v4031_v28 = vpop.f32.mrf.mxu1 }
 0x8f0   : > { %4175 = vmatpush1.bf16.msra.mxu0 %v14239_v54  ;;  %v4032_v4 = vpop.f32.mrf.mxu1 }
 0x8f1   : > { %v4044_v27 = vpack.c.bf16 %v4032_v4, %v4029_v12  ;;  %4176 = vmatprep.subr.bf16.mxu0 %v13215_v7  ;;  %v12586_v4 = vld [vmem:[%s16864_s4 + $0x11c] ss:$8 sps:$4 sm:$0xff]  }
 0x8f2   : > { %v4034_v50 = vpop.f32.mrf.mxu1 }
 0x8f3   : > { %11897 = vmatmul.mubr.msk.bf16.gmra.mxu0 %vm3250_vm4, %v4044_v27 }
 0x8f4   : > { %4177 = vmatpush1.bf16.msra.mxu0 %v14233_v8  ;;  %v4037_v23 = vpop.f32.mrf.mxu1  ;;  %11900 = vmatprep.mubr.msk.bf16.mxu0 %vm13214_vm0, %v13213_v22 }
 0x8f5   : > { %4178 = vmatprep.subr.bf16.mxu0 %v13215_v7  ;;  %v4045_v35 = vpack.c.bf16 %v4037_v23, %v4037_v23  ;;  %v12584_v23 = vld [vmem:[%s16864_s4 + $0x118] ss:$8 sps:$4 sm:$0xff]  }
 0x8f6   : > { %v4039_v24 = vpop.f32.mrf.mxu1 }
 0x8f7   : > { %v12587_v24 = vld [vmem:[%s16864_s4 + $0x12c] ss:$8 sps:$4 sm:$0xff]  }
 0x8f8   : > { %4179 = vmatpush1.bf16.msra.mxu0 %v14227_v0  ;;  %v4040_v14 = vpop.f32.mrf.mxu1 }
 0x8f9   : > { %4180 = vmatprep.subr.bf16.mxu0 %v13215_v7 }
 0x8fa   : > { %v4041_v40 = vpop.f32.mrf.mxu1 }
 0x8fb   : > { %11901 = vmatmul.mubr.msk.bf16.gmra.mxu0 %vm3250_vm4, %v4045_v35  ;;  %v10191_v35 = vld [vmem:[%s16864_s4 + $0x138] sm:$0x33] }
 0x8fc   : > { %4181 = vmatpush1.bf16.msra.mxu0 %v14221_v30  ;;  %10175 = vmatprep.mubr.msk.bf16.mxu0 %vm3056_vm2, %v12576_v2  ;;  %v12589_v2 = vld [vmem:[%s16864_s4 + $0x128] ss:$8 sps:$4 sm:$0xff]   ;;  %v10197_v14 = vcombine.high %v10191_v35, %v10191_v35  ;;  %v10196_v40 = vcombine.low %v10191_v35, %v10191_v35 }
 0x8fd   : > { %4182 = vmatprep.subr.bf16.mxu0 %v13215_v7 }
 0x900   : > { %4183 = vmatpush1.bf16.msra.mxu0 %v14215_v29 }
 0x901   : > { %4184 = vmatprep.subr.bf16.mxu0 %v13215_v7 }
 0x904   : > { %4185 = vmatpush1.bf16.msra.mxu0 %v14201_v13 }
 0x905   : > { %4186 = vmatprep.subr.bf16.mxu0 %v13215_v7 }
 0x908   : > { %4187 = vmatpush1.bf16.msra.mxu0 %v14195_v34 }
 0x909   : > { %4190 = vmatprep.subr.bf16.mxu0 %v13215_v7 }
 0x90c   : > { %4191 = vmatpush2.bf16.msra.mxu0 %v14317_v36 }
 0x90d   : > { %4192 = vmatprep.subr.bf16.mxu0 %v13215_v7 }
 0x910   : > { %4193 = vmatpush2.bf16.msra.mxu0 %v14313_v3 }
 0x911   : > { %4194 = vmatprep.subr.bf16.mxu0 %v13215_v7 }
 0x914   : > { %4195 = vmatpush2.bf16.msra.mxu0 %v14307_v18 }
 0x915   : > { %4196 = vmatprep.subr.bf16.mxu0 %v13215_v7 }
 0x918   : > { %4197 = vmatpush2.bf16.msra.mxu0 %v14301_v15 }
 0x919   : > { %4198 = vmatprep.subr.bf16.mxu0 %v13215_v7 }
 0x91c   : > { %4199 = vmatpush2.bf16.msra.mxu0 %v14287_v61 }
 0x91d   : > { %4200 = vmatprep.subr.bf16.mxu0 %v13215_v7 }
 0x920   : > { %4201 = vmatpush2.bf16.msra.mxu0 %v14273_v45 }
 0x921   : > { %4202 = vmatprep.subr.bf16.mxu0 %v13215_v7 }
 0x924   : > { %4203 = vmatpush2.bf16.msra.mxu0 %v14259_v44 }
 0x925   : > { %11920 = vmatprep.subr.bf16.mxu0 %v13213_v22 }
 0x927   : > { %4205 = vmatmul.mubr.bf16.vlgmr.msra.gmra.mxu0 %v12574_v59  ;;  %v12592_v59 = vld [vmem:[%s16865_s5 + $0x78] sm:$0xff]  }
 0x928   : > { %10176 = vmatprep.mubr.msk.bf16.mxu0 %vm3056_vm2, %v12577_v57  ;;  %11921 = vmatpush3.bf16.msra.mxu0 %v12592_v59  ;;  %v12593_v57 = vld [vmem:[%s16865_s5 + $0x70] sm:$0xff]  }
 0x929   : > { %11922 = vmatprep.subr.bf16.mxu0 %v13213_v22 }
 0x92c   : > { %11923 = vmatpush3.bf16.msra.mxu0 %v12593_v57 }
 0x92d   : > { %4542 = vmatprep.subr.bf16.mxu0 %v13215_v7 }
 0x92f   : > { %4213 = vmatmul.mubr.bf16.gmra.mxu0 %v12579_v41 }
 0x930   : > { %10177 = vmatprep.mubr.msk.bf16.mxu0 %vm3056_vm2, %v10174_v31 }
 0x937   : > { %4221 = vmatmul.mubr.bf16.gmra.mxu0 %v10173_v63 }
 0x938   : > { %11924 = vmatprep.mubr.msk.bf16.mxu0 %vm13214_vm0, %v13213_v22 }
 0x9ab   : > { %v4106_v48 = vpop.f32.mrf.mxu0 }
 0x9ac   : > { %v14785_v20 = vadd.f32 %v4106_v48, %v14705_v17 }
 0x9ad   : > { %v11894_v37 = vpop.f32.mrf.mxu0 }
 0x9af   : > { %v4109_v38 = vpop.f32.mrf.mxu0 }
 0x9b0   : > { %v14788_v56 = vadd.f32 %v4109_v38, %v14708_v51 }
 0x9b1   : > { %v11895_v52 = vpop.f32.mrf.mxu0 }
 0x9b3   : > { %v4114_v47 = vpop.f32.mrf.mxu0 }
 0x9b4   : > { %v14791_v46 = vadd.f32 %v4114_v47, %v14711_v1 }
 0x9b5   : > { %v11898_v39 = vpop.f32.mrf.mxu0 }
 0x9b7   : > { %v4117_v58 = vpop.f32.mrf.mxu0 }
 0x9b8   : > { %v14794_v60 = vadd.f32 %v4117_v58, %v14714_v11 }
 0x9b9   : > { %v11899_v9 = vpop.f32.mrf.mxu0 }
 0x9bb   : > { %v4122_v49 = vpop.f32.mrf.mxu0 }
 0x9bc   : > { %v14797_v17 = vadd.f32 %v4122_v49, %v14717_v32 }
 0x9bd   : > { %v11902_v19 = vpop.f32.mrf.mxu0 }
 0x9bf   : > { %v4125_v21 = vpop.f32.mrf.mxu0 }
 0x9c1   : > { %v11903_v5 = vpop.f32.mrf.mxu0 }
 0x9e7   : > { %v4206_v51 = vpop.f32.mrf.mxu0 }
 0x9e9   : > { %v4208_v6 = vpop.f32.mrf.mxu0 }
 0x9eb   : > { %v4209_v62 = vpop.f32.mrf.mxu0 }
 0x9ec   : > { %v4228_v10 = vpack.c.bf16 %v4209_v62, %v4206_v51 }
 0x9ed   : > { %v4211_v25 = vpop.f32.mrf.mxu0 }
 0x9ee   : > { %11909 = vmatmul.mubr.msk.bf16.vlgmr.msra.gmra.mxu1 %vm3250_vm4, %v4228_v10 }
 0x9ef   : > { %4358 = vmatpush1.bf16.msra.mxu1 %v14245_v33  ;;  %v4214_v1 = vpop.f32.mrf.mxu0  ;;  %11912 = vmatprep.mubr.msk.bf16.mxu1 %vm13214_vm0, %v13213_v22 }
 0x9f0   : > { %4359 = vmatprep.subr.bf16.mxu1 %v13215_v7 }
 0x9f1   : > { %v4216_v11 = vpop.f32.mrf.mxu0 }
 0x9f3   : > { %4360 = vmatpush1.bf16.msra.mxu1 %v14239_v54  ;;  %v4217_v32 = vpop.f32.mrf.mxu0 }
 0x9f4   : > { %v4229_v42 = vpack.c.bf16 %v4217_v32, %v4214_v1  ;;  %4361 = vmatprep.subr.bf16.mxu1 %v13215_v7  ;;  %v12596_v32 = vld [vmem:[%s16864_s4 + $0x144] ss:$8 sps:$4 sm:$0xff]  }
 0x9f5   : > { %v4219_v16 = vpop.f32.mrf.mxu0 }
 0x9f6   : > { %11913 = vmatmul.mubr.msk.bf16.gmra.mxu1 %vm3250_vm4, %v4229_v42 }
 0x9f7   : > { %4362 = vmatpush1.bf16.msra.mxu1 %v14233_v8  ;;  %v4222_v43 = vpop.f32.mrf.mxu0  ;;  %11916 = vmatprep.mubr.msk.bf16.mxu1 %vm13214_vm0, %v13213_v22 }
 0x9f8   : > { %4363 = vmatprep.subr.bf16.mxu1 %v13215_v7  ;;  %v4230_v28 = vpack.c.bf16 %v4222_v43, %v4222_v43  ;;  %v12594_v43 = vld [vmem:[%s16864_s4 + $0x140] ss:$8 sps:$4 sm:$0xff]  }
 0x9f9   : > { %v4224_v12 = vpop.f32.mrf.mxu0 }
 0x9fa   : > { %v12597_v12 = vld [vmem:[%s16864_s4 + $0x154] ss:$8 sps:$4 sm:$0xff]  }
 0x9fb   : > { %4364 = vmatpush1.bf16.msra.mxu1 %v14227_v0  ;;  %v4225_v27 = vpop.f32.mrf.mxu0 }
 0x9fc   : > { %4365 = vmatprep.subr.bf16.mxu1 %v13215_v7 }
 0x9fd   : > { %v4226_v50 = vpop.f32.mrf.mxu0 }
 0x9fe   : > { %11917 = vmatmul.mubr.msk.bf16.gmra.mxu1 %vm3250_vm4, %v4230_v28  ;;  %v10214_v28 = vld [vmem:[%s16864_s4 + $0x160] sm:$0x33] }
 0x9ff   : > { %4366 = vmatpush1.bf16.msra.mxu1 %v14221_v30  ;;  %10198 = vmatprep.mubr.msk.bf16.mxu1 %vm3056_vm2, %v12586_v4  ;;  %v12599_v4 = vld [vmem:[%s16864_s4 + $0x150] ss:$8 sps:$4 sm:$0xff]   ;;  %v10220_v27 = vcombine.high %v10214_v28, %v10214_v28  ;;  %v10219_v50 = vcombine.low %v10214_v28, %v10214_v28 }
 0xa00   : > { %4367 = vmatprep.subr.bf16.mxu1 %v13215_v7 }
 0xa03   : > { %4368 = vmatpush1.bf16.msra.mxu1 %v14215_v29 }
 0xa04   : > { %4369 = vmatprep.subr.bf16.mxu1 %v13215_v7 }
 0xa07   : > { %4370 = vmatpush1.bf16.msra.mxu1 %v14201_v13 }
 0xa08   : > { %4371 = vmatprep.subr.bf16.mxu1 %v13215_v7 }
 0xa0b   : > { %4372 = vmatpush1.bf16.msra.mxu1 %v14195_v34 }
 0xa0c   : > { %4375 = vmatprep.subr.bf16.mxu1 %v13215_v7 }
 0xa0f   : > { %4376 = vmatpush2.bf16.msra.mxu1 %v14317_v36 }
 0xa10   : > { %4377 = vmatprep.subr.bf16.mxu1 %v13215_v7 }
 0xa13   : > { %4378 = vmatpush2.bf16.msra.mxu1 %v14313_v3 }
 0xa14   : > { %4379 = vmatprep.subr.bf16.mxu1 %v13215_v7 }
 0xa17   : > { %4380 = vmatpush2.bf16.msra.mxu1 %v14307_v18 }
 0xa18   : > { %4381 = vmatprep.subr.bf16.mxu1 %v13215_v7 }
 0xa1b   : > { %4382 = vmatpush2.bf16.msra.mxu1 %v14301_v15 }
 0xa1c   : > { %4383 = vmatprep.subr.bf16.mxu1 %v13215_v7 }
 0xa1f   : > { %4384 = vmatpush2.bf16.msra.mxu1 %v14287_v61 }
 0xa20   : > { %4385 = vmatprep.subr.bf16.mxu1 %v13215_v7 }
 0xa23   : > { %4386 = vmatpush2.bf16.msra.mxu1 %v14273_v45 }
 0xa24   : > { %4387 = vmatprep.subr.bf16.mxu1 %v13215_v7 }
 0xa27   : > { %4388 = vmatpush2.bf16.msra.mxu1 %v14259_v44 }
 0xa28   : > { %11936 = vmatprep.subr.bf16.mxu1 %v13213_v22 }
 0xa2a   : > { %4390 = vmatmul.mubr.bf16.vlgmr.msra.gmra.mxu1 %v12584_v23  ;;  %v12602_v23 = vld [vmem:[%s16865_s5 + $0x88] sm:$0xff]  }
 0xa2b   : > { %10199 = vmatprep.mubr.msk.bf16.mxu1 %vm3056_vm2, %v12587_v24  ;;  %11937 = vmatpush3.bf16.msra.mxu1 %v12602_v23  ;;  %v12603_v24 = vld [vmem:[%s16865_s5 + $0x80] sm:$0xff]  }
 0xa2c   : > { %11938 = vmatprep.subr.bf16.mxu1 %v13213_v22 }
 0xa2f   : > { %11939 = vmatpush3.bf16.msra.mxu1 %v12603_v24 }
 0xa30   : > { %4727 = vmatprep.subr.bf16.mxu1 %v13215_v7 }
 0xa32   : > { %4398 = vmatmul.mubr.bf16.gmra.mxu1 %v12589_v2 }
 0xa33   : > { %10200 = vmatprep.mubr.msk.bf16.mxu1 %vm3056_vm2, %v10197_v14 }
 0xa3a   : > { %4406 = vmatmul.mubr.bf16.gmra.mxu1 %v10196_v40 }
 0xa3b   : > { %11940 = vmatprep.mubr.msk.bf16.mxu1 %vm13214_vm0, %v13213_v22 }
 0xaae   : > { %v4291_v53 = vpop.f32.mrf.mxu1 }
 0xaaf   : > { %v14865_v41 = vadd.f32 %v4291_v53, %v14785_v20 }
 0xab0   : > { %v11910_v31 = vpop.f32.mrf.mxu1 }
 0xab2   : > { %v4294_v63 = vpop.f32.mrf.mxu1 }
 0xab3   : > { %v14868_v26 = vadd.f32 %v4294_v63, %v14788_v56 }
 0xab4   : > { %v11911_v55 = vpop.f32.mrf.mxu1 }
 0xab6   : > { %v4299_v48 = vpop.f32.mrf.mxu1 }
 0xab7   : > { %v14871_v37 = vadd.f32 %v4299_v48, %v14791_v46 }
 0xab8   : > { %v11914_v38 = vpop.f32.mrf.mxu1 }
 0xaba   : > { %v4302_v52 = vpop.f32.mrf.mxu1 }
 0xabb   : > { %v14874_v47 = vadd.f32 %v4302_v52, %v14794_v60 }
 0xabc   : > { %v11915_v39 = vpop.f32.mrf.mxu1 }
 0xabe   : > { %v4307_v58 = vpop.f32.mrf.mxu1 }
 0xabf   : > { %v14877_v20 = vadd.f32 %v4307_v58, %v14797_v17 }
 0xac0   : > { %v11918_v9 = vpop.f32.mrf.mxu1 }
 0xac2   : > { %v4310_v49 = vpop.f32.mrf.mxu1 }
 0xac4   : > { %v11919_v19 = vpop.f32.mrf.mxu1 }
 0xaea   : > { %v4391_v56 = vpop.f32.mrf.mxu1 }
 0xaec   : > { %v4393_v21 = vpop.f32.mrf.mxu1 }
 0xaee   : > { %v4394_v5 = vpop.f32.mrf.mxu1 }
 0xaef   : > { %v4413_v51 = vpack.c.bf16 %v4394_v5, %v4391_v56 }
 0xaf0   : > { %v4396_v6 = vpop.f32.mrf.mxu1 }
 0xaf1   : > { %11925 = vmatmul.mubr.msk.bf16.vlgmr.msra.gmra.mxu0 %vm3250_vm4, %v4413_v51 }
 0xaf2   : > { %4543 = vmatpush1.bf16.msra.mxu0 %v14245_v33  ;;  %v4399_v46 = vpop.f32.mrf.mxu1  ;;  %11928 = vmatprep.mubr.msk.bf16.mxu0 %vm13214_vm0, %v13213_v22 }
 0xaf3   : > { %4544 = vmatprep.subr.bf16.mxu0 %v13215_v7 }
 0xaf4   : > { %v4401_v60 = vpop.f32.mrf.mxu1 }
 0xaf6   : > { %4545 = vmatpush1.bf16.msra.mxu0 %v14239_v54  ;;  %v4402_v17 = vpop.f32.mrf.mxu1 }
 0xaf7   : > { %v4414_v62 = vpack.c.bf16 %v4402_v17, %v4399_v46  ;;  %4546 = vmatprep.subr.bf16.mxu0 %v13215_v7  ;;  %v12606_v17 = vld [vmem:[%s16864_s4 + $0x16c] ss:$8 sps:$4 sm:$0xff]  }
 0xaf8   : > { %v4404_v10 = vpop.f32.mrf.mxu1 }
 0xaf9   : > { %11929 = vmatmul.mubr.msk.bf16.gmra.mxu0 %vm3250_vm4, %v4414_v62 }
 0xafa   : > { %4547 = vmatpush1.bf16.msra.mxu0 %v14233_v8  ;;  %v4407_v25 = vpop.f32.mrf.mxu1  ;;  %11932 = vmatprep.mubr.msk.bf16.mxu0 %vm13214_vm0, %v13213_v22 }
 0xafb   : > { %4548 = vmatprep.subr.bf16.mxu0 %v13215_v7  ;;  %v4415_v11 = vpack.c.bf16 %v4407_v25, %v4407_v25  ;;  %v12604_v25 = vld [vmem:[%s16864_s4 + $0x168] ss:$8 sps:$4 sm:$0xff]  }
 0xafc   : > { %v4409_v1 = vpop.f32.mrf.mxu1 }
 0xafd   : > { %v12607_v1 = vld [vmem:[%s16864_s4 + $0x17c] ss:$8 sps:$4 sm:$0xff]  }
 0xafe   : > { %4549 = vmatpush1.bf16.msra.mxu0 %v14227_v0  ;;  %v4410_v42 = vpop.f32.mrf.mxu1 }
 0xaff   : > { %4550 = vmatprep.subr.bf16.mxu0 %v13215_v7 }
 0xb00   : > { %v4411_v16 = vpop.f32.mrf.mxu1 }
 0xb01   : > { %11933 = vmatmul.mubr.msk.bf16.gmra.mxu0 %vm3250_vm4, %v4415_v11  ;;  %v10237_v11 = vld [vmem:[%s16864_s4 + $0x188] sm:$0x33] }
 0xb02   : > { %4551 = vmatpush1.bf16.msra.mxu0 %v14221_v30  ;;  %10221 = vmatprep.mubr.msk.bf16.mxu0 %vm3056_vm2, %v12596_v32  ;;  %v12609_v32 = vld [vmem:[%s16864_s4 + $0x178] ss:$8 sps:$4 sm:$0xff]   ;;  %v10243_v42 = vcombine.high %v10237_v11, %v10237_v11  ;;  %v10242_v16 = vcombine.low %v10237_v11, %v10237_v11 }
 0xb03   : > { %4552 = vmatprep.subr.bf16.mxu0 %v13215_v7 }
 0xb06   : > { %4553 = vmatpush1.bf16.msra.mxu0 %v14215_v29 }
 0xb07   : > { %4554 = vmatprep.subr.bf16.mxu0 %v13215_v7 }
 0xb0a   : > { %4555 = vmatpush1.bf16.msra.mxu0 %v14201_v13 }
 0xb0b   : > { %4556 = vmatprep.subr.bf16.mxu0 %v13215_v7 }
 0xb0e   : > { %4557 = vmatpush1.bf16.msra.mxu0 %v14195_v34 }
 0xb0f   : > { %4560 = vmatprep.subr.bf16.mxu0 %v13215_v7 }
 0xb12   : > { %4561 = vmatpush2.bf16.msra.mxu0 %v14317_v36 }
 0xb13   : > { %4562 = vmatprep.subr.bf16.mxu0 %v13215_v7 }
 0xb16   : > { %4563 = vmatpush2.bf16.msra.mxu0 %v14313_v3 }
 0xb17   : > { %4564 = vmatprep.subr.bf16.mxu0 %v13215_v7 }
 0xb1a   : > { %4565 = vmatpush2.bf16.msra.mxu0 %v14307_v18 }
 0xb1b   : > { %4566 = vmatprep.subr.bf16.mxu0 %v13215_v7 }
 0xb1e   : > { %4567 = vmatpush2.bf16.msra.mxu0 %v14301_v15 }
 0xb1f   : > { %4568 = vmatprep.subr.bf16.mxu0 %v13215_v7 }
 0xb22   : > { %4569 = vmatpush2.bf16.msra.mxu0 %v14287_v61 }
 0xb23   : > { %4570 = vmatprep.subr.bf16.mxu0 %v13215_v7 }
 0xb26   : > { %4571 = vmatpush2.bf16.msra.mxu0 %v14273_v45 }
 0xb27   : > { %4572 = vmatprep.subr.bf16.mxu0 %v13215_v7 }
 0xb2a   : > { %4573 = vmatpush2.bf16.msra.mxu0 %v14259_v44 }
 0xb2b   : > { %11952 = vmatprep.subr.bf16.mxu0 %v13213_v22 }
 0xb2d   : > { %4575 = vmatmul.mubr.bf16.vlgmr.msra.gmra.mxu0 %v12594_v43  ;;  %v12612_v43 = vld [vmem:[%s16865_s5 + $0x98] sm:$0xff]  }
 0xb2e   : > { %10222 = vmatprep.mubr.msk.bf16.mxu0 %vm3056_vm2, %v12597_v12  ;;  %11953 = vmatpush3.bf16.msra.mxu0 %v12612_v43  ;;  %v12613_v12 = vld [vmem:[%s16865_s5 + $0x90] sm:$0xff]  }
 0xb2f   : > { %11954 = vmatprep.subr.bf16.mxu0 %v13213_v22 }
 0xb32   : > { %11955 = vmatpush3.bf16.msra.mxu0 %v12613_v12 }
 0xb33   : > { %4912 = vmatprep.subr.bf16.mxu0 %v13215_v7 }
 0xb35   : > { %4583 = vmatmul.mubr.bf16.gmra.mxu0 %v12599_v4 }
 0xb36   : > { %10223 = vmatprep.mubr.msk.bf16.mxu0 %vm3056_vm2, %v10220_v27 }
 0xb3d   : > { %4591 = vmatmul.mubr.bf16.gmra.mxu0 %v10219_v50 }
 0xb3e   : > { %11956 = vmatprep.mubr.msk.bf16.mxu0 %vm13214_vm0, %v13213_v22 }
 0xbb1   : > { %v4476_v35 = vpop.f32.mrf.mxu0 }
 0xbb2   : > { %v14945_v2 = vadd.f32 %v4476_v35, %v14865_v41 }
 0xbb3   : > { %v11926_v14 = vpop.f32.mrf.mxu0 }
 0xbb5   : > { %v4479_v40 = vpop.f32.mrf.mxu0 }
 0xbb6   : > { %v14948_v59 = vadd.f32 %v4479_v40, %v14868_v26 }
 0xbb7   : > { %v11927_v57 = vpop.f32.mrf.mxu0 }
 0xbb9   : > { %v4484_v53 = vpop.f32.mrf.mxu0 }
 0xbba   : > { %v14951_v31 = vadd.f32 %v4484_v53, %v14871_v37 }
 0xbbb   : > { %v11930_v63 = vpop.f32.mrf.mxu0 }
 0xbbd   : > { %v4487_v55 = vpop.f32.mrf.mxu0 }
 0xbbe   : > { %v14954_v48 = vadd.f32 %v4487_v55, %v14874_v47 }
 0xbbf   : > { %v11931_v38 = vpop.f32.mrf.mxu0 }
 0xbc1   : > { %v4492_v52 = vpop.f32.mrf.mxu0 }
 0xbc2   : > { %v14957_v41 = vadd.f32 %v4492_v52, %v14877_v20 }
 0xbc3   : > { %v11934_v39 = vpop.f32.mrf.mxu0 }
 0xbc5   : > { %v4495_v58 = vpop.f32.mrf.mxu0 }
 0xbc7   : > { %v11935_v9 = vpop.f32.mrf.mxu0 }
 0xbed   : > { %v4576_v26 = vpop.f32.mrf.mxu0 }
 0xbef   : > { %v4578_v49 = vpop.f32.mrf.mxu0 }
 0xbf1   : > { %v4579_v19 = vpop.f32.mrf.mxu0 }
 0xbf2   : > { %v4598_v56 = vpack.c.bf16 %v4579_v19, %v4576_v26 }
 0xbf3   : > { %v4581_v21 = vpop.f32.mrf.mxu0 }
 0xbf4   : > { %11941 = vmatmul.mubr.msk.bf16.vlgmr.msra.gmra.mxu1 %vm3250_vm4, %v4598_v56 }
 0xbf5   : > { %4728 = vmatpush1.bf16.msra.mxu1 %v14245_v33  ;;  %v4584_v37 = vpop.f32.mrf.mxu0  ;;  %11944 = vmatprep.mubr.msk.bf16.mxu1 %vm13214_vm0, %v13213_v22 }
 0xbf6   : > { %4729 = vmatprep.subr.bf16.mxu1 %v13215_v7 }
 0xbf7   : > { %v4586_v47 = vpop.f32.mrf.mxu0 }
 0xbf9   : > { %4730 = vmatpush1.bf16.msra.mxu1 %v14239_v54  ;;  %v4587_v20 = vpop.f32.mrf.mxu0 }
 0xbfa   : > { %v4599_v5 = vpack.c.bf16 %v4587_v20, %v4584_v37  ;;  %4731 = vmatprep.subr.bf16.mxu1 %v13215_v7  ;;  %v12616_v20 = vld [vmem:[%s16864_s4 + $0x194] ss:$8 sps:$4 sm:$0xff]  }
 0xbfb   : > { %v4589_v51 = vpop.f32.mrf.mxu0 }
 0xbfc   : > { %11945 = vmatmul.mubr.msk.bf16.gmra.mxu1 %vm3250_vm4, %v4599_v5 }
 0xbfd   : > { %4732 = vmatpush1.bf16.msra.mxu1 %v14233_v8  ;;  %v4592_v6 = vpop.f32.mrf.mxu0  ;;  %11948 = vmatprep.mubr.msk.bf16.mxu1 %vm13214_vm0, %v13213_v22 }
 0xbfe   : > { %4733 = vmatprep.subr.bf16.mxu1 %v13215_v7  ;;  %v4600_v60 = vpack.c.bf16 %v4592_v6, %v4592_v6  ;;  %v12614_v6 = vld [vmem:[%s16864_s4 + $0x190] ss:$8 sps:$4 sm:$0xff]  }
 0xbff   : > { %v4594_v46 = vpop.f32.mrf.mxu0 }
 0xc00   : > { %v12617_v46 = vld [vmem:[%s16864_s4 + $0x1a4] ss:$8 sps:$4 sm:$0xff]  }
 0xc01   : > { %4734 = vmatpush1.bf16.msra.mxu1 %v14227_v0  ;;  %v4595_v62 = vpop.f32.mrf.mxu0 }
 0xc02   : > { %4735 = vmatprep.subr.bf16.mxu1 %v13215_v7 }
 0xc03   : > { %v4596_v10 = vpop.f32.mrf.mxu0 }
 0xc04   : > { %11949 = vmatmul.mubr.msk.bf16.gmra.mxu1 %vm3250_vm4, %v4600_v60  ;;  %v10260_v60 = vld [vmem:[%s16864_s4 + $0x1b0] sm:$0x33] }
 0xc05   : > { %4736 = vmatpush1.bf16.msra.mxu1 %v14221_v30  ;;  %10244 = vmatprep.mubr.msk.bf16.mxu1 %vm3056_vm2, %v12606_v17  ;;  %v12619_v17 = vld [vmem:[%s16864_s4 + $0x1a0] ss:$8 sps:$4 sm:$0xff]   ;;  %v10266_v62 = vcombine.high %v10260_v60, %v10260_v60  ;;  %v10265_v10 = vcombine.low %v10260_v60, %v10260_v60 }
 0xc06   : > { %4737 = vmatprep.subr.bf16.mxu1 %v13215_v7 }
 0xc09   : > { %4738 = vmatpush1.bf16.msra.mxu1 %v14215_v29 }
 0xc0a   : > { %4739 = vmatprep.subr.bf16.mxu1 %v13215_v7 }
 0xc0d   : > { %4740 = vmatpush1.bf16.msra.mxu1 %v14201_v13 }
 0xc0e   : > { %4741 = vmatprep.subr.bf16.mxu1 %v13215_v7 }
 0xc11   : > { %4742 = vmatpush1.bf16.msra.mxu1 %v14195_v34 }
 0xc12   : > { %4745 = vmatprep.subr.bf16.mxu1 %v13215_v7 }
 0xc15   : > { %4746 = vmatpush2.bf16.msra.mxu1 %v14317_v36 }
 0xc16   : > { %4747 = vmatprep.subr.bf16.mxu1 %v13215_v7 }
 0xc19   : > { %4748 = vmatpush2.bf16.msra.mxu1 %v14313_v3 }
 0xc1a   : > { %4749 = vmatprep.subr.bf16.mxu1 %v13215_v7 }
 0xc1d   : > { %4750 = vmatpush2.bf16.msra.mxu1 %v14307_v18 }
 0xc1e   : > { %4751 = vmatprep.subr.bf16.mxu1 %v13215_v7 }
 0xc21   : > { %4752 = vmatpush2.bf16.msra.mxu1 %v14301_v15 }
 0xc22   : > { %4753 = vmatprep.subr.bf16.mxu1 %v13215_v7 }
 0xc25   : > { %4754 = vmatpush2.bf16.msra.mxu1 %v14287_v61 }
 0xc26   : > { %4755 = vmatprep.subr.bf16.mxu1 %v13215_v7 }
 0xc29   : > { %4756 = vmatpush2.bf16.msra.mxu1 %v14273_v45 }
 0xc2a   : > { %4757 = vmatprep.subr.bf16.mxu1 %v13215_v7 }
 0xc2d   : > { %4758 = vmatpush2.bf16.msra.mxu1 %v14259_v44 }
 0xc2e   : > { %11968 = vmatprep.subr.bf16.mxu1 %v13213_v22 }
 0xc30   : > { %4760 = vmatmul.mubr.bf16.vlgmr.msra.gmra.mxu1 %v12604_v25  ;;  %v12622_v25 = vld [vmem:[%s16865_s5 + $0xa8] sm:$0xff]  }
 0xc31   : > { %10245 = vmatprep.mubr.msk.bf16.mxu1 %vm3056_vm2, %v12607_v1  ;;  %11969 = vmatpush3.bf16.msra.mxu1 %v12622_v25  ;;  %v12623_v1 = vld [vmem:[%s16865_s5 + $0xa0] sm:$0xff]  }
 0xc32   : > { %11970 = vmatprep.subr.bf16.mxu1 %v13213_v22 }
 0xc35   : > { %11971 = vmatpush3.bf16.msra.mxu1 %v12623_v1 }
 0xc36   : > { %5097 = vmatprep.subr.bf16.mxu1 %v13215_v7 }
 0xc38   : > { %4768 = vmatmul.mubr.bf16.gmra.mxu1 %v12609_v32 }
 0xc39   : > { %10246 = vmatprep.mubr.msk.bf16.mxu1 %vm3056_vm2, %v10243_v42 }
 0xc40   : > { %4776 = vmatmul.mubr.bf16.gmra.mxu1 %v10242_v16 }
 0xc41   : > { %11972 = vmatprep.mubr.msk.bf16.mxu1 %vm13214_vm0, %v13213_v22 }
 0xcb4   : > { %v4661_v28 = vpop.f32.mrf.mxu1 }
 0xcb5   : > { %v15025_v4 = vadd.f32 %v4661_v28, %v14945_v2 }
 0xcb6   : > { %v11942_v27 = vpop.f32.mrf.mxu1 }
 0xcb8   : > { %v4664_v50 = vpop.f32.mrf.mxu1 }
 0xcb9   : > { %v15028_v23 = vadd.f32 %v4664_v50, %v14948_v59 }
 0xcba   : > { %v11943_v24 = vpop.f32.mrf.mxu1 }
 0xcbc   : > { %v4669_v35 = vpop.f32.mrf.mxu1 }
 0xcbd   : > { %v15031_v14 = vadd.f32 %v4669_v35, %v14951_v31 }
 0xcbe   : > { %v11946_v40 = vpop.f32.mrf.mxu1 }
 0xcc0   : > { %v4672_v57 = vpop.f32.mrf.mxu1 }
 0xcc1   : > { %v15034_v53 = vadd.f32 %v4672_v57, %v14954_v48 }
 0xcc2   : > { %v11947_v63 = vpop.f32.mrf.mxu1 }
 0xcc4   : > { %v4677_v55 = vpop.f32.mrf.mxu1 }
 0xcc5   : > { %v15037_v2 = vadd.f32 %v4677_v55, %v14957_v41 }
 0xcc6   : > { %v11950_v38 = vpop.f32.mrf.mxu1 }
 0xcc8   : > { %v4680_v52 = vpop.f32.mrf.mxu1 }
 0xcca   : > { %v11951_v39 = vpop.f32.mrf.mxu1 }
 0xcf0   : > { %v4761_v59 = vpop.f32.mrf.mxu1 }
 0xcf2   : > { %v4763_v58 = vpop.f32.mrf.mxu1 }
 0xcf4   : > { %v4764_v9 = vpop.f32.mrf.mxu1 }
 0xcf5   : > { %v4783_v26 = vpack.c.bf16 %v4764_v9, %v4761_v59 }
 0xcf6   : > { %v4766_v49 = vpop.f32.mrf.mxu1 }
 0xcf7   : > { %11957 = vmatmul.mubr.msk.bf16.vlgmr.msra.gmra.mxu0 %vm3250_vm4, %v4783_v26 }
 0xcf8   : > { %4913 = vmatpush1.bf16.msra.mxu0 %v14245_v33  ;;  %v4769_v31 = vpop.f32.mrf.mxu1  ;;  %11960 = vmatprep.mubr.msk.bf16.mxu0 %vm13214_vm0, %v13213_v22 }
 0xcf9   : > { %4914 = vmatprep.subr.bf16.mxu0 %v13215_v7 }
 0xcfa   : > { %v4771_v48 = vpop.f32.mrf.mxu1 }
 0xcfc   : > { %4915 = vmatpush1.bf16.msra.mxu0 %v14239_v54  ;;  %v4772_v41 = vpop.f32.mrf.mxu1 }
 0xcfd   : > { %v4784_v19 = vpack.c.bf16 %v4772_v41, %v4769_v31  ;;  %4916 = vmatprep.subr.bf16.mxu0 %v13215_v7  ;;  %v12626_v41 = vld [vmem:[%s16864_s4 + $0x1bc] ss:$8 sps:$4 sm:$0xff]  }
 0xcfe   : > { %v4774_v56 = vpop.f32.mrf.mxu1 }
 0xcff   : > { %11961 = vmatmul.mubr.msk.bf16.gmra.mxu0 %vm3250_vm4, %v4784_v19 }
 0xd00   : > { %4917 = vmatpush1.bf16.msra.mxu0 %v14233_v8  ;;  %v4777_v21 = vpop.f32.mrf.mxu1  ;;  %11964 = vmatprep.mubr.msk.bf16.mxu0 %vm13214_vm0, %v13213_v22 }
 0xd01   : > { %4918 = vmatprep.subr.bf16.mxu0 %v13215_v7  ;;  %v4785_v47 = vpack.c.bf16 %v4777_v21, %v4777_v21  ;;  %v12624_v21 = vld [vmem:[%s16864_s4 + $0x1b8] ss:$8 sps:$4 sm:$0xff]  }
 0xd02   : > { %v4779_v37 = vpop.f32.mrf.mxu1 }
 0xd03   : > { %v12627_v37 = vld [vmem:[%s16864_s4 + $0x1cc] ss:$8 sps:$4 sm:$0xff]  }
 0xd04   : > { %4919 = vmatpush1.bf16.msra.mxu0 %v14227_v0  ;;  %v4780_v5 = vpop.f32.mrf.mxu1 }
 0xd05   : > { %4920 = vmatprep.subr.bf16.mxu0 %v13215_v7 }
 0xd06   : > { %v4781_v51 = vpop.f32.mrf.mxu1 }
 0xd07   : > { %11965 = vmatmul.mubr.msk.bf16.gmra.mxu0 %vm3250_vm4, %v4785_v47  ;;  %v10283_v47 = vld [vmem:[%s16864_s4 + $0x1d8] sm:$0x33] }
 0xd08   : > { %4921 = vmatpush1.bf16.msra.mxu0 %v14221_v30  ;;  %10267 = vmatprep.mubr.msk.bf16.mxu0 %vm3056_vm2, %v12616_v20  ;;  %v12629_v20 = vld [vmem:[%s16864_s4 + $0x1c8] ss:$8 sps:$4 sm:$0xff]   ;;  %v10289_v5 = vcombine.high %v10283_v47, %v10283_v47  ;;  %v10288_v51 = vcombine.low %v10283_v47, %v10283_v47 }
 0xd09   : > { %4922 = vmatprep.subr.bf16.mxu0 %v13215_v7 }
 0xd0c   : > { %4923 = vmatpush1.bf16.msra.mxu0 %v14215_v29 }
 0xd0d   : > { %4924 = vmatprep.subr.bf16.mxu0 %v13215_v7 }
 0xd10   : > { %4925 = vmatpush1.bf16.msra.mxu0 %v14201_v13 }
 0xd11   : > { %4926 = vmatprep.subr.bf16.mxu0 %v13215_v7 }
 0xd14   : > { %4927 = vmatpush1.bf16.msra.mxu0 %v14195_v34 }
 0xd15   : > { %4930 = vmatprep.subr.bf16.mxu0 %v13215_v7 }
 0xd18   : > { %4931 = vmatpush2.bf16.msra.mxu0 %v14317_v36 }
 0xd19   : > { %4932 = vmatprep.subr.bf16.mxu0 %v13215_v7 }
 0xd1c   : > { %4933 = vmatpush2.bf16.msra.mxu0 %v14313_v3 }
 0xd1d   : > { %4934 = vmatprep.subr.bf16.mxu0 %v13215_v7 }
 0xd20   : > { %4935 = vmatpush2.bf16.msra.mxu0 %v14307_v18 }
 0xd21   : > { %4936 = vmatprep.subr.bf16.mxu0 %v13215_v7 }
 0xd24   : > { %4937 = vmatpush2.bf16.msra.mxu0 %v14301_v15 }
 0xd25   : > { %4938 = vmatprep.subr.bf16.mxu0 %v13215_v7 }
 0xd28   : > { %4939 = vmatpush2.bf16.msra.mxu0 %v14287_v61 }
 0xd29   : > { %4940 = vmatprep.subr.bf16.mxu0 %v13215_v7 }
 0xd2c   : > { %4941 = vmatpush2.bf16.msra.mxu0 %v14273_v45 }
 0xd2d   : > { %4942 = vmatprep.subr.bf16.mxu0 %v13215_v7 }
 0xd30   : > { %4943 = vmatpush2.bf16.msra.mxu0 %v14259_v44 }
 0xd31   : > { %11984 = vmatprep.subr.bf16.mxu0 %v13213_v22 }
 0xd33   : > { %4945 = vmatmul.mubr.bf16.vlgmr.msra.gmra.mxu0 %v12614_v6  ;;  %v12632_v6 = vld [vmem:[%s16865_s5 + $0xb8] sm:$0xff]  }
 0xd34   : > { %10268 = vmatprep.mubr.msk.bf16.mxu0 %vm3056_vm2, %v12617_v46  ;;  %11985 = vmatpush3.bf16.msra.mxu0 %v12632_v6  ;;  %v12633_v46 = vld [vmem:[%s16865_s5 + $0xb0] sm:$0xff]  }
 0xd35   : > { %11986 = vmatprep.subr.bf16.mxu0 %v13213_v22 }
 0xd38   : > { %11987 = vmatpush3.bf16.msra.mxu0 %v12633_v46 }
 0xd39   : > { %5282 = vmatprep.subr.bf16.mxu0 %v13215_v7 }
 0xd3b   : > { %4953 = vmatmul.mubr.bf16.gmra.mxu0 %v12619_v17 }
 0xd3c   : > { %10269 = vmatprep.mubr.msk.bf16.mxu0 %vm3056_vm2, %v10266_v62 }
 0xd43   : > { %4961 = vmatmul.mubr.bf16.gmra.mxu0 %v10265_v10 }
 0xd44   : > { %11988 = vmatprep.mubr.msk.bf16.mxu0 %vm13214_vm0, %v13213_v22 }
 0xdb7   : > { %v4846_v11 = vpop.f32.mrf.mxu0 }
 0xdb8   : > { %v15105_v32 = vadd.f32 %v4846_v11, %v15025_v4 }
 0xdb9   : > { %v11958_v42 = vpop.f32.mrf.mxu0 }
 0xdbb   : > { %v4849_v16 = vpop.f32.mrf.mxu0 }
 0xdbc   : > { %v15108_v43 = vadd.f32 %v4849_v16, %v15028_v23 }
 0xdbd   : > { %v11959_v12 = vpop.f32.mrf.mxu0 }
 0xdbf   : > { %v4854_v28 = vpop.f32.mrf.mxu0 }
 0xdc0   : > { %v15111_v27 = vadd.f32 %v4854_v28, %v15031_v14 }
 0xdc1   : > { %v11962_v50 = vpop.f32.mrf.mxu0 }
 0xdc3   : > { %v4857_v24 = vpop.f32.mrf.mxu0 }
 0xdc4   : > { %v15114_v35 = vadd.f32 %v4857_v24, %v15034_v53 }
 0xdc5   : > { %v11963_v40 = vpop.f32.mrf.mxu0 }
 0xdc7   : > { %v4862_v57 = vpop.f32.mrf.mxu0 }
 0xdc8   : > { %v15117_v4 = vadd.f32 %v4862_v57, %v15037_v2 }
 0xdc9   : > { %v11966_v63 = vpop.f32.mrf.mxu0 }
 0xdcb   : > { %v4865_v55 = vpop.f32.mrf.mxu0 }
 0xdcd   : > { %v11967_v38 = vpop.f32.mrf.mxu0 }
 0xdf3   : > { %v4946_v23 = vpop.f32.mrf.mxu0 }
 0xdf5   : > { %v4948_v52 = vpop.f32.mrf.mxu0 }
 0xdf7   : > { %v4949_v39 = vpop.f32.mrf.mxu0 }
 0xdf8   : > { %v4968_v59 = vpack.c.bf16 %v4949_v39, %v4946_v23 }
 0xdf9   : > { %v4951_v58 = vpop.f32.mrf.mxu0 }
 0xdfa   : > { %11973 = vmatmul.mubr.msk.bf16.vlgmr.msra.gmra.mxu1 %vm3250_vm4, %v4968_v59 }
 0xdfb   : > { %5098 = vmatpush1.bf16.msra.mxu1 %v14245_v33  ;;  %v4954_v14 = vpop.f32.mrf.mxu0  ;;  %11976 = vmatprep.mubr.msk.bf16.mxu1 %vm13214_vm0, %v13213_v22 }
 0xdfc   : > { %5099 = vmatprep.subr.bf16.mxu1 %v13215_v7 }
 0xdfd   : > { %v4956_v53 = vpop.f32.mrf.mxu0 }
 0xdff   : > { %5100 = vmatpush1.bf16.msra.mxu1 %v14239_v54  ;;  %v4957_v2 = vpop.f32.mrf.mxu0 }
 0xe00   : > { %v4969_v9 = vpack.c.bf16 %v4957_v2, %v4954_v14  ;;  %5101 = vmatprep.subr.bf16.mxu1 %v13215_v7  ;;  %v12636_v2 = vld [vmem:[%s16864_s4 + $0x1e4] ss:$8 sps:$4 sm:$0xff]  }
 0xe01   : > { %v4959_v26 = vpop.f32.mrf.mxu0 }
 0xe02   : > { %11977 = vmatmul.mubr.msk.bf16.gmra.mxu1 %vm3250_vm4, %v4969_v9 }
 0xe03   : > { %5102 = vmatpush1.bf16.msra.mxu1 %v14233_v8  ;;  %v4962_v49 = vpop.f32.mrf.mxu0  ;;  %11980 = vmatprep.mubr.msk.bf16.mxu1 %vm13214_vm0, %v13213_v22 }
 0xe04   : > { %5103 = vmatprep.subr.bf16.mxu1 %v13215_v7  ;;  %v4970_v48 = vpack.c.bf16 %v4962_v49, %v4962_v49  ;;  %v12634_v49 = vld [vmem:[%s16864_s4 + $0x1e0] ss:$8 sps:$4 sm:$0xff]  }
 0xe05   : > { %v4964_v31 = vpop.f32.mrf.mxu0 }
 0xe06   : > { %v12637_v31 = vld [vmem:[%s16864_s4 + $0x1f4] ss:$8 sps:$4 sm:$0xff]  }
 0xe07   : > { %5104 = vmatpush1.bf16.msra.mxu1 %v14227_v0  ;;  %v4965_v19 = vpop.f32.mrf.mxu0 }
 0xe08   : > { %5105 = vmatprep.subr.bf16.mxu1 %v13215_v7 }
 0xe09   : > { %v4966_v56 = vpop.f32.mrf.mxu0 }
 0xe0a   : > { %11981 = vmatmul.mubr.msk.bf16.gmra.mxu1 %vm3250_vm4, %v4970_v48  ;;  %v10306_v48 = vld [vmem:[%s16864_s4 + $0x200] sm:$0x33] }
 0xe0b   : > { %5106 = vmatpush1.bf16.msra.mxu1 %v14221_v30  ;;  %10290 = vmatprep.mubr.msk.bf16.mxu1 %vm3056_vm2, %v12626_v41  ;;  %v12639_v41 = vld [vmem:[%s16864_s4 + $0x1f0] ss:$8 sps:$4 sm:$0xff]   ;;  %v10312_v19 = vcombine.high %v10306_v48, %v10306_v48  ;;  %v10311_v56 = vcombine.low %v10306_v48, %v10306_v48 }
 0xe0c   : > { %5107 = vmatprep.subr.bf16.mxu1 %v13215_v7 }
 0xe0f   : > { %5108 = vmatpush1.bf16.msra.mxu1 %v14215_v29 }
 0xe10   : > { %5109 = vmatprep.subr.bf16.mxu1 %v13215_v7 }
 0xe13   : > { %5110 = vmatpush1.bf16.msra.mxu1 %v14201_v13 }
 0xe14   : > { %5111 = vmatprep.subr.bf16.mxu1 %v13215_v7 }
 0xe17   : > { %5112 = vmatpush1.bf16.msra.mxu1 %v14195_v34 }
 0xe18   : > { %5115 = vmatprep.subr.bf16.mxu1 %v13215_v7 }
 0xe1b   : > { %5116 = vmatpush2.bf16.msra.mxu1 %v14317_v36 }
 0xe1c   : > { %5117 = vmatprep.subr.bf16.mxu1 %v13215_v7 }
 0xe1f   : > { %5118 = vmatpush2.bf16.msra.mxu1 %v14313_v3 }
 0xe20   : > { %5119 = vmatprep.subr.bf16.mxu1 %v13215_v7 }
 0xe23   : > { %5120 = vmatpush2.bf16.msra.mxu1 %v14307_v18 }
 0xe24   : > { %5121 = vmatprep.subr.bf16.mxu1 %v13215_v7 }
 0xe27   : > { %5122 = vmatpush2.bf16.msra.mxu1 %v14301_v15 }
 0xe28   : > { %5123 = vmatprep.subr.bf16.mxu1 %v13215_v7 }
 0xe2b   : > { %5124 = vmatpush2.bf16.msra.mxu1 %v14287_v61 }
 0xe2c   : > { %5125 = vmatprep.subr.bf16.mxu1 %v13215_v7 }
 0xe2f   : > { %5126 = vmatpush2.bf16.msra.mxu1 %v14273_v45 }
 0xe30   : > { %5127 = vmatprep.subr.bf16.mxu1 %v13215_v7 }
 0xe33   : > { %5128 = vmatpush2.bf16.msra.mxu1 %v14259_v44 }
 0xe34   : > { %12000 = vmatprep.subr.bf16.mxu1 %v13213_v22 }
 0xe36   : > { %5130 = vmatmul.mubr.bf16.vlgmr.msra.gmra.mxu1 %v12624_v21  ;;  %v12642_v21 = vld [vmem:[%s16865_s5 + $0xc8] sm:$0xff]  }
 0xe37   : > { %10291 = vmatprep.mubr.msk.bf16.mxu1 %vm3056_vm2, %v12627_v37  ;;  %12001 = vmatpush3.bf16.msra.mxu1 %v12642_v21  ;;  %v12643_v37 = vld [vmem:[%s16865_s5 + $0xc0] sm:$0xff]  }
 0xe38   : > { %12002 = vmatprep.subr.bf16.mxu1 %v13213_v22 }
 0xe3b   : > { %12003 = vmatpush3.bf16.msra.mxu1 %v12643_v37 }
 0xe3c   : > { %5467 = vmatprep.subr.bf16.mxu1 %v13215_v7 }
 0xe3e   : > { %5138 = vmatmul.mubr.bf16.gmra.mxu1 %v12629_v20 }
 0xe3f   : > { %10292 = vmatprep.mubr.msk.bf16.mxu1 %vm3056_vm2, %v10289_v5 }
 0xe46   : > { %5146 = vmatmul.mubr.bf16.gmra.mxu1 %v10288_v51 }
 0xe47   : > { %12004 = vmatprep.mubr.msk.bf16.mxu1 %vm13214_vm0, %v13213_v22 }
 0xeba   : > { %v5031_v60 = vpop.f32.mrf.mxu1 }
 0xebb   : > { %v15185_v17 = vadd.f32 %v5031_v60, %v15105_v32 }
 0xebc   : > { %v11974_v62 = vpop.f32.mrf.mxu1 }
 0xebe   : > { %v5034_v10 = vpop.f32.mrf.mxu1 }
 0xebf   : > { %v15188_v25 = vadd.f32 %v5034_v10, %v15108_v43 }
 0xec0   : > { %v11975_v1 = vpop.f32.mrf.mxu1 }
 0xec2   : > { %v5039_v11 = vpop.f32.mrf.mxu1 }
 0xec3   : > { %v15191_v42 = vadd.f32 %v5039_v11, %v15111_v27 }
 0xec4   : > { %v11978_v16 = vpop.f32.mrf.mxu1 }
 0xec6   : > { %v5042_v12 = vpop.f32.mrf.mxu1 }
 0xec7   : > { %v15194_v28 = vadd.f32 %v5042_v12, %v15114_v35 }
 0xec8   : > { %v11979_v50 = vpop.f32.mrf.mxu1 }
 0xeca   : > { %v5047_v24 = vpop.f32.mrf.mxu1 }
 0xecb   : > { %v15197_v32 = vadd.f32 %v5047_v24, %v15117_v4 }
 0xecc   : > { %v11982_v40 = vpop.f32.mrf.mxu1 }
 0xece   : > { %v5050_v57 = vpop.f32.mrf.mxu1 }
 0xed0   : > { %v11983_v63 = vpop.f32.mrf.mxu1 }
 0xef6   : > { %v5131_v43 = vpop.f32.mrf.mxu1 }
 0xef8   : > { %v5133_v55 = vpop.f32.mrf.mxu1 }
 0xefa   : > { %v5134_v38 = vpop.f32.mrf.mxu1 }
 0xefb   : > { %v5153_v23 = vpack.c.bf16 %v5134_v38, %v5131_v43 }
 0xefc   : > { %v5136_v52 = vpop.f32.mrf.mxu1 }
 0xefd   : > { %11989 = vmatmul.mubr.msk.bf16.vlgmr.msra.gmra.mxu0 %vm3250_vm4, %v5153_v23 }
 0xefe   : > { %5283 = vmatpush1.bf16.msra.mxu0 %v14245_v33  ;;  %v5139_v27 = vpop.f32.mrf.mxu1  ;;  %11992 = vmatprep.mubr.msk.bf16.mxu0 %vm13214_vm0, %v13213_v22 }
 0xeff   : > { %5284 = vmatprep.subr.bf16.mxu0 %v13215_v7 }
 0xf00   : > { %v5141_v35 = vpop.f32.mrf.mxu1 }
 0xf02   : > { %5285 = vmatpush1.bf16.msra.mxu0 %v14239_v54  ;;  %v5142_v4 = vpop.f32.mrf.mxu1 }
 0xf03   : > { %v5154_v39 = vpack.c.bf16 %v5142_v4, %v5139_v27  ;;  %5286 = vmatprep.subr.bf16.mxu0 %v13215_v7  ;;  %v12646_v4 = vld [vmem:[%s16864_s4 + $0x20c] ss:$8 sps:$4 sm:$0xff]  }
 0xf04   : > { %v5144_v59 = vpop.f32.mrf.mxu1 }
 0xf05   : > { %11993 = vmatmul.mubr.msk.bf16.gmra.mxu0 %vm3250_vm4, %v5154_v39 }
 0xf06   : > { %5287 = vmatpush1.bf16.msra.mxu0 %v14233_v8  ;;  %v5147_v58 = vpop.f32.mrf.mxu1  ;;  %11996 = vmatprep.mubr.msk.bf16.mxu0 %vm13214_vm0, %v13213_v22 }
 0xf07   : > { %5288 = vmatprep.subr.bf16.mxu0 %v13215_v7  ;;  %v5155_v53 = vpack.c.bf16 %v5147_v58, %v5147_v58  ;;  %v12644_v58 = vld [vmem:[%s16864_s4 + $0x208] ss:$8 sps:$4 sm:$0xff]  }
 0xf08   : > { %v5149_v14 = vpop.f32.mrf.mxu1 }
 0xf09   : > { %v12647_v14 = vld [vmem:[%s16864_s4 + $0x21c] ss:$8 sps:$4 sm:$0xff]  }
 0xf0a   : > { %5289 = vmatpush1.bf16.msra.mxu0 %v14227_v0  ;;  %v5150_v9 = vpop.f32.mrf.mxu1 }
 0xf0b   : > { %5290 = vmatprep.subr.bf16.mxu0 %v13215_v7 }
 0xf0c   : > { %v5151_v26 = vpop.f32.mrf.mxu1 }
 0xf0d   : > { %11997 = vmatmul.mubr.msk.bf16.gmra.mxu0 %vm3250_vm4, %v5155_v53  ;;  %v10329_v53 = vld [vmem:[%s16864_s4 + $0x228] sm:$0x33] }
 0xf0e   : > { %5291 = vmatpush1.bf16.msra.mxu0 %v14221_v30  ;;  %10313 = vmatprep.mubr.msk.bf16.mxu0 %vm3056_vm2, %v12636_v2  ;;  %v12649_v2 = vld [vmem:[%s16864_s4 + $0x218] ss:$8 sps:$4 sm:$0xff]   ;;  %v10335_v9 = vcombine.high %v10329_v53, %v10329_v53  ;;  %v10334_v26 = vcombine.low %v10329_v53, %v10329_v53 }
 0xf0f   : > { %5292 = vmatprep.subr.bf16.mxu0 %v13215_v7 }
 0xf12   : > { %5293 = vmatpush1.bf16.msra.mxu0 %v14215_v29 }
 0xf13   : > { %5294 = vmatprep.subr.bf16.mxu0 %v13215_v7 }
 0xf16   : > { %5295 = vmatpush1.bf16.msra.mxu0 %v14201_v13 }
 0xf17   : > { %5296 = vmatprep.subr.bf16.mxu0 %v13215_v7 }
 0xf1a   : > { %5297 = vmatpush1.bf16.msra.mxu0 %v14195_v34 }
 0xf1b   : > { %5300 = vmatprep.subr.bf16.mxu0 %v13215_v7 }
 0xf1e   : > { %5301 = vmatpush2.bf16.msra.mxu0 %v14317_v36 }
 0xf1f   : > { %5302 = vmatprep.subr.bf16.mxu0 %v13215_v7 }
 0xf22   : > { %5303 = vmatpush2.bf16.msra.mxu0 %v14313_v3 }
 0xf23   : > { %5304 = vmatprep.subr.bf16.mxu0 %v13215_v7 }
 0xf26   : > { %5305 = vmatpush2.bf16.msra.mxu0 %v14307_v18 }
 0xf27   : > { %5306 = vmatprep.subr.bf16.mxu0 %v13215_v7 }
 0xf2a   : > { %5307 = vmatpush2.bf16.msra.mxu0 %v14301_v15 }
 0xf2b   : > { %5308 = vmatprep.subr.bf16.mxu0 %v13215_v7 }
 0xf2e   : > { %5309 = vmatpush2.bf16.msra.mxu0 %v14287_v61 }
 0xf2f   : > { %5310 = vmatprep.subr.bf16.mxu0 %v13215_v7 }
 0xf32   : > { %5311 = vmatpush2.bf16.msra.mxu0 %v14273_v45 }
 0xf33   : > { %5312 = vmatprep.subr.bf16.mxu0 %v13215_v7 }
 0xf36   : > { %5313 = vmatpush2.bf16.msra.mxu0 %v14259_v44 }
 0xf37   : > { %12016 = vmatprep.subr.bf16.mxu0 %v13213_v22 }
 0xf39   : > { %5315 = vmatmul.mubr.bf16.vlgmr.msra.gmra.mxu0 %v12634_v49  ;;  %v12652_v49 = vld [vmem:[%s16865_s5 + $0xd8] sm:$0xff]  }
 0xf3a   : > { %10314 = vmatprep.mubr.msk.bf16.mxu0 %vm3056_vm2, %v12637_v31  ;;  %12017 = vmatpush3.bf16.msra.mxu0 %v12652_v49  ;;  %v12653_v31 = vld [vmem:[%s16865_s5 + $0xd0] sm:$0xff]  }
 0xf3b   : > { %12018 = vmatprep.subr.bf16.mxu0 %v13213_v22 }
 0xf3e   : > { %12019 = vmatpush3.bf16.msra.mxu0 %v12653_v31 }
 0xf3f   : > { %5652 = vmatprep.subr.bf16.mxu0 %v13215_v7 }
 0xf41   : > { %5323 = vmatmul.mubr.bf16.gmra.mxu0 %v12639_v41 }
 0xf42   : > { %10315 = vmatprep.mubr.msk.bf16.mxu0 %vm3056_vm2, %v10312_v19 }
 0xf49   : > { %5331 = vmatmul.mubr.bf16.gmra.mxu0 %v10311_v56 }
 0xf4a   : > { %12020 = vmatprep.mubr.msk.bf16.mxu0 %vm13214_vm0, %v13213_v22 }
 0xfbd   : > { %v5216_v47 = vpop.f32.mrf.mxu0 }
 0xfbe   : > { %v15265_v20 = vadd.f32 %v5216_v47, %v15185_v17 }
 0xfbf   : > { %v11990_v5 = vpop.f32.mrf.mxu0 }
 0xfc1   : > { %v5219_v51 = vpop.f32.mrf.mxu0 }
 0xfc2   : > { %v15268_v6 = vadd.f32 %v5219_v51, %v15188_v25 }
 0xfc3   : > { %v11991_v46 = vpop.f32.mrf.mxu0 }
 0xfc5   : > { %v5224_v60 = vpop.f32.mrf.mxu0 }
 0xfc6   : > { %v15271_v62 = vadd.f32 %v5224_v60, %v15191_v42 }
 0xfc7   : > { %v11994_v10 = vpop.f32.mrf.mxu0 }
 0xfc9   : > { %v5227_v1 = vpop.f32.mrf.mxu0 }
 0xfca   : > { %v15274_v11 = vadd.f32 %v5227_v1, %v15194_v28 }
 0xfcb   : > { %v11995_v16 = vpop.f32.mrf.mxu0 }
 0xfcd   : > { %v5232_v12 = vpop.f32.mrf.mxu0 }
 0xfce   : > { %v15277_v17 = vadd.f32 %v5232_v12, %v15197_v32 }
 0xfcf   : > { %v11998_v50 = vpop.f32.mrf.mxu0 }
 0xfd1   : > { %v5235_v24 = vpop.f32.mrf.mxu0 }
 0xfd3   : > { %v11999_v40 = vpop.f32.mrf.mxu0 }
 0xff9   : > { %v5316_v25 = vpop.f32.mrf.mxu0 }
 0xffb   : > { %v5318_v57 = vpop.f32.mrf.mxu0 }
 0xffd   : > { %v5319_v63 = vpop.f32.mrf.mxu0 }
 0xffe   : > { %v5338_v43 = vpack.c.bf16 %v5319_v63, %v5316_v25 }
 0xfff   : > { %v5321_v55 = vpop.f32.mrf.mxu0 }
0x1000   : > { %12005 = vmatmul.mubr.msk.bf16.vlgmr.msra.gmra.mxu1 %vm3250_vm4, %v5338_v43 }
0x1001   : > { %5468 = vmatpush1.bf16.msra.mxu1 %v14245_v33  ;;  %v5324_v42 = vpop.f32.mrf.mxu0  ;;  %12008 = vmatprep.mubr.msk.bf16.mxu1 %vm13214_vm0, %v13213_v22 }
0x1002   : > { %5469 = vmatprep.subr.bf16.mxu1 %v13215_v7 }
0x1003   : > { %v5326_v28 = vpop.f32.mrf.mxu0 }
0x1005   : > { %5470 = vmatpush1.bf16.msra.mxu1 %v14239_v54  ;;  %v5327_v32 = vpop.f32.mrf.mxu0 }
0x1006   : > { %v5339_v38 = vpack.c.bf16 %v5327_v32, %v5324_v42  ;;  %5471 = vmatprep.subr.bf16.mxu1 %v13215_v7  ;;  %v12656_v32 = vld [vmem:[%s16864_s4 + $0x234] ss:$8 sps:$4 sm:$0xff]  }
0x1007   : > { %v5329_v23 = vpop.f32.mrf.mxu0 }
0x1008   : > { %12009 = vmatmul.mubr.msk.bf16.gmra.mxu1 %vm3250_vm4, %v5339_v38 }
0x1009   : > { %5472 = vmatpush1.bf16.msra.mxu1 %v14233_v8  ;;  %v5332_v52 = vpop.f32.mrf.mxu0  ;;  %12012 = vmatprep.mubr.msk.bf16.mxu1 %vm13214_vm0, %v13213_v22 }
0x100a   : > { %5473 = vmatprep.subr.bf16.mxu1 %v13215_v7  ;;  %v5340_v35 = vpack.c.bf16 %v5332_v52, %v5332_v52  ;;  %v12654_v52 = vld [vmem:[%s16864_s4 + $0x230] ss:$8 sps:$4 sm:$0xff]  }
0x100b   : > { %v5334_v27 = vpop.f32.mrf.mxu0 }
0x100c   : > { %v12657_v27 = vld [vmem:[%s16864_s4 + $0x244] ss:$8 sps:$4 sm:$0xff]  }
0x100d   : > { %5474 = vmatpush1.bf16.msra.mxu1 %v14227_v0  ;;  %v5335_v39 = vpop.f32.mrf.mxu0 }
0x100e   : > { %5475 = vmatprep.subr.bf16.mxu1 %v13215_v7 }
0x100f   : > { %v5336_v59 = vpop.f32.mrf.mxu0 }
0x1010   : > { %12013 = vmatmul.mubr.msk.bf16.gmra.mxu1 %vm3250_vm4, %v5340_v35  ;;  %v10352_v35 = vld [vmem:[%s16864_s4 + $0x250] sm:$0x33] }
0x1011   : > { %5476 = vmatpush1.bf16.msra.mxu1 %v14221_v30  ;;  %10336 = vmatprep.mubr.msk.bf16.mxu1 %vm3056_vm2, %v12646_v4  ;;  %v12659_v4 = vld [vmem:[%s16864_s4 + $0x240] ss:$8 sps:$4 sm:$0xff]   ;;  %v10358_v39 = vcombine.high %v10352_v35, %v10352_v35  ;;  %v10357_v59 = vcombine.low %v10352_v35, %v10352_v35 }
0x1012   : > { %5477 = vmatprep.subr.bf16.mxu1 %v13215_v7 }
0x1015   : > { %5478 = vmatpush1.bf16.msra.mxu1 %v14215_v29 }
0x1016   : > { %5479 = vmatprep.subr.bf16.mxu1 %v13215_v7 }
0x1019   : > { %5480 = vmatpush1.bf16.msra.mxu1 %v14201_v13 }
0x101a   : > { %5481 = vmatprep.subr.bf16.mxu1 %v13215_v7 }
0x101d   : > { %5482 = vmatpush1.bf16.msra.mxu1 %v14195_v34 }
0x101e   : > { %5485 = vmatprep.subr.bf16.mxu1 %v13215_v7 }
0x1021   : > { %5486 = vmatpush2.bf16.msra.mxu1 %v14317_v36 }
0x1022   : > { %5487 = vmatprep.subr.bf16.mxu1 %v13215_v7 }
0x1025   : > { %5488 = vmatpush2.bf16.msra.mxu1 %v14313_v3 }
0x1026   : > { %5489 = vmatprep.subr.bf16.mxu1 %v13215_v7 }
0x1029   : > { %5490 = vmatpush2.bf16.msra.mxu1 %v14307_v18 }
0x102a   : > { %5491 = vmatprep.subr.bf16.mxu1 %v13215_v7 }
0x102d   : > { %5492 = vmatpush2.bf16.msra.mxu1 %v14301_v15 }
0x102e   : > { %5493 = vmatprep.subr.bf16.mxu1 %v13215_v7 }
0x1031   : > { %5494 = vmatpush2.bf16.msra.mxu1 %v14287_v61 }
0x1032   : > { %5495 = vmatprep.subr.bf16.mxu1 %v13215_v7 }
0x1035   : > { %5496 = vmatpush2.bf16.msra.mxu1 %v14273_v45 }
0x1036   : > { %5497 = vmatprep.subr.bf16.mxu1 %v13215_v7 }
0x1039   : > { %5498 = vmatpush2.bf16.msra.mxu1 %v14259_v44 }
0x103a   : > { %12032 = vmatprep.subr.bf16.mxu1 %v13213_v22 }
0x103c   : > { %5500 = vmatmul.mubr.bf16.vlgmr.msra.gmra.mxu1 %v12644_v58  ;;  %v12662_v58 = vld [vmem:[%s16865_s5 + $0xe8] sm:$0xff]  }
0x103d   : > { %10337 = vmatprep.mubr.msk.bf16.mxu1 %vm3056_vm2, %v12647_v14  ;;  %12033 = vmatpush3.bf16.msra.mxu1 %v12662_v58  ;;  %v12663_v14 = vld [vmem:[%s16865_s5 + $0xe0] sm:$0xff]  }
0x103e   : > { %12034 = vmatprep.subr.bf16.mxu1 %v13213_v22 }
0x1041   : > { %12035 = vmatpush3.bf16.msra.mxu1 %v12663_v14 }
0x1042   : > { %5837 = vmatprep.subr.bf16.mxu1 %v13215_v7 }
0x1044   : > { %5508 = vmatmul.mubr.bf16.gmra.mxu1 %v12649_v2 }
0x1045   : > { %10338 = vmatprep.mubr.msk.bf16.mxu1 %vm3056_vm2, %v10335_v9 }
0x104c   : > { %5516 = vmatmul.mubr.bf16.gmra.mxu1 %v10334_v26 }
0x104d   : > { %12036 = vmatprep.mubr.msk.bf16.mxu1 %vm13214_vm0, %v13213_v22 }
0x10c0   : > { %v5401_v48 = vpop.f32.mrf.mxu1 }
0x10c1   : > { %v15345_v41 = vadd.f32 %v5401_v48, %v15265_v20 }
0x10c2   : > { %v12006_v19 = vpop.f32.mrf.mxu1 }
0x10c4   : > { %v5404_v56 = vpop.f32.mrf.mxu1 }
0x10c5   : > { %v15348_v21 = vadd.f32 %v5404_v56, %v15268_v6 }
0x10c6   : > { %v12007_v37 = vpop.f32.mrf.mxu1 }
0x10c8   : > { %v5409_v47 = vpop.f32.mrf.mxu1 }
0x10c9   : > { %v15351_v5 = vadd.f32 %v5409_v47, %v15271_v62 }
0x10ca   : > { %v12010_v51 = vpop.f32.mrf.mxu1 }
0x10cc   : > { %v5412_v46 = vpop.f32.mrf.mxu1 }
0x10cd   : > { %v15354_v60 = vadd.f32 %v5412_v46, %v15274_v11 }
0x10ce   : > { %v12011_v10 = vpop.f32.mrf.mxu1 }
0x10d0   : > { %v5417_v1 = vpop.f32.mrf.mxu1 }
0x10d1   : > { %v15357_v20 = vadd.f32 %v5417_v1, %v15277_v17 }
0x10d2   : > { %v12014_v16 = vpop.f32.mrf.mxu1 }
0x10d4   : > { %v5420_v12 = vpop.f32.mrf.mxu1 }
0x10d6   : > { %v12015_v50 = vpop.f32.mrf.mxu1 }
0x10fc   : > { %v5501_v6 = vpop.f32.mrf.mxu1 }
0x10fe   : > { %v5503_v24 = vpop.f32.mrf.mxu1 }
0x1100   : > { %v5504_v40 = vpop.f32.mrf.mxu1 }
0x1101   : > { %v5523_v25 = vpack.c.bf16 %v5504_v40, %v5501_v6 }
0x1102   : > { %v5506_v57 = vpop.f32.mrf.mxu1 }
0x1103   : > { %12021 = vmatmul.mubr.msk.bf16.vlgmr.msra.gmra.mxu0 %vm3250_vm4, %v5523_v25 }
0x1104   : > { %5653 = vmatpush1.bf16.msra.mxu0 %v14245_v33  ;;  %v5509_v62 = vpop.f32.mrf.mxu1  ;;  %12024 = vmatprep.mubr.msk.bf16.mxu0 %vm13214_vm0, %v13213_v22 }
0x1105   : > { %5654 = vmatprep.subr.bf16.mxu0 %v13215_v7 }
0x1106   : > { %v5511_v11 = vpop.f32.mrf.mxu1 }
0x1108   : > { %5655 = vmatpush1.bf16.msra.mxu0 %v14239_v54  ;;  %v5512_v17 = vpop.f32.mrf.mxu1 }
0x1109   : > { %v5524_v63 = vpack.c.bf16 %v5512_v17, %v5509_v62  ;;  %5656 = vmatprep.subr.bf16.mxu0 %v13215_v7 }
0x110a   : > { %v5514_v43 = vpop.f32.mrf.mxu1 }
0x110b   : > { %12025 = vmatmul.mubr.msk.bf16.gmra.mxu0 %vm3250_vm4, %v5524_v63 }
0x110c   : > { %5657 = vmatpush1.bf16.msra.mxu0 %v14233_v8  ;;  %v5517_v55 = vpop.f32.mrf.mxu1  ;;  %12028 = vmatprep.mubr.msk.bf16.mxu0 %vm13214_vm0, %v13213_v22 }
0x110d   : > { %5658 = vmatprep.subr.bf16.mxu0 %v13215_v7  ;;  %v5525_v28 = vpack.c.bf16 %v5517_v55, %v5517_v55 }
0x110e   : > { %v5519_v42 = vpop.f32.mrf.mxu1 }
0x1110   : > { %5659 = vmatpush1.bf16.msra.mxu0 %v14227_v0  ;;  %v5520_v38 = vpop.f32.mrf.mxu1 }
0x1111   : > { %5660 = vmatprep.subr.bf16.mxu0 %v13215_v7 }
0x1112   : > { %v5521_v23 = vpop.f32.mrf.mxu1 }
0x1113   : > { %12029 = vmatmul.mubr.msk.bf16.gmra.mxu0 %vm3250_vm4, %v5525_v28 }
0x1114   : > { %5661 = vmatpush1.bf16.msra.mxu0 %v14221_v30  ;;  %10359 = vmatprep.mubr.msk.bf16.mxu0 %vm3056_vm2, %v12656_v32 }
0x1115   : > { %5662 = vmatprep.subr.bf16.mxu0 %v13215_v7 }
0x1118   : > { %5663 = vmatpush1.bf16.msra.mxu0 %v14215_v29 }
0x1119   : > { %5664 = vmatprep.subr.bf16.mxu0 %v13215_v7 }
0x111c   : > { %5665 = vmatpush1.bf16.msra.mxu0 %v14201_v13 }
0x111d   : > { %5666 = vmatprep.subr.bf16.mxu0 %v13215_v7 }
0x1120   : > { %5667 = vmatpush1.bf16.msra.mxu0 %v14195_v34 }
0x1121   : > { %5670 = vmatprep.subr.bf16.mxu0 %v13215_v7 }
0x1124   : > { %5671 = vmatpush2.bf16.msra.mxu0 %v14317_v36 }
0x1125   : > { %5672 = vmatprep.subr.bf16.mxu0 %v13215_v7 }
0x1128   : > { %5673 = vmatpush2.bf16.msra.mxu0 %v14313_v3 }
0x1129   : > { %5674 = vmatprep.subr.bf16.mxu0 %v13215_v7 }
0x112c   : > { %5675 = vmatpush2.bf16.msra.mxu0 %v14307_v18 }
0x112d   : > { %5676 = vmatprep.subr.bf16.mxu0 %v13215_v7 }
0x1130   : > { %5677 = vmatpush2.bf16.msra.mxu0 %v14301_v15 }
0x1131   : > { %5678 = vmatprep.subr.bf16.mxu0 %v13215_v7 }
0x1134   : > { %5679 = vmatpush2.bf16.msra.mxu0 %v14287_v61 }
0x1135   : > { %5680 = vmatprep.subr.bf16.mxu0 %v13215_v7 }
0x1138   : > { %5681 = vmatpush2.bf16.msra.mxu0 %v14273_v45 }
0x1139   : > { %5682 = vmatprep.subr.bf16.mxu0 %v13215_v7 }
0x113c   : > { %5683 = vmatpush2.bf16.msra.mxu0 %v14259_v44 }
0x113d   : > { %12048 = vmatprep.subr.bf16.mxu0 %v13213_v22 }
0x113f   : > { %5685 = vmatmul.mubr.bf16.vlgmr.msra.gmra.mxu0 %v12654_v52 }
0x1140   : > { %10360 = vmatprep.mubr.msk.bf16.mxu0 %vm3056_vm2, %v12657_v27 }
0x1147   : > { %5693 = vmatmul.mubr.bf16.gmra.mxu0 %v12659_v4 }
0x1148   : > { %10361 = vmatprep.mubr.msk.bf16.mxu0 %vm3056_vm2, %v10358_v39 }
0x114f   : > { %5701 = vmatmul.mubr.bf16.gmra.mxu0 %v10357_v59 }
0x1150   : > { %12052 = vmatprep.mubr.msk.bf16.mxu0 %vm13214_vm0, %v13213_v22 }
0x11c3   : > { %v5586_v53 = vpop.f32.mrf.mxu0 }
0x11c4   : > { %v15425_v2 = vadd.f32 %v5586_v53, %v15345_v41 }
0x11c5   : > { %v12022_v9 = vpop.f32.mrf.mxu0 }
0x11c7   : > { %v5589_v26 = vpop.f32.mrf.mxu0 }
0x11c8   : > { %v15428_v49 = vadd.f32 %v5589_v26, %v15348_v21 }
0x11c9   : > { %v12023_v31 = vpop.f32.mrf.mxu0 }
0x11cb   : > { %v5594_v48 = vpop.f32.mrf.mxu0 }
0x11cc   : > { %v15431_v19 = vadd.f32 %v5594_v48, %v15351_v5 }
0x11cd   : > { %v12026_v56 = vpop.f32.mrf.mxu0 }
0x11cf   : > { %v5597_v37 = vpop.f32.mrf.mxu0 }
0x11d0   : > { %v15434_v47 = vadd.f32 %v5597_v37, %v15354_v60 }
0x11d1   : > { %v12027_v51 = vpop.f32.mrf.mxu0 }
0x11d3   : > { %v5602_v46 = vpop.f32.mrf.mxu0 }
0x11d4   : > { %v15437_v41 = vadd.f32 %v5602_v46, %v15357_v20  ;;  %v10394_v46 = vld [vmem:[%s16866_s6] ss:$0 sm:$0xff] }
0x11d5   : > { %v12030_v10 = vpop.f32.mrf.mxu0 }
0x11d7   : > { %v5605_v1 = vpop.f32.mrf.mxu0 }
0x11d9   : > { %v12031_v16 = vpop.f32.mrf.mxu0 }
0x11ff   : > { %v5686_v21 = vpop.f32.mrf.mxu0 }
0x1201   : > { %v5688_v12 = vpop.f32.mrf.mxu0 }
0x1203   : > { %v5689_v50 = vpop.f32.mrf.mxu0 }
0x1204   : > { %v5708_v6 = vpack.c.bf16 %v5689_v50, %v5686_v21 }
0x1205   : > { %v5691_v24 = vpop.f32.mrf.mxu0 }
0x1206   : > { %12037 = vmatmul.mubr.msk.bf16.vlgmr.msra.gmra.mxu1 %vm3250_vm4, %v5708_v6 }
0x1207   : > { %5838 = vmatpush1.bf16.msra.mxu1 %v14245_v33  ;;  %v5694_v5 = vpop.f32.mrf.mxu0  ;;  %12040 = vmatprep.mubr.msk.bf16.mxu1 %vm13214_vm0, %v13213_v22 }
0x1208   : > { %5839 = vmatprep.subr.bf16.mxu1 %v13215_v7 }
0x1209   : > { %v5696_v60 = vpop.f32.mrf.mxu0 }
0x120b   : > { %5840 = vmatpush1.bf16.msra.mxu1 %v14239_v54  ;;  %v5697_v20 = vpop.f32.mrf.mxu0  ;;  %v12666_v54 = vld [vmem:[%s16864_s4 + $0x25c] ss:$8 sps:$4 sm:$0xff]  }
0x120c   : > { %v5709_v40 = vpack.c.bf16 %v5697_v20, %v5694_v5  ;;  %5841 = vmatprep.subr.bf16.mxu1 %v13215_v7 }
0x120d   : > { %v5699_v25 = vpop.f32.mrf.mxu0 }
0x120e   : > { %12041 = vmatmul.mubr.msk.bf16.gmra.mxu1 %vm3250_vm4, %v5709_v40 }
0x120f   : > { %5842 = vmatpush1.bf16.msra.mxu1 %v14233_v8  ;;  %v5702_v57 = vpop.f32.mrf.mxu0  ;;  %12044 = vmatprep.mubr.msk.bf16.mxu1 %vm13214_vm0, %v13213_v22  ;;  %v12672_v8 = vld [vmem:[%s16865_s5 + $0xf8] sm:$0xff]  }
0x1210   : > { %5843 = vmatprep.subr.bf16.mxu1 %v13215_v7  ;;  %v5710_v62 = vpack.c.bf16 %v5702_v57, %v5702_v57  ;;  %12049 = vmatpush3.bf16.msra.mxu0 %v12672_v8 }
0x1211   : > { %v5704_v33 = vpop.f32.mrf.mxu0  ;;  %12050 = vmatprep.subr.bf16.mxu0 %v13213_v22 }
0x1213   : > { %5844 = vmatpush1.bf16.msra.mxu1 %v14227_v0  ;;  %v5705_v11 = vpop.f32.mrf.mxu0 }
0x1214   : > { %5845 = vmatprep.subr.bf16.mxu1 %v13215_v7 }
0x1215   : > { %v5706_v17 = vpop.f32.mrf.mxu0 }
0x1216   : > { %12045 = vmatmul.mubr.msk.bf16.gmra.mxu1 %vm3250_vm4, %v5710_v62 }
0x1217   : > { %5846 = vmatpush1.bf16.msra.mxu1 %v14221_v30  ;;  %10382 = vmatprep.mubr.msk.bf16.mxu1 %vm3056_vm2, %v12666_v54 }
0x1218   : > { %5847 = vmatprep.subr.bf16.mxu1 %v13215_v7 }
0x121b   : > { %5848 = vmatpush1.bf16.msra.mxu1 %v14215_v29  ;;  %v10375_v29 = vld [vmem:[%s16864_s4 + $0x278] sm:$0x33] }
0x121c   : > { %5849 = vmatprep.subr.bf16.mxu1 %v13215_v7  ;;  %v10381_v30 = vcombine.high %v10375_v29, %v10375_v29  ;;  %v10380_v0 = vcombine.low %v10375_v29, %v10375_v29 }
0x121f   : > { %5850 = vmatpush1.bf16.msra.mxu1 %v14201_v13  ;;  %v12667_v13 = vld [vmem:[%s16864_s4 + $0x26c] ss:$8 sps:$4 sm:$0xff]  }
0x1220   : > { %5851 = vmatprep.subr.bf16.mxu1 %v13215_v7 }
0x1223   : > { %5852 = vmatpush1.bf16.msra.mxu1 %v14195_v34  ;;  %v12664_v34 = vld [vmem:[%s16864_s4 + $0x258] ss:$8 sps:$4 sm:$0xff]  }
0x1224   : > { %5855 = vmatprep.subr.bf16.mxu1 %v13215_v7 }
0x1227   : > { %5856 = vmatpush2.bf16.msra.mxu1 %v14317_v36 }
0x1228   : > { %5857 = vmatprep.subr.bf16.mxu1 %v13215_v7 }
0x122b   : > { %5858 = vmatpush2.bf16.msra.mxu1 %v14313_v3 }
0x122c   : > { %5859 = vmatprep.subr.bf16.mxu1 %v13215_v7 }
0x122f   : > { %5860 = vmatpush2.bf16.msra.mxu1 %v14307_v18 }
0x1230   : > { %5861 = vmatprep.subr.bf16.mxu1 %v13215_v7 }
0x1233   : > { %5862 = vmatpush2.bf16.msra.mxu1 %v14301_v15 }
0x1234   : > { %5863 = vmatprep.subr.bf16.mxu1 %v13215_v7 }
0x1237   : > { %5864 = vmatpush2.bf16.msra.mxu1 %v14287_v61 }
0x1238   : > { %5865 = vmatprep.subr.bf16.mxu1 %v13215_v7 }
0x123b   : > { %5866 = vmatpush2.bf16.msra.mxu1 %v14273_v45 }
0x123c   : > { %5867 = vmatprep.subr.bf16.mxu1 %v13215_v7  ;;  %v12669_v7 = vld [vmem:[%s16864_s4 + $0x268] ss:$8 sps:$4 sm:$0xff]  }
0x123f   : > { %5868 = vmatpush2.bf16.msra.mxu1 %v14259_v44  ;;  %v12673_v44 = vld [vmem:[%s16865_s5 + $0xf0] sm:$0xff]  }
0x1240   : > { %12074 = vmatprep.subr.bf16.mxu1 %v13213_v22  ;;  %12051 = vmatpush3.bf16.msra.mxu0 %v12673_v44 }
0x1241   : > { %12064 = vmatprep.subr.bf16.mxu0 %v13213_v22 }
0x1242   : > { %5870 = vmatmul.mubr.bf16.vlgmr.msra.gmra.mxu1 %v12664_v34 }
0x1243   : > { %10383 = vmatprep.mubr.msk.bf16.mxu1 %vm3056_vm2, %v12667_v13 }
0x124a   : > { %5878 = vmatmul.mubr.bf16.gmra.mxu1 %v12669_v7 }
0x124b   : > { %10384 = vmatprep.mubr.msk.bf16.mxu1 %vm3056_vm2, %v10381_v30 }
0x1252   : > { %5886 = vmatmul.mubr.bf16.gmra.mxu1 %v10380_v0 }
0x1253   : > { %12080 = vmatprep.mubr.msk.bf16.mxu1 %vm13214_vm0, %v13213_v22 }
0x12c6   : > { %v5771_v45 = vpop.f32.mrf.mxu1 }
0x12c7   : > { %v5793_v61 = vadd.f32 %v5771_v45, %v15425_v2 }
0x12c8   : > { %v12038_v15 = vpop.f32.mrf.mxu1 }
0x12c9   : > { %v12675_v15 = vld [vmem:[%s16867_s7] sm:$0xff]  }
0x12ca   : > { %v5774_v18 = vpop.f32.mrf.mxu1 }
0x12cb   : > { %v5794_v3 = vadd.f32 %v5774_v18, %v15428_v49  ;;  %v12676_v18 = vld [vmem:[%s16868_s8 + $0x38] sm:$0xff]  }
0x12cc   : > { %v12039_v36 = vpop.f32.mrf.mxu1 }
0x12cd   : > { %v12678_v36 = vld [vmem:[%s16868_s8 + $0x28] sm:$0xff]  }
0x12ce   : > { %v5779_v63 = vpop.f32.mrf.mxu1 }
0x12cf   : > { %v5795_v43 = vadd.f32 %v5779_v63, %v15431_v19  ;;  %v12681_v63 = vld [vmem:[%s16868_s8 + $0x18] sm:$0xff]  }
0x12d0   : > { %v12042_v55 = vpop.f32.mrf.mxu1 }
0x12d1   : > { %v12683_v55 = vld [vmem:[%s16868_s8 + $0x8] sm:$0xff]  }
0x12d2   : > { %v5782_v42 = vpop.f32.mrf.mxu1 }
0x12d3   : > { %v5796_v28 = vadd.f32 %v5782_v42, %v15434_v47  ;;  %v12679_v42 = vld [vmem:[%s16868_s8 + $0x20] sm:$0xff]  }
0x12d4   : > { %v12043_v32 = vpop.f32.mrf.mxu1 }
0x12d6   : > { %v5787_v38 = vpop.f32.mrf.mxu1 }
0x12d7   : > { %v5797_v23 = vadd.f32 %v5787_v38, %v15437_v41 }
0x12d8   : > { %v12046_v52 = vpop.f32.mrf.mxu1 }
0x12da   : > { %v5790_v27 = vpop.f32.mrf.mxu1 }
0x12dc   : > { %v12047_v35 = vpop.f32.mrf.mxu1 }
0x1302   : > { %v5871_v4 = vpop.f32.mrf.mxu1 }
0x1304   : > { %v5873_v39 = vpop.f32.mrf.mxu1 }
0x1306   : > { %v5874_v59 = vpop.f32.mrf.mxu1 }
0x1307   : > { %v5893_v58 = vpack.c.bf16 %v5874_v59, %v5871_v4  ;;  %v12688_v59 = vld [vmem:[%s16868_s8 + $0x58] sm:$0xff]  }
0x1308   : > { %v5876_v14 = vpop.f32.mrf.mxu1 }
0x1309   : > { %12053 = vmatmul.mubr.msk.bf16.vlgmr.msra.gmra.mxu0 %vm3250_vm4, %v5893_v58 }
0x130a   : > { %v5879_v53 = vpop.f32.mrf.mxu1  ;;  %12056 = vmatprep.mubr.msk.bf16.mxu0 %vm13214_vm0, %v13213_v22 }
0x130c   : > { %v5881_v2 = vpop.f32.mrf.mxu1 }
0x130d   : > { %v12684_v2 = vld [vmem:[%s16867_s7 + $0x18] sm:$0xff]  }
0x130e   : > { %v5882_v9 = vpop.f32.mrf.mxu1 }
0x130f   : > { %v5894_v26 = vpack.c.bf16 %v5882_v9, %v5879_v53  ;;  %v12680_v53 = vld [vmem:[%s16867_s7 + $0x10] sm:$0xff]   ;;  %v12686_v9 = vld [vmem:[%s16867_s7 + $0x20] sm:$0xff]  }
0x1310   : > { %v5884_v49 = vpop.f32.mrf.mxu1 }
0x1311   : > { %12057 = vmatmul.mubr.msk.bf16.gmra.mxu0 %vm3250_vm4, %v5894_v26  ;;  %v12687_v26 = vld [vmem:[%s16867_s7 + $0x28] sm:$0xff]   ;;  %v12689_v49 = vld [vmem:[%s16868_s8 + $0x50] sm:$0xff]  }
0x1312   : > { %v5887_v31 = vpop.f32.mrf.mxu1  ;;  %12060 = vmatprep.mubr.msk.bf16.mxu0 %vm13214_vm0, %v13213_v22 }
0x1313   : > { %v5895_v19 = vpack.c.bf16 %v5887_v31, %v5887_v31  ;;  %v12690_v31 = vld [vmem:[%s16868_s8 + $0x48] sm:$0xff]  }
0x1314   : > { %v5889_v48 = vpop.f32.mrf.mxu1 }
0x1315   : > { %v12691_v48 = vld [vmem:[%s16868_s8 + $0x40] sm:$0xff]  }
0x1316   : > { %v5890_v56 = vpop.f32.mrf.mxu1 }
0x1317   : > { %v12700_v56 = vld [vmem:[%s16868_s8 + $0xb0] sm:$0xff]  }
0x1318   : > { %v5891_v37 = vpop.f32.mrf.mxu1 }
0x1319   : > { %12061 = vmatmul.mubr.msk.bf16.gmra.mxu0 %vm3250_vm4, %v5895_v19  ;;  %v12698_v19 = vld [vmem:[%s16868_s8 + $0xb8] sm:$0xff]   ;;  %v12702_v37 = vld [vmem:[%s16868_s8 + $0xa8] sm:$0xff]  }
0x131a   : > { %12070 = vmatprep.mubr.msk.bf16.mxu0 %vm13214_vm0, %v13213_v22 }
0x13c9   : > { %v5956_v47 = vpop.f32.mrf.mxu0 }
0x13ca   : > { %v5978_v51 = vadd.f32 %v5956_v47, %v5793_v61  ;;  %v12674_v61 = vld [vmem:[%s16867_s7 + $0x8] sm:$0xff]   ;;  %v12703_v47 = vld [vmem:[%s16868_s8 + $0xa0] sm:$0xff]  }
0x13cb   : > { %v12054_v41 = vpop.f32.mrf.mxu0 }
0x13cc   : > { %v5990_v1 = vadd.f32 %v10394_v46, %v5978_v51 }
0x13cd   : > { %v5959_v10 = vpop.f32.mrf.mxu0 }
0x13ce   : > { %v5979_v16 = vadd.f32 %v5959_v10, %v5794_v3  ;;  %v5995_v6 = vmax.f32 %v5990_v1, 0.0  ;;  %v12677_v3 = vld [vmem:[%s16868_s8 + $0x30] sm:$0xff]  }
0x13cf   : > { %v12055_v21 = vpop.f32.mrf.mxu0 }
0x13d0   : > { %v5991_v12 = vadd.f32 %v10394_v46, %v5979_v16 }
0x13d1   : > { %v5964_v50 = vpop.f32.mrf.mxu0 }
0x13d2   : > { %v5996_v24 = vmax.f32 %v5991_v12, 0.0  ;;  %v5980_v5 = vadd.f32 %v5964_v50, %v5795_v43  ;;  %v12682_v43 = vld [vmem:[%s16868_s8 + $0x10] sm:$0xff]  }
0x13d3   : > { %v12058_v60 = vpop.f32.mrf.mxu0 }
0x13d4   : > { %v15521_v20 = vpack.c.bf16 %v5996_v24, %v5995_v6  ;;  %v5992_v25 = vadd.f32 %v10394_v46, %v5980_v5 }
0x13d5   : > { %v5967_v40 = vpop.f32.mrf.mxu0 }
0x13d6   : > { %v5981_v57 = vadd.f32 %v5967_v40, %v5796_v28  ;;  %v5997_v11 = vmax.f32 %v5992_v25, 0.0  ;;  %v12685_v28 = vld [vmem:[%s16868_s8] sm:$0xff]   ;;  %v12692_v40 = vld [vmem:[%s16868_s8 + $0x78] sm:$0xff]  }
0x13d7   : > { %v12059_v33 = vpop.f32.mrf.mxu0 }
0x13d8   : > { %v5993_v62 = vadd.f32 %v10394_v46, %v5981_v57  ;;  %v12693_v33 = vld [vmem:[%s16868_s8 + $0x70] sm:$0xff]  }
0x13d9   : > { %v5972_v54 = vpop.f32.mrf.mxu0 }
0x13da   : > { %v5998_v17 = vmax.f32 %v5993_v62, 0.0  ;;  %v5982_v34 = vadd.f32 %v5972_v54, %v5797_v23  ;;  %v12694_v54 = vld [vmem:[%s16868_s8 + $0x68] sm:$0xff]  }
0x13db   : > { %v12062_v13 = vpop.f32.mrf.mxu0 }
0x13dc   : > { %v15523_v29 = vpack.c.bf16 %v5998_v17, %v5997_v11  ;;  %v5994_v7 = vadd.f32 %v10394_v46, %v5982_v34  ;;  %v12695_v34 = vld [vmem:[%s16868_s8 + $0x60] sm:$0xff]  }
0x13dd   : > { %v5975_v30 = vpop.f32.mrf.mxu0 }
0x13de   : > { %v5999_v0 = vmax.f32 %v5994_v7, 0.0  ;;  %v12696_v7 = vld [vmem:[%s16868_s8 + $0x98] sm:$0xff]  }
0x13df   : > { %v12063_v8 = vpop.f32.mrf.mxu0 }
0x13e0   : > { %v6002_v44 = vpack.c.bf16 %v5999_v0, %v5999_v0  ;;  %v12697_v0 = vld [vmem:[%s16868_s8 + $0x90] sm:$0xff]  }
0x13e2   : > { %v15525_v45 = vsel %vm6014_vm5, %v6002_v44, 0 }
0x13e3   : > { %12065 = vmatpush3.bf16.msra.mxu0 %v15525_v45  ;;  %12075 = vmatpush3.bf16.msra.mxu1 %v15525_v45 }
0x13e4   : > { %12066 = vmatprep.subr.bf16.mxu0 %v13213_v22  ;;  %12076 = vmatprep.subr.bf16.mxu1 %v13213_v22 }
0x13e7   : > { %12067 = vmatpush3.bf16.msra.mxu0 %v15523_v29  ;;  %12077 = vmatpush3.bf16.msra.mxu1 %v15523_v29 }
0x13e8   : > { %12068 = vmatprep.subr.bf16.mxu0 %v13213_v22  ;;  %12078 = vmatprep.subr.bf16.mxu1 %v13213_v22 }
0x13eb   : > { %12069 = vmatpush3.bf16.msra.mxu0 %v15521_v20  ;;  %12079 = vmatpush3.bf16.msra.mxu1 %v15521_v20 }
0x13ec   : > { %12084 = vmatprep.subr.bf16.mxu0 %v13213_v22  ;;  %12096 = vmatprep.subr.bf16.mxu1 %v13213_v22 }
0x13ee   : > { %12081 = vmatmul.mubr.msk.bf16.vlgmr.msra.gmra.mxu1 %vm6010_vm6, %v12674_v61  ;;  %12071 = vmatmul.mubr.msk.bf16.vlgmr.msra.gmra.mxu0 %vm6010_vm6, %v12675_v15  ;;  %v12699_v61 = vld [vmem:[%s16868_s8 + $0x88] sm:$0xff]  }
0x13ef   : > { %12085 = vmatpush3.bf16.msra.mxu0 %v12676_v18  ;;  %12092 = vmatprep.mubr.msk.bf16.mxu0 %vm13214_vm0, %v13213_v22 }
0x13f0   : > { %12086 = vmatprep.subr.bf16.mxu0 %v13213_v22  ;;  %12104 = vmatprep.mubr.msk.bf16.mxu1 %vm13214_vm0, %v13213_v22 }
0x13f1   : > { %12097 = vmatpush3.bf16.msra.mxu1 %v12681_v63 }
0x13f2   : > { %12098 = vmatprep.subr.bf16.mxu1 %v13213_v22 }
0x13f3   : > { %12087 = vmatpush3.bf16.msra.mxu0 %v12677_v3  ;;  %v12701_v3 = vld [vmem:[%s16868_s8 + $0x80] sm:$0xff]  }
0x13f4   : > { %12088 = vmatprep.subr.bf16.mxu0 %v13213_v22 }
0x13f5   : > { %12099 = vmatpush3.bf16.msra.mxu1 %v12682_v43 }
0x13f6   : > { %12100 = vmatprep.subr.bf16.mxu1 %v13213_v22 }
0x13f7   : > { %12089 = vmatpush3.bf16.msra.mxu0 %v12678_v36 }
0x13f8   : > { %12090 = vmatprep.subr.bf16.mxu0 %v13213_v22 }
0x13f9   : > { %12101 = vmatpush3.bf16.msra.mxu1 %v12683_v55 }
0x13fa   : > { %12102 = vmatprep.subr.bf16.mxu1 %v13213_v22 }
0x13fb   : > { %12091 = vmatpush3.bf16.msra.mxu0 %v12679_v42 }
0x13fc   : > { %12108 = vmatprep.subr.bf16.mxu0 %v13213_v22 }
0x13fd   : > { %12103 = vmatpush3.bf16.msra.mxu1 %v12685_v28 }
0x13fe   : > { %12118 = vmatprep.subr.bf16.mxu1 %v13213_v22 }
0x14ae   : > { %v6113_v32 = vpop.f32.mrf.mxu1  ;;  %v6052_v38 = vpop.f32.mrf.mxu0 }
0x14b0   : > { %v12082_v23 = vpop.f32.mrf.mxu1  ;;  %v12072_v52 = vpop.f32.mrf.mxu0 }
0x14b1   : > { %v12706_v23 = vld [vmem:[%s16868_s8 + $0xd8] sm:$0xff]   ;;  %v12707_v52 = vld [vmem:[%s16868_s8 + $0xd0] sm:$0xff]  }
0x14b2   : > { %v6116_v27 = vpop.f32.mrf.mxu1  ;;  %v6055_v35 = vpop.f32.mrf.mxu0 }
0x14b3   : > { %v6120_v4 = vpack.c.bf16 %v6116_v27, %v6113_v32  ;;  %v6059_v39 = vpack.c.bf16 %v6055_v35, %v6052_v38  ;;  %v12704_v32 = vld [vmem:[%s16867_s7 + $0x30] sm:$0xff]   ;;  %v12705_v38 = vld [vmem:[%s16867_s7 + $0x38] sm:$0xff]   ;;  %v12709_v35 = vld [vmem:[%s16868_s8 + $0xc8] sm:$0xff]  }
0x14b4   : > { %v12083_v58 = vpop.f32.mrf.mxu1  ;;  %v12073_v14 = vpop.f32.mrf.mxu0  ;;  %v12708_v27 = vld [vmem:[%s16868_s8 + $0xf8] sm:$0xff]  }
0x14b5   : > { %12093 = vmatmul.mubr.msk.bf16.vlgmr.msra.gmra.mxu0 %vm1322_vm1, %v6120_v4  ;;  %12105 = vmatmul.mubr.msk.bf16.vlgmr.msra.gmra.mxu1 %vm1322_vm1, %v6059_v39  ;;  %v12710_v4 = vld [vmem:[%s16868_s8 + $0xf0] sm:$0xff]   ;;  %v12711_v39 = vld [vmem:[%s16868_s8 + $0xc0] sm:$0xff]  }
0x14b6   : > { %12109 = vmatpush3.bf16.msra.mxu0 %v15525_v45  ;;  %12114 = vmatprep.mubr.msk.bf16.mxu0 %vm13214_vm0, %v13213_v22  ;;  %v12713_v58 = vld [vmem:[%s16868_s8 + $0xe0] sm:$0xff]  }
0x14b7   : > { %12110 = vmatprep.subr.bf16.mxu0 %v13213_v22  ;;  %12119 = vmatpush3.bf16.msra.mxu1 %v12688_v59  ;;  %v12712_v59 = vld [vmem:[%s16868_s8 + $0xe8] sm:$0xff]  }
0x14b8   : > { %12120 = vmatprep.subr.bf16.mxu1 %v13213_v22  ;;  %12126 = vmatprep.mubr.msk.bf16.mxu1 %vm13214_vm0, %v13213_v22 }
0x14ba   : > { %12111 = vmatpush3.bf16.msra.mxu0 %v15523_v29 }
0x14bb   : > { %12112 = vmatprep.subr.bf16.mxu0 %v13213_v22  ;;  %12121 = vmatpush3.bf16.msra.mxu1 %v12689_v49 }
0x14bc   : > { %12122 = vmatprep.subr.bf16.mxu1 %v13213_v22 }
0x14be   : > { %12113 = vmatpush3.bf16.msra.mxu0 %v15521_v20 }
0x14bf   : > { %12130 = vmatprep.subr.bf16.mxu0 %v13213_v22  ;;  %12123 = vmatpush3.bf16.msra.mxu1 %v12690_v31 }
0x14c0   : > { %12124 = vmatprep.subr.bf16.mxu1 %v13213_v22 }
0x14c1   : > { %12115 = vmatmul.mubr.msk.bf16.vlgmr.msra.gmra.mxu0 %vm6010_vm6, %v12680_v53 }
0x14c2   : > { %12131 = vmatpush3.bf16.msra.mxu0 %v15525_v45  ;;  %12136 = vmatprep.mubr.msk.bf16.mxu0 %vm13214_vm0, %v13213_v22 }
0x14c3   : > { %12132 = vmatprep.subr.bf16.mxu0 %v13213_v22  ;;  %12125 = vmatpush3.bf16.msra.mxu1 %v12691_v48 }
0x14c4   : > { %12140 = vmatprep.subr.bf16.mxu1 %v13213_v22 }
0x14c6   : > { %12133 = vmatpush3.bf16.msra.mxu0 %v15523_v29 }
0x14c7   : > { %12134 = vmatprep.subr.bf16.mxu0 %v13213_v22 }
0x14ca   : > { %12135 = vmatpush3.bf16.msra.mxu0 %v15521_v20 }
0x14cb   : > { %12152 = vmatprep.subr.bf16.mxu0 %v13213_v22 }
0x14cd   : > { %12137 = vmatmul.mubr.msk.bf16.vlgmr.msra.gmra.mxu0 %vm6010_vm6, %v12684_v2 }
0x14ce   : > { %12153 = vmatpush3.bf16.msra.mxu0 %v15525_v45  ;;  %12158 = vmatprep.mubr.msk.bf16.mxu0 %vm13214_vm0, %v13213_v22 }
0x14cf   : > { %12154 = vmatprep.subr.bf16.mxu0 %v13213_v22 }
0x14d2   : > { %12155 = vmatpush3.bf16.msra.mxu0 %v15523_v29 }
0x14d3   : > { %12156 = vmatprep.subr.bf16.mxu0 %v13213_v22 }
0x14d6   : > { %12157 = vmatpush3.bf16.msra.mxu0 %v15521_v20 }
0x14d7   : > { %12174 = vmatprep.subr.bf16.mxu0 %v13213_v22 }
0x14d9   : > { %12159 = vmatmul.mubr.msk.bf16.vlgmr.msra.gmra.mxu0 %vm6010_vm6, %v12686_v9 }
0x14da   : > { %12175 = vmatpush3.bf16.msra.mxu0 %v15525_v45  ;;  %12180 = vmatprep.mubr.msk.bf16.mxu0 %vm13214_vm0, %v13213_v22 }
0x14db   : > { %12176 = vmatprep.subr.bf16.mxu0 %v13213_v22 }
0x14de   : > { %12177 = vmatpush3.bf16.msra.mxu0 %v15523_v29 }
0x14df   : > { %12178 = vmatprep.subr.bf16.mxu0 %v13213_v22 }
0x14e2   : > { %12179 = vmatpush3.bf16.msra.mxu0 %v15521_v20 }
0x14e3   : > { %12184 = vmatprep.subr.bf16.mxu0 %v13213_v22 }
0x14e5   : > { %12181 = vmatmul.mubr.msk.bf16.vlgmr.msra.gmra.mxu0 %vm6010_vm6, %v12687_v26 }
0x14e6   : > { %12192 = vmatprep.mubr.msk.bf16.mxu0 %vm13214_vm0, %v13213_v22  ;;  %12185 = vmatpush3.bf16.msra.mxu0 %v12698_v19 }
0x14e7   : > { %12186 = vmatprep.subr.bf16.mxu0 %v13213_v22 }
0x14ea   : > { %12187 = vmatpush3.bf16.msra.mxu0 %v12700_v56 }
0x14eb   : > { %12188 = vmatprep.subr.bf16.mxu0 %v13213_v22 }
0x14ee   : > { %12189 = vmatpush3.bf16.msra.mxu0 %v12702_v37 }
0x14ef   : > { %12190 = vmatprep.subr.bf16.mxu0 %v13213_v22 }
0x14f2   : > { %12191 = vmatpush3.bf16.msra.mxu0 %v12703_v47 }
0x14f3   : > { %12218 = vmatprep.subr.bf16.mxu0 %v13213_v22 }
0x1575   : > { %v6191_v51 = vpop.f32.mrf.mxu0  ;;  %v6259_v46 = vpop.f32.mrf.mxu1 }
0x1576   : > { %v15669_v41 = vadd.f32 %v6259_v46, %v6191_v51 }
0x1577   : > { %v12094_v10 = vpop.f32.mrf.mxu0  ;;  %v12106_v1 = vpop.f32.mrf.mxu1 }
0x1579   : > { %v6194_v16 = vpop.f32.mrf.mxu0  ;;  %v6262_v21 = vpop.f32.mrf.mxu1 }
0x157a   : > { %v15671_v12 = vadd.f32 %v6262_v21, %v6194_v16 }
0x157b   : > { %v12095_v50 = vpop.f32.mrf.mxu0  ;;  %v12107_v6 = vpop.f32.mrf.mxu1 }
0x1581   : > { %v6311_v24 = vpop.f32.mrf.mxu0 }
0x1583   : > { %v12116_v5 = vpop.f32.mrf.mxu0 }
0x1585   : > { %v6314_v60 = vpop.f32.mrf.mxu0 }
0x1586   : > { %v6318_v25 = vpack.c.bf16 %v6314_v60, %v6311_v24 }
0x1587   : > { %v12117_v57 = vpop.f32.mrf.mxu0 }
0x1588   : > { %12127 = vmatmul.mubr.msk.bf16.vlgmr.msra.gmra.mxu1 %vm1322_vm1, %v6318_v25 }
0x1589   : > { %12141 = vmatpush3.bf16.msra.mxu1 %v12692_v40  ;;  %12148 = vmatprep.mubr.msk.bf16.mxu1 %vm13214_vm0, %v13213_v22 }
0x158a   : > { %12142 = vmatprep.subr.bf16.mxu1 %v13213_v22 }
0x158d   : > { %12143 = vmatpush3.bf16.msra.mxu1 %v12693_v33  ;;  %v6443_v62 = vpop.f32.mrf.mxu0 }
0x158e   : > { %12144 = vmatprep.subr.bf16.mxu1 %v13213_v22 }
0x158f   : > { %v12138_v11 = vpop.f32.mrf.mxu0 }
0x1591   : > { %12145 = vmatpush3.bf16.msra.mxu1 %v12694_v54  ;;  %v6446_v17 = vpop.f32.mrf.mxu0 }
0x1592   : > { %12146 = vmatprep.subr.bf16.mxu1 %v13213_v22  ;;  %v6450_v30 = vpack.c.bf16 %v6446_v17, %v6443_v62 }
0x1593   : > { %v12139_v13 = vpop.f32.mrf.mxu0 }
0x1594   : > { %v12714_v13 = vld [vmem:[%s16867_s7 + $0x40] sm:$0xff]  }
0x1595   : > { %12147 = vmatpush3.bf16.msra.mxu1 %v12695_v34 }
0x1596   : > { %12162 = vmatprep.subr.bf16.mxu1 %v13213_v22 }
0x1598   : > { %12149 = vmatmul.mubr.msk.bf16.vlgmr.msra.gmra.mxu1 %vm1322_vm1, %v6450_v30 }
0x1599   : > { %12163 = vmatpush3.bf16.msra.mxu1 %v12696_v7  ;;  %v6575_v8 = vpop.f32.mrf.mxu0  ;;  %12170 = vmatprep.mubr.msk.bf16.mxu1 %vm13214_vm0, %v13213_v22  ;;  %v12718_v7 = vld [vmem:[%s16868_s8 + $0x100] sm:$0xff]  }
0x159a   : > { %12164 = vmatprep.subr.bf16.mxu1 %v13213_v22 }
0x159b   : > { %v12160_v44 = vpop.f32.mrf.mxu0 }
0x159d   : > { %12165 = vmatpush3.bf16.msra.mxu1 %v12697_v0  ;;  %v6578_v15 = vpop.f32.mrf.mxu0 }
0x159e   : > { %12166 = vmatprep.subr.bf16.mxu1 %v13213_v22  ;;  %v6582_v63 = vpack.c.bf16 %v6578_v15, %v6575_v8 }
0x159f   : > { %v12161_v18 = vpop.f32.mrf.mxu0 }
0x15a1   : > { %12167 = vmatpush3.bf16.msra.mxu1 %v12699_v61 }
0x15a2   : > { %12168 = vmatprep.subr.bf16.mxu1 %v13213_v22 }
0x15a5   : > { %12169 = vmatpush3.bf16.msra.mxu1 %v12701_v3  ;;  %v6707_v36 = vpop.f32.mrf.mxu0 }
0x15a6   : > { %12196 = vmatprep.subr.bf16.mxu1 %v13213_v22 }
0x15a7   : > { %v12182_v43 = vpop.f32.mrf.mxu0 }
0x15a8   : > { %12171 = vmatmul.mubr.msk.bf16.vlgmr.msra.gmra.mxu1 %vm1322_vm1, %v6582_v63 }
0x15a9   : > { %12197 = vmatpush3.bf16.msra.mxu1 %v15525_v45  ;;  %v6710_v55 = vpop.f32.mrf.mxu0  ;;  %12202 = vmatprep.mubr.msk.bf16.mxu1 %vm13214_vm0, %v13213_v22 }
0x15aa   : > { %v6714_v42 = vpack.c.bf16 %v6710_v55, %v6707_v36  ;;  %12198 = vmatprep.subr.bf16.mxu1 %v13213_v22 }
0x15ab   : > { %v12183_v28 = vpop.f32.mrf.mxu0 }
0x15ac   : > { %12193 = vmatmul.mubr.msk.bf16.vlgmr.msra.gmra.mxu0 %vm1322_vm1, %v6714_v42 }
0x15ad   : > { %12199 = vmatpush3.bf16.msra.mxu1 %v15523_v29  ;;  %12219 = vmatpush3.bf16.msra.mxu0 %v15525_v45 }
0x15ae   : > { %12200 = vmatprep.subr.bf16.mxu1 %v13213_v22  ;;  %12220 = vmatprep.subr.bf16.mxu0 %v13213_v22 }
0x15af   : > { %12224 = vmatprep.mubr.msk.bf16.mxu0 %vm13214_vm0, %v13213_v22 }
0x15b1   : > { %12201 = vmatpush3.bf16.msra.mxu1 %v15521_v20  ;;  %12221 = vmatpush3.bf16.msra.mxu0 %v15523_v29 }
0x15b2   : > { %12222 = vmatprep.subr.bf16.mxu0 %v13213_v22  ;;  %12206 = vmatprep.subr.bf16.mxu1 %v13213_v22 }
0x15b4   : > { %12203 = vmatmul.mubr.msk.bf16.vlgmr.msra.gmra.mxu1 %vm6010_vm6, %v12704_v32 }
0x15b5   : > { %12223 = vmatpush3.bf16.msra.mxu0 %v15521_v20  ;;  %12214 = vmatprep.mubr.msk.bf16.mxu1 %vm13214_vm0, %v13213_v22 }
0x15b6   : > { %12228 = vmatprep.subr.bf16.mxu0 %v13213_v22  ;;  %12207 = vmatpush3.bf16.msra.mxu1 %v12706_v23  ;;  %v12719_v23 = vld [vmem:[%s16870_s10 + $0xe0] ss:$16 sps:$4 sm:$0xff]  }
0x15b7   : > { %12208 = vmatprep.subr.bf16.mxu1 %v13213_v22 }
0x15b8   : > { %12225 = vmatmul.mubr.msk.bf16.vlgmr.msra.gmra.mxu0 %vm6010_vm6, %v12705_v38 }
0x15b9   : > { %12236 = vmatprep.mubr.msk.bf16.mxu0 %vm13214_vm0, %v13213_v22  ;;  %12229 = vmatpush3.bf16.msra.mxu0 %v12708_v27  ;;  %v12722_v27 = vld [vmem:[%s16870_s10 + $0x2e0] ss:$16 sps:$4 sm:$0xff]  }
0x15ba   : > { %12209 = vmatpush3.bf16.msra.mxu1 %v12707_v52  ;;  %12230 = vmatprep.subr.bf16.mxu0 %v13213_v22  ;;  %v12721_v52 = vld [vmem:[%s16870_s10 + $0xe4] ss:$16 sps:$4 sm:$0xff]  }
0x15bb   : > { %12210 = vmatprep.subr.bf16.mxu1 %v13213_v22 }
0x15bd   : > { %12231 = vmatpush3.bf16.msra.mxu0 %v12710_v4  ;;  %v12727_v4 = vld [vmem:[%s16870_s10 + $0xc4] ss:$16 sps:$4 sm:$0xff]  }
0x15be   : > { %12211 = vmatpush3.bf16.msra.mxu1 %v12709_v35  ;;  %12232 = vmatprep.subr.bf16.mxu0 %v13213_v22  ;;  %v12724_v35 = vld [vmem:[%s16870_s10 + $0x2e4] ss:$16 sps:$4 sm:$0xff]  }
0x15bf   : > { %12212 = vmatprep.subr.bf16.mxu1 %v13213_v22 }
0x15c1   : > { %12233 = vmatpush3.bf16.msra.mxu0 %v12712_v59  ;;  %v12725_v59 = vld [vmem:[%s16870_s10 + $0xc0] ss:$16 sps:$4 sm:$0xff]  }
0x15c2   : > { %12213 = vmatpush3.bf16.msra.mxu1 %v12711_v39  ;;  %12234 = vmatprep.subr.bf16.mxu0 %v13213_v22  ;;  %v12730_v39 = vld [vmem:[%s16870_s10 + $0x2c4] ss:$16 sps:$4 sm:$0xff]  }
0x15c3   : > { %12240 = vmatprep.subr.bf16.mxu1 %v13213_v22 }
0x15c5   : > { %12235 = vmatpush3.bf16.msra.mxu0 %v12713_v58  ;;  %v12728_v58 = vld [vmem:[%s16870_s10 + $0x2c0] ss:$16 sps:$4 sm:$0xff]  }
0x15c6   : > { %8962 = vmatprep.subr.bf16.mxu0 %v12721_v52 }
0x1648   : > { %v6389_v14 = vpop.f32.mrf.mxu1 }
0x1649   : > { %v6396_v53 = vadd.f32 %v6389_v14, %v15669_v41  ;;  %v12733_v14 = vld [vmem:[%s16870_s10 + $0xa4] ss:$16 sps:$4 sm:$0xff]  }
0x164a   : > { %v12128_v2 = vpop.f32.mrf.mxu1 }
0x164b   : > { %v12731_v2 = vld [vmem:[%s16870_s10 + $0xa0] ss:$16 sps:$4 sm:$0xff]  }
0x164c   : > { %v6392_v9 = vpop.f32.mrf.mxu1 }
0x164d   : > { %v6397_v26 = vadd.f32 %v6392_v9, %v15671_v12  ;;  %v12734_v9 = vld [vmem:[%s16870_s10 + $0x2a0] ss:$16 sps:$4 sm:$0xff]  }
0x164e   : > { %v12129_v49 = vpop.f32.mrf.mxu1 }
0x164f   : > { %v12742_v49 = vld [vmem:[%s16870_s10 + $0x284] ss:$16 sps:$4 sm:$0xff]  }
0x1658   : > { %v6521_v31 = vpop.f32.mrf.mxu1 }
0x1659   : > { %v6528_v48 = vadd.f32 %v6521_v31, %v6396_v53  ;;  %v12736_v53 = vld [vmem:[%s16870_s10 + $0x2a4] ss:$16 sps:$4 sm:$0xff]   ;;  %v12737_v31 = vld [vmem:[%s16870_s10 + $0x80] ss:$16 sps:$4 sm:$0xff]  }
0x165a   : > { %v12150_v19 = vpop.f32.mrf.mxu1 }
0x165b   : > { %v12745_v19 = vld [vmem:[%s16870_s10 + $0x64] ss:$16 sps:$4 sm:$0xff]  }
0x165c   : > { %v6524_v56 = vpop.f32.mrf.mxu1 }
0x165d   : > { %v6529_v37 = vadd.f32 %v6524_v56, %v6397_v26  ;;  %v12739_v26 = vld [vmem:[%s16870_s10 + $0x84] ss:$16 sps:$4 sm:$0xff]  }
0x165e   : > { %v12151_v47 = vpop.f32.mrf.mxu1  ;;  %v12748_v56 = vld [vmem:[%s16870_s10 + $0x264] ss:$16 sps:$4 sm:$0xff]  }
0x165f   : > { %v12746_v47 = vld [vmem:[%s16870_s10 + $0x260] ss:$16 sps:$4 sm:$0xff]  }
0x1668   : > { %v6653_v51 = vpop.f32.mrf.mxu1 }
0x1669   : > { %v6660_v46 = vadd.f32 %v6653_v51, %v6528_v48  ;;  %v12740_v48 = vld [vmem:[%s16870_s10 + $0x280] ss:$16 sps:$4 sm:$0xff]   ;;  %v12751_v51 = vld [vmem:[%s16870_s10 + $0x44] ss:$16 sps:$4 sm:$0xff]  }
0x166a   : > { %v12172_v10 = vpop.f32.mrf.mxu1 }
0x166b   : > { %v12749_v10 = vld [vmem:[%s16870_s10 + $0x40] ss:$16 sps:$4 sm:$0xff]  }
0x166c   : > { %v6656_v1 = vpop.f32.mrf.mxu1  ;;  %v6785_v16 = vpop.f32.mrf.mxu0 }
0x166d   : > { %v6661_v21 = vadd.f32 %v6656_v1, %v6529_v37  ;;  %v6792_v50 = vadd.f32 %v6785_v16, %v6660_v46  ;;  %v12743_v37 = vld [vmem:[%s16870_s10 + $0x60] ss:$16 sps:$4 sm:$0xff]   ;;  %v12754_v46 = vld [vmem:[%s16870_s10 + $0x244] ss:$16 sps:$4 sm:$0xff]  }
0x166e   : > { %v12194_v6 = vpop.f32.mrf.mxu0  ;;  %v12173_v41 = vpop.f32.mrf.mxu1  ;;  %v12752_v1 = vld [vmem:[%s16870_s10 + $0x240] ss:$16 sps:$4 sm:$0xff]   ;;  %v12757_v16 = vld [vmem:[%s16870_s10 + $0x24] ss:$16 sps:$4 sm:$0xff]  }
0x166f   : > { %v12758_v6 = vld [vmem:[%s16870_s10 + $0x220] ss:$16 sps:$4 sm:$0xff]   ;;  %v12763_v41 = vld [vmem:[%s16870_s10 + $0x4] ss:$16 sps:$4 sm:$0xff]  }
0x1670   : > { %v6788_v24 = vpop.f32.mrf.mxu0 }
0x1671   : > { %v6793_v5 = vadd.f32 %v6788_v24, %v6661_v21  ;;  %v12760_v21 = vld [vmem:[%s16870_s10 + $0x224] ss:$16 sps:$4 sm:$0xff]  }
0x1672   : > { %v12195_v60 = vpop.f32.mrf.mxu0  ;;  %v12766_v24 = vld [vmem:[%s16870_s10 + $0x204] ss:$16 sps:$4 sm:$0xff]  }
0x1673   : > { %v12764_v60 = vld [vmem:[%s16870_s10 + $0x200] ss:$16 sps:$4 sm:$0xff]  }
0x1674   : > { %v6839_v12 = vpop.f32.mrf.mxu1 }
0x1676   : > { %v12204_v40 = vpop.f32.mrf.mxu1 }
0x1677   : > { %v12772_v40 = vld [vmem:[%s16870_s10 + $0x3e4] ss:$16 sps:$4 sm:$0xff]  }
0x1678   : > { %v6842_v25 = vpop.f32.mrf.mxu1  ;;  %v6971_v57 = vpop.f32.mrf.mxu0 }
0x1679   : > { %v6846_v33 = vpack.c.bf16 %v6842_v25, %v6839_v12  ;;  %v12769_v12 = vld [vmem:[%s16870_s10 + $0x1e4] ss:$16 sps:$4 sm:$0xff]   ;;  %v12767_v25 = vld [vmem:[%s16870_s10 + $0x1e0] ss:$16 sps:$4 sm:$0xff]  }
0x167a   : > { %v12226_v62 = vpop.f32.mrf.mxu0  ;;  %v12205_v54 = vpop.f32.mrf.mxu1 }
0x167b   : > { %12215 = vmatmul.mubr.msk.bf16.vlgmr.msra.gmra.mxu1 %vm1322_vm1, %v6846_v33  ;;  %v12775_v33 = vld [vmem:[%s16870_s10 + $0x1c4] ss:$16 sps:$4 sm:$0xff]   ;;  %v12773_v54 = vld [vmem:[%s16870_s10 + $0x1c0] ss:$16 sps:$4 sm:$0xff]  }
0x167c   : > { %12241 = vmatpush3.bf16.msra.mxu1 %v15525_v45  ;;  %v6974_v11 = vpop.f32.mrf.mxu0  ;;  %12246 = vmatprep.mubr.msk.bf16.mxu1 %vm13214_vm0, %v13213_v22  ;;  %v12715_v45 = vld [vmem:[%s16868_s8 + $0x118] sm:$0xff]   ;;  %v12778_v62 = vld [vmem:[%s16870_s10 + $0x3c4] ss:$16 sps:$4 sm:$0xff]  }
0x167d   : > { %v6978_v17 = vpack.c.bf16 %v6974_v11, %v6971_v57  ;;  %12242 = vmatprep.subr.bf16.mxu1 %v13213_v22  ;;  %v12770_v57 = vld [vmem:[%s16870_s10 + $0x3e0] ss:$16 sps:$4 sm:$0xff]  }
0x167e   : > { %v12227_v34 = vpop.f32.mrf.mxu0  ;;  %v12776_v11 = vld [vmem:[%s16870_s10 + $0x3c0] ss:$16 sps:$4 sm:$0xff]  }
0x167f   : > { %12237 = vmatmul.mubr.msk.bf16.vlgmr.msra.gmra.mxu0 %vm1322_vm1, %v6978_v17  ;;  %v7201_v17 = vlaneseq  ;;  %v13216_v34 = vmov 1966171168  }
0x1680   : > { %12243 = vmatpush3.bf16.msra.mxu1 %v15523_v29  ;;  %v12716_v29 = vld [vmem:[%s16868_s8 + $0x110] sm:$0xff]   ;;  %8963 = vmatpush1.bf16.msra.mxu0 %v12719_v23 }
0x1681   : > { %12244 = vmatprep.subr.bf16.mxu1 %v13213_v22  ;;  %8964 = vmatprep.subr.bf16.mxu0 %v12727_v4  ;;  %vm15953_vm7 = vcmp.lt.s32.totalorder %v7201_v17, 64  ;;  %v12788_v23 = vld [vmem:[%s16870_s10 + $0x380] ss:$16 sps:$4 sm:$0xff]   ;;  %vm7232_vm8 = vcmp.ge.s32.totalorder %v7201_v17, 64  ;;  %vm7233_vm9 = vcmp.lt.s32.totalorder %v7201_v17, 128 }
0x1682   : > { %vm16062_vm10 = vmand %vm7232_vm8, %vm7233_vm9 }
0x1684   : > { %12245 = vmatpush3.bf16.msra.mxu1 %v15521_v20  ;;  %v12717_v20 = vld [vmem:[%s16868_s8 + $0x108] sm:$0xff]   ;;  %8965 = vmatpush1.bf16.msra.mxu0 %v12725_v59 }
0x1685   : > { %12250 = vmatprep.subr.bf16.mxu1 %v13213_v22  ;;  %8966 = vmatprep.subr.bf16.mxu0 %v12733_v14  ;;  %v12796_v14 = vld [vmem:[%s16870_s10 + $0x364] ss:$16 sps:$4 sm:$0xff]  }
0x1687   : > { %12247 = vmatmul.mubr.msk.bf16.vlgmr.msra.gmra.mxu1 %vm6010_vm6, %v12714_v13  ;;  %v7208_v13 = vunpack.c.l.s4 %v13216_v34 }
0x1688   : > { %12258 = vmatprep.mubr.msk.bf16.mxu1 %vm13214_vm0, %v13213_v22  ;;  %12251 = vmatpush3.bf16.msra.mxu1 %v12715_v45 }
0x1689   : > { %12252 = vmatprep.subr.bf16.mxu1 %v13213_v22  ;;  %8967 = vmatpush1.bf16.msra.mxu0 %v12731_v2  ;;  %v7209_v45 = vunpack.c.0.s8 %v7208_v13  ;;  %v12794_v2 = vld [vmem:[%s16870_s10 + $0x360] ss:$16 sps:$4 sm:$0xff]  }
0x168a   : > { %8968 = vmatprep.subr.bf16.mxu0 %v12739_v26  ;;  %v12809_v13 = vld [vmem:[%s16870_s10 + $0x100] ss:$16 sps:$4 sm:$0xff]  }
0x168c   : > { %12253 = vmatpush3.bf16.msra.mxu1 %v12716_v29  ;;  %v15931_v29 = vshrl.u32 %v7201_v17, 7 }
0x168d   : > { %12254 = vmatprep.subr.bf16.mxu1 %v13213_v22  ;;  %8969 = vmatpush1.bf16.msra.mxu0 %v12737_v31 }
0x168e   : > { %8970 = vmatprep.subr.bf16.mxu0 %v12745_v19 }
0x1690   : > { %12255 = vmatpush3.bf16.msra.mxu1 %v12717_v20 }
0x1691   : > { %12256 = vmatprep.subr.bf16.mxu1 %v13213_v22  ;;  %8971 = vmatpush1.bf16.msra.mxu0 %v12743_v37 }
0x1692   : > { %8972 = vmatprep.subr.bf16.mxu0 %v12751_v51  ;;  %v12799_v51 = vld [vmem:[%s16870_s10 + $0x144] ss:$16 sps:$4 sm:$0xff]  }
0x1694   : > { %12257 = vmatpush3.bf16.msra.mxu1 %v12718_v7  ;;  %v10538_v7 = vld [vmem:[%s16869_s9] ss:$0 sm:$0xff] }
0x1695   : > { %9003 = vmatprep.subr.bf16.mxu1 %v12724_v35  ;;  %8973 = vmatpush1.bf16.msra.mxu0 %v12749_v10 }
0x1696   : > { %8974 = vmatprep.subr.bf16.mxu0 %v12757_v16  ;;  %v12797_v16 = vld [vmem:[%s16870_s10 + $0x140] ss:$16 sps:$4 sm:$0xff]  }
0x173b   : > { %v6917_v30 = vpop.f32.mrf.mxu1 }
0x173c   : > { %v6924_v0 = vadd.f32 %v6917_v30, %v6792_v50  ;;  %v12755_v50 = vld [vmem:[%s16870_s10 + $0x20] ss:$16 sps:$4 sm:$0xff]  }
0x173d   : > { %v12216_v8 = vpop.f32.mrf.mxu1  ;;  %8975 = vmatpush1.bf16.msra.mxu0 %v12755_v50 }
0x173e   : > { %8976 = vmatprep.subr.bf16.mxu0 %v12763_v41  ;;  %v12784_v8 = vld [vmem:[%s16870_s10 + $0x3a4] ss:$16 sps:$4 sm:$0xff]  }
0x173f   : > { %v6920_v44 = vpop.f32.mrf.mxu1  ;;  %v7049_v61 = vpop.f32.mrf.mxu0  ;;  %v12805_v41 = vld [vmem:[%s16870_s10 + $0x124] ss:$16 sps:$4 sm:$0xff]  }
0x1740   : > { %v6925_v15 = vadd.f32 %v6920_v44, %v6793_v5  ;;  %v15805_v18 = vadd.f32 %v7049_v61, %v6924_v0  ;;  %v12761_v5 = vld [vmem:[%s16870_s10] ss:$16 sps:$4 sm:$0xff]   ;;  %v12781_v0 = vld [vmem:[%s16870_s10 + $0x1a4] ss:$16 sps:$4 sm:$0xff]  }
0x1741   : > { %v12238_v3 = vpop.f32.mrf.mxu0  ;;  %v12217_v36 = vpop.f32.mrf.mxu1  ;;  %8977 = vmatpush1.bf16.msra.mxu0 %v12761_v5  ;;  %v12779_v61 = vld [vmem:[%s16870_s10 + $0x1a0] ss:$16 sps:$4 sm:$0xff]  }
0x1742   : > { %8978 = vmatprep.subr.bf16.mxu0 %v12769_v12 }
0x1743   : > { %v7052_v63 = vpop.f32.mrf.mxu0 }
0x1744   : > { %v15807_v43 = vadd.f32 %v7052_v63, %v6925_v15  ;;  %v12782_v15 = vld [vmem:[%s16870_s10 + $0x3a0] ss:$16 sps:$4 sm:$0xff]   ;;  %v7362_v63 = vsub.s32 1, %v15931_v29 }
0x1745   : > { %v12239_v55 = vpop.f32.mrf.mxu0  ;;  %8979 = vmatpush2.bf16.msra.mxu0 %v12767_v25 }
0x1746   : > { %8980 = vmatprep.subr.bf16.mxu0 %v12775_v33  ;;  %v12806_v33 = vld [vmem:[%s16870_s10 + $0x320] ss:$16 sps:$4 sm:$0xff]  }
0x1747   : > { %v7103_v22 = vpop.f32.mrf.mxu1 }
0x1749   : > { %v12248_v42 = vpop.f32.mrf.mxu1  ;;  %8981 = vmatpush2.bf16.msra.mxu0 %v12773_v54  ;;  %v12814_v54 = vld [vmem:[%s16870_s10 + $0x304] ss:$16 sps:$4 sm:$0xff]  }
0x174a   : > { %8982 = vmatprep.subr.bf16.mxu0 %v12781_v0  ;;  %v12787_v42 = vld [vmem:[%s16870_s10 + $0x184] ss:$16 sps:$4 sm:$0xff]  }
0x174b   : > { %v7106_v28 = vpop.f32.mrf.mxu1  ;;  %v12874_v0 = vld [vmem:[%s16870_s10 + $0x7c4] ss:$16 sps:$4 sm:$0xff]  }
0x174c   : > { %v7110_v32 = vpack.c.bf16 %v7106_v28, %v7103_v22  ;;  %v12790_v28 = vld [vmem:[%s16870_s10 + $0x384] ss:$16 sps:$4 sm:$0xff]  }
0x174d   : > { %v12249_v38 = vpop.f32.mrf.mxu1  ;;  %8983 = vmatpush2.bf16.msra.mxu0 %v12779_v61 }
0x174e   : > { %12259 = vmatmul.mubr.msk.bf16.vlgmr.msra.gmra.mxu1 %vm1322_vm1, %v7110_v32  ;;  %v12785_v38 = vld [vmem:[%s16870_s10 + $0x180] ss:$16 sps:$4 sm:$0xff]   ;;  %8984 = vmatprep.subr.bf16.mxu0 %v12787_v42  ;;  %v7366_v42 = vsub.s32 2, %v15931_v29 }
0x174f   : > { %9004 = vmatpush1.bf16.msra.mxu1 %v12722_v27 }
0x1750   : > { %9005 = vmatprep.subr.bf16.mxu1 %v12730_v39 }
0x1751   : > { %8985 = vmatpush2.bf16.msra.mxu0 %v12785_v38 }
0x1753   : > { %9006 = vmatpush1.bf16.msra.mxu1 %v12728_v58  ;;  %v12793_v58 = vld [vmem:[%s16870_s10 + $0x164] ss:$16 sps:$4 sm:$0xff]  }
0x1754   : > { %9007 = vmatprep.subr.bf16.mxu1 %v12736_v53  ;;  %v12791_v53 = vld [vmem:[%s16870_s10 + $0x160] ss:$16 sps:$4 sm:$0xff]   ;;  %8986 = vmatprep.subr.bf16.mxu0 %v12793_v58 }
0x1755   : > { %8987 = vmatpush2.bf16.msra.mxu0 %v12791_v53  ;;  %v12815_v58 = vld [vmem:[%s16870_s10 + $0x4e0] ss:$16 sps:$4 sm:$0xff]  }
0x1756   : > { %8988 = vmatprep.subr.bf16.mxu0 %v12799_v51  ;;  %v12830_v51 = vld [vmem:[%s16870_s10 + $0x6a0] ss:$16 sps:$4 sm:$0xff]  }
0x1757   : > { %9008 = vmatpush1.bf16.msra.mxu1 %v12734_v9 }
0x1758   : > { %9009 = vmatprep.subr.bf16.mxu1 %v12742_v49 }
0x1759   : > { %8989 = vmatpush2.bf16.msra.mxu0 %v12797_v16  ;;  %v12836_v16 = vld [vmem:[%s16870_s10 + $0x680] ss:$16 sps:$4 sm:$0xff]  }
0x175a   : > { %8990 = vmatprep.subr.bf16.mxu0 %v12805_v41  ;;  %v12842_v41 = vld [vmem:[%s16870_s10 + $0x660] ss:$16 sps:$4 sm:$0xff]  }
0x175b   : > { %9010 = vmatpush1.bf16.msra.mxu1 %v12740_v48 }
0x175c   : > { %9011 = vmatprep.subr.bf16.mxu1 %v12748_v56 }
0x175f   : > { %9012 = vmatpush1.bf16.msra.mxu1 %v12746_v47 }
0x1760   : > { %9013 = vmatprep.subr.bf16.mxu1 %v12754_v46  ;;  %v12802_v46 = vld [vmem:[%s16870_s10 + $0x344] ss:$16 sps:$4 sm:$0xff]  }
0x1763   : > { %9014 = vmatpush1.bf16.msra.mxu1 %v12752_v1 }
0x1764   : > { %9015 = vmatprep.subr.bf16.mxu1 %v12760_v21  ;;  %v12800_v21 = vld [vmem:[%s16870_s10 + $0x340] ss:$16 sps:$4 sm:$0xff]  }
0x1767   : > { %9016 = vmatpush1.bf16.msra.mxu1 %v12758_v6 }
0x1768   : > { %9017 = vmatprep.subr.bf16.mxu1 %v12766_v24  ;;  %v12808_v24 = vld [vmem:[%s16870_s10 + $0x324] ss:$16 sps:$4 sm:$0xff]  }
0x176b   : > { %9018 = vmatpush1.bf16.msra.mxu1 %v12764_v60 }
0x176c   : > { %9019 = vmatprep.subr.bf16.mxu1 %v12772_v40 }
0x176f   : > { %9020 = vmatpush2.bf16.msra.mxu1 %v12770_v57  ;;  %v12803_v57 = vld [vmem:[%s16870_s10 + $0x120] ss:$16 sps:$4 sm:$0xff]  }
0x1770   : > { %9021 = vmatprep.subr.bf16.mxu1 %v12778_v62  ;;  %v12811_v62 = vld [vmem:[%s16870_s10 + $0x104] ss:$16 sps:$4 sm:$0xff]   ;;  %8991 = vmatpush2.bf16.msra.mxu0 %v12803_v57  ;;  %v12851_v57 = vld [vmem:[%s16870_s10 + $0x420] ss:$16 sps:$4 sm:$0xff]  }
0x1771   : > { %8992 = vmatprep.subr.bf16.mxu0 %v12811_v62  ;;  %v12859_v62 = vld [vmem:[%s16870_s10 + $0x404] ss:$16 sps:$4 sm:$0xff]  }
0x1773   : > { %9022 = vmatpush2.bf16.msra.mxu1 %v12776_v11 }
0x1774   : > { %9023 = vmatprep.subr.bf16.mxu1 %v12784_v8  ;;  %8993 = vmatpush2.bf16.msra.mxu0 %v12809_v13  ;;  %v12865_v13 = vld [vmem:[%s16870_s10 + $0x5e4] ss:$16 sps:$4 sm:$0xff]  }
0x1777   : > { %9024 = vmatpush2.bf16.msra.mxu1 %v12782_v15 }
0x1778   : > { %9025 = vmatprep.subr.bf16.mxu1 %v12790_v28  ;;  %v7378_v28 = vsub.s32 5, %v15931_v29 }
0x177b   : > { %9026 = vmatpush2.bf16.msra.mxu1 %v12788_v23 }
0x177c   : > { %9027 = vmatprep.subr.bf16.mxu1 %v12796_v14  ;;  %v12818_v14 = vld [vmem:[%s16870_s10 + $0x6e0] ss:$16 sps:$4 sm:$0xff]  }
0x177f   : > { %9028 = vmatpush2.bf16.msra.mxu1 %v12794_v2 }
0x1780   : > { %9029 = vmatprep.subr.bf16.mxu1 %v12802_v46  ;;  %v12835_v46 = vld [vmem:[%s16870_s10 + $0x484] ss:$16 sps:$4 sm:$0xff]  }
0x1783   : > { %9030 = vmatpush2.bf16.msra.mxu1 %v12800_v21  ;;  %v12841_v21 = vld [vmem:[%s16870_s10 + $0x464] ss:$16 sps:$4 sm:$0xff]  }
0x1784   : > { %9031 = vmatprep.subr.bf16.mxu1 %v12808_v24  ;;  %v12847_v24 = vld [vmem:[%s16870_s10 + $0x444] ss:$16 sps:$4 sm:$0xff]  }
0x1787   : > { %9032 = vmatpush2.bf16.msra.mxu1 %v12806_v33  ;;  %v12854_v33 = vld [vmem:[%s16870_s10 + $0x620] ss:$16 sps:$4 sm:$0xff]  }
0x1788   : > { %9033 = vmatprep.subr.bf16.mxu1 %v12814_v54  ;;  %v12862_v54 = vld [vmem:[%s16870_s10 + $0x604] ss:$16 sps:$4 sm:$0xff]  }
0x180e   : > { %v7181_v20 = vpop.f32.mrf.mxu1 }
0x180f   : > { %v7188_v30 = vadd.f32 %v7181_v20, %v15805_v18  ;;  %v15950_v18 = vsub.s32 %v7209_v45, %v15931_v29  ;;  %v12812_v45 = vld [vmem:[%s16870_s10 + $0x300] ss:$16 sps:$4 sm:$0xff]  }
0x1810   : > { %v12260_v44 = vpop.f32.mrf.mxu1  ;;  %9034 = vmatpush2.bf16.msra.mxu1 %v12812_v45  ;;  %v12868_v45 = vld [vmem:[%s16870_s10 + $0x7e4] ss:$16 sps:$4 sm:$0xff]  }
0x1811   : > { %v7197_v3 = vadd.f32 %v10538_v7, %v7188_v30  ;;  %v12820_v30 = vld [vmem:[%s16870_s10 + $0x6e4] ss:$16 sps:$4 sm:$0xff]  }
0x1812   : > { %v7184_v36 = vpop.f32.mrf.mxu1  ;;  %9085 = vmatprep.subr.bf16.mxu1 %v12820_v30  ;;  %v12871_v30 = vld [vmem:[%s16870_s10 + $0x5c4] ss:$16 sps:$4 sm:$0xff]  }
0x1813   : > { %v7199_v55 = vmax.f32 %v7197_v3, 0.0  ;;  %v7189_v22 = vadd.f32 %v7184_v36, %v15807_v43 }
0x1814   : > { %v12261_v32 = vpop.f32.mrf.mxu1 }
0x1815   : > { %v7198_v52 = vadd.f32 %v10538_v7, %v7189_v22  ;;  %v7213_v43 = vrot.slane %v7199_v55, %v15950_v18  ;;  %v7244_v27 = vcombine.high %v7199_v55, %v7199_v55  ;;  %7205 = vst.msk [vmem:[#allocation2] sm:$0x1] %vm15953_vm7, %v7199_v55  ;;  %v12817_v7 = vld [vmem:[%s16870_s10 + $0x4e4] ss:$16 sps:$4 sm:$0xff]   ;;  %v7370_v55 = vsub.s32 3, %v15931_v29 }
0x1816   : > { %9044 = vmatprep.subr.bf16.mxu0 %v12817_v7  ;;  %v7358_v22 = vsub.s32 0, %v15931_v29  ;;  %v7386_v32 = vsub.s32 7, %v15931_v29  ;;  %v12866_v7 = vld [vmem:[%s16870_s10 + $0x7e0] ss:$16 sps:$4 sm:$0xff]  }
0x1817   : > { %v7200_v35 = vmax.f32 %v7198_v52, 0.0  ;;  %v7214_v4 = vcombine.high %v7213_v43, %v7213_v43  ;;  %v7251_v39 = vrot.slane %v7244_v27, %v15950_v18  ;;  %v7221_v59 = vrot.slane %v7213_v43, %v15950_v18 }
0x1819   : > { %v7289_v9 = vrot.slane %v7200_v35, %v15950_v18  ;;  %v7317_v26 = vcombine.high %v7200_v35, %v7200_v35  ;;  %v7228_v49 = vrot.slane %v7214_v4, %v15950_v18  ;;  %v7261_v31 = vcombine.high %v7251_v39, %v7251_v39  ;;  %7281 = vst.msk [vmem:[#allocation2 + $0x4] sm:$0x1] %vm15953_vm7, %v7200_v35 }
0x181a   : > { %v7258_v48 = vrot.slane %v7251_v39, %v15950_v18  ;;  %v7236_v19 = vcombine.high %v7221_v59, %v7221_v59 }
0x181b   : > { %7229 = vrot.lane.b32.xlu0 %v7228_v49, %s13217_s18  ;;  %v7268_v56 = vrot.slane %v7261_v31, %v15950_v18  ;;  %v7290_v37 = vcombine.high %v7289_v9, %v7289_v9  ;;  %v7324_v47 = vrot.slane %v7317_v26, %v15950_v18  ;;  %v7297_v1 = vrot.slane %v7289_v9, %v15950_v18  ;;  %v12823_v9 = vld [vmem:[%s16870_s10 + $0x4c4] ss:$16 sps:$4 sm:$0xff]  }
0x181c   : > { %7260 = vst.msk [vmem:[#allocation2 + $0x2] sm:$0x1] %vm15953_vm7, %v7258_v48  ;;  %7238 = vst.msk [vmem:[#allocation2 + $0x1] sm:$0x1] %vm15953_vm7, %v7236_v19  ;;  %v7273_v10 = vcombine.high %v7258_v48, %v7258_v48  ;;  %v7239_v50 = vcombine.high %v7228_v49, %v7228_v49  ;;  %v12826_v26 = vld [vmem:[%s16870_s10 + $0x6c4] ss:$16 sps:$4 sm:$0xff]  }
0x181d   : > { %7269 = vrot.lane.b32.xlu1 %v7268_v56, %s13217_s18  ;;  %v7331_v6 = vrot.slane %v7324_v47, %v15950_v18  ;;  %v7276_v5 = vcombine.high %v7268_v56, %v7268_v56  ;;  %v7309_v60 = vcombine.high %v7297_v1, %v7297_v1  ;;  %v7304_v12 = vrot.slane %v7290_v37, %v15950_v18  ;;  %v12821_v48 = vld [vmem:[%s16870_s10 + $0x4c0] ss:$16 sps:$4 sm:$0xff]   ;;  %v12829_v56 = vld [vmem:[%s16870_s10 + $0x4a4] ss:$16 sps:$4 sm:$0xff]  }
0x181e   : > { %7275 = vst.msk [vmem:[#allocation2 + $0x3] sm:$0x1] %vm15953_vm7, %v7273_v10  ;;  %v7334_v40 = vcombine.high %v7324_v47, %v7324_v47  ;;  %v12824_v19 = vld [vmem:[%s16870_s10 + $0x6c0] ss:$16 sps:$4 sm:$0xff]   ;;  %v12832_v37 = vld [vmem:[%s16870_s10 + $0x6a4] ss:$16 sps:$4 sm:$0xff]  }
0x181f   : > { %7240 = vrot.lane.b32.xlu0 %v7239_v50, %s13217_s18  ;;  %7333 = vst.msk [vmem:[#allocation2 + $0x6] sm:$0x1] %vm15953_vm7, %v7331_v6  ;;  %v7346_v25 = vcombine.high %v7331_v6, %v7331_v6  ;;  %7311 = vst.msk [vmem:[#allocation2 + $0x5] sm:$0x1] %vm15953_vm7, %v7309_v60  ;;  %v7312_v11 = vcombine.high %v7304_v12, %v7304_v12  ;;  %v12827_v47 = vld [vmem:[%s16870_s10 + $0x4a0] ss:$16 sps:$4 sm:$0xff]  }
0x1820   : > { %v7341_v34 = vrot.slane %v7334_v40, %v15950_v18  ;;  %v12838_v10 = vld [vmem:[%s16870_s10 + $0x684] ss:$16 sps:$4 sm:$0xff]   ;;  %v12833_v1 = vld [vmem:[%s16870_s10 + $0x480] ss:$16 sps:$4 sm:$0xff]  }
0x1821   : > { %7277 = vrot.lane.b32.xlu1 %v7276_v5, %s13217_s18  ;;  %7348 = vst.msk [vmem:[#allocation2 + $0x7] sm:$0x1] %vm15953_vm7, %v7346_v25  ;;  %v12844_v50 = vld [vmem:[%s16870_s10 + $0x664] ss:$16 sps:$4 sm:$0xff]   ;;  %v12839_v6 = vld [vmem:[%s16870_s10 + $0x460] ss:$16 sps:$4 sm:$0xff]  }
0x1822   : > { %v7349_v20 = vcombine.high %v7341_v34, %v7341_v34  ;;  %v12850_v5 = vld [vmem:[%s16870_s10 + $0x644] ss:$16 sps:$4 sm:$0xff]   ;;  %v12845_v60 = vld [vmem:[%s16870_s10 + $0x440] ss:$16 sps:$4 sm:$0xff]  }
0x1823   : > { %7305 = vrot.lane.b32.xlu0 %v7304_v12, %s13217_s18  ;;  %v12848_v12 = vld [vmem:[%s16870_s10 + $0x640] ss:$16 sps:$4 sm:$0xff]   ;;  %v12853_v40 = vld [vmem:[%s16870_s10 + $0x424] ss:$16 sps:$4 sm:$0xff]  }
0x1824   : > { %v12856_v25 = vld [vmem:[%s16870_s10 + $0x624] ss:$16 sps:$4 sm:$0xff]  }
0x1825   : > { %7313 = vrot.lane.b32.xlu1 %v7312_v11, %s13217_s18  ;;  %v12857_v11 = vld [vmem:[%s16870_s10 + $0x400] ss:$16 sps:$4 sm:$0xff]  }
0x1827   : > { %7342 = vrot.lane.b32.xlu0 %v7341_v34, %s13217_s18  ;;  %v12860_v34 = vld [vmem:[%s16870_s10 + $0x600] ss:$16 sps:$4 sm:$0xff]  }
0x1829   : > { %7350 = vrot.lane.b32.xlu1 %v7349_v20, %s13217_s18  ;;  %v12863_v20 = vld [vmem:[%s16870_s10 + $0x5e0] ss:$16 sps:$4 sm:$0xff]   ;;  %s9650_s18 = sshll.u32 %s459_s26, 4  ;;  %s9651_s18 = int_to_ptr.vmem [resolvable:$true] %s9650_s18 }
0x182a   : > { %s13151_s0 = scalar_lea.vmem %s9651_s18, 16  ;;  %p13158_p0 = scmp.lt.s32.totalorder %s9651_s18, %s13156_s15 }
0x182b   : > { %p13152_p11 = scmp.ne.s32.totalorder %s9651_s18, %s13151_s0  ;;  %p13159_p1 = scmp.lt.s32.totalorder %s13157_s22, %s13151_s0 }
0x182d   : > { %p13153_p12 = pnand %p13152_p11, %p13332_p5  ;;  %p13160_p2 = por %p13159_p1, %p13158_p0 }
0x182f   : > { %p13154_p13 = pneg %p13153_p12 }
0x1831   : > { %p13161_p3 = pnand %p13160_p2, %p13154_p13 }
0x188d   : > { %v7230_v8 = vpop.permute.xlu0 %7229 }
0x188e   : > { %7235 = vst.msk [vmem:[#allocation2] sm:$0x1] %vm16062_vm10, %v7230_v8  ;;  %v12869_v8 = vld [vmem:[%s16870_s10 + $0x5c0] ss:$16 sps:$4 sm:$0xff]  }
0x188f   : > { %v7270_v44 = vpop.permute.xlu1 %7269 }
0x1890   : > { %7272 = vst.msk [vmem:[#allocation2 + $0x2] sm:$0x1] %vm16062_vm10, %v7270_v44  ;;  %v12872_v44 = vld [vmem:[%s16870_s10 + $0x7c0] ss:$16 sps:$4 sm:$0xff]  }
0x1891   : > { %v7241_v61 = vpop.permute.xlu0 %7240 }
0x1892   : > { %7243 = vst.msk [vmem:[#allocation2 + $0x1] sm:$0x1] %vm16062_vm10, %v7241_v61  ;;  %v12877_v61 = vld [vmem:[%s16870_s10 + $0x5a4] ss:$16 sps:$4 sm:$0xff]  }
0x1893   : > { %v7278_v15 = vpop.permute.xlu1 %7277 }
0x1894   : > { %7280 = vst.msk [vmem:[#allocation2 + $0x3] sm:$0x1] %vm16062_vm10, %v7278_v15  ;;  %v12880_v15 = vld [vmem:[%s16870_s10 + $0x7a4] ss:$16 sps:$4 sm:$0xff]  }
0x1895   : > { %v7306_v17 = vpop.permute.xlu0 %7305 }
0x1896   : > { %7308 = vst.msk [vmem:[#allocation2 + $0x4] sm:$0x1] %vm16062_vm10, %v7306_v17  ;;  %v12875_v17 = vld [vmem:[%s16870_s10 + $0x5a0] ss:$16 sps:$4 sm:$0xff]  }
0x1897   : > { %v7314_v3 = vpop.permute.xlu1 %7313 }
0x1898   : > { %7316 = vst.msk [vmem:[#allocation2 + $0x5] sm:$0x1] %vm16062_vm10, %v7314_v3  ;;  %v12878_v3 = vld [vmem:[%s16870_s10 + $0x7a0] ss:$16 sps:$4 sm:$0xff]  }
0x1899   : > { %v7343_v18 = vpop.permute.xlu0 %7342 }
0x189a   : > { %7345 = vst.msk [vmem:[#allocation2 + $0x6] sm:$0x1] %vm16062_vm10, %v7343_v18  ;;  %v12883_v18 = vld [vmem:[%s16870_s10 + $0x584] ss:$16 sps:$4 sm:$0xff]  }
0x189b   : > { %v7351_v36 = vpop.permute.xlu1 %7350 }
0x189c   : > { %7353 = vst.msk [vmem:[#allocation2 + $0x7] sm:$0x1] %vm16062_vm10, %v7351_v36  ;;  %v12886_v36 = vld [vmem:[%s16870_s10 + $0x784] ss:$16 sps:$4 sm:$0xff]  }
0x18a3   : > { %v16088_v38 = vld [vmem:[#allocation2] sm:$0xff] }
0x18a4   : > { %v7363_v23 = vrot.slane %v16088_v38, %v7362_v63  ;;  %v7371_v52 = vrot.slane %v16088_v38, %v7370_v55  ;;  %v7359_v43 = vrot.slane %v16088_v38, %v7358_v22  ;;  %v7367_v27 = vrot.slane %v16088_v38, %v7366_v42 }
0x18a5   : > { %v7379_v35 = vrot.slane %v16088_v38, %v7378_v28  ;;  %v7387_v4 = vrot.slane %v16088_v38, %v7386_v32  ;;  %v12881_v28 = vld [vmem:[%s16870_s10 + $0x580] ss:$16 sps:$4 sm:$0xff]  }
0x18a6   : > { %v16104_v39 = vpack.c.bf16 %v7363_v23, %v7363_v23  ;;  %v16106_v59 = vpack.c.bf16 %v7371_v52, %v7371_v52  ;;  %v16114_v53 = vpack.c.bf16 %v7359_v43, %v7359_v43  ;;  %v16116_v2 = vpack.c.bf16 %v7367_v27, %v7367_v27  ;;  %v12884_v32 = vld [vmem:[%s16870_s10 + $0x780] ss:$16 sps:$4 sm:$0xff]   ;;  %v12889_v23 = vld [vmem:[%s16870_s10 + $0x564] ss:$16 sps:$4 sm:$0xff]  }
0x18a7   : > { %v16128_v49 = vpack.c.bf16 %v7379_v35, %v7379_v35  ;;  %v16130_v31 = vpack.c.bf16 %v7387_v4, %v7387_v4  ;;  %v12892_v52 = vld [vmem:[%s16870_s10 + $0x764] ss:$16 sps:$4 sm:$0xff]   ;;  %v12887_v43 = vld [vmem:[%s16870_s10 + $0x560] ss:$16 sps:$4 sm:$0xff]  }
0x18a8   : > { %8994 = vmatprep.mubr.bf16.mxu0 %v16104_v39  ;;  %9035 = vmatprep.mubr.bf16.mxu1 %v16106_v59  ;;  %v12890_v27 = vld [vmem:[%s16870_s10 + $0x760] ss:$16 sps:$4 sm:$0xff]   ;;  %v12895_v35 = vld [vmem:[%s16870_s10 + $0x544] ss:$16 sps:$4 sm:$0xff]  }
0x18a9   : > { %8995 = vmatmul.mubr.bf16.vlgmr.msra.gmra.mxu0 %v16114_v53  ;;  %9036 = vmatmul.mubr.bf16.vlgmr.msra.gmra.mxu1 %v16116_v2  ;;  %v12898_v4 = vld [vmem:[%s16870_s10 + $0x744] ss:$16 sps:$4 sm:$0xff]  }
0x18aa   : > { %9045 = vmatpush1.bf16.msra.mxu0 %v12815_v58  ;;  %9086 = vmatpush1.bf16.msra.mxu1 %v12818_v14  ;;  %v12893_v58 = vld [vmem:[%s16870_s10 + $0x540] ss:$16 sps:$4 sm:$0xff]  }
0x18ab   : > { %9076 = vmatprep.mubr.bf16.mxu0 %v16128_v49  ;;  %9117 = vmatprep.mubr.bf16.mxu1 %v16130_v31  ;;  %v12896_v14 = vld [vmem:[%s16870_s10 + $0x740] ss:$16 sps:$4 sm:$0xff]  }
0x18ac   : > { %9046 = vmatprep.subr.bf16.mxu0 %v12823_v9  ;;  %9087 = vmatprep.subr.bf16.mxu1 %v12826_v26  ;;  %v12901_v9 = vld [vmem:[%s16870_s10 + $0x524] ss:$16 sps:$4 sm:$0xff]  }
0x18ad   : > { %v12904_v26 = vld [vmem:[%s16870_s10 + $0x724] ss:$16 sps:$4 sm:$0xff]  }
0x18ae   : > { %9047 = vmatpush1.bf16.msra.mxu0 %v12821_v48  ;;  %9088 = vmatpush1.bf16.msra.mxu1 %v12824_v19  ;;  %v12899_v48 = vld [vmem:[%s16870_s10 + $0x520] ss:$16 sps:$4 sm:$0xff]  }
0x18af   : > { %9048 = vmatprep.subr.bf16.mxu0 %v12829_v56  ;;  %9089 = vmatprep.subr.bf16.mxu1 %v12832_v37  ;;  %v12902_v19 = vld [vmem:[%s16870_s10 + $0x720] ss:$16 sps:$4 sm:$0xff]   ;;  %v12907_v56 = vld [vmem:[%s16870_s10 + $0x504] ss:$16 sps:$4 sm:$0xff]  }
0x18b0   : > { %v12910_v37 = vld [vmem:[%s16870_s10 + $0x704] ss:$16 sps:$4 sm:$0xff]  }
0x18b2   : > { %9049 = vmatpush1.bf16.msra.mxu0 %v12827_v47  ;;  %9090 = vmatpush1.bf16.msra.mxu1 %v12830_v51  ;;  %v7374_v47 = vsub.s32 4, %v15931_v29  ;;  %v7382_v51 = vsub.s32 6, %v15931_v29 }
0x18b3   : > { %9050 = vmatprep.subr.bf16.mxu0 %v12835_v46  ;;  %9091 = vmatprep.subr.bf16.mxu1 %v12838_v10  ;;  %v12905_v46 = vld [vmem:[%s16870_s10 + $0x500] ss:$16 sps:$4 sm:$0xff]  }
0x18b4   : > { %v12908_v10 = vld [vmem:[%s16870_s10 + $0x700] ss:$16 sps:$4 sm:$0xff]  }
0x18b6   : > { %9051 = vmatpush1.bf16.msra.mxu0 %v12833_v1  ;;  %9092 = vmatpush1.bf16.msra.mxu1 %v12836_v16  ;;  %v7375_v1 = vrot.slane %v16088_v38, %v7374_v47  ;;  %v7383_v16 = vrot.slane %v16088_v38, %v7382_v51  ;;  %v12914_v38 = vld [vmem:[%s16870_s10 + $0x2e8] ss:$16 sps:$4 sm:$0xff]   ;;  %v12985_v51 = vld [vmem:[%s16870_s10 + $0x16c] ss:$16 sps:$4 sm:$0xff]  }
0x18b7   : > { %9052 = vmatprep.subr.bf16.mxu0 %v12841_v21  ;;  %9093 = vmatprep.subr.bf16.mxu1 %v12844_v50  ;;  %v12913_v21 = vld [vmem:[%s16870_s10 + $0xec] ss:$16 sps:$4 sm:$0xff]   ;;  %v12980_v47 = vld [vmem:[%s16870_s10 + $0x388] ss:$16 sps:$4 sm:$0xff]  }
0x18b8   : > { %v12916_v50 = vld [vmem:[%s16870_s10 + $0x2ec] ss:$16 sps:$4 sm:$0xff]  }
0x18ba   : > { %9053 = vmatpush1.bf16.msra.mxu0 %v12839_v6  ;;  %9094 = vmatpush1.bf16.msra.mxu1 %v12842_v41  ;;  %v12911_v6 = vld [vmem:[%s16870_s10 + $0xe8] ss:$16 sps:$4 sm:$0xff]   ;;  %v16321_v41 = vpack.c.bf16 %v7375_v1, %v7375_v1 }
0x18bb   : > { %9054 = vmatprep.subr.bf16.mxu0 %v12847_v24  ;;  %9095 = vmatprep.subr.bf16.mxu1 %v12850_v5  ;;  %v16323_v24 = vpack.c.bf16 %v7383_v16, %v7383_v16  ;;  %v12919_v5 = vld [vmem:[%s16870_s10 + $0xcc] ss:$16 sps:$4 sm:$0xff]   ;;  %v12986_v1 = vld [vmem:[%s16870_s10 + $0x368] ss:$16 sps:$4 sm:$0xff]  }
0x18bc   : > { %v12991_v16 = vld [vmem:[%s16870_s10 + $0x14c] ss:$16 sps:$4 sm:$0xff]  }
0x18be   : > { %9055 = vmatpush1.bf16.msra.mxu0 %v12845_v60  ;;  %9096 = vmatpush1.bf16.msra.mxu1 %v12848_v12  ;;  %v12922_v60 = vld [vmem:[%s16870_s10 + $0x2cc] ss:$16 sps:$4 sm:$0xff]   ;;  %v12917_v12 = vld [vmem:[%s16870_s10 + $0xc8] ss:$16 sps:$4 sm:$0xff]  }
0x18bf   : > { %9056 = vmatprep.subr.bf16.mxu0 %v12853_v40  ;;  %9097 = vmatprep.subr.bf16.mxu1 %v12856_v25  ;;  %v12920_v40 = vld [vmem:[%s16870_s10 + $0x2c8] ss:$16 sps:$4 sm:$0xff]   ;;  %v12925_v25 = vld [vmem:[%s16870_s10 + $0xac] ss:$16 sps:$4 sm:$0xff]  }
0x18c2   : > { %9057 = vmatpush1.bf16.msra.mxu0 %v12851_v57  ;;  %9098 = vmatpush1.bf16.msra.mxu1 %v12854_v33  ;;  %v12923_v57 = vld [vmem:[%s16870_s10 + $0xa8] ss:$16 sps:$4 sm:$0xff]   ;;  %v12931_v33 = vld [vmem:[%s16870_s10 + $0x8c] ss:$16 sps:$4 sm:$0xff]  }
0x18c3   : > { %9058 = vmatprep.subr.bf16.mxu0 %v12859_v62  ;;  %9099 = vmatprep.subr.bf16.mxu1 %v12862_v54  ;;  %v12934_v62 = vld [vmem:[%s16870_s10 + $0x28c] ss:$16 sps:$4 sm:$0xff]   ;;  %v12929_v54 = vld [vmem:[%s16870_s10 + $0x88] ss:$16 sps:$4 sm:$0xff]  }
0x18c6   : > { %9059 = vmatpush1.bf16.msra.mxu0 %v12857_v11  ;;  %9100 = vmatpush1.bf16.msra.mxu1 %v12860_v34  ;;  %v12932_v11 = vld [vmem:[%s16870_s10 + $0x288] ss:$16 sps:$4 sm:$0xff]   ;;  %v12937_v34 = vld [vmem:[%s16870_s10 + $0x6c] ss:$16 sps:$4 sm:$0xff]  }
0x18c7   : > { %9060 = vmatprep.subr.bf16.mxu0 %v12865_v13  ;;  %9101 = vmatprep.subr.bf16.mxu1 %v12868_v45  ;;  %v12940_v13 = vld [vmem:[%s16870_s10 + $0x26c] ss:$16 sps:$4 sm:$0xff]   ;;  %v12935_v45 = vld [vmem:[%s16870_s10 + $0x68] ss:$16 sps:$4 sm:$0xff]  }
0x18ca   : > { %9061 = vmatpush2.bf16.msra.mxu0 %v12863_v20  ;;  %9102 = vmatpush2.bf16.msra.mxu1 %v12866_v7  ;;  %v12938_v20 = vld [vmem:[%s16870_s10 + $0x268] ss:$16 sps:$4 sm:$0xff]   ;;  %v12943_v7 = vld [vmem:[%s16870_s10 + $0x4c] ss:$16 sps:$4 sm:$0xff]  }
0x18cb   : > { %9062 = vmatprep.subr.bf16.mxu0 %v12871_v30  ;;  %9103 = vmatprep.subr.bf16.mxu1 %v12874_v0  ;;  %v12946_v30 = vld [vmem:[%s16870_s10 + $0x24c] ss:$16 sps:$4 sm:$0xff]   ;;  %v12941_v0 = vld [vmem:[%s16870_s10 + $0x48] ss:$16 sps:$4 sm:$0xff]  }
0x18ce   : > { %9063 = vmatpush2.bf16.msra.mxu0 %v12869_v8  ;;  %9104 = vmatpush2.bf16.msra.mxu1 %v12872_v44  ;;  %v12944_v8 = vld [vmem:[%s16870_s10 + $0x248] ss:$16 sps:$4 sm:$0xff]   ;;  %v12949_v44 = vld [vmem:[%s16870_s10 + $0x2c] ss:$16 sps:$4 sm:$0xff]  }
0x18cf   : > { %9064 = vmatprep.subr.bf16.mxu0 %v12877_v61  ;;  %9105 = vmatprep.subr.bf16.mxu1 %v12880_v15  ;;  %v12952_v61 = vld [vmem:[%s16870_s10 + $0x22c] ss:$16 sps:$4 sm:$0xff]   ;;  %v12947_v15 = vld [vmem:[%s16870_s10 + $0x28] ss:$16 sps:$4 sm:$0xff]  }
0x18d2   : > { %9065 = vmatpush2.bf16.msra.mxu0 %v12875_v17  ;;  %9106 = vmatpush2.bf16.msra.mxu1 %v12878_v3  ;;  %v12950_v17 = vld [vmem:[%s16870_s10 + $0x228] ss:$16 sps:$4 sm:$0xff]   ;;  %v12955_v3 = vld [vmem:[%s16870_s10 + $0xc] ss:$16 sps:$4 sm:$0xff]  }
0x18d3   : > { %9066 = vmatprep.subr.bf16.mxu0 %v12883_v18  ;;  %9107 = vmatprep.subr.bf16.mxu1 %v12886_v36  ;;  %v12958_v18 = vld [vmem:[%s16870_s10 + $0x20c] ss:$16 sps:$4 sm:$0xff]   ;;  %v12953_v36 = vld [vmem:[%s16870_s10 + $0x8] ss:$16 sps:$4 sm:$0xff]  }
0x18d6   : > { %9067 = vmatpush2.bf16.msra.mxu0 %v12881_v28  ;;  %9108 = vmatpush2.bf16.msra.mxu1 %v12884_v32  ;;  %v12956_v28 = vld [vmem:[%s16870_s10 + $0x208] ss:$16 sps:$4 sm:$0xff]   ;;  %v12961_v32 = vld [vmem:[%s16870_s10 + $0x1ec] ss:$16 sps:$4 sm:$0xff]  }
0x18d7   : > { %9068 = vmatprep.subr.bf16.mxu0 %v12889_v23  ;;  %9109 = vmatprep.subr.bf16.mxu1 %v12892_v52  ;;  %v12964_v23 = vld [vmem:[%s16870_s10 + $0x3ec] ss:$16 sps:$4 sm:$0xff]   ;;  %v12959_v52 = vld [vmem:[%s16870_s10 + $0x1e8] ss:$16 sps:$4 sm:$0xff]  }
0x18da   : > { %9069 = vmatpush2.bf16.msra.mxu0 %v12887_v43  ;;  %9110 = vmatpush2.bf16.msra.mxu1 %v12890_v27  ;;  %v12962_v43 = vld [vmem:[%s16870_s10 + $0x3e8] ss:$16 sps:$4 sm:$0xff]   ;;  %v12967_v27 = vld [vmem:[%s16870_s10 + $0x1cc] ss:$16 sps:$4 sm:$0xff]  }
0x18db   : > { %9070 = vmatprep.subr.bf16.mxu0 %v12895_v35  ;;  %9111 = vmatprep.subr.bf16.mxu1 %v12898_v4  ;;  %v12970_v35 = vld [vmem:[%s16870_s10 + $0x3cc] ss:$16 sps:$4 sm:$0xff]   ;;  %v12965_v4 = vld [vmem:[%s16870_s10 + $0x1c8] ss:$16 sps:$4 sm:$0xff]  }
0x18de   : > { %9071 = vmatpush2.bf16.msra.mxu0 %v12893_v58  ;;  %9112 = vmatpush2.bf16.msra.mxu1 %v12896_v14  ;;  %v12968_v58 = vld [vmem:[%s16870_s10 + $0x3c8] ss:$16 sps:$4 sm:$0xff]   ;;  %v12973_v14 = vld [vmem:[%s16870_s10 + $0x1ac] ss:$16 sps:$4 sm:$0xff]  }
0x18df   : > { %9072 = vmatprep.subr.bf16.mxu0 %v12901_v9  ;;  %9113 = vmatprep.subr.bf16.mxu1 %v12904_v26  ;;  %v12976_v9 = vld [vmem:[%s16870_s10 + $0x3ac] ss:$16 sps:$4 sm:$0xff]   ;;  %v12971_v26 = vld [vmem:[%s16870_s10 + $0x1a8] ss:$16 sps:$4 sm:$0xff]  }
0x18e2   : > { %9073 = vmatpush2.bf16.msra.mxu0 %v12899_v48  ;;  %9114 = vmatpush2.bf16.msra.mxu1 %v12902_v19  ;;  %v12974_v48 = vld [vmem:[%s16870_s10 + $0x3a8] ss:$16 sps:$4 sm:$0xff]   ;;  %v12979_v19 = vld [vmem:[%s16870_s10 + $0x18c] ss:$16 sps:$4 sm:$0xff]  }
0x18e3   : > { %9074 = vmatprep.subr.bf16.mxu0 %v12907_v56  ;;  %9115 = vmatprep.subr.bf16.mxu1 %v12910_v37  ;;  %v12982_v56 = vld [vmem:[%s16870_s10 + $0x38c] ss:$16 sps:$4 sm:$0xff]   ;;  %v12977_v37 = vld [vmem:[%s16870_s10 + $0x188] ss:$16 sps:$4 sm:$0xff]  }
0x18e6   : > { %9075 = vmatpush2.bf16.msra.mxu0 %v12905_v46  ;;  %9116 = vmatpush2.bf16.msra.mxu1 %v12908_v10  ;;  %v12988_v46 = vld [vmem:[%s16870_s10 + $0x36c] ss:$16 sps:$4 sm:$0xff]   ;;  %v12983_v10 = vld [vmem:[%s16870_s10 + $0x168] ss:$16 sps:$4 sm:$0xff]  }
0x18e7   : > { %9126 = vmatprep.subr.bf16.mxu0 %v12913_v21  ;;  %9167 = vmatprep.subr.bf16.mxu1 %v12916_v50  ;;  %v12994_v21 = vld [vmem:[%s16870_s10 + $0x34c] ss:$16 sps:$4 sm:$0xff]   ;;  %v12989_v50 = vld [vmem:[%s16870_s10 + $0x148] ss:$16 sps:$4 sm:$0xff]  }
0x18e9   : > { %9077 = vmatmul.mubr.bf16.vlgmr.msra.gmra.mxu0 %v16321_v41  ;;  %9118 = vmatmul.mubr.bf16.vlgmr.msra.gmra.mxu1 %v16323_v24 }
0x18ea   : > { %9127 = vmatpush1.bf16.msra.mxu0 %v12911_v6  ;;  %9158 = vmatprep.mubr.bf16.mxu0 %v16104_v39  ;;  %v12928_v39 = vld [vmem:[%s16870_s10 + $0x2ac] ss:$16 sps:$4 sm:$0xff]   ;;  %v12992_v6 = vld [vmem:[%s16870_s10 + $0x348] ss:$16 sps:$4 sm:$0xff]  }
0x18eb   : > { %9168 = vmatpush1.bf16.msra.mxu1 %v12914_v38  ;;  %9199 = vmatprep.mubr.bf16.mxu1 %v16106_v59  ;;  %v12926_v59 = vld [vmem:[%s16870_s10 + $0x2a8] ss:$16 sps:$4 sm:$0xff]   ;;  %v12997_v38 = vld [vmem:[%s16870_s10 + $0x12c] ss:$16 sps:$4 sm:$0xff]  }
0x18ec   : > { %9128 = vmatprep.subr.bf16.mxu0 %v12919_v5  ;;  %9169 = vmatprep.subr.bf16.mxu1 %v12922_v60  ;;  %v13000_v5 = vld [vmem:[%s16870_s10 + $0x32c] ss:$16 sps:$4 sm:$0xff]   ;;  %v12995_v60 = vld [vmem:[%s16870_s10 + $0x128] ss:$16 sps:$4 sm:$0xff]  }
0x18ee   : > { %9129 = vmatpush1.bf16.msra.mxu0 %v12917_v12  ;;  %v12998_v12 = vld [vmem:[%s16870_s10 + $0x328] ss:$16 sps:$4 sm:$0xff]  }
0x18ef   : > { %9170 = vmatpush1.bf16.msra.mxu1 %v12920_v40  ;;  %9130 = vmatprep.subr.bf16.mxu0 %v12925_v25  ;;  %v13003_v40 = vld [vmem:[%s16870_s10 + $0x10c] ss:$16 sps:$4 sm:$0xff]  }
0x18f0   : > { %9171 = vmatprep.subr.bf16.mxu1 %v12928_v39  ;;  %v13006_v25 = vld [vmem:[%s16870_s10 + $0x30c] ss:$16 sps:$4 sm:$0xff]   ;;  %v13001_v39 = vld [vmem:[%s16870_s10 + $0x108] ss:$16 sps:$4 sm:$0xff]  }
0x18f2   : > { %9131 = vmatpush1.bf16.msra.mxu0 %v12923_v57  ;;  %v13004_v57 = vld [vmem:[%s16870_s10 + $0x308] ss:$16 sps:$4 sm:$0xff]  }
0x18f3   : > { %9172 = vmatpush1.bf16.msra.mxu1 %v12926_v59  ;;  %9132 = vmatprep.subr.bf16.mxu0 %v12931_v33  ;;  %v13009_v59 = vld [vmem:[%s16870_s10 + $0x4ec] ss:$16 sps:$4 sm:$0xff]  }
0x18f4   : > { %9173 = vmatprep.subr.bf16.mxu1 %v12934_v62  ;;  %v13012_v33 = vld [vmem:[%s16870_s10 + $0x6ec] ss:$16 sps:$4 sm:$0xff]   ;;  %v13007_v62 = vld [vmem:[%s16870_s10 + $0x4e8] ss:$16 sps:$4 sm:$0xff]  }
0x18f6   : > { %9133 = vmatpush1.bf16.msra.mxu0 %v12929_v54  ;;  %v13010_v54 = vld [vmem:[%s16870_s10 + $0x6e8] ss:$16 sps:$4 sm:$0xff]  }
0x18f7   : > { %9174 = vmatpush1.bf16.msra.mxu1 %v12932_v11  ;;  %9134 = vmatprep.subr.bf16.mxu0 %v12937_v34  ;;  %v13015_v11 = vld [vmem:[%s16870_s10 + $0x4cc] ss:$16 sps:$4 sm:$0xff]  }
0x18f8   : > { %9175 = vmatprep.subr.bf16.mxu1 %v12940_v13  ;;  %v13018_v34 = vld [vmem:[%s16870_s10 + $0x6cc] ss:$16 sps:$4 sm:$0xff]   ;;  %v13013_v13 = vld [vmem:[%s16870_s10 + $0x4c8] ss:$16 sps:$4 sm:$0xff]  }
0x18fa   : > { %9135 = vmatpush1.bf16.msra.mxu0 %v12935_v45  ;;  %v13016_v45 = vld [vmem:[%s16870_s10 + $0x6c8] ss:$16 sps:$4 sm:$0xff]  }
0x18fb   : > { %9176 = vmatpush1.bf16.msra.mxu1 %v12938_v20  ;;  %9136 = vmatprep.subr.bf16.mxu0 %v12943_v7  ;;  %v13022_v20 = vld [vmem:[%s16870_s10 + $0x6a8] ss:$16 sps:$4 sm:$0xff]   ;;  %v13030_v7 = vld [vmem:[%s16870_s10 + $0x68c] ss:$16 sps:$4 sm:$0xff]  }
0x18fc   : > { %9177 = vmatprep.subr.bf16.mxu1 %v12946_v30  ;;  %v13025_v30 = vld [vmem:[%s16870_s10 + $0x488] ss:$16 sps:$4 sm:$0xff]  }
0x18fe   : > { %9137 = vmatpush1.bf16.msra.mxu0 %v12941_v0  ;;  %v13028_v0 = vld [vmem:[%s16870_s10 + $0x688] ss:$16 sps:$4 sm:$0xff]  }
0x18ff   : > { %9178 = vmatpush1.bf16.msra.mxu1 %v12944_v8  ;;  %9138 = vmatprep.subr.bf16.mxu0 %v12949_v44  ;;  %v13033_v8 = vld [vmem:[%s16870_s10 + $0x46c] ss:$16 sps:$4 sm:$0xff]  }
0x1900   : > { %9179 = vmatprep.subr.bf16.mxu1 %v12952_v61  ;;  %v13036_v44 = vld [vmem:[%s16870_s10 + $0x66c] ss:$16 sps:$4 sm:$0xff]   ;;  %v13031_v61 = vld [vmem:[%s16870_s10 + $0x468] ss:$16 sps:$4 sm:$0xff]  }
0x1902   : > { %9139 = vmatpush1.bf16.msra.mxu0 %v12947_v15  ;;  %v13034_v15 = vld [vmem:[%s16870_s10 + $0x668] ss:$16 sps:$4 sm:$0xff]  }
0x1903   : > { %9180 = vmatpush1.bf16.msra.mxu1 %v12950_v17  ;;  %9140 = vmatprep.subr.bf16.mxu0 %v12955_v3  ;;  %v13039_v17 = vld [vmem:[%s16870_s10 + $0x44c] ss:$16 sps:$4 sm:$0xff]  }
0x1904   : > { %9181 = vmatprep.subr.bf16.mxu1 %v12958_v18  ;;  %v13042_v3 = vld [vmem:[%s16870_s10 + $0x64c] ss:$16 sps:$4 sm:$0xff]   ;;  %v13037_v18 = vld [vmem:[%s16870_s10 + $0x448] ss:$16 sps:$4 sm:$0xff]  }
0x1906   : > { %9141 = vmatpush1.bf16.msra.mxu0 %v12953_v36  ;;  %v13040_v36 = vld [vmem:[%s16870_s10 + $0x648] ss:$16 sps:$4 sm:$0xff]  }
0x1907   : > { %9182 = vmatpush1.bf16.msra.mxu1 %v12956_v28  ;;  %9142 = vmatprep.subr.bf16.mxu0 %v12961_v32  ;;  %v13045_v28 = vld [vmem:[%s16870_s10 + $0x42c] ss:$16 sps:$4 sm:$0xff]  }
0x1908   : > { %9183 = vmatprep.subr.bf16.mxu1 %v12964_v23  ;;  %v13048_v32 = vld [vmem:[%s16870_s10 + $0x62c] ss:$16 sps:$4 sm:$0xff]   ;;  %v13043_v23 = vld [vmem:[%s16870_s10 + $0x428] ss:$16 sps:$4 sm:$0xff]  }
0x190a   : > { %9143 = vmatpush2.bf16.msra.mxu0 %v12959_v52  ;;  %v13046_v52 = vld [vmem:[%s16870_s10 + $0x628] ss:$16 sps:$4 sm:$0xff]  }
0x190b   : > { %9184 = vmatpush2.bf16.msra.mxu1 %v12962_v43  ;;  %9144 = vmatprep.subr.bf16.mxu0 %v12967_v27  ;;  %v13051_v43 = vld [vmem:[%s16870_s10 + $0x40c] ss:$16 sps:$4 sm:$0xff]  }
0x190c   : > { %9185 = vmatprep.subr.bf16.mxu1 %v12970_v35  ;;  %v13054_v27 = vld [vmem:[%s16870_s10 + $0x60c] ss:$16 sps:$4 sm:$0xff]   ;;  %v13049_v35 = vld [vmem:[%s16870_s10 + $0x408] ss:$16 sps:$4 sm:$0xff]  }
0x190e   : > { %9145 = vmatpush2.bf16.msra.mxu0 %v12965_v4  ;;  %v13052_v4 = vld [vmem:[%s16870_s10 + $0x608] ss:$16 sps:$4 sm:$0xff]  }
0x190f   : > { %9186 = vmatpush2.bf16.msra.mxu1 %v12968_v58  ;;  %9146 = vmatprep.subr.bf16.mxu0 %v12973_v14  ;;  %v13057_v58 = vld [vmem:[%s16870_s10 + $0x5ec] ss:$16 sps:$4 sm:$0xff]  }
0x1910   : > { %9187 = vmatprep.subr.bf16.mxu1 %v12976_v9  ;;  %v13060_v14 = vld [vmem:[%s16870_s10 + $0x7ec] ss:$16 sps:$4 sm:$0xff]   ;;  %v13055_v9 = vld [vmem:[%s16870_s10 + $0x5e8] ss:$16 sps:$4 sm:$0xff]  }
0x1912   : > { %9147 = vmatpush2.bf16.msra.mxu0 %v12971_v26  ;;  %v13058_v26 = vld [vmem:[%s16870_s10 + $0x7e8] ss:$16 sps:$4 sm:$0xff]  }
0x1913   : > { %9188 = vmatpush2.bf16.msra.mxu1 %v12974_v48  ;;  %9148 = vmatprep.subr.bf16.mxu0 %v12979_v19  ;;  %v13063_v48 = vld [vmem:[%s16870_s10 + $0x5cc] ss:$16 sps:$4 sm:$0xff]  }
0x1914   : > { %9189 = vmatprep.subr.bf16.mxu1 %v12982_v56  ;;  %v13066_v19 = vld [vmem:[%s16870_s10 + $0x7cc] ss:$16 sps:$4 sm:$0xff]   ;;  %v13061_v56 = vld [vmem:[%s16870_s10 + $0x5c8] ss:$16 sps:$4 sm:$0xff]  }
0x1916   : > { %9149 = vmatpush2.bf16.msra.mxu0 %v12977_v37  ;;  %v13064_v37 = vld [vmem:[%s16870_s10 + $0x7c8] ss:$16 sps:$4 sm:$0xff]  }
0x1917   : > { %9190 = vmatpush2.bf16.msra.mxu1 %v12980_v47  ;;  %9150 = vmatprep.subr.bf16.mxu0 %v12985_v51  ;;  %v13069_v47 = vld [vmem:[%s16870_s10 + $0x5ac] ss:$16 sps:$4 sm:$0xff]  }
0x1918   : > { %9191 = vmatprep.subr.bf16.mxu1 %v12988_v46  ;;  %v13072_v51 = vld [vmem:[%s16870_s10 + $0x7ac] ss:$16 sps:$4 sm:$0xff]   ;;  %v13067_v46 = vld [vmem:[%s16870_s10 + $0x5a8] ss:$16 sps:$4 sm:$0xff]  }
0x191a   : > { %9151 = vmatpush2.bf16.msra.mxu0 %v12983_v10  ;;  %v13070_v10 = vld [vmem:[%s16870_s10 + $0x7a8] ss:$16 sps:$4 sm:$0xff]  }
0x191b   : > { %9192 = vmatpush2.bf16.msra.mxu1 %v12986_v1  ;;  %9152 = vmatprep.subr.bf16.mxu0 %v12991_v16  ;;  %v13075_v1 = vld [vmem:[%s16870_s10 + $0x58c] ss:$16 sps:$4 sm:$0xff]  }
0x191c   : > { %9193 = vmatprep.subr.bf16.mxu1 %v12994_v21  ;;  %v13078_v16 = vld [vmem:[%s16870_s10 + $0x78c] ss:$16 sps:$4 sm:$0xff]   ;;  %v13073_v21 = vld [vmem:[%s16870_s10 + $0x588] ss:$16 sps:$4 sm:$0xff]  }
0x191e   : > { %9153 = vmatpush2.bf16.msra.mxu0 %v12989_v50  ;;  %v13076_v50 = vld [vmem:[%s16870_s10 + $0x788] ss:$16 sps:$4 sm:$0xff]  }
0x191f   : > { %9194 = vmatpush2.bf16.msra.mxu1 %v12992_v6  ;;  %9154 = vmatprep.subr.bf16.mxu0 %v12997_v38  ;;  %v13081_v6 = vld [vmem:[%s16870_s10 + $0x56c] ss:$16 sps:$4 sm:$0xff]  }
0x1920   : > { %9195 = vmatprep.subr.bf16.mxu1 %v13000_v5  ;;  %v13084_v38 = vld [vmem:[%s16870_s10 + $0x76c] ss:$16 sps:$4 sm:$0xff]   ;;  %v13079_v5 = vld [vmem:[%s16870_s10 + $0x568] ss:$16 sps:$4 sm:$0xff]  }
0x1922   : > { %9155 = vmatpush2.bf16.msra.mxu0 %v12995_v60  ;;  %v13082_v60 = vld [vmem:[%s16870_s10 + $0x768] ss:$16 sps:$4 sm:$0xff]  }
0x1923   : > { %9196 = vmatpush2.bf16.msra.mxu1 %v12998_v12  ;;  %9156 = vmatprep.subr.bf16.mxu0 %v13003_v40  ;;  %v13087_v12 = vld [vmem:[%s16870_s10 + $0x54c] ss:$16 sps:$4 sm:$0xff]  }
0x1924   : > { %9197 = vmatprep.subr.bf16.mxu1 %v13006_v25  ;;  %v13090_v40 = vld [vmem:[%s16870_s10 + $0x74c] ss:$16 sps:$4 sm:$0xff]   ;;  %v13085_v25 = vld [vmem:[%s16870_s10 + $0x548] ss:$16 sps:$4 sm:$0xff]  }
0x1926   : > { %9157 = vmatpush2.bf16.msra.mxu0 %v13001_v39  ;;  %v13088_v39 = vld [vmem:[%s16870_s10 + $0x748] ss:$16 sps:$4 sm:$0xff]  }
0x1927   : > { %9198 = vmatpush2.bf16.msra.mxu1 %v13004_v57  ;;  %9208 = vmatprep.subr.bf16.mxu0 %v13009_v59  ;;  %v13093_v57 = vld [vmem:[%s16870_s10 + $0x52c] ss:$16 sps:$4 sm:$0xff]  }
0x1928   : > { %9249 = vmatprep.subr.bf16.mxu1 %v13012_v33  ;;  %v13096_v59 = vld [vmem:[%s16870_s10 + $0x72c] ss:$16 sps:$4 sm:$0xff]   ;;  %v13091_v33 = vld [vmem:[%s16870_s10 + $0x528] ss:$16 sps:$4 sm:$0xff]  }
0x1929   : > { %9159 = vmatmul.mubr.bf16.vlgmr.msra.gmra.mxu0 %v16114_v53  ;;  %v13021_v53 = vld [vmem:[%s16870_s10 + $0x4ac] ss:$16 sps:$4 sm:$0xff]  }
0x192a   : > { %9200 = vmatmul.mubr.bf16.vlgmr.msra.gmra.mxu1 %v16116_v2  ;;  %9209 = vmatpush1.bf16.msra.mxu0 %v13007_v62  ;;  %v13024_v2 = vld [vmem:[%s16870_s10 + $0x6ac] ss:$16 sps:$4 sm:$0xff]   ;;  %v13094_v62 = vld [vmem:[%s16870_s10 + $0x728] ss:$16 sps:$4 sm:$0xff]  }
0x192b   : > { %9240 = vmatprep.mubr.bf16.mxu0 %v16128_v49  ;;  %9250 = vmatpush1.bf16.msra.mxu1 %v13010_v54  ;;  %v13019_v49 = vld [vmem:[%s16870_s10 + $0x4a8] ss:$16 sps:$4 sm:$0xff]   ;;  %v13099_v54 = vld [vmem:[%s16870_s10 + $0x50c] ss:$16 sps:$4 sm:$0xff]  }
0x192c   : > { %9281 = vmatprep.mubr.bf16.mxu1 %v16130_v31  ;;  %9210 = vmatprep.subr.bf16.mxu0 %v13015_v11  ;;  %v13027_v31 = vld [vmem:[%s16870_s10 + $0x48c] ss:$16 sps:$4 sm:$0xff]  }
0x192d   : > { %9251 = vmatprep.subr.bf16.mxu1 %v13018_v34  ;;  %v13102_v11 = vld [vmem:[%s16870_s10 + $0x70c] ss:$16 sps:$4 sm:$0xff]   ;;  %v13097_v34 = vld [vmem:[%s16870_s10 + $0x508] ss:$16 sps:$4 sm:$0xff]  }
0x192e   : > { %9211 = vmatpush1.bf16.msra.mxu0 %v13013_v13  ;;  %v13100_v13 = vld [vmem:[%s16870_s10 + $0x708] ss:$16 sps:$4 sm:$0xff]  }
0x192f   : > { %9252 = vmatpush1.bf16.msra.mxu1 %v13016_v45  ;;  %9212 = vmatprep.subr.bf16.mxu0 %v13021_v53  ;;  %v13103_v45 = vld [vmem:[%s16872_s12 + $0x78] sm:$0xff]  }
0x1930   : > { %9253 = vmatprep.subr.bf16.mxu1 %v13024_v2  ;;  %v13104_v53 = vld [vmem:[%s16872_s12 + $0x38] sm:$0xff]   ;;  %v13105_v2 = vld [vmem:[%s16872_s12 + $0x70] sm:$0xff]  }
0x1932   : > { %9213 = vmatpush1.bf16.msra.mxu0 %v13019_v49 }
0x1933   : > { %9254 = vmatpush1.bf16.msra.mxu1 %v13022_v20  ;;  %9214 = vmatprep.subr.bf16.mxu0 %v13027_v31  ;;  %v13106_v31 = vld [vmem:[%s16872_s12 + $0x30] sm:$0xff]  }
0x1934   : > { %9255 = vmatprep.subr.bf16.mxu1 %v13030_v7 }
0x1936   : > { %9215 = vmatpush1.bf16.msra.mxu0 %v13025_v30 }
0x1937   : > { %9256 = vmatpush1.bf16.msra.mxu1 %v13028_v0  ;;  %9216 = vmatprep.subr.bf16.mxu0 %v13033_v8  ;;  %v13107_v0 = vld [vmem:[%s16872_s12 + $0x68] sm:$0xff]  }
0x1938   : > { %9257 = vmatprep.subr.bf16.mxu1 %v13036_v44 }
0x193a   : > { %9217 = vmatpush1.bf16.msra.mxu0 %v13031_v61 }
0x193b   : > { %9258 = vmatpush1.bf16.msra.mxu1 %v13034_v15  ;;  %9218 = vmatprep.subr.bf16.mxu0 %v13039_v17  ;;  %v13109_v15 = vld [vmem:[%s16872_s12 + $0x60] sm:$0xff]   ;;  %v13119_v17 = vld [vmem:[%s16872_s12 + $0xf8] sm:$0xff]  }
0x193c   : > { %9259 = vmatprep.subr.bf16.mxu1 %v13042_v3  ;;  %v13120_v3 = vld [vmem:[%s16872_s12 + $0xb8] sm:$0xff]  }
0x193e   : > { %9219 = vmatpush1.bf16.msra.mxu0 %v13037_v18  ;;  %v13121_v18 = vld [vmem:[%s16872_s12 + $0xf0] sm:$0xff]  }
0x193f   : > { %9260 = vmatpush1.bf16.msra.mxu1 %v13040_v36  ;;  %9220 = vmatprep.subr.bf16.mxu0 %v13045_v28  ;;  %v13110_v36 = vld [vmem:[%s16872_s12 + $0x20] sm:$0xff]   ;;  %v13111_v28 = vld [vmem:[%s16872_s12 + $0x58] sm:$0xff]  }
0x1940   : > { %9261 = vmatprep.subr.bf16.mxu1 %v13048_v32  ;;  %v13122_v32 = vld [vmem:[%s16872_s12 + $0xb0] sm:$0xff]  }
0x1942   : > { %9221 = vmatpush1.bf16.msra.mxu0 %v13043_v23  ;;  %v13123_v23 = vld [vmem:[%s16872_s12 + $0xe8] sm:$0xff]  }
0x1943   : > { %9262 = vmatpush1.bf16.msra.mxu1 %v13046_v52  ;;  %9222 = vmatprep.subr.bf16.mxu0 %v13051_v43  ;;  %v13112_v52 = vld [vmem:[%s16872_s12 + $0x18] sm:$0xff]   ;;  %v13113_v43 = vld [vmem:[%s16872_s12 + $0x50] sm:$0xff]  }
0x1944   : > { %9263 = vmatprep.subr.bf16.mxu1 %v13054_v27  ;;  %v13124_v27 = vld [vmem:[%s16872_s12 + $0xa8] sm:$0xff]  }
0x1946   : > { %9223 = vmatpush1.bf16.msra.mxu0 %v13049_v35  ;;  %v13125_v35 = vld [vmem:[%s16872_s12 + $0xe0] sm:$0xff]  }
0x1947   : > { %9264 = vmatpush1.bf16.msra.mxu1 %v13052_v4  ;;  %9224 = vmatprep.subr.bf16.mxu0 %v13057_v58  ;;  %v13114_v4 = vld [vmem:[%s16872_s12 + $0x10] sm:$0xff]   ;;  %v13115_v58 = vld [vmem:[%s16872_s12 + $0x48] sm:$0xff]  }
0x1948   : > { %9265 = vmatprep.subr.bf16.mxu1 %v13060_v14  ;;  %v13126_v14 = vld [vmem:[%s16872_s12 + $0xa0] sm:$0xff]  }
0x194a   : > { %9225 = vmatpush2.bf16.msra.mxu0 %v13055_v9  ;;  %v13127_v9 = vld [vmem:[%s16872_s12 + $0xd8] sm:$0xff]  }
0x194b   : > { %9266 = vmatpush2.bf16.msra.mxu1 %v13058_v26  ;;  %9226 = vmatprep.subr.bf16.mxu0 %v13063_v48  ;;  %v13116_v26 = vld [vmem:[%s16872_s12 + $0x8] sm:$0xff]   ;;  %v13117_v48 = vld [vmem:[%s16872_s12 + $0x40] sm:$0xff]  }
0x194c   : > { %9267 = vmatprep.subr.bf16.mxu1 %v13066_v19  ;;  %v13128_v19 = vld [vmem:[%s16872_s12 + $0x98] sm:$0xff]  }
0x194e   : > { %9227 = vmatpush2.bf16.msra.mxu0 %v13061_v56  ;;  %v13118_v56 = vld [vmem:[%s16872_s12] sm:$0xff]  }
0x194f   : > { %9268 = vmatpush2.bf16.msra.mxu1 %v13064_v37  ;;  %9228 = vmatprep.subr.bf16.mxu0 %v13069_v47  ;;  %v7660_v37 = vld [vmem:[%s16871_s11] sm:$0xf] }
0x1950   : > { %9269 = vmatprep.subr.bf16.mxu1 %v13072_v51  ;;  %v8945_v47 = vrot.slane %v7660_v37, %v7358_v22  ;;  %v8949_v51 = vrot.slane %v7660_v37, %v7362_v63 }
0x1952   : > { %9229 = vmatpush2.bf16.msra.mxu0 %v13067_v46 }
0x1953   : > { %9270 = vmatpush2.bf16.msra.mxu1 %v13070_v10  ;;  %9230 = vmatprep.subr.bf16.mxu0 %v13075_v1 }
0x1954   : > { %9271 = vmatprep.subr.bf16.mxu1 %v13078_v16 }
0x1956   : > { %9231 = vmatpush2.bf16.msra.mxu0 %v13073_v21 }
0x1957   : > { %9272 = vmatpush2.bf16.msra.mxu1 %v13076_v50  ;;  %9232 = vmatprep.subr.bf16.mxu0 %v13081_v6  ;;  %v13129_v50 = vld [vmem:[%s16872_s12 + $0xd0] sm:$0xff]  }
0x1958   : > { %9273 = vmatprep.subr.bf16.mxu1 %v13084_v38 }
0x195a   : > { %9233 = vmatpush2.bf16.msra.mxu0 %v13079_v5  ;;  %v13130_v5 = vld [vmem:[%s16872_s12 + $0x90] sm:$0xff]  }
0x195b   : > { %9274 = vmatpush2.bf16.msra.mxu1 %v13082_v60  ;;  %9234 = vmatprep.subr.bf16.mxu0 %v13087_v12 }
0x195c   : > { %9275 = vmatprep.subr.bf16.mxu1 %v13090_v40 }
0x195e   : > { %9235 = vmatpush2.bf16.msra.mxu0 %v13085_v25 }
0x195f   : > { %9276 = vmatpush2.bf16.msra.mxu1 %v13088_v39  ;;  %9236 = vmatprep.subr.bf16.mxu0 %v13093_v57  ;;  %v13131_v39 = vld [vmem:[%s16872_s12 + $0xc8] sm:$0xff]  }
0x1960   : > { %9277 = vmatprep.subr.bf16.mxu1 %v13096_v59  ;;  %v13132_v59 = vld [vmem:[%s16872_s12 + $0x88] sm:$0xff]  }
0x1962   : > { %9237 = vmatpush2.bf16.msra.mxu0 %v13091_v33 }
0x1963   : > { %9278 = vmatpush2.bf16.msra.mxu1 %v13094_v62  ;;  %9238 = vmatprep.subr.bf16.mxu0 %v13099_v54 }
0x1964   : > { %9279 = vmatprep.subr.bf16.mxu1 %v13102_v11 }
0x1966   : > { %9239 = vmatpush2.bf16.msra.mxu0 %v13097_v34  ;;  %v13133_v34 = vld [vmem:[%s16872_s12 + $0xc0] sm:$0xff]  }
0x1967   : > { %9280 = vmatpush2.bf16.msra.mxu1 %v13100_v13  ;;  %11492 = vmatprep.subr.bf16.mxu0 %v13103_v45  ;;  %v13134_v45 = vld [vmem:[%s16872_s12 + $0x80] sm:$0xff]  }
0x1968   : > { %11514 = vmatprep.subr.bf16.mxu1 %v13119_v17 }
0x1969   : > { %9241 = vmatmul.mubr.bf16.vlgmr.msra.gmra.mxu0 %v16321_v41  ;;  %v8996_v49 = vpop.f32.mrf.mxu0  ;;  %v9037_v20 = vpop.f32.mrf.mxu1  ;;  %v13108_v41 = vld [vmem:[%s16872_s12 + $0x28] sm:$0xff]  }
0x196a   : > { %9282 = vmatmul.mubr.bf16.vlgmr.msra.gmra.mxu1 %v16323_v24  ;;  %11493 = vmatpush3.bf16.msra.mxu0 %v13104_v53  ;;  %v8997_v46 = vadd.f32 %v8996_v49, %v8945_v47 }
0x196b   : > { %v8998_v7 = vpop.f32.mrf.mxu0  ;;  %v9039_v30 = vpop.f32.mrf.mxu1  ;;  %11494 = vmatprep.subr.bf16.mxu0 %v13105_v2  ;;  %11515 = vmatpush3.bf16.msra.mxu1 %v13120_v3 }
0x196c   : > { %11516 = vmatprep.subr.bf16.mxu1 %v13121_v18  ;;  %v8999_v10 = vadd.f32 %v8998_v7, %v8949_v51  ;;  %v9038_v1 = vadd.f32 %v9037_v20, %v8997_v46 }
0x196d   : > { %v9000_v8 = vpop.f32.mrf.mxu0  ;;  %v9041_v44 = vpop.f32.mrf.mxu1 }
0x196e   : > { %11495 = vmatpush3.bf16.msra.mxu0 %v13106_v31  ;;  %v9040_v6 = vadd.f32 %v9039_v30, %v8999_v10  ;;  %v8953_v44 = vrot.slane %v7660_v37, %v7366_v42 }
0x196f   : > { %v9001_v24 = vpop.f32.mrf.mxu0  ;;  %v9042_v61 = vpop.f32.mrf.mxu1  ;;  %11496 = vmatprep.subr.bf16.mxu0 %v13107_v0  ;;  %11517 = vmatpush3.bf16.msra.mxu1 %v13122_v32 }
0x1970   : > { %11518 = vmatprep.subr.bf16.mxu1 %v13123_v23 }
0x1972   : > { %11497 = vmatpush3.bf16.msra.mxu0 %v13108_v41  ;;  %v8957_v41 = vrot.slane %v7660_v37, %v7370_v55  ;;  %v9362_v37 = vld [vmem:[%s16873_s13] sm:$0x1] }
0x1973   : > { %11498 = vmatprep.subr.bf16.mxu0 %v13109_v15  ;;  %11519 = vmatpush3.bf16.msra.mxu1 %v13124_v27 }
0x1974   : > { %11520 = vmatprep.subr.bf16.mxu1 %v13125_v35 }
0x1976   : > { %11499 = vmatpush3.bf16.msra.mxu0 %v13110_v36 }
0x1977   : > { %11500 = vmatprep.subr.bf16.mxu0 %v13111_v28  ;;  %11521 = vmatpush3.bf16.msra.mxu1 %v13126_v14 }
0x1978   : > { %11522 = vmatprep.subr.bf16.mxu1 %v13127_v9 }
0x197a   : > { %11501 = vmatpush3.bf16.msra.mxu0 %v13112_v52 }
0x197b   : > { %11502 = vmatprep.subr.bf16.mxu0 %v13113_v43  ;;  %11523 = vmatpush3.bf16.msra.mxu1 %v13128_v19 }
0x197c   : > { %11524 = vmatprep.subr.bf16.mxu1 %v13129_v50 }
0x197e   : > { %11503 = vmatpush3.bf16.msra.mxu0 %v13114_v4 }
0x197f   : > { %11504 = vmatprep.subr.bf16.mxu0 %v13115_v58  ;;  %11525 = vmatpush3.bf16.msra.mxu1 %v13130_v5 }
0x1980   : > { %11526 = vmatprep.subr.bf16.mxu1 %v13131_v39 }
0x1982   : > { %11505 = vmatpush3.bf16.msra.mxu0 %v13116_v26 }
0x1983   : > { %11506 = vmatprep.subr.bf16.mxu0 %v13117_v48  ;;  %11527 = vmatpush3.bf16.msra.mxu1 %v13132_v59 }
0x1984   : > { %11528 = vmatprep.subr.bf16.mxu1 %v13133_v34 }
0x1986   : > { %11507 = vmatpush3.bf16.msra.mxu0 %v13118_v56 }
0x1987   : > { %11529 = vmatpush3.bf16.msra.mxu1 %v13134_v45 }
0x19a9   : > { %v9078_v16 = vpop.f32.mrf.mxu0  ;;  %v9119_v21 = vpop.f32.mrf.mxu1 }
0x19aa   : > { %v9079_v38 = vadd.f32 %v9078_v16, %v9038_v1 }
0x19ab   : > { %v9080_v60 = vpop.f32.mrf.mxu0  ;;  %v9121_v22 = vpop.f32.mrf.mxu1 }
0x19ac   : > { %v9120_v12 = vadd.f32 %v9119_v21, %v9079_v38  ;;  %v9081_v63 = vadd.f32 %v9080_v60, %v9040_v6 }
0x19ad   : > { %v9082_v40 = vpop.f32.mrf.mxu0  ;;  %v9123_v25 = vpop.f32.mrf.mxu1 }
0x19ae   : > { %v9122_v57 = vadd.f32 %v9121_v22, %v9081_v63  ;;  %v9290_v33 = vmax.f32 %v9120_v12, 0.0 }
0x19af   : > { %v9083_v62 = vpop.f32.mrf.mxu0  ;;  %v9124_v54 = vpop.f32.mrf.mxu1 }
0x19b0   : > { %v9291_v11 = vmax.f32 %v9122_v57, 0.0  ;;  %v9294_v53 = vpack.c.bf16 %v9290_v33, %v9290_v33 }
0x19b2   : > { %v9295_v13 = vpack.c.bf16 %v9291_v11, %v9291_v11 }
0x19b4   : > { %9587 = vmatprep.mubr.bf16.mxu0 %v9295_v13 }
0x19b5   : > { %9588 = vmatmul.mubr.bf16.vlgmr.msra.gmra.mxu0 %v9294_v53 }
0x19e9   : > { %v9160_v2 = vpop.f32.mrf.mxu0 }
0x19ea   : > { %v9201_v49 = vpop.f32.mrf.mxu1  ;;  %v9161_v24 = vadd.f32 %v9160_v2, %v8953_v44 }
0x19eb   : > { %v9162_v20 = vpop.f32.mrf.mxu0 }
0x19ec   : > { %v9203_v31 = vpop.f32.mrf.mxu1  ;;  %v9163_v61 = vadd.f32 %v9162_v20, %v8957_v41  ;;  %v9202_v15 = vadd.f32 %v9201_v49, %v9161_v24 }
0x19ed   : > { %v9164_v7 = vpop.f32.mrf.mxu0 }
0x19ee   : > { %v9205_v30 = vpop.f32.mrf.mxu1  ;;  %v9204_v3 = vadd.f32 %v9203_v31, %v9163_v61 }
0x19ef   : > { %v9165_v0 = vpop.f32.mrf.mxu0 }
0x19f0   : > { %v9206_v8 = vpop.f32.mrf.mxu1 }
0x1a29   : > { %v9242_v17 = vpop.f32.mrf.mxu0 }
0x1a2a   : > { %v9243_v18 = vadd.f32 %v9242_v17, %v9202_v15  ;;  %v9283_v36 = vpop.f32.mrf.mxu1 }
0x1a2b   : > { %v9244_v28 = vpop.f32.mrf.mxu0 }
0x1a2c   : > { %v9284_v32 = vadd.f32 %v9283_v36, %v9243_v18  ;;  %v9245_v23 = vadd.f32 %v9244_v28, %v9204_v3  ;;  %v9285_v52 = vpop.f32.mrf.mxu1 }
0x1a2d   : > { %v9246_v43 = vpop.f32.mrf.mxu0 }
0x1a2e   : > { %v9286_v27 = vadd.f32 %v9285_v52, %v9245_v23  ;;  %v9287_v35 = vpop.f32.mrf.mxu1  ;;  %v9292_v4 = vmax.f32 %v9284_v32, 0.0 }
0x1a2f   : > { %v9247_v42 = vpop.f32.mrf.mxu0 }
0x1a30   : > { %v9293_v29 = vmax.f32 %v9286_v27, 0.0  ;;  %v9288_v55 = vpop.f32.mrf.mxu1  ;;  %v9296_v14 = vpack.c.bf16 %v9292_v4, %v9292_v4 }
0x1a32   : > { %v9297_v58 = vpack.c.bf16 %v9293_v29, %v9293_v29 }
0x1a34   : > { %9627 = vmatprep.mubr.bf16.mxu1 %v9297_v58 }
0x1a35   : > { %9628 = vmatmul.mubr.bf16.vlgmr.msra.gmra.mxu1 %v9296_v14 }
0x1a75   : > { %v11508_v9 = vpop.f32.mrf.mxu0 }
0x1a77   : > { %v11509_v26 = vpop.f32.mrf.mxu0 }
0x1a78   : > { %v11510_v48 = vadd.f32 %v11509_v26, %v11508_v9 }
0x1a79   : > { %v11511_v19 = vpop.f32.mrf.mxu0 }
0x1a7a   : > { %v9590_v46 = vadd.f32 %v11510_v48, %v9362_v37 }
0x1a7b   : > { %v11512_v56 = vpop.f32.mrf.mxu0 }
0x1af5   : > { %v11530_v47 = vpop.f32.mrf.mxu1 }
0x1af7   : > { %v11531_v51 = vpop.f32.mrf.mxu1 }
0x1af8   : > { %v11532_v10 = vadd.f32 %v11531_v51, %v11530_v47 }
0x1af9   : > { %v11533_v1 = vpop.f32.mrf.mxu1 }
0x1afa   : > { %v9630_v16 = vadd.f32 %v11532_v10, %v9590_v46 }
0x1afb   : > { %v11534_v21 = vpop.f32.mrf.mxu1 }
0x1afc   : > { %9636 = vst.msk [vmem:[%s459_s26] sm:$0x1] %vm9635_vm11, %v9630_v16 }
0x1afd   : > { %13164 = shalt.err (!%p13161_p3)
}
0x1afe   : > { %s13165_s25 = scalar_lea.hbm %s16825_s20, 16  ;;  %s13169_s27 = scalar_lea.hbm %s16874_s14, 32 }
0x1aff   : > { %p13166_p4 = scmp.ne.s32.totalorder %s16825_s20, %s13165_s25  ;;  %p13170_p9 = scmp.lt.s32.totalorder %s16825_s20, %s16874_s14 }
0x1b00   : > { %p13171_p10 = scmp.lt.s32.totalorder %s13169_s27, %s13165_s25 }
0x1b01   : > { %p13167_p7 = pnand %p13166_p4, %p13332_p5 }
0x1b02   : > { %p13172_p11 = por %p13171_p10, %p13170_p9 }
0x1b03   : > { %p13168_p8 = pneg %p13167_p7 }
0x1b05   : > { %p13173_p12 = pnand %p13172_p11, %p13168_p8 }
0x1b07   : > { %13176 = shalt.err (!%p13173_p12)
}
0x1b08   : > { %12262 = dma.vmem_to_hbm [thread:$0]  (%p13332_p5), %s9651_s18, 16, %s16825_s20, %s9638_s21  }
0x1b09 PF: > { %p12268_p13 = scmp.ge.s32.totalorder %s13211_s16, 2  ;;  %s9662_s0 = sand.u32 1, %s13199_s29  }
0x1b0a   : > { %s9663_s15 = scalar_lea.sflag [#allocation4], %s9662_s0 }
0x1b0b   : > { %p12265_p0 = pnand %p12268_p13, %p13336_p6 }
0x1b0d   : > { %p12266_p1 = pneg %p12265_p0 }
0x1b0f   : > { %13194 = dma.done.wait (%p12266_p1), %s9663_s15, 16  }
0x1b10   : > { %13196 = vsyncadd (%p12266_p1), %s9663_s15, 4294967280  ;;  %s16889_s16 = sld [smem:[#allocation7_spill]]  ;;  %s16892_s29 = smov %s13203_s30 }
0x1b11   : > { %s16890_s22 = sld [smem:[#allocation6_spill]] }
0x1b12   : > { %s16891_s15 = sld [smem:[#allocation8_spill]] }
0x1b16   : > { %p24_p2 = scmp.ge.s32.totalorder %s16889_s16, 4  }
0x1b17   : > { %s16893_s30 = smov %s16890_s22 }
0x1b18   :  { %26 = sbr.rel (!%p24_p2) target bundleno = 5 (0x5), region = 163 }
0x1b1d   :  { %9667 = vsyncpa [#allocation4], 1 }
0x1b1e   :  { %9669 = vsyncpa [#allocation4 + $0x1], 1 }

</bundles_post_ra>
